<compile_context>
chip_gen: v5e
topology: v5e:2x2
jax: 0.10.0
libtpu: 0.0.40
codegen_flags: <defaults>
</compile_context>

<pallas_src>
import functools
import math

import jax
import jax.numpy as jnp
from jax.experimental import pallas as pl
from jax.experimental.pallas import tpu as pltpu


def _layer_norm(z, w, b, eps=1e-5):
    mu = jnp.mean(z, axis=-1, keepdims=True)
    var = jnp.mean((z - mu) ** 2, axis=-1, keepdims=True)
    return (z - mu) * jax.lax.rsqrt(var + eps) * w + b


def transformer_layer_kernel(
    x_ref,      # (M, E)   M = nb*S rows (batch-major, seq within batch), f32
    wqkv_ref,   # (E, 3E)  packed QKV weight, pre-transposed, 1/sqrt(D) folded in
    bqkv_ref,   # (1, 3E)  packed QKV bias (Q part pre-scaled), f32
    wo_ref,     # (E, E)   out_proj.weight pre-transposed -> single K=E matmul
    w1_ref,     # (E, F)   linear1 weight, pre-transposed
    b1_ref,     # (1, F)
    w2_ref,     # (F, E)   linear2 weight, pre-transposed
    pe_ref,     # (8, E)   packed rows: out_b, ff2_b, ln1_w, ln1_b, ln2_w, ln2_b
    o_ref,      # (M, E)
    *,
    num_heads: int,
    seq_len: int,
    batches_per_step: int,
):
    f32 = jnp.float32
    x = x_ref[...].astype(f32)                           # (M, E)
    M, E = x.shape
    H, S, nb = num_heads, seq_len, batches_per_step
    D = E // H
    G = H * nb                                            # (head, batch) groups
    assert M == nb * S
    mm = wqkv_ref.dtype                                   # matmul operand dtype

    bo, b2 = pe_ref[0], pe_ref[1]
    g1, be1 = pe_ref[2], pe_ref[3]
    g2, be2 = pe_ref[4], pe_ref[5]

    # ---- Packed QKV projection: one (M,E)x(E,3E) MXU matmul (M = nb*S rows) --
    qkv = jnp.dot(x.astype(mm), wqkv_ref[...],
                  preferred_element_type=f32) + bqkv_ref[0]          # (M, 3E)
    qkv = qkv.astype(mm)
    q = qkv[:, 0 * E:1 * E]       # 1/sqrt(D) already folded into the weights
    k = qkv[:, 1 * E:2 * E]
    v = qkv[:, 2 * E:3 * E]

    # ---- Head/batch split -> (G, S, D), rows ordered (head, batch, seq) ------
    # H lane slices + a sublane concat + a (free, tile-aligned) leading-dim
    # regroup.  For production configs with head_dim >= 128 the slices are
    # lane-aligned; the S % 8 != 0 fallback uses per-(head,batch) pieces.
    def to_heads(t):
        cols = [t[:, h * D:(h + 1) * D] for h in range(H)]           # (M, D) x H
        if S % 8 == 0:
            return jnp.concatenate(cols, axis=0).reshape(G, S, D)
        return jnp.concatenate(
            [c[b * S:(b + 1) * S][None] for c in cols for b in range(nb)], axis=0)

    qh, kh, vh = to_heads(q), to_heads(k), to_heads(v)

    # ---- (head,batch)-batched scaled dot-product attention (f32 softmax) -----
    s = jnp.einsum('gqd,gkd->gqk', qh, kh, preferred_element_type=f32)
    s = s - jnp.max(s, axis=-1, keepdims=True)
    p = jnp.exp(s)
    p = p * pl.reciprocal(jnp.sum(p, axis=-1, keepdims=True), approx=True)
    ctx = jnp.einsum('gqk,gkd->gqd', p.astype(mm), vh,
                     preferred_element_type=f32)                      # (G, S, D)

    # ---- Reassemble heads into (M, E) and run ONE K=E output projection ------
    ctx = ctx.astype(mm)
    if S % 8 == 0:
        ctx2 = ctx.reshape(G * S, D)
        head_cols = [ctx2[h * M:(h + 1) * M, :] for h in range(H)]
    else:
        head_cols = [jnp.concatenate([ctx[h * nb + b] for b in range(nb)], axis=0)
                     for h in range(H)]
    ctx_se = jnp.concatenate(head_cols, axis=1)                       # (M, E)
    attn = jnp.dot(ctx_se, wo_ref[...], preferred_element_type=f32) + bo

    # dropout1: identity (inference)
    y = _layer_norm(x + attn, g1, be1)

    # ---- Feedforward: Linear -> ReLU -> Linear (M rows) ----------------------
    h1 = jnp.dot(y.astype(mm), w1_ref[...], preferred_element_type=f32) + b1_ref[0]
    h1 = jnp.maximum(h1, 0.0)
    ff = jnp.dot(h1.astype(mm), w2_ref[...], preferred_element_type=f32) + b2

    # dropout2: identity (inference)
    o_ref[...] = _layer_norm(y + ff, g2, be2).astype(o_ref.dtype)


def transformer_layer(x_sbe, params, num_heads, *, matmul_dtype=jnp.bfloat16):
    """Apply the TransformerLayer to seq-first input x of shape (S, B, E)."""
    S, B, E = x_sbe.shape
    H = num_heads
    assert E % H == 0, "embed_dim must be divisible by num_heads"
    D = E // H
    F = params["ff1_w"].shape[0]
    f32 = jnp.float32

    # ---- Batch folding: nb batches per grid step (M = nb*S matmul rows). -----
    # Keep >= 2 grid steps so both v7x TensorCores get work; fall back to a
    # single full-array step if the row block would not be 8-row aligned.
    nb = B // 2 if (B >= 2 and B % 2 == 0) else B
    if nb != B and (nb * S) % 8 != 0:
        nb = B
    M = nb * S
    n_steps = B // nb

    # ---- One-time layout plumbing (wrapper side) ------------------------------
    # Pre-transpose weights so every in-kernel matmul is `x @ W`, fold the
    # 1/sqrt(D) attention scale into the Q columns of the packed QKV projection,
    # cast matmul weights to bf16, and pack the E-wide bias/LayerNorm vectors.
    scale = 1.0 / math.sqrt(D)
    qkv_scale = jnp.concatenate(
        [jnp.full((E,), scale, f32), jnp.ones((2 * E,), f32)])
    wqkv = (jnp.transpose(params["in_w"]).astype(f32) * qkv_scale).astype(matmul_dtype)
    bqkv = (params["in_b"].astype(f32) * qkv_scale).reshape(1, 3 * E)
    wo = jnp.transpose(params["out_w"]).astype(matmul_dtype)        # (E, E)
    w1 = jnp.transpose(params["ff1_w"]).astype(matmul_dtype)        # (E, F)
    w2 = jnp.transpose(params["ff2_w"]).astype(matmul_dtype)        # (F, E)
    b1 = params["ff1_b"].astype(f32).reshape(1, F)
    packed_e = jnp.zeros((8, E), f32)
    for i, name in enumerate(["out_b", "ff2_b", "ln1_w", "ln1_b", "ln2_w", "ln2_b"]):
        packed_e = packed_e.at[i].set(params[name].astype(f32))

    # Activations: (S, B, E) -> (B*S, E), batch-major rows.  Wrapper-side layout
    # plumbing; gives lane-dense (M, E) blocks and a trivial row-block out_spec.
    x_rows = jnp.transpose(x_sbe.astype(f32), (1, 0, 2)).reshape(B * S, E)

    kernel = functools.partial(
        transformer_layer_kernel, num_heads=H, seq_len=S, batches_per_step=nb)

    def build(single_buffer_weights):
        if single_buffer_weights:
            # Weights/biases never change across grid steps: single-buffer them
            # (halves their VMEM footprint; matters on v7x at production sizes).
            const = lambda shape: pl.BlockSpec(
                shape, lambda i: (0,) * len(shape), pipeline_mode=pl.Buffered(1))
        else:
            const = lambda shape: pl.BlockSpec(shape, lambda i: (0,) * len(shape))
        return pl.pallas_call(
            kernel,
            out_shape=jax.ShapeDtypeStruct((B * S, E), f32),
            grid_spec=pltpu.PrefetchScalarGridSpec(
                num_scalar_prefetch=0,
                grid=(n_steps,),
                in_specs=[
                    pl.BlockSpec((M, E), lambda i: (i, 0)),
                    const((E, 3 * E)), const((1, 3 * E)),
                    const((E, E)),
                    const((E, F)), const((1, F)),
                    const((F, E)),
                    const((8, E)),
                ],
                out_specs=pl.BlockSpec((M, E), lambda i: (i, 0)),
            ),
            compiler_params=pltpu.CompilerParams(
                dimension_semantics=("parallel",),
                vmem_limit_bytes=64 * 1024 * 1024),
        )

    args = (x_rows, wqkv, bqkv, wo, w1, b1, w2, packed_e)
    try:
        out = build(True)(*args)
    except Exception:
        # Fallback for jax builds where pipeline_mode=pl.Buffered(1) is not
        # supported on the pallas_call pipeline: default double buffering.
        out = build(False)(*args)

    return jnp.transpose(out.reshape(B, S, E), (1, 0, 2))


def transformer_layer_reference(x_sbe, params, num_heads):
    """Pure-JAX f32 reference matching PyTorch semantics (dropout = identity)."""
    x = x_sbe.astype(jnp.float32)
    S, B, E = x.shape
    H = num_heads
    D = E // H

    def ln(z, w, b):
        mu = jnp.mean(z, -1, keepdims=True)
        var = jnp.mean((z - mu) ** 2, -1, keepdims=True)
        return (z - mu) * jax.lax.rsqrt(var + 1e-5) * w + b

    qkv = jnp.einsum('sbe,fe->sbf', x, params["in_w"]) + params["in_b"]
    q = qkv[..., 0 * E:1 * E].reshape(S, B, H, D) * (D ** -0.5)
    k = qkv[..., 1 * E:2 * E].reshape(S, B, H, D)
    v = qkv[..., 2 * E:3 * E].reshape(S, B, H, D)
    s = jnp.einsum('qbhd,kbhd->bhqk', q, k)
    p = jax.nn.softmax(s, axis=-1)
    ctx = jnp.einsum('bhqk,kbhd->qbhd', p, v).reshape(S, B, E)
    attn = jnp.einsum('sbe,fe->sbf', ctx, params["out_w"]) + params["out_b"]
    y = ln(x + attn, params["ln1_w"], params["ln1_b"])
    h = jax.nn.relu(jnp.einsum('sbe,fe->sbf', y, params["ff1_w"]) + params["ff1_b"])
    ff = jnp.einsum('sbf,ef->sbe', h, params["ff2_w"]) + params["ff2_b"]
    return ln(y + ff, params["ln2_w"], params["ln2_b"])


def init_params(key, embed_dim, dim_feedforward):
    """Parameters in PyTorch-native layout (nn.MultiheadAttention / nn.Linear)."""
    E, F = embed_dim, dim_feedforward
    ks = jax.random.split(key, 6)
    s = 0.02
    return {
        "in_w": (s * jax.random.normal(ks[0], (3 * E, E))).astype(jnp.float32),
        "in_b": (s * jax.random.normal(ks[1], (3 * E,))).astype(jnp.float32),
        "out_w": (s * jax.random.normal(ks[2], (E, E))).astype(jnp.float32),
        "out_b": jnp.zeros((E,), jnp.float32),
        "ff1_w": (s * jax.random.normal(ks[3], (F, E))).astype(jnp.float32),
        "ff1_b": (s * jax.random.normal(ks[4], (F,))).astype(jnp.float32),
        "ff2_w": (s * jax.random.normal(ks[5], (E, F))).astype(jnp.float32),
        "ff2_b": jnp.zeros((E,), jnp.float32),
        "ln1_w": jnp.ones((E,), jnp.float32),
        "ln1_b": jnp.zeros((E,), jnp.float32),
        "ln2_w": jnp.ones((E,), jnp.float32),
        "ln2_b": jnp.zeros((E,), jnp.float32),
    }


if __name__ == "__main__":
    # Small but lane-dense shapes: E multiple of 128, batch folds to 2 grid
    # steps of 4 batch elements (M = 64 matmul rows per step).
    SEQ, BATCH, EMBED = 16, 8, 128
    NUM_HEADS, DIM_FF = 4, 256

    key = jax.random.PRNGKey(0)
    k_x, k_p = jax.random.split(key)
    x = jax.random.normal(k_x, (SEQ, BATCH, EMBED), dtype=jnp.float32)
    params = init_params(k_p, EMBED, DIM_FF)

    out = transformer_layer(x, params, NUM_HEADS)
    out = jax.block_until_ready(out)
    assert out.shape == (SEQ, BATCH, EMBED)
    assert bool(jnp.all(jnp.isfinite(out)))

    # Parity vs pure-JAX f32 reference.  Kernel matmuls use bf16 operands with
    # f32 accumulation + approx softmax reciprocal; 2.5e-2 max-abs is ~4x
    # tighter than before and leaves margin over the expected ~5e-3 bf16 error.
    ref = transformer_layer_reference(x, params, NUM_HEADS)
    err = float(jnp.max(jnp.abs(out - ref)))
    assert err < 2.5e-2, f"max abs error vs reference too large: {err}"

    print("KERNEL_OK")
</pallas_src>

<mosaic_0001>
module attributes {stable_mosaic.version = 11 : i64} {
  func.func @transformer_layer_kernel(%arg0: i32, %arg1: memref<64x128xf32, #tpu.memory_space<vmem>>, %arg2: memref<128x384xbf16, #tpu.memory_space<vmem>>, %arg3: memref<1x384xf32, #tpu.memory_space<vmem>>, %arg4: memref<128x128xbf16, #tpu.memory_space<vmem>>, %arg5: memref<128x256xbf16, #tpu.memory_space<vmem>>, %arg6: memref<1x256xf32, #tpu.memory_space<vmem>>, %arg7: memref<256x128xbf16, #tpu.memory_space<vmem>>, %arg8: memref<8x128xf32, #tpu.memory_space<vmem>>, %arg9: memref<64x128xf32, #tpu.memory_space<vmem>>) attributes {dimension_semantics = [#tpu.dimension_semantics<parallel>], iteration_bounds = array<i64: 2>, scalar_prefetch = 0 : i64, scratch_operands = 0 : i64, tpu.core_type = #tpu.core_type<tc>, window_params = [{transform_indices = @transform_0, window_bounds = array<i64: 64, 128>}, {pipeline_mode = #tpu.pipeline_mode<synchronous>, transform_indices = @transform_1, window_bounds = array<i64: 128, 384>}, {pipeline_mode = #tpu.pipeline_mode<synchronous>, transform_indices = @transform_2, window_bounds = array<i64: 1, 384>}, {pipeline_mode = #tpu.pipeline_mode<synchronous>, transform_indices = @transform_3, window_bounds = array<i64: 128, 128>}, {pipeline_mode = #tpu.pipeline_mode<synchronous>, transform_indices = @transform_4, window_bounds = array<i64: 128, 256>}, {pipeline_mode = #tpu.pipeline_mode<synchronous>, transform_indices = @transform_5, window_bounds = array<i64: 1, 256>}, {pipeline_mode = #tpu.pipeline_mode<synchronous>, transform_indices = @transform_6, window_bounds = array<i64: 256, 128>}, {pipeline_mode = #tpu.pipeline_mode<synchronous>, transform_indices = @transform_7, window_bounds = array<i64: 8, 128>}, {transform_indices = @transform_8, window_bounds = array<i64: 64, 128>}]} {
    %c0 = arith.constant 0 : index
    %c0_0 = arith.constant 0 : index
    %0 = vector.load %arg1[%c0, %c0_0] : memref<64x128xf32, #tpu.memory_space<vmem>>, vector<64x128xf32>
    %c0_1 = arith.constant 0 : index
    %c0_2 = arith.constant 0 : index
    %1 = vector.load %arg8[%c0_1, %c0_2] : memref<8x128xf32, #tpu.memory_space<vmem>>, vector<1x128xf32>
    %2 = vector.shape_cast %1 : vector<1x128xf32> to vector<128xf32>
    %c1 = arith.constant 1 : index
    %c0_3 = arith.constant 0 : index
    %3 = vector.load %arg8[%c1, %c0_3] : memref<8x128xf32, #tpu.memory_space<vmem>>, vector<1x128xf32>
    %4 = vector.shape_cast %3 : vector<1x128xf32> to vector<128xf32>
    %c2 = arith.constant 2 : index
    %c0_4 = arith.constant 0 : index
    %5 = vector.load %arg8[%c2, %c0_4] : memref<8x128xf32, #tpu.memory_space<vmem>>, vector<1x128xf32>
    %6 = vector.shape_cast %5 : vector<1x128xf32> to vector<128xf32>
    %c3 = arith.constant 3 : index
    %c0_5 = arith.constant 0 : index
    %7 = vector.load %arg8[%c3, %c0_5] : memref<8x128xf32, #tpu.memory_space<vmem>>, vector<1x128xf32>
    %8 = vector.shape_cast %7 : vector<1x128xf32> to vector<128xf32>
    %c4 = arith.constant 4 : index
    %c0_6 = arith.constant 0 : index
    %9 = vector.load %arg8[%c4, %c0_6] : memref<8x128xf32, #tpu.memory_space<vmem>>, vector<1x128xf32>
    %10 = vector.shape_cast %9 : vector<1x128xf32> to vector<128xf32>
    %c5 = arith.constant 5 : index
    %c0_7 = arith.constant 0 : index
    %11 = vector.load %arg8[%c5, %c0_7] : memref<8x128xf32, #tpu.memory_space<vmem>>, vector<1x128xf32>
    %12 = vector.shape_cast %11 : vector<1x128xf32> to vector<128xf32>
    %13 = arith.truncf %0 : vector<64x128xf32> to vector<64x128xbf16>
    %c0_8 = arith.constant 0 : index
    %c0_9 = arith.constant 0 : index
    %14 = vector.load %arg2[%c0_8, %c0_9] : memref<128x384xbf16, #tpu.memory_space<vmem>>, vector<128x384xbf16>
    %cst = arith.constant dense<0.000000e+00> : vector<64x384xf32>
    %15 = tpu.matmul %13, %14, %cst {dimension_numbers = #tpu.dot_dimension_numbers<[1], [0], [0], [1], [0, 0, 1, 1], [], []>} : vector<64x128xbf16>, vector<128x384xbf16>, vector<64x384xf32> -> vector<64x384xf32>
    %c0_10 = arith.constant 0 : index
    %c0_11 = arith.constant 0 : index
    %16 = vector.load %arg3[%c0_10, %c0_11] : memref<1x384xf32, #tpu.memory_space<vmem>>, vector<1x384xf32>
    %17 = vector.shape_cast %16 : vector<1x384xf32> to vector<384xf32>
    %18 = vector.shape_cast %17 : vector<384xf32> to vector<1x384xf32>
    %19 = vector.broadcast %18 : vector<1x384xf32> to vector<64x384xf32>
    %20 = arith.addf %15, %19 : vector<64x384xf32>
    %21 = arith.truncf %20 : vector<64x384xf32> to vector<64x384xbf16>
    %22 = vector.extract_strided_slice %21 {offsets = [0, 0], sizes = [64, 128], strides = [1, 1]} : vector<64x384xbf16> to vector<64x128xbf16>
    %23 = vector.extract_strided_slice %21 {offsets = [0, 128], sizes = [64, 128], strides = [1, 1]} : vector<64x384xbf16> to vector<64x128xbf16>
    %24 = vector.extract_strided_slice %21 {offsets = [0, 256], sizes = [64, 128], strides = [1, 1]} : vector<64x384xbf16> to vector<64x128xbf16>
    %25 = vector.extract_strided_slice %22 {offsets = [0, 0], sizes = [64, 32], strides = [1, 1]} : vector<64x128xbf16> to vector<64x32xbf16>
    %26 = vector.extract_strided_slice %22 {offsets = [0, 32], sizes = [64, 32], strides = [1, 1]} : vector<64x128xbf16> to vector<64x32xbf16>
    %27 = vector.extract_strided_slice %22 {offsets = [0, 64], sizes = [64, 32], strides = [1, 1]} : vector<64x128xbf16> to vector<64x32xbf16>
    %28 = vector.extract_strided_slice %22 {offsets = [0, 96], sizes = [64, 32], strides = [1, 1]} : vector<64x128xbf16> to vector<64x32xbf16>
    %29 = tpu.concatenate %25, %26, %27, %28 in 0 : vector<64x32xbf16>, vector<64x32xbf16>, vector<64x32xbf16>, vector<64x32xbf16> -> vector<256x32xbf16>
    %30 = vector.shape_cast %29 : vector<256x32xbf16> to vector<16x16x32xbf16>
    %31 = vector.extract_strided_slice %23 {offsets = [0, 0], sizes = [64, 32], strides = [1, 1]} : vector<64x128xbf16> to vector<64x32xbf16>
    %32 = vector.extract_strided_slice %23 {offsets = [0, 32], sizes = [64, 32], strides = [1, 1]} : vector<64x128xbf16> to vector<64x32xbf16>
    %33 = vector.extract_strided_slice %23 {offsets = [0, 64], sizes = [64, 32], strides = [1, 1]} : vector<64x128xbf16> to vector<64x32xbf16>
    %34 = vector.extract_strided_slice %23 {offsets = [0, 96], sizes = [64, 32], strides = [1, 1]} : vector<64x128xbf16> to vector<64x32xbf16>
    %35 = tpu.concatenate %31, %32, %33, %34 in 0 : vector<64x32xbf16>, vector<64x32xbf16>, vector<64x32xbf16>, vector<64x32xbf16> -> vector<256x32xbf16>
    %36 = vector.shape_cast %35 : vector<256x32xbf16> to vector<16x16x32xbf16>
    %37 = vector.extract_strided_slice %24 {offsets = [0, 0], sizes = [64, 32], strides = [1, 1]} : vector<64x128xbf16> to vector<64x32xbf16>
    %38 = vector.extract_strided_slice %24 {offsets = [0, 32], sizes = [64, 32], strides = [1, 1]} : vector<64x128xbf16> to vector<64x32xbf16>
    %39 = vector.extract_strided_slice %24 {offsets = [0, 64], sizes = [64, 32], strides = [1, 1]} : vector<64x128xbf16> to vector<64x32xbf16>
    %40 = vector.extract_strided_slice %24 {offsets = [0, 96], sizes = [64, 32], strides = [1, 1]} : vector<64x128xbf16> to vector<64x32xbf16>
    %41 = tpu.concatenate %37, %38, %39, %40 in 0 : vector<64x32xbf16>, vector<64x32xbf16>, vector<64x32xbf16>, vector<64x32xbf16> -> vector<256x32xbf16>
    %42 = vector.shape_cast %41 : vector<256x32xbf16> to vector<16x16x32xbf16>
    "tpu.trace_start"() <{level = 10 : i32, message = "gqd,gkd->gqk"}> : () -> ()
    %cst_12 = arith.constant dense<0.000000e+00> : vector<16x16x16xf32>
    %43 = tpu.matmul %30, %36, %cst_12 {dimension_numbers = #tpu.dot_dimension_numbers<[2], [2], [1], [1], [0, 0, 0, 1, 1, 1], [0], [0]>} : vector<16x16x32xbf16>, vector<16x16x32xbf16>, vector<16x16x16xf32> -> vector<16x16x16xf32>
    "tpu.trace_stop"() : () -> ()
    %cst_13 = arith.constant dense<0xFF800000> : vector<16x16xf32>
    %44 = vector.multi_reduction <maximumf>, %43, %cst_13 [2] : vector<16x16x16xf32> to vector<16x16xf32>
    %45 = vector.shape_cast %44 : vector<16x16xf32> to vector<16x16x1xf32>
    %46 = vector.broadcast %45 : vector<16x16x1xf32> to vector<16x16x16xf32>
    %47 = arith.subf %43, %46 : vector<16x16x16xf32>
    %48 = math.exp %47 : vector<16x16x16xf32>
    %cst_14 = arith.constant dense<0.000000e+00> : vector<16x16xf32>
    %49 = vector.multi_reduction <add>, %48, %cst_14 [2] : vector<16x16x16xf32> to vector<16x16xf32>
    %50 = vector.shape_cast %49 : vector<16x16xf32> to vector<16x16x1xf32>
    %51 = tpu.reciprocal %50 {approx = true} : vector<16x16x1xf32> -> vector<16x16x1xf32>
    %52 = vector.broadcast %51 : vector<16x16x1xf32> to vector<16x16x16xf32>
    %53 = arith.mulf %48, %52 : vector<16x16x16xf32>
    %54 = arith.truncf %53 : vector<16x16x16xf32> to vector<16x16x16xbf16>
    "tpu.trace_start"() <{level = 10 : i32, message = "gqk,gkd->gqd"}> : () -> ()
    %cst_15 = arith.constant dense<0.000000e+00> : vector<16x16x32xf32>
    %55 = tpu.matmul %54, %42, %cst_15 {dimension_numbers = #tpu.dot_dimension_numbers<[2], [1], [1], [2], [0, 0, 0, 1, 1, 2], [0], [0]>} : vector<16x16x16xbf16>, vector<16x16x32xbf16>, vector<16x16x32xf32> -> vector<16x16x32xf32>
    "tpu.trace_stop"() : () -> ()
    %56 = arith.truncf %55 : vector<16x16x32xf32> to vector<16x16x32xbf16>
    %57 = vector.shape_cast %56 : vector<16x16x32xbf16> to vector<256x32xbf16>
    %58 = vector.extract_strided_slice %57 {offsets = [0, 0], sizes = [64, 32], strides = [1, 1]} : vector<256x32xbf16> to vector<64x32xbf16>
    %59 = vector.extract_strided_slice %57 {offsets = [64, 0], sizes = [64, 32], strides = [1, 1]} : vector<256x32xbf16> to vector<64x32xbf16>
    %60 = vector.extract_strided_slice %57 {offsets = [128, 0], sizes = [64, 32], strides = [1, 1]} : vector<256x32xbf16> to vector<64x32xbf16>
    %61 = vector.extract_strided_slice %57 {offsets = [192, 0], sizes = [64, 32], strides = [1, 1]} : vector<256x32xbf16> to vector<64x32xbf16>
    %62 = tpu.concatenate %58, %59, %60, %61 in 1 : vector<64x32xbf16>, vector<64x32xbf16>, vector<64x32xbf16>, vector<64x32xbf16> -> vector<64x128xbf16>
    %c0_16 = arith.constant 0 : index
    %c0_17 = arith.constant 0 : index
    %63 = vector.load %arg4[%c0_16, %c0_17] : memref<128x128xbf16, #tpu.memory_space<vmem>>, vector<128x128xbf16>
    %cst_18 = arith.constant dense<0.000000e+00> : vector<64x128xf32>
    %64 = tpu.matmul %62, %63, %cst_18 {dimension_numbers = #tpu.dot_dimension_numbers<[1], [0], [0], [1], [0, 0, 1, 1], [], []>} : vector<64x128xbf16>, vector<128x128xbf16>, vector<64x128xf32> -> vector<64x128xf32>
    %65 = vector.shape_cast %2 : vector<128xf32> to vector<1x128xf32>
    %66 = vector.broadcast %65 : vector<1x128xf32> to vector<64x128xf32>
    %67 = arith.addf %64, %66 : vector<64x128xf32>
    %68 = arith.addf %0, %67 : vector<64x128xf32>
    %cst_19 = arith.constant dense<0.000000e+00> : vector<64xf32>
    %69 = vector.multi_reduction <add>, %68, %cst_19 [1] : vector<64x128xf32> to vector<64xf32>
    %70 = vector.shape_cast %69 : vector<64xf32> to vector<64x1xf32>
    %cst_20 = arith.constant 1.280000e+02 : f32
    %71 = vector.broadcast %cst_20 : f32 to vector<64x1xf32>
    %72 = arith.divf %70, %71 : vector<64x1xf32>
    %73 = vector.broadcast %72 : vector<64x1xf32> to vector<64x128xf32>
    %74 = arith.subf %68, %73 : vector<64x128xf32>
    %75 = arith.mulf %74, %74 : vector<64x128xf32>
    %cst_21 = arith.constant dense<0.000000e+00> : vector<64xf32>
    %76 = vector.multi_reduction <add>, %75, %cst_21 [1] : vector<64x128xf32> to vector<64xf32>
    %77 = vector.shape_cast %76 : vector<64xf32> to vector<64x1xf32>
    %cst_22 = arith.constant 1.280000e+02 : f32
    %78 = vector.broadcast %cst_22 : f32 to vector<64x1xf32>
    %79 = arith.divf %77, %78 : vector<64x1xf32>
    %80 = vector.broadcast %72 : vector<64x1xf32> to vector<64x128xf32>
    %81 = arith.subf %68, %80 : vector<64x128xf32>
    %cst_23 = arith.constant 9.99999974E-6 : f32
    %82 = vector.broadcast %cst_23 : f32 to vector<64x1xf32>
    %83 = arith.addf %79, %82 : vector<64x1xf32>
    %84 = math.rsqrt %83 : vector<64x1xf32>
    %85 = vector.broadcast %84 : vector<64x1xf32> to vector<64x128xf32>
    %86 = arith.mulf %81, %85 : vector<64x128xf32>
    %87 = vector.shape_cast %6 : vector<128xf32> to vector<1x128xf32>
    %88 = vector.broadcast %87 : vector<1x128xf32> to vector<64x128xf32>
    %89 = arith.mulf %86, %88 : vector<64x128xf32>
    %90 = vector.shape_cast %8 : vector<128xf32> to vector<1x128xf32>
    %91 = vector.broadcast %90 : vector<1x128xf32> to vector<64x128xf32>
    %92 = arith.addf %89, %91 : vector<64x128xf32>
    %93 = arith.truncf %92 : vector<64x128xf32> to vector<64x128xbf16>
    %c0_24 = arith.constant 0 : index
    %c0_25 = arith.constant 0 : index
    %94 = vector.load %arg5[%c0_24, %c0_25] : memref<128x256xbf16, #tpu.memory_space<vmem>>, vector<128x256xbf16>
    %cst_26 = arith.constant dense<0.000000e+00> : vector<64x256xf32>
    %95 = tpu.matmul %93, %94, %cst_26 {dimension_numbers = #tpu.dot_dimension_numbers<[1], [0], [0], [1], [0, 0, 1, 1], [], []>} : vector<64x128xbf16>, vector<128x256xbf16>, vector<64x256xf32> -> vector<64x256xf32>
    %c0_27 = arith.constant 0 : index
    %c0_28 = arith.constant 0 : index
    %96 = vector.load %arg6[%c0_27, %c0_28] : memref<1x256xf32, #tpu.memory_space<vmem>>, vector<1x256xf32>
    %97 = vector.shape_cast %96 : vector<1x256xf32> to vector<256xf32>
    %98 = vector.shape_cast %97 : vector<256xf32> to vector<1x256xf32>
    %99 = vector.broadcast %98 : vector<1x256xf32> to vector<64x256xf32>
    %100 = arith.addf %95, %99 : vector<64x256xf32>
    %cst_29 = arith.constant 0.000000e+00 : f32
    %101 = vector.broadcast %cst_29 : f32 to vector<64x256xf32>
    %102 = arith.maximumf %100, %101 : vector<64x256xf32>
    %103 = arith.truncf %102 : vector<64x256xf32> to vector<64x256xbf16>
    %c0_30 = arith.constant 0 : index
    %c0_31 = arith.constant 0 : index
    %104 = vector.load %arg7[%c0_30, %c0_31] : memref<256x128xbf16, #tpu.memory_space<vmem>>, vector<256x128xbf16>
    %cst_32 = arith.constant dense<0.000000e+00> : vector<64x128xf32>
    %105 = tpu.matmul %103, %104, %cst_32 {dimension_numbers = #tpu.dot_dimension_numbers<[1], [0], [0], [1], [0, 0, 1, 1], [], []>} : vector<64x256xbf16>, vector<256x128xbf16>, vector<64x128xf32> -> vector<64x128xf32>
    %106 = vector.shape_cast %4 : vector<128xf32> to vector<1x128xf32>
    %107 = vector.broadcast %106 : vector<1x128xf32> to vector<64x128xf32>
    %108 = arith.addf %105, %107 : vector<64x128xf32>
    %109 = arith.addf %92, %108 : vector<64x128xf32>
    %cst_33 = arith.constant dense<0.000000e+00> : vector<64xf32>
    %110 = vector.multi_reduction <add>, %109, %cst_33 [1] : vector<64x128xf32> to vector<64xf32>
    %111 = vector.shape_cast %110 : vector<64xf32> to vector<64x1xf32>
    %cst_34 = arith.constant 1.280000e+02 : f32
    %112 = vector.broadcast %cst_34 : f32 to vector<64x1xf32>
    %113 = arith.divf %111, %112 : vector<64x1xf32>
    %114 = vector.broadcast %113 : vector<64x1xf32> to vector<64x128xf32>
    %115 = arith.subf %109, %114 : vector<64x128xf32>
    %116 = arith.mulf %115, %115 : vector<64x128xf32>
    %cst_35 = arith.constant dense<0.000000e+00> : vector<64xf32>
    %117 = vector.multi_reduction <add>, %116, %cst_35 [1] : vector<64x128xf32> to vector<64xf32>
    %118 = vector.shape_cast %117 : vector<64xf32> to vector<64x1xf32>
    %cst_36 = arith.constant 1.280000e+02 : f32
    %119 = vector.broadcast %cst_36 : f32 to vector<64x1xf32>
    %120 = arith.divf %118, %119 : vector<64x1xf32>
    %121 = vector.broadcast %113 : vector<64x1xf32> to vector<64x128xf32>
    %122 = arith.subf %109, %121 : vector<64x128xf32>
    %cst_37 = arith.constant 9.99999974E-6 : f32
    %123 = vector.broadcast %cst_37 : f32 to vector<64x1xf32>
    %124 = arith.addf %120, %123 : vector<64x1xf32>
    %125 = math.rsqrt %124 : vector<64x1xf32>
    %126 = vector.broadcast %125 : vector<64x1xf32> to vector<64x128xf32>
    %127 = arith.mulf %122, %126 : vector<64x128xf32>
    %128 = vector.shape_cast %10 : vector<128xf32> to vector<1x128xf32>
    %129 = vector.broadcast %128 : vector<1x128xf32> to vector<64x128xf32>
    %130 = arith.mulf %127, %129 : vector<64x128xf32>
    %131 = vector.shape_cast %12 : vector<128xf32> to vector<1x128xf32>
    %132 = vector.broadcast %131 : vector<1x128xf32> to vector<64x128xf32>
    %133 = arith.addf %130, %132 : vector<64x128xf32>
    %c0_38 = arith.constant 0 : index
    %c0_39 = arith.constant 0 : index
    %134 = vector.load %arg9[%c0_38, %c0_39] : memref<64x128xf32, #tpu.memory_space<vmem>>, vector<64x128xf32>
    tpu.vector_store %arg9[%c0_38, %c0_39], %133 {strides = array<i32>} : memref<64x128xf32, #tpu.memory_space<vmem>>, vector<64x128xf32>,
    return
  }
  func.func @transform_0(%arg0: i32) -> (i32, i32) {
    %c0_i32 = arith.constant 0 : i32
    %c0_i32_0 = arith.constant 0 : i32
    return %arg0, %c0_i32 : i32, i32
  }
  func.func @transform_1(%arg0: i32) -> (i32, i32) {
    %c0_i32 = arith.constant 0 : i32
    %c0_i32_0 = arith.constant 0 : i32
    %c0_i32_1 = arith.constant 0 : i32
    return %c0_i32, %c0_i32_0 : i32, i32
  }
  func.func @transform_2(%arg0: i32) -> (i32, i32) {
    %c0_i32 = arith.constant 0 : i32
    %c0_i32_0 = arith.constant 0 : i32
    %c0_i32_1 = arith.constant 0 : i32
    return %c0_i32, %c0_i32_0 : i32, i32
  }
  func.func @transform_3(%arg0: i32) -> (i32, i32) {
    %c0_i32 = arith.constant 0 : i32
    %c0_i32_0 = arith.constant 0 : i32
    %c0_i32_1 = arith.constant 0 : i32
    return %c0_i32, %c0_i32_0 : i32, i32
  }
  func.func @transform_4(%arg0: i32) -> (i32, i32) {
    %c0_i32 = arith.constant 0 : i32
    %c0_i32_0 = arith.constant 0 : i32
    %c0_i32_1 = arith.constant 0 : i32
    return %c0_i32, %c0_i32_0 : i32, i32
  }
  func.func @transform_5(%arg0: i32) -> (i32, i32) {
    %c0_i32 = arith.constant 0 : i32
    %c0_i32_0 = arith.constant 0 : i32
    %c0_i32_1 = arith.constant 0 : i32
    return %c0_i32, %c0_i32_0 : i32, i32
  }
  func.func @transform_6(%arg0: i32) -> (i32, i32) {
    %c0_i32 = arith.constant 0 : i32
    %c0_i32_0 = arith.constant 0 : i32
    %c0_i32_1 = arith.constant 0 : i32
    return %c0_i32, %c0_i32_0 : i32, i32
  }
  func.func @transform_7(%arg0: i32) -> (i32, i32) {
    %c0_i32 = arith.constant 0 : i32
    %c0_i32_0 = arith.constant 0 : i32
    %c0_i32_1 = arith.constant 0 : i32
    return %c0_i32, %c0_i32_0 : i32, i32
  }
  func.func @transform_8(%arg0: i32) -> (i32, i32) {
    %c0_i32 = arith.constant 0 : i32
    %c0_i32_0 = arith.constant 0 : i32
    return %arg0, %c0_i32 : i32, i32
  }
}

module attributes {stable_mosaic.version = 11 : i64} {
  func.func @transformer_layer_kernel(%arg0: i32, %arg1: memref<64x128xf32, #tpu.memory_space<vmem>>, %arg2: memref<128x384xbf16, #tpu.memory_space<vmem>>, %arg3: memref<1x384xf32, #tpu.memory_space<vmem>>, %arg4: memref<128x128xbf16, #tpu.memory_space<vmem>>, %arg5: memref<128x256xbf16, #tpu.memory_space<vmem>>, %arg6: memref<1x256xf32, #tpu.memory_space<vmem>>, %arg7: memref<256x128xbf16, #tpu.memory_space<vmem>>, %arg8: memref<8x128xf32, #tpu.memory_space<vmem>>, %arg9: memref<64x128xf32, #tpu.memory_space<vmem>>) attributes {dimension_semantics = [#tpu.dimension_semantics<parallel>], iteration_bounds = array<i64: 2>, scalar_prefetch = 0 : i64, scratch_operands = 0 : i64, tpu.core_type = #tpu.core_type<tc>, window_params = [{transform_indices = @transform_0, window_bounds = array<i64: 64, 128>}, {pipeline_mode = #tpu.pipeline_mode<synchronous>, transform_indices = @transform_1, window_bounds = array<i64: 128, 384>}, {pipeline_mode = #tpu.pipeline_mode<synchronous>, transform_indices = @transform_2, window_bounds = array<i64: 1, 384>}, {pipeline_mode = #tpu.pipeline_mode<synchronous>, transform_indices = @transform_3, window_bounds = array<i64: 128, 128>}, {pipeline_mode = #tpu.pipeline_mode<synchronous>, transform_indices = @transform_4, window_bounds = array<i64: 128, 256>}, {pipeline_mode = #tpu.pipeline_mode<synchronous>, transform_indices = @transform_5, window_bounds = array<i64: 1, 256>}, {pipeline_mode = #tpu.pipeline_mode<synchronous>, transform_indices = @transform_6, window_bounds = array<i64: 256, 128>}, {pipeline_mode = #tpu.pipeline_mode<synchronous>, transform_indices = @transform_7, window_bounds = array<i64: 8, 128>}, {transform_indices = @transform_8, window_bounds = array<i64: 64, 128>}]} {
    %c0 = arith.constant 0 : index
    %c0_0 = arith.constant 0 : index
    %0 = vector.load %arg1[%c0, %c0_0] : memref<64x128xf32, #tpu.memory_space<vmem>>, vector<64x128xf32>
    %c0_1 = arith.constant 0 : index
    %c0_2 = arith.constant 0 : index
    %1 = vector.load %arg8[%c0_1, %c0_2] : memref<8x128xf32, #tpu.memory_space<vmem>>, vector<1x128xf32>
    %2 = vector.shape_cast %1 : vector<1x128xf32> to vector<128xf32>
    %c1 = arith.constant 1 : index
    %c0_3 = arith.constant 0 : index
    %3 = vector.load %arg8[%c1, %c0_3] : memref<8x128xf32, #tpu.memory_space<vmem>>, vector<1x128xf32>
    %4 = vector.shape_cast %3 : vector<1x128xf32> to vector<128xf32>
    %c2 = arith.constant 2 : index
    %c0_4 = arith.constant 0 : index
    %5 = vector.load %arg8[%c2, %c0_4] : memref<8x128xf32, #tpu.memory_space<vmem>>, vector<1x128xf32>
    %6 = vector.shape_cast %5 : vector<1x128xf32> to vector<128xf32>
    %c3 = arith.constant 3 : index
    %c0_5 = arith.constant 0 : index
    %7 = vector.load %arg8[%c3, %c0_5] : memref<8x128xf32, #tpu.memory_space<vmem>>, vector<1x128xf32>
    %8 = vector.shape_cast %7 : vector<1x128xf32> to vector<128xf32>
    %c4 = arith.constant 4 : index
    %c0_6 = arith.constant 0 : index
    %9 = vector.load %arg8[%c4, %c0_6] : memref<8x128xf32, #tpu.memory_space<vmem>>, vector<1x128xf32>
    %10 = vector.shape_cast %9 : vector<1x128xf32> to vector<128xf32>
    %c5 = arith.constant 5 : index
    %c0_7 = arith.constant 0 : index
    %11 = vector.load %arg8[%c5, %c0_7] : memref<8x128xf32, #tpu.memory_space<vmem>>, vector<1x128xf32>
    %12 = vector.shape_cast %11 : vector<1x128xf32> to vector<128xf32>
    %13 = arith.truncf %0 : vector<64x128xf32> to vector<64x128xbf16>
    %c0_8 = arith.constant 0 : index
    %c0_9 = arith.constant 0 : index
    %14 = vector.load %arg2[%c0_8, %c0_9] : memref<128x384xbf16, #tpu.memory_space<vmem>>, vector<128x384xbf16>
    %cst = arith.constant dense<0.000000e+00> : vector<64x384xf32>
    %15 = tpu.matmul %13, %14, %cst {dimension_numbers = #tpu.dot_dimension_numbers<[1], [0], [0], [1], [0, 0, 1, 1], [], []>} : vector<64x128xbf16>, vector<128x384xbf16>, vector<64x384xf32> -> vector<64x384xf32>
    %c0_10 = arith.constant 0 : index
    %c0_11 = arith.constant 0 : index
    %16 = vector.load %arg3[%c0_10, %c0_11] : memref<1x384xf32, #tpu.memory_space<vmem>>, vector<1x384xf32>
    %17 = vector.shape_cast %16 : vector<1x384xf32> to vector<384xf32>
    %18 = vector.shape_cast %17 : vector<384xf32> to vector<1x384xf32>
    %19 = vector.broadcast %18 : vector<1x384xf32> to vector<64x384xf32>
    %20 = arith.addf %15, %19 : vector<64x384xf32>
    %21 = arith.truncf %20 : vector<64x384xf32> to vector<64x384xbf16>
    %22 = vector.extract_strided_slice %21 {offsets = [0, 0], sizes = [64, 128], strides = [1, 1]} : vector<64x384xbf16> to vector<64x128xbf16>
    %23 = vector.extract_strided_slice %21 {offsets = [0, 128], sizes = [64, 128], strides = [1, 1]} : vector<64x384xbf16> to vector<64x128xbf16>
    %24 = vector.extract_strided_slice %21 {offsets = [0, 256], sizes = [64, 128], strides = [1, 1]} : vector<64x384xbf16> to vector<64x128xbf16>
    %25 = vector.extract_strided_slice %22 {offsets = [0, 0], sizes = [64, 32], strides = [1, 1]} : vector<64x128xbf16> to vector<64x32xbf16>
    %26 = vector.extract_strided_slice %22 {offsets = [0, 32], sizes = [64, 32], strides = [1, 1]} : vector<64x128xbf16> to vector<64x32xbf16>
    %27 = vector.extract_strided_slice %22 {offsets = [0, 64], sizes = [64, 32], strides = [1, 1]} : vector<64x128xbf16> to vector<64x32xbf16>
    %28 = vector.extract_strided_slice %22 {offsets = [0, 96], sizes = [64, 32], strides = [1, 1]} : vector<64x128xbf16> to vector<64x32xbf16>
    %29 = tpu.concatenate %25, %26, %27, %28 in 0 : vector<64x32xbf16>, vector<64x32xbf16>, vector<64x32xbf16>, vector<64x32xbf16> -> vector<256x32xbf16>
    %30 = vector.shape_cast %29 : vector<256x32xbf16> to vector<16x16x32xbf16>
    %31 = vector.extract_strided_slice %23 {offsets = [0, 0], sizes = [64, 32], strides = [1, 1]} : vector<64x128xbf16> to vector<64x32xbf16>
    %32 = vector.extract_strided_slice %23 {offsets = [0, 32], sizes = [64, 32], strides = [1, 1]} : vector<64x128xbf16> to vector<64x32xbf16>
    %33 = vector.extract_strided_slice %23 {offsets = [0, 64], sizes = [64, 32], strides = [1, 1]} : vector<64x128xbf16> to vector<64x32xbf16>
    %34 = vector.extract_strided_slice %23 {offsets = [0, 96], sizes = [64, 32], strides = [1, 1]} : vector<64x128xbf16> to vector<64x32xbf16>
    %35 = tpu.concatenate %31, %32, %33, %34 in 0 : vector<64x32xbf16>, vector<64x32xbf16>, vector<64x32xbf16>, vector<64x32xbf16> -> vector<256x32xbf16>
    %36 = vector.shape_cast %35 : vector<256x32xbf16> to vector<16x16x32xbf16>
    %37 = vector.extract_strided_slice %24 {offsets = [0, 0], sizes = [64, 32], strides = [1, 1]} : vector<64x128xbf16> to vector<64x32xbf16>
    %38 = vector.extract_strided_slice %24 {offsets = [0, 32], sizes = [64, 32], strides = [1, 1]} : vector<64x128xbf16> to vector<64x32xbf16>
    %39 = vector.extract_strided_slice %24 {offsets = [0, 64], sizes = [64, 32], strides = [1, 1]} : vector<64x128xbf16> to vector<64x32xbf16>
    %40 = vector.extract_strided_slice %24 {offsets = [0, 96], sizes = [64, 32], strides = [1, 1]} : vector<64x128xbf16> to vector<64x32xbf16>
    %41 = tpu.concatenate %37, %38, %39, %40 in 0 : vector<64x32xbf16>, vector<64x32xbf16>, vector<64x32xbf16>, vector<64x32xbf16> -> vector<256x32xbf16>
    %42 = vector.shape_cast %41 : vector<256x32xbf16> to vector<16x16x32xbf16>
    "tpu.trace_start"() <{level = 10 : i32, message = "gqd,gkd->gqk"}> : () -> ()
    %cst_12 = arith.constant dense<0.000000e+00> : vector<16x16x16xf32>
    %43 = tpu.matmul %30, %36, %cst_12 {dimension_numbers = #tpu.dot_dimension_numbers<[2], [2], [1], [1], [0, 0, 0, 1, 1, 1], [0], [0]>} : vector<16x16x32xbf16>, vector<16x16x32xbf16>, vector<16x16x16xf32> -> vector<16x16x16xf32>
    "tpu.trace_stop"() : () -> ()
    %cst_13 = arith.constant dense<0xFF800000> : vector<16x16xf32>
    %44 = vector.multi_reduction <maximumf>, %43, %cst_13 [2] : vector<16x16x16xf32> to vector<16x16xf32>
    %45 = vector.shape_cast %44 : vector<16x16xf32> to vector<16x16x1xf32>
    %46 = vector.broadcast %45 : vector<16x16x1xf32> to vector<16x16x16xf32>
    %47 = arith.subf %43, %46 : vector<16x16x16xf32>
    %48 = math.exp %47 : vector<16x16x16xf32>
    %cst_14 = arith.constant dense<0.000000e+00> : vector<16x16xf32>
    %49 = vector.multi_reduction <add>, %48, %cst_14 [2] : vector<16x16x16xf32> to vector<16x16xf32>
    %50 = vector.shape_cast %49 : vector<16x16xf32> to vector<16x16x1xf32>
    %51 = tpu.reciprocal %50 {approx = true} : vector<16x16x1xf32> -> vector<16x16x1xf32>
    %52 = vector.broadcast %51 : vector<16x16x1xf32> to vector<16x16x16xf32>
    %53 = arith.mulf %48, %52 : vector<16x16x16xf32>
    %54 = arith.truncf %53 : vector<16x16x16xf32> to vector<16x16x16xbf16>
    "tpu.trace_start"() <{level = 10 : i32, message = "gqk,gkd->gqd"}> : () -> ()
    %cst_15 = arith.constant dense<0.000000e+00> : vector<16x16x32xf32>
    %55 = tpu.matmul %54, %42, %cst_15 {dimension_numbers = #tpu.dot_dimension_numbers<[2], [1], [1], [2], [0, 0, 0, 1, 1, 2], [0], [0]>} : vector<16x16x16xbf16>, vector<16x16x32xbf16>, vector<16x16x32xf32> -> vector<16x16x32xf32>
    "tpu.trace_stop"() : () -> ()
    %56 = arith.truncf %55 : vector<16x16x32xf32> to vector<16x16x32xbf16>
    %57 = vector.shape_cast %56 : vector<16x16x32xbf16> to vector<256x32xbf16>
    %58 = vector.extract_strided_slice %57 {offsets = [0, 0], sizes = [64, 32], strides = [1, 1]} : vector<256x32xbf16> to vector<64x32xbf16>
    %59 = vector.extract_strided_slice %57 {offsets = [64, 0], sizes = [64, 32], strides = [1, 1]} : vector<256x32xbf16> to vector<64x32xbf16>
    %60 = vector.extract_strided_slice %57 {offsets = [128, 0], sizes = [64, 32], strides = [1, 1]} : vector<256x32xbf16> to vector<64x32xbf16>
    %61 = vector.extract_strided_slice %57 {offsets = [192, 0], sizes = [64, 32], strides = [1, 1]} : vector<256x32xbf16> to vector<64x32xbf16>
    %62 = tpu.concatenate %58, %59, %60, %61 in 1 : vector<64x32xbf16>, vector<64x32xbf16>, vector<64x32xbf16>, vector<64x32xbf16> -> vector<64x128xbf16>
    %c0_16 = arith.constant 0 : index
    %c0_17 = arith.constant 0 : index
    %63 = vector.load %arg4[%c0_16, %c0_17] : memref<128x128xbf16, #tpu.memory_space<vmem>>, vector<128x128xbf16>
    %cst_18 = arith.constant dense<0.000000e+00> : vector<64x128xf32>
    %64 = tpu.matmul %62, %63, %cst_18 {dimension_numbers = #tpu.dot_dimension_numbers<[1], [0], [0], [1], [0, 0, 1, 1], [], []>} : vector<64x128xbf16>, vector<128x128xbf16>, vector<64x128xf32> -> vector<64x128xf32>
    %65 = vector.shape_cast %2 : vector<128xf32> to vector<1x128xf32>
    %66 = vector.broadcast %65 : vector<1x128xf32> to vector<64x128xf32>
    %67 = arith.addf %64, %66 : vector<64x128xf32>
    %68 = arith.addf %0, %67 : vector<64x128xf32>
    %cst_19 = arith.constant dense<0.000000e+00> : vector<64xf32>
    %69 = vector.multi_reduction <add>, %68, %cst_19 [1] : vector<64x128xf32> to vector<64xf32>
    %70 = vector.shape_cast %69 : vector<64xf32> to vector<64x1xf32>
    %cst_20 = arith.constant 1.280000e+02 : f32
    %71 = vector.broadcast %cst_20 : f32 to vector<64x1xf32>
    %72 = arith.divf %70, %71 : vector<64x1xf32>
    %73 = vector.broadcast %72 : vector<64x1xf32> to vector<64x128xf32>
    %74 = arith.subf %68, %73 : vector<64x128xf32>
    %75 = arith.mulf %74, %74 : vector<64x128xf32>
    %cst_21 = arith.constant dense<0.000000e+00> : vector<64xf32>
    %76 = vector.multi_reduction <add>, %75, %cst_21 [1] : vector<64x128xf32> to vector<64xf32>
    %77 = vector.shape_cast %76 : vector<64xf32> to vector<64x1xf32>
    %cst_22 = arith.constant 1.280000e+02 : f32
    %78 = vector.broadcast %cst_22 : f32 to vector<64x1xf32>
    %79 = arith.divf %77, %78 : vector<64x1xf32>
    %80 = vector.broadcast %72 : vector<64x1xf32> to vector<64x128xf32>
    %81 = arith.subf %68, %80 : vector<64x128xf32>
    %cst_23 = arith.constant 9.99999974E-6 : f32
    %82 = vector.broadcast %cst_23 : f32 to vector<64x1xf32>
    %83 = arith.addf %79, %82 : vector<64x1xf32>
    %84 = math.rsqrt %83 : vector<64x1xf32>
    %85 = vector.broadcast %84 : vector<64x1xf32> to vector<64x128xf32>
    %86 = arith.mulf %81, %85 : vector<64x128xf32>
    %87 = vector.shape_cast %6 : vector<128xf32> to vector<1x128xf32>
    %88 = vector.broadcast %87 : vector<1x128xf32> to vector<64x128xf32>
    %89 = arith.mulf %86, %88 : vector<64x128xf32>
    %90 = vector.shape_cast %8 : vector<128xf32> to vector<1x128xf32>
    %91 = vector.broadcast %90 : vector<1x128xf32> to vector<64x128xf32>
    %92 = arith.addf %89, %91 : vector<64x128xf32>
    %93 = arith.truncf %92 : vector<64x128xf32> to vector<64x128xbf16>
    %c0_24 = arith.constant 0 : index
    %c0_25 = arith.constant 0 : index
    %94 = vector.load %arg5[%c0_24, %c0_25] : memref<128x256xbf16, #tpu.memory_space<vmem>>, vector<128x256xbf16>
    %cst_26 = arith.constant dense<0.000000e+00> : vector<64x256xf32>
    %95 = tpu.matmul %93, %94, %cst_26 {dimension_numbers = #tpu.dot_dimension_numbers<[1], [0], [0], [1], [0, 0, 1, 1], [], []>} : vector<64x128xbf16>, vector<128x256xbf16>, vector<64x256xf32> -> vector<64x256xf32>
    %c0_27 = arith.constant 0 : index
    %c0_28 = arith.constant 0 : index
    %96 = vector.load %arg6[%c0_27, %c0_28] : memref<1x256xf32, #tpu.memory_space<vmem>>, vector<1x256xf32>
    %97 = vector.shape_cast %96 : vector<1x256xf32> to vector<256xf32>
    %98 = vector.shape_cast %97 : vector<256xf32> to vector<1x256xf32>
    %99 = vector.broadcast %98 : vector<1x256xf32> to vector<64x256xf32>
    %100 = arith.addf %95, %99 : vector<64x256xf32>
    %cst_29 = arith.constant 0.000000e+00 : f32
    %101 = vector.broadcast %cst_29 : f32 to vector<64x256xf32>
    %102 = arith.maximumf %100, %101 : vector<64x256xf32>
    %103 = arith.truncf %102 : vector<64x256xf32> to vector<64x256xbf16>
    %c0_30 = arith.constant 0 : index
    %c0_31 = arith.constant 0 : index
    %104 = vector.load %arg7[%c0_30, %c0_31] : memref<256x128xbf16, #tpu.memory_space<vmem>>, vector<256x128xbf16>
    %cst_32 = arith.constant dense<0.000000e+00> : vector<64x128xf32>
    %105 = tpu.matmul %103, %104, %cst_32 {dimension_numbers = #tpu.dot_dimension_numbers<[1], [0], [0], [1], [0, 0, 1, 1], [], []>} : vector<64x256xbf16>, vector<256x128xbf16>, vector<64x128xf32> -> vector<64x128xf32>
    %106 = vector.shape_cast %4 : vector<128xf32> to vector<1x128xf32>
    %107 = vector.broadcast %106 : vector<1x128xf32> to vector<64x128xf32>
    %108 = arith.addf %105, %107 : vector<64x128xf32>
    %109 = arith.addf %92, %108 : vector<64x128xf32>
    %cst_33 = arith.constant dense<0.000000e+00> : vector<64xf32>
    %110 = vector.multi_reduction <add>, %109, %cst_33 [1] : vector<64x128xf32> to vector<64xf32>
    %111 = vector.shape_cast %110 : vector<64xf32> to vector<64x1xf32>
    %cst_34 = arith.constant 1.280000e+02 : f32
    %112 = vector.broadcast %cst_34 : f32 to vector<64x1xf32>
    %113 = arith.divf %111, %112 : vector<64x1xf32>
    %114 = vector.broadcast %113 : vector<64x1xf32> to vector<64x128xf32>
    %115 = arith.subf %109, %114 : vector<64x128xf32>
    %116 = arith.mulf %115, %115 : vector<64x128xf32>
    %cst_35 = arith.constant dense<0.000000e+00> : vector<64xf32>
    %117 = vector.multi_reduction <add>, %116, %cst_35 [1] : vector<64x128xf32> to vector<64xf32>
    %118 = vector.shape_cast %117 : vector<64xf32> to vector<64x1xf32>
    %cst_36 = arith.constant 1.280000e+02 : f32
    %119 = vector.broadcast %cst_36 : f32 to vector<64x1xf32>
    %120 = arith.divf %118, %119 : vector<64x1xf32>
    %121 = vector.broadcast %113 : vector<64x1xf32> to vector<64x128xf32>
    %122 = arith.subf %109, %121 : vector<64x128xf32>
    %cst_37 = arith.constant 9.99999974E-6 : f32
    %123 = vector.broadcast %cst_37 : f32 to vector<64x1xf32>
    %124 = arith.addf %120, %123 : vector<64x1xf32>
    %125 = math.rsqrt %124 : vector<64x1xf32>
    %126 = vector.broadcast %125 : vector<64x1xf32> to vector<64x128xf32>
    %127 = arith.mulf %122, %126 : vector<64x128xf32>
    %128 = vector.shape_cast %10 : vector<128xf32> to vector<1x128xf32>
    %129 = vector.broadcast %128 : vector<1x128xf32> to vector<64x128xf32>
    %130 = arith.mulf %127, %129 : vector<64x128xf32>
    %131 = vector.shape_cast %12 : vector<128xf32> to vector<1x128xf32>
    %132 = vector.broadcast %131 : vector<1x128xf32> to vector<64x128xf32>
    %133 = arith.addf %130, %132 : vector<64x128xf32>
    %c0_38 = arith.constant 0 : index
    %c0_39 = arith.constant 0 : index
    %134 = vector.load %arg9[%c0_38, %c0_39] : memref<64x128xf32, #tpu.memory_space<vmem>>, vector<64x128xf32>
    tpu.vector_store %arg9[%c0_38, %c0_39], %133 {strides = array<i32>} : memref<64x128xf32, #tpu.memory_space<vmem>>, vector<64x128xf32>,
    return
  }
  func.func @transform_0(%arg0: i32) -> (i32, i32) {
    %c0_i32 = arith.constant 0 : i32
    %c0_i32_0 = arith.constant 0 : i32
    return %arg0, %c0_i32 : i32, i32
  }
  func.func @transform_1(%arg0: i32) -> (i32, i32) {
    %c0_i32 = arith.constant 0 : i32
    %c0_i32_0 = arith.constant 0 : i32
    %c0_i32_1 = arith.constant 0 : i32
    return %c0_i32, %c0_i32_0 : i32, i32
  }
  func.func @transform_2(%arg0: i32) -> (i32, i32) {
    %c0_i32 = arith.constant 0 : i32
    %c0_i32_0 = arith.constant 0 : i32
    %c0_i32_1 = arith.constant 0 : i32
    return %c0_i32, %c0_i32_0 : i32, i32
  }
  func.func @transform_3(%arg0: i32) -> (i32, i32) {
    %c0_i32 = arith.constant 0 : i32
    %c0_i32_0 = arith.constant 0 : i32
    %c0_i32_1 = arith.constant 0 : i32
    return %c0_i32, %c0_i32_0 : i32, i32
  }
  func.func @transform_4(%arg0: i32) -> (i32, i32) {
    %c0_i32 = arith.constant 0 : i32
    %c0_i32_0 = arith.constant 0 : i32
    %c0_i32_1 = arith.constant 0 : i32
    return %c0_i32, %c0_i32_0 : i32, i32
  }
  func.func @transform_5(%arg0: i32) -> (i32, i32) {
    %c0_i32 = arith.constant 0 : i32
    %c0_i32_0 = arith.constant 0 : i32
    %c0_i32_1 = arith.constant 0 : i32
    return %c0_i32, %c0_i32_0 : i32, i32
  }
  func.func @transform_6(%arg0: i32) -> (i32, i32) {
    %c0_i32 = arith.constant 0 : i32
    %c0_i32_0 = arith.constant 0 : i32
    %c0_i32_1 = arith.constant 0 : i32
    return %c0_i32, %c0_i32_0 : i32, i32
  }
  func.func @transform_7(%arg0: i32) -> (i32, i32) {
    %c0_i32 = arith.constant 0 : i32
    %c0_i32_0 = arith.constant 0 : i32
    %c0_i32_1 = arith.constant 0 : i32
    return %c0_i32, %c0_i32_0 : i32, i32
  }
  func.func @transform_8(%arg0: i32) -> (i32, i32) {
    %c0_i32 = arith.constant 0 : i32
    %c0_i32_0 = arith.constant 0 : i32
    return %arg0, %c0_i32 : i32, i32
  }
}

</mosaic_0001>

<bundles_post_ra>
// kernel: tpu_custom_call.1
= control target key start
LH: loop header
LB: loop body
LE: loop exit
PB: predicated region body
PF: predicated region fallthrough
CT: control target
= control target key end

     0   :  { %s5075_s0 = inlined_call_operand.hbm [shape: f32[128,128], index: 0, kind: input, shape index: {}]   ;;  %s5076_s1 = inlined_call_operand.hbm [shape: bf16[128,384], index: 1, kind: input, shape index: {}]   ;;  %s5077_s2 = inlined_call_operand.hbm [shape: f32[1,384], index: 2, kind: input, shape index: {}]   ;;  %s5078_s3 = inlined_call_operand.hbm [shape: bf16[128,128], index: 3, kind: input, shape index: {}]   ;;  %s5079_s4 = inlined_call_operand.hbm [shape: bf16[128,256], index: 4, kind: input, shape index: {}]   ;;  %s5080_s5 = inlined_call_operand.vmem [shape: f32[1,256], index: 5, kind: input, shape index: {}]   ;;  %s5081_s6 = inlined_call_operand.hbm [shape: bf16[256,128], index: 6, kind: input, shape index: {}]   ;;  %s5082_s7 = inlined_call_operand.hbm [shape: f32[8,128], index: 7, kind: input, shape index: {}]   ;;  %s5083_s8 = inlined_call_operand.hbm [shape: f32[128,128], index: 8, kind: output, shape index: {}]  }
   0x1   :  { %5086 = sst [smem:[#allocation20_spill]] %s5076_s1 }
   0x2   :  { %5087 = sst [smem:[#allocation21_spill]] %s5077_s2 }
   0x3   :  { %5088 = sst [smem:[#allocation22_spill]] %s5078_s3 }
   0x4   :  { %13 = vsyncpa [#allocation3], 0 }
   0x5   :  { %15 = vsyncpa [#allocation3 + $0x1], 0 }
   0x6   :  { %16 = vsyncpa [#allocation6], 0 }
   0x7   :  { %17 = vsyncpa [#allocation9], 0 }
   0x8   :  { %18 = vsyncpa [#allocation12], 0 }
   0x9   :  { %19 = vsyncpa [#allocation4], 0 }
   0xa   :  { %21 = vsyncpa [#allocation4 + $0x1], 0  ;;  %s4119_s27 = smov 0   ;;  %s4121_s28 = smov 0  }
   0xb   :  { %s4123_s29 = smov 0   ;;  %s4125_s30 = smov 0  }
   0xc LB: > { %s5089_s1 = sld [smem:[#allocation20_spill]]  ;;  %s4143_s12 = sadd.s32 4294967295, %s4054_s30   ;;  %s4054_s30 = sphi %s4125_s30, %s5105_s30   ;;  %s4050_s29 = sphi %s4123_s29, %s5104_s29   ;;  %s4046_s28 = sphi %s4121_s28, %s5103_s28   ;;  %s4042_s27 = sphi %s4119_s27, %s5102_s27  }
   0xd   : > { %p3084_p0 = scmp.ge.s32.totalorder %s4054_s30, 1  ;;  %p48_p1 = scmp.eq.s32.totalorder %s4143_s12, 0 }
   0xe   : > { %p231_p2 = scmp.lt.s32.totalorder %s4054_s30, 3  ;;  %s4056_s14 = smov [#allocation5]  }
   0xf   : > { %s244_s15 = sshll.u32 %s4056_s14, 4  ;;  %s5091_s3 = sld [smem:[#allocation22_spill]]  ;;  %s245_s15 = int_to_ptr.vmem [resolvable:$true] %s244_s15 }
  0x10   : > { %p4148_p3 = pnand %p3084_p0, %p231_p2  ;;  %s4057_s20 = smov [#allocation8]  }
  0x11   : > { %s270_s21 = sshll.u32 %s4057_s20, 4  ;;  %s4058_s22 = smov 192   ;;  %s271_s21 = int_to_ptr.vmem [resolvable:$true] %s270_s21 }
  0x12   : > { %s242_s11 = sshll.u32 %s5089_s1, 4  ;;  %p3499_p4 = pneg %p4148_p3  ;;  %s243_s11 = int_to_ptr.hbm [resolvable:$true] %s242_s11 }
  0x13   : > { %s4059_s23 = smov 12   ;;  %s4060_s24 = smov 64  }
  0x14   : > { %p4160_p6 = pnand %p3499_p4, %p48_p1  ;;  %s4061_s25 = smov 4  }
  0x15   : > { %s268_s18 = sshll.u32 %s5091_s3, 4  ;;  %s299_s10 = sshll.u32 %s5081_s6, 4  ;;  %s269_s18 = int_to_ptr.hbm [resolvable:$true] %s268_s18  ;;  %s300_s10 = int_to_ptr.hbm [resolvable:$true] %s299_s10 }
  0x16   : > { %3502 = dma.hbm_to_vmem [thread:$0]  (!%p4160_p6), %s243_s11, 3072, %s245_s15, [#allocation6], %s4058_s22, %s4058_s22, %s4059_s23  }
  0x17   : > { %3508 = dma.hbm_to_vmem [thread:$0]  (!%p4160_p6), %s269_s18, 1024, %s271_s21, [#allocation9], %s4060_s24, %s4060_s24, %s4061_s25  }
  0x18   : > { %s4062_s14 = smov [#allocation11]   ;;  %s5093_s2 = sld [smem:[#allocation21_spill]] }
  0x19   : > { %s301_s16 = sshll.u32 %s4062_s14, 4  ;;  %s4063_s11 = smov [#allocation7]   ;;  %s302_s16 = int_to_ptr.vmem [resolvable:$true] %s301_s16 }
  0x1a   : > { %3514 = dma.hbm_to_vmem [thread:$0]  (!%p4160_p6), %s300_s10, 2048, %s302_s16, [#allocation12], %s4060_s24, %s4060_s24, %s4061_s25  }
  0x1b   : > { %s259_s15 = sshll.u32 %s4063_s11, 4  ;;  %s282_s21 = sshll.u32 %s5079_s4, 4  ;;  %s260_s15 = int_to_ptr.vmem [resolvable:$true] %s259_s15  ;;  %s283_s21 = int_to_ptr.hbm [resolvable:$true] %s282_s21 }
  0x1c   : > { %s4064_s23 = smov [#allocation10]   ;;  %s314_s9 = sshll.u32 %s5082_s7, 4  ;;  %s315_s9 = int_to_ptr.hbm [resolvable:$true] %s314_s9 }
  0x1d   : > { %s284_s26 = sshll.u32 %s4064_s23, 4  ;;  %s5084_s10 = smov 128   ;;  %s285_s26 = int_to_ptr.vmem [resolvable:$true] %s284_s26 }
  0x1e   : > { %s257_s1 = sshll.u32 %s5093_s2, 4  ;;  %s5085_s14 = smov 8   ;;  %s258_s1 = int_to_ptr.hbm [resolvable:$true] %s257_s1 }
  0x1f   : > { %3505 = dma.hbm_to_vmem [thread:$0]  (!%p4160_p6), %s258_s1, 48, %s260_s15, [#allocation6]  }
  0x20   : > { %3511 = dma.hbm_to_vmem [thread:$0]  (!%p4160_p6), %s283_s21, 2048, %s285_s26, [#allocation9], %s5084_s10, %s5084_s10, %s5085_s14  }
  0x21   : > { %s4067_s1 = smov [#allocation13]   ;;  %s3083_s17 = sadd.s32 4294967294, %s4054_s30  }
  0x22   : > { %s316_s16 = sshll.u32 %s4067_s1, 4  ;;  %s4193_s20 = sadd.s32 1, %s4054_s30   ;;  %s317_s16 = int_to_ptr.vmem [resolvable:$true] %s316_s16 }
  0x23   : > { %3517 = dma.hbm_to_vmem [thread:$0]  (!%p4160_p6), %s315_s9, 128, %s317_s16, [#allocation12]  }
  0x24   : > { %s31_s11 = ssub.s32 %s4054_s30, %s4193_s20  ;;  %s34_s15 = sadd.s32 1, %s4050_s29 }
  0x25   : > { %p32_p7 = scmp.eq.s32.totalorder %s31_s11, 0  ;;  %p41_p8 = scmp.ne.s32.totalorder %s4050_s29, %s4046_s28 }
  0x26   : > { %p42_p9 = scmp.eq.s32.totalorder %s4054_s30, 0  ;;  %p47_p10 = scmp.ne.s32.totalorder %s4046_s28, %s4042_s27 }
  0x27   : > { %s4204_s22 = scalar_select %p32_p7, %s4050_s29, %s34_s15  }
  0x28   : > { %p4206_p11 = por %p42_p9, %p41_p8  ;;  %p4212_p12 = por %p48_p1, %p47_p10 }
  0x29   : > { %p218_p13 = scmp.eq.s32.totalorder %s4143_s12, 1  ;;  %p224_p0 = scmp.eq.s32.totalorder %s3083_s17, 1 }
  0x2a   : > { %p3532_p2 = scmp.lt.s32.totalorder %s4054_s30, 2  ;;  %s327_s21 = sand.u32 1, %s4050_s29  }
  0x2b   : > { %p4219_p4 = por %p218_p13, %p41_p8  ;;  %p4223_p6 = por %p224_p0, %p47_p10 }
  0x2c   : > { %s3092_s24 = sshll.u32 %s327_s21, 6  ;;  %s3397_s25 = sshll.u32 %s4054_s30, 6 }
  0x2d   : > { %s336_s16 = scalar_lea.hbm %s5075_s0, %s3397_s25  ;;  %s331_s11 = scalar_lea.vmem [#allocation2], %s3092_s24 }
  0x2e   : > { %s339_s15 = sshll.u32 %s331_s11, 4  ;;  %s337_s10 = sshll.u32 %s336_s16, 4  ;;  %s340_s15 = int_to_ptr.vmem [resolvable:$true] %s339_s15  ;;  %s338_s10 = int_to_ptr.hbm [resolvable:$true] %s337_s10 }
  0x2f   : > { %p4233_p7 = pnand %p3532_p2, %p4206_p11  ;;  %s328_s14 = scalar_lea.sflag [#allocation3], %s327_s21 }
  0x30   : > { %s3946_s2 = sshra.s32 %s338_s10, 4  ;;  %s3953_s9 = scalar_lea.hbm %s5075_s0, 128  ;;  %s3947_s2 = int_to_ptr.hbm [resolvable:$true] %s3946_s2 }
  0x31   : > { %s3948_s3 = scalar_lea.hbm %s3947_s2, 64  ;;  %p3950_p9 = pneg %p4233_p7 }
  0x32   : > { %p3949_p8 = scmp.ne.s32.totalorder %s3947_s2, %s3948_s3  ;;  %p3954_p11 = scmp.lt.s32.totalorder %s3947_s2, %s5075_s0 }
  0x33   : > { %p3955_p0 = scmp.lt.s32.totalorder %s3953_s9, %s3948_s3 }
  0x34   : > { %p3951_p10 = pnand %p3950_p9, %p3949_p8 }
  0x35   : > { %p3956_p2 = por %p3955_p0, %p3954_p11 }
  0x36   : > { %p3952_p13 = pneg %p3951_p10 }
  0x38   : > { %p3957_p5 = pnand %p3956_p2, %p3952_p13 }
  0x3a   : > { %3960 = shalt.err (!%p3957_p5)
}
  0x3b   : > { %s5099_s21 = smov 8   ;;  %s5100_s16 = smov 128  }
  0x3c   : > { %3521 = dma.hbm_to_vmem [thread:$0]  (!%p4233_p7), %s338_s10, 1024, %s340_s15, %s328_s14, %s5100_s16, %s5100_s16, %s5099_s21  }
  0x3d   : > { %351 = sbr.rel (%p4148_p3) target bundleno = 2199 (0x897), region = 52  ;;  %s4253_s11 = sand.u32 (!%p4148_p3), 1, %s4046_s28  }
  0x3e   : > { %s3096_s2 = sshll.u32 (!%p4148_p3), %s4253_s11, 6  ;;  %s354_s3 = scalar_lea.sflag (!%p4148_p3), [#allocation3], %s4253_s11 }
  0x3f   : > { %s4259_s24 = scalar_lea.vmem (!%p4148_p3), [#allocation2], %s3096_s2 }
  0x42   : > { %4021 = dma.done.wait (%p4212_p12), %s354_s3, 1024  }
  0x43   : > { %4023 = vsyncadd (%p4212_p12), %s354_s3, 4294966272 }
  0x44   : > { %4025 = dma.done.wait (%p48_p1), [#allocation6], 3120  }
  0x45   : > { %4027 = vsyncadd (%p48_p1), [#allocation6], 4294964176 }
  0x46   : > { %4029 = dma.done.wait (%p48_p1), [#allocation9], 3072  }
  0x47   : > { %4031 = vsyncadd (%p48_p1), [#allocation9], 4294964224 }
  0x48   : > { %4033 = dma.done.wait (%p48_p1), [#allocation12], 2176  }
  0x49   : > { %4035 = vsyncadd (%p48_p1), [#allocation12], 4294965120  ;;  %v3190_v0 = vld [vmem:[#allocation5 + $0xa8] sm:$0xf]  ;;  %v3420_v1 = vld [vmem:[#allocation5 + $0xb0] sm:$0xf0] }
  0x4a   : > { %v3419_v2 = vld [vmem:[#allocation5 + $0xac] sm:$0xf]  ;;  %v3191_v3 = vor.u32 %v3420_v1, %v3190_v0  ;;  %v3192_v4 = vld [vmem:[#allocation5 + $0xb4] sm:$0xf0]  ;;  %v3178_v5 = vld [vmem:[#allocation5 + $0x90] sm:$0xf] }
  0x4b   : > { %v3417_v6 = vld [vmem:[#allocation5 + $0x98] sm:$0xf0]  ;;  %v3195_v7 = vor.u32 %v3419_v2, %v3192_v4  ;;  %v3416_v8 = vld [vmem:[#allocation5 + $0x94] sm:$0xf]  ;;  %v3180_v9 = vld [vmem:[#allocation5 + $0x9c] sm:$0xf0] }
  0x4c   : > { %610 = vmatpush.bf16.msra.mxu0 %v3191_v3  ;;  %v3179_v10 = vor.u32 %v3417_v6, %v3178_v5  ;;  %v3183_v11 = vor.u32 %v3416_v8, %v3180_v9  ;;  %v3166_v12 = vld [vmem:[#allocation5 + $0x78] sm:$0xf]  ;;  %v3414_v13 = vld [vmem:[#allocation5 + $0x80] sm:$0xf0]  ;;  %v3413_v14 = vld [vmem:[#allocation5 + $0x7c] sm:$0xf] }
  0x4d   : > { %639 = vmatpush.bf16.msra.mxu1 %v3195_v7  ;;  %v3168_v15 = vld [vmem:[#allocation5 + $0x84] sm:$0xf0]  ;;  %v3167_v16 = vor.u32 %v3414_v13, %v3166_v12  ;;  %v3154_v18 = vld [vmem:[#allocation5 + $0x60] sm:$0xf]  ;;  %v3411_v19 = vld [vmem:[#allocation5 + $0x68] sm:$0xf0] }
  0x4e   : > { %v3171_v17 = vor.u32 %v3413_v14, %v3168_v15  ;;  %v3410_v20 = vld [vmem:[#allocation5 + $0x64] sm:$0xf]  ;;  %v3156_v21 = vld [vmem:[#allocation5 + $0x6c] sm:$0xf0]  ;;  %v3155_v22 = vor.u32 %v3411_v19, %v3154_v18  ;;  %v3142_v23 = vld [vmem:[#allocation5 + $0x48] sm:$0xf] }
  0x4f   : > { %v3198_v24 = vld [vmem:[#allocation5 + $0xb0] sm:$0xf]  ;;  %v3421_v25 = vld [vmem:[#allocation5 + $0xb8] sm:$0xf0]  ;;  %v3159_v26 = vor.u32 %v3410_v20, %v3156_v21  ;;  %v3408_v27 = vld [vmem:[#allocation5 + $0x50] sm:$0xf0] }
  0x50   : > { %611 = vmatpush.bf16.msra.mxu0 %v3179_v10  ;;  %v3199_v28 = vor.u32 %v3421_v25, %v3198_v24  ;;  %v3186_v29 = vld [vmem:[#allocation5 + $0x98] sm:$0xf]  ;;  %v3418_v30 = vld [vmem:[#allocation5 + $0xa0] sm:$0xf0]  ;;  %v3407_v31 = vld [vmem:[#allocation5 + $0x4c] sm:$0xf]  ;;  %v3143_v35 = vor.u32 %v3408_v27, %v3142_v23 }
  0x51   : > { %640 = vmatpush.bf16.msra.mxu1 %v3183_v11  ;;  %v3144_v32 = vld [vmem:[#allocation5 + $0x54] sm:$0xf0]  ;;  %v3130_v33 = vld [vmem:[#allocation5 + $0x30] sm:$0xf]  ;;  %v3187_v34 = vor.u32 %v3418_v30, %v3186_v29  ;;  %v3174_v36 = vld [vmem:[#allocation5 + $0x80] sm:$0xf] }
  0x52   : > { %668 = vmatpush.bf16.msra.mxu2 %v3199_v28  ;;  %v3415_v37 = vld [vmem:[#allocation5 + $0x88] sm:$0xf0]  ;;  %v3147_v38 = vor.u32 %v3407_v31, %v3144_v32  ;;  %v3405_v39 = vld [vmem:[#allocation5 + $0x38] sm:$0xf0]  ;;  %v3404_v40 = vld [vmem:[#allocation5 + $0x34] sm:$0xf] }
  0x53   : > { %v3132_v41 = vld [vmem:[#allocation5 + $0x3c] sm:$0xf0]  ;;  %v3175_v42 = vor.u32 %v3415_v37, %v3174_v36  ;;  %v3131_v43 = vor.u32 %v3405_v39, %v3130_v33  ;;  %v3162_v44 = vld [vmem:[#allocation5 + $0x68] sm:$0xf]  ;;  %v3412_v45 = vld [vmem:[#allocation5 + $0x70] sm:$0xf0] }
  0x54   : > { %612 = vmatpush.bf16.msra.mxu0 %v3167_v16  ;;  %v3135_v46 = vor.u32 %v3404_v40, %v3132_v41  ;;  %v3118_v47 = vld [vmem:[#allocation5 + $0x18] sm:$0xf]  ;;  %v3402_v48 = vld [vmem:[#allocation5 + $0x20] sm:$0xf0]  ;;  %v3401_v49 = vld [vmem:[#allocation5 + $0x1c] sm:$0xf]  ;;  %v3163_v51 = vor.u32 %v3412_v45, %v3162_v44 }
  0x55   : > { %641 = vmatpush.bf16.msra.mxu1 %v3171_v17  ;;  %v3120_v50 = vld [vmem:[#allocation5 + $0x24] sm:$0xf0]  ;;  %v3119_v52 = vor.u32 %v3402_v48, %v3118_v47  ;;  %v3150_v53 = vld [vmem:[#allocation5 + $0x50] sm:$0xf]  ;;  %v3409_v54 = vld [vmem:[#allocation5 + $0x58] sm:$0xf0] }
  0x56   : > { %669 = vmatpush.bf16.msra.mxu2 %v3187_v34  ;;  %v3123_v55 = vor.u32 %v3401_v49, %v3120_v50  ;;  %v3106_v56 = vld [vmem:[#allocation5] sm:$0xf]  ;;  %v3399_v57 = vld [vmem:[#allocation5 + $0x8] sm:$0xf0]  ;;  %v3398_v58 = vld [vmem:[#allocation5 + $0x4] sm:$0xf]  ;;  %v3151_v61 = vor.u32 %v3409_v54, %v3150_v53 }
  0x57   : > { %v3108_v59 = vld [vmem:[#allocation5 + $0xc] sm:$0xf0]  ;;  %v424_v60 = vld [vmem:[%s4259_s24] sm:$0xff]  ;;  %v3107_v62 = vor.u32 %v3399_v57, %v3106_v56  ;;  %v425_v63 = vld [vmem:[%s4259_s24 + $0x8] sm:$0xff]  ;;  %vm853_vm0 = vcmask 261120   ;;  %s4068_s13 = smov 96  }
  0x58   : > { %613 = vmatpush.bf16.msra.mxu0 %v3155_v22  ;;  %v3138_v0 = vld [vmem:[#allocation5 + $0x38] sm:$0xf]  ;;  %v3406_v1 = vld [vmem:[#allocation5 + $0x40] sm:$0xf0]  ;;  %v3111_v2 = vor.u32 %v3398_v58, %v3108_v59  ;;  %v438_v3 = vpack.c.bf16 %v425_v63, %v424_v60  ;;  %v3126_v5 = vld [vmem:[#allocation5 + $0x20] sm:$0xf] }
  0x59   : > { %642 = vmatpush.bf16.msra.mxu1 %v3159_v26  ;;  %v3139_v4 = vor.u32 %v3406_v1, %v3138_v0  ;;  %v3403_v6 = vld [vmem:[#allocation5 + $0x28] sm:$0xf0]  ;;  %v3114_v8 = vld [vmem:[#allocation5 + $0x8] sm:$0xf]  ;;  %v3400_v9 = vld [vmem:[#allocation5 + $0x10] sm:$0xf0] }
  0x5a   : > { %670 = vmatpush.bf16.msra.mxu2 %v3175_v42  ;;  %v3127_v7 = vor.u32 %v3403_v6, %v3126_v5  ;;  %v3115_v10 = vor.u32 %v3400_v9, %v3114_v8  ;;  %v426_v11 = vld [vmem:[%s4259_s24 + $0x10] sm:$0xff]  ;;  %v427_v12 = vld [vmem:[%s4259_s24 + $0x18] sm:$0xff]  ;;  %v428_v14 = vld [vmem:[%s4259_s24 + $0x20] sm:$0xff]  ;;  %s4069_s10 = smov 64   ;;  %s4070_s14 = smov 32   ;;  %vm1174_vm1 = vcmask 130048  }
  0x5b   : > { %v439_v13 = vpack.c.bf16 %v427_v12, %v426_v11  ;;  %v429_v15 = vld [vmem:[%s4259_s24 + $0x28] sm:$0xff]  ;;  %v430_v17 = vld [vmem:[%s4259_s24 + $0x30] sm:$0xff]  ;;  %v431_v18 = vld [vmem:[%s4259_s24 + $0x38] sm:$0xff]  ;;  %vm2059_vm2 = vcmask 523264   ;;  %vm2068_vm3 = vcmask 785408   ;;  %s5004_s17 = scalar_lea.vmem [#allocation14], %s3096_s2 }
  0x5c   : > { %614 = vmatpush.bf16.msra.mxu0 %v3143_v35  ;;  %v440_v16 = vpack.c.bf16 %v429_v15, %v428_v14  ;;  %v441_v19 = vpack.c.bf16 %v431_v18, %v430_v17  ;;  %v4285_v20 = vld [vmem:[#allocation7] sm:$0x7]  ;;  %s3462_s25 = sshll.u32 %s4143_s12, 6  ;;  %s2950_s21 = sshll.u32 %s5004_s17, 4  ;;  %s2951_s21 = int_to_ptr.vmem [resolvable:$true] %s2950_s21 }
  0x5d   : > { %643 = vmatpush.bf16.msra.mxu1 %v3147_v38  ;;  %v4288_v23 = vperm.slane %v4285_v20, 0  ;;  %v4291_v24 = vperm.slane %v4285_v20, 1  ;;  %s2949_s18 = scalar_lea.hbm %s5083_s8, %s3462_s25  ;;  %s2938_s16 = scalar_lea.sflag [#allocation4], %s4253_s11 }
  0x5e   : > { %671 = vmatpush.bf16.msra.mxu2 %v3163_v51  ;;  %s2952_s12 = sshll.u32 %s2949_s18, 4  ;;  %s2953_s12 = int_to_ptr.hbm [resolvable:$true] %s2952_s12 }
  0x5f   : > { %s3990_s2 = sshra.s32 %s2953_s12, 4  ;;  %s3991_s2 = int_to_ptr.hbm [resolvable:$true] %s3990_s2 }
  0x60   : > { %615 = vmatpush.bf16.msra.mxu0 %v3131_v43  ;;  %s3992_s3 = scalar_lea.hbm %s3991_s2, 64  ;;  %p3997_p12 = scmp.lt.s32.totalorder %s3991_s2, %s5083_s8 }
  0x61   : > { %644 = vmatpush.bf16.msra.mxu1 %v3135_v46  ;;  %p3993_p1 = scmp.ne.s32.totalorder %s3991_s2, %s3992_s3 }
  0x62   : > { %672 = vmatpush.bf16.msra.mxu2 %v3151_v61 }
  0x63   : > { %p3994_p3 = pnand %p3993_p1, %p4219_p4 }
  0x64   : > { %616 = vmatpush.bf16.msra.mxu0 %v3119_v52 }
  0x65   : > { %645 = vmatpush.bf16.msra.mxu1 %v3123_v55  ;;  %p3995_p5 = pneg %p3994_p3 }
  0x66   : > { %673 = vmatpush.bf16.msra.mxu2 %v3139_v4 }
  0x68   : > { %617 = vmatpush.bf16.msra.mxu0 %v3107_v62 }
  0x69   : > { %646 = vmatpush.bf16.msra.mxu1 %v3111_v2 }
  0x6a   : > { %674 = vmatpush.bf16.msra.mxu2 %v3127_v7 }
  0x6b   : > { %618 = vmatmul.bf16.vlgmr.msra.gmra.mxu0 %v438_v3 }
  0x6c   : > { %647 = vmatmul.bf16.vlgmr.msra.gmra.mxu1 %v438_v3 }
  0x6e   : > { %675 = vmatpush.bf16.msra.mxu2 %v3115_v10 }
  0x71   : > { %676 = vmatmul.bf16.vlgmr.msra.gmra.mxu2 %v438_v3 }
  0x7b   : > { %623 = vmatmul.bf16.gmra.mxu0 %v439_v13 }
  0x7c   : > { %652 = vmatmul.bf16.gmra.mxu1 %v439_v13 }
  0x81   : > { %681 = vmatmul.bf16.gmra.mxu2 %v439_v13 }
  0x8b   : > { %628 = vmatmul.bf16.gmra.mxu0 %v440_v16 }
  0x8c   : > { %657 = vmatmul.bf16.gmra.mxu1 %v440_v16 }
  0x91   : > { %686 = vmatmul.bf16.gmra.mxu2 %v440_v16 }
  0x9b   : > { %633 = vmatmul.bf16.gmra.mxu0 %v441_v19 }
  0x9c   : > { %662 = vmatmul.bf16.gmra.mxu1 %v441_v19 }
  0xa1   : > { %691 = vmatmul.bf16.gmra.mxu2 %v441_v19  ;;  %v4327_v19 = vperm.slane %v4285_v20, 2 }
  0xe8   : > { %v619_v21 = vpop.f32.mrf.mxu0 }
  0xe9   : > { %v648_v22 = vpop.f32.mrf.mxu1  ;;  %v620_v25 = vadd.f32 %v619_v21, %v4288_v23 }
  0xea   : > { %v649_v26 = vadd.f32 %v648_v22, %v4291_v24 }
  0xec   : > { %v697_v30 = vpack.c.bf16 %v649_v26, %v620_v25 }
  0xee   : > { %v721_v33 = vunpack.c.l.b16 %v697_v30  ;;  %v757_v34 = vunpack.c.h.b16 %v697_v30 }
  0xf0   : > { %v621_v27 = vpop.f32.mrf.mxu0 }
  0xf1   : > { %v622_v28 = vadd.f32 %v621_v27, %v4288_v23  ;;  %v650_v29 = vpop.f32.mrf.mxu1 }
  0xf2   : > { %v651_v31 = vadd.f32 %v650_v29, %v4291_v24 }
  0xf4   : > { %v699_v32 = vpack.c.bf16 %v651_v31, %v622_v28  ;;  %v4303_v47 = vpop.f32.mrf.mxu2 }
  0xf6   : > { %v722_v35 = vunpack.c.l.b16 %v699_v32  ;;  %v758_v36 = vunpack.c.h.b16 %v699_v32 }
  0xf8   : > { %v624_v37 = vpop.f32.mrf.mxu0  ;;  %v765_v38 = vpack.c.b16 %v758_v36, %v757_v34  ;;  %v729_v39 = vpack.c.b16 %v722_v35, %v721_v33 }
  0xf9   : > { %v653_v40 = vpop.f32.mrf.mxu1  ;;  %v625_v42 = vadd.f32 %v624_v37, %v4288_v23 }
  0xfa   : > { %769 = vrot.lane.b32.xlu0 %v765_v38, %s4068_s13  ;;  %741 = vrot.lane.b32.xlu2 %v729_v39, %s4069_s10  ;;  %v858_v41 = vsel %vm853_vm0, %v765_v38, 0  ;;  %v654_v43 = vadd.f32 %v653_v40, %v4291_v24 }
  0xfb   : > { %867 = vmatpush.bf16.xpose.msrb.mxu0 %v858_v41 }
  0xfc   : > { %v701_v48 = vpack.c.bf16 %v654_v43, %v625_v42  ;;  %v679_v60 = vpop.f32.mrf.mxu2 }
  0xfd   : > { %v680_v30 = vadd.f32 %v679_v60, %v4327_v19 }
  0xfe   : > { %v723_v51 = vunpack.c.l.b16 %v701_v48  ;;  %v759_v52 = vunpack.c.h.b16 %v701_v48 }
  0xff   : > { %v700_v36 = vpack.c.bf16 %v680_v30, %v680_v30 }
 0x100   : > { %v626_v44 = vpop.f32.mrf.mxu0 }
 0x101   : > { %v627_v45 = vadd.f32 %v626_v44, %v4288_v23  ;;  %v655_v46 = vpop.f32.mrf.mxu1  ;;  %v802_v43 = vunpack.c.l.b16 %v700_v36 }
 0x102   : > { %v656_v49 = vadd.f32 %v655_v46, %v4291_v24  ;;  %733 = vrot.lane.b32.xlu0 %v729_v39, %s4068_s13  ;;  %3200 = vmatmul.msk.bf16.vlgmr.msrb.gmra.mxu0 %vm853_vm0, %v729_v39 }
 0x104   : > { %v703_v50 = vpack.c.bf16 %v656_v49, %v627_v45  ;;  %v682_v7 = vpop.f32.mrf.mxu2 }
 0x105   : > { %v683_v29 = vadd.f32 %v682_v7, %v4327_v19 }
 0x106   : > { %v724_v53 = vunpack.c.l.b16 %v703_v50  ;;  %v760_v54 = vunpack.c.h.b16 %v703_v50 }
 0x107   : > { %v702_v33 = vpack.c.bf16 %v683_v29, %v683_v29 }
 0x108   : > { %v629_v55 = vpop.f32.mrf.mxu0  ;;  %v766_v56 = vpack.c.b16 %v760_v54, %v759_v52  ;;  %v730_v57 = vpack.c.b16 %v724_v53, %v723_v51 }
 0x109   : > { %v658_v58 = vpop.f32.mrf.mxu1  ;;  %v630_v61 = vadd.f32 %v629_v55, %v4288_v23  ;;  %v803_v40 = vunpack.c.l.b16 %v702_v33 }
 0x10a   : > { %771 = vrot.lane.b32.xlu1 %v766_v56, %s4068_s13  ;;  %735 = vrot.lane.b32.xlu2 %v730_v57, %s4068_s13  ;;  %v878_v59 = vsel %vm853_vm0, %v766_v56, 0  ;;  %v659_v62 = vadd.f32 %v658_v58, %v4291_v24 }
 0x10b   : > { %749 = vrot.lane.b32.xlu0 %v729_v39, %s4070_s14  ;;  %887 = vmatpush.bf16.xpose.msra.mxu3 %v878_v59 }
 0x10c   : > { %v705_v63 = vpack.c.bf16 %v659_v62, %v630_v61  ;;  %v684_v17 = vpop.f32.mrf.mxu2 }
 0x10d   : > { %v685_v20 = vadd.f32 %v684_v17, %v4327_v19 }
 0x10e   : > { %v725_v4 = vunpack.c.l.b16 %v705_v63  ;;  %v761_v5 = vunpack.c.h.b16 %v705_v63 }
 0x10f   : > { %v704_v34 = vpack.c.bf16 %v685_v20, %v685_v20 }
 0x110   : > { %v631_v0 = vpop.f32.mrf.mxu0 }
 0x111   : > { %v632_v1 = vadd.f32 %v631_v0, %v4288_v23  ;;  %v660_v2 = vpop.f32.mrf.mxu1  ;;  %v804_v41 = vunpack.c.l.b16 %v704_v34 }
 0x112   : > { %v661_v3 = vadd.f32 %v660_v2, %v4291_v24  ;;  %3201 = vmatmul.msk.bf16.vlgmr.msra.gmra.mxu3 %vm853_vm0, %v730_v57  ;;  %777 = vrot.lane.b32.xlu1 %v765_v38, %s4069_s10 }
 0x113   : > { %743 = vrot.lane.b32.xlu2 %v730_v57, %s4069_s10  ;;  %779 = vrot.lane.b32.xlu0 %v766_v56, %s4069_s10  ;;  %v4344_v45 = vpack.c.b16 %v804_v41, %v803_v40 }
 0x114   : > { %v707_v6 = vpack.c.bf16 %v661_v3, %v632_v1  ;;  %v687_v31 = vpop.f32.mrf.mxu2 }
 0x115   : > { %v688_v48 = vadd.f32 %v687_v31, %v4327_v19 }
 0x116   : > { %v726_v8 = vunpack.c.l.b16 %v707_v6  ;;  %v762_v9 = vunpack.c.h.b16 %v707_v6 }
 0x117   : > { %v706_v50 = vpack.c.bf16 %v688_v48, %v688_v48 }
 0x118   : > { %v767_v10 = vpack.c.b16 %v762_v9, %v761_v5  ;;  %v634_v11 = vpop.f32.mrf.mxu0  ;;  %v731_v12 = vpack.c.b16 %v726_v8, %v725_v4 }
 0x119   : > { %v663_v13 = vpop.f32.mrf.mxu1  ;;  %v635_v15 = vadd.f32 %v634_v11, %v4288_v23  ;;  %v805_v52 = vunpack.c.l.b16 %v706_v50 }
 0x11a   : > { %785 = vrot.lane.b32.xlu1 %v765_v38, %s4070_s14  ;;  %v898_v14 = vsel %vm853_vm0, %v767_v10, 0  ;;  %v664_v16 = vadd.f32 %v663_v13, %v4291_v24 }
 0x11b   : > { %787 = vrot.lane.b32.xlu2 %v766_v56, %s4070_s14  ;;  %907 = vmatpush.bf16.xpose.msrb.mxu3 %v898_v14 }
 0x11c   : > { %737 = vrot.lane.b32.xlu0 %v731_v12, %s4068_s13  ;;  %v709_v18 = vpack.c.bf16 %v664_v16, %v635_v15 }
 0x11e   : > { %v763_v27 = vunpack.c.h.b16 %v709_v18  ;;  %v727_v37 = vunpack.c.l.b16 %v709_v18 }
 0x120   : > { %v636_v21 = vpop.f32.mrf.mxu0 }
 0x121   : > { %v637_v22 = vadd.f32 %v636_v21, %v4288_v23  ;;  %v665_v25 = vpop.f32.mrf.mxu1  ;;  %v678_v23 = vadd.f32 %v4303_v47, %v4327_v19  ;;  %v689_v47 = vpop.f32.mrf.mxu2 }
 0x122   : > { %v666_v26 = vadd.f32 %v665_v25, %v4291_v24  ;;  %3202 = vmatmul.msk.bf16.vlgmr.msrb.gmra.mxu3 %vm853_vm0, %v731_v12  ;;  %773 = vrot.lane.b32.xlu1 %v767_v10, %s4068_s13  ;;  %v690_v49 = vadd.f32 %v689_v47, %v4327_v19 }
 0x123   : > { %745 = vrot.lane.b32.xlu2 %v731_v12, %s4069_s10  ;;  %v698_v35 = vpack.c.bf16 %v678_v23, %v678_v23 }
 0x124   : > { %v711_v28 = vpack.c.bf16 %v666_v26, %v637_v22  ;;  %781 = vrot.lane.b32.xlu0 %v767_v10, %s4069_s10  ;;  %v708_v51 = vpack.c.bf16 %v690_v49, %v690_v49 }
 0x125   : > { %v801_v42 = vunpack.c.l.b16 %v698_v35 }
 0x126   : > { %v764_v24 = vunpack.c.h.b16 %v711_v28  ;;  %v728_v38 = vunpack.c.l.b16 %v711_v28  ;;  %v806_v53 = vunpack.c.l.b16 %v708_v51 }
 0x127   : > { %v809_v46 = vpack.c.b16 %v802_v43, %v801_v42 }
 0x128   : > { %v768_v32 = vpack.c.b16 %v764_v24, %v763_v27  ;;  %v732_v44 = vpack.c.b16 %v728_v38, %v727_v37  ;;  %v4357_v54 = vpack.c.b16 %v806_v53, %v805_v52 }
 0x129   : > { %v692_v49 = vpop.f32.mrf.mxu2 }
 0x12a   : > { %751 = vrot.lane.b32.xlu1 %v730_v57, %s4070_s14  ;;  %v918_v39 = vsel %vm853_vm0, %v768_v32, 0  ;;  %v693_v50 = vadd.f32 %v692_v49, %v4327_v19 }
 0x12b   : > { %927 = vmatpush.bf16.xpose.msra.mxu3 %v918_v39  ;;  %775 = vrot.lane.b32.xlu2 %v768_v32, %s4068_s13 }
 0x12c   : > { %753 = vrot.lane.b32.xlu0 %v731_v12, %s4070_s14  ;;  %v710_v52 = vpack.c.bf16 %v693_v50, %v693_v50 }
 0x131   : > { %v694_v51 = vpop.f32.mrf.mxu2 }
 0x132   : > { %3203 = vmatmul.msk.bf16.vlgmr.msra.gmra.mxu3 %vm853_vm0, %v732_v44  ;;  %739 = vrot.lane.b32.xlu1 %v732_v44, %s4068_s13  ;;  %v695_v53 = vadd.f32 %v694_v51, %v4327_v19 }
 0x133   : > { %829 = vrot.lane.b32.xlu2 %v809_v46, %s4069_s10 }
 0x134   : > { %819 = vrot.lane.b32.xlu0 %v4344_v45, %s4068_s13 }
 0x13a   : > { %789 = vrot.lane.b32.xlu1 %v767_v10, %s4070_s14 }
 0x13b   : > { %831 = vrot.lane.b32.xlu2 %v4344_v45, %s4069_s10 }
 0x13c   : > { %783 = vrot.lane.b32.xlu0 %v768_v32, %s4069_s10 }
 0x142   : > { %817 = vrot.lane.b32.xlu1 %v809_v46, %s4068_s13 }
 0x143   : > { %747 = vrot.lane.b32.xlu2 %v732_v44, %s4069_s10 }
 0x144   : > { %821 = vrot.lane.b32.xlu0 %v4357_v54, %s4068_s13 }
 0x14a   : > { %791 = vrot.lane.b32.xlu1 %v768_v32, %s4070_s14 }
 0x14b   : > { %755 = vrot.lane.b32.xlu2 %v732_v44, %s4070_s14 }
 0x152   : > { %841 = vrot.lane.b32.xlu1 %v809_v46, %s4070_s14 }
 0x154   : > { %v742_v55 = vpop.permute.xlu2 %741 }
 0x15a   : > { %843 = vrot.lane.b32.xlu1 %v4344_v45, %s4070_s14 }
 0x164   : > { %v736_v56 = vpop.permute.xlu2 %735 }
 0x16c   : > { %v770_v57 = vpop.permute.xlu0 %769 }
 0x16d   : > { %v938_v58 = vsel %vm853_vm0, %v770_v57, 0  ;;  %v744_v59 = vpop.permute.xlu2 %743 }
 0x16e   : > { %947 = vmatpush.bf16.xpose.msrb.mxu3 %v938_v58 }
 0x174   : > { %v734_v60 = vpop.permute.xlu0 %733 }
 0x175   : > { %v788_v61 = vpop.permute.xlu2 %787  ;;  %3204 = vmatmul.msk.bf16.vlgmr.msrb.gmra.mxu3 %vm853_vm0, %v734_v60 }
 0x176   : > { %v1118_v10 = vsel %vm853_vm0, %v788_v61, 0 }
 0x17c   : > { %v772_v62 = vpop.permute.xlu1 %771 }
 0x17d   : > { %v958_v63 = vsel %vm853_vm0, %v772_v62, 0  ;;  %v750_v0 = vpop.permute.xlu0 %749  ;;  %v746_v1 = vpop.permute.xlu2 %745 }
 0x17e   : > { %967 = vmatpush.bf16.xpose.msra.mxu3 %v958_v63 }
 0x17f   : > { %v4371_v2 = vpop.f32.mrf.mxu0 }
 0x180   : > { %v1175_v3 = vsel %vm1174_vm1, %v4371_v2, -inf }
 0x181   : > { %1176 = vmax.xlane.f32.xlu0 %v1175_v3 }
 0x184   : > { %v778_v4 = vpop.permute.xlu1 %777 }
 0x185   : > { %v780_v5 = vpop.permute.xlu0 %779  ;;  %3205 = vmatmul.msk.bf16.vlgmr.msra.gmra.mxu3 %vm853_vm0, %v736_v56  ;;  %v1018_v6 = vsel %vm853_vm0, %v778_v4, 0  ;;  %v776_v7 = vpop.permute.xlu2 %775  ;;  %v712_v56 = vpack.c.bf16 %v695_v53, %v695_v53 }
 0x186   : > { %v1038_v8 = vsel %vm853_vm0, %v780_v5, 0  ;;  %1027 = vmatpush.bf16.xpose.msrb.mxu2 %v1018_v6  ;;  %v998_v9 = vsel %vm853_vm0, %v776_v7, 0 }
 0x187   : > { %1047 = vmatpush.bf16.xpose.msrb.mxu3 %v1038_v8  ;;  %v4380_v11 = vpop.f32.mrf.mxu0  ;;  %1007 = vmatpush.bf16.xpose.msrb.mxu1 %v998_v9  ;;  %v808_v57 = vunpack.c.l.b16 %v712_v56 }
 0x188   : > { %v1178_v12 = vsel %vm1174_vm1, %v4380_v11, -inf }
 0x189   : > { %1179 = vmax.xlane.f32.xlu1 %v1178_v12 }
 0x18c   : > { %v786_v13 = vpop.permute.xlu1 %785 }
 0x18d   : > { %v1098_v14 = vsel %vm853_vm0, %v786_v13, 0  ;;  %3208 = vmatmul.msk.bf16.vlgmr.msrb.gmra.mxu2 %vm853_vm0, %v742_v55  ;;  %v4400_v20 = vpop.permute.xlu2 %829  ;;  %v807_v55 = vunpack.c.l.b16 %v710_v52 }
 0x18e   : > { %1107 = vmatpush.bf16.xpose.msra.mxu2 %v1098_v14  ;;  %v738_v15 = vpop.permute.xlu0 %737 }
 0x18f   : > { %1127 = vmatpush.bf16.xpose.msra.mxu3 %v1118_v10  ;;  %v4432_v58 = vpack.c.b16 %v808_v57, %v807_v55 }
 0x194   : > { %v774_v16 = vpop.permute.xlu1 %773 }
 0x195   : > { %v978_v17 = vsel %vm853_vm0, %v774_v16, 0  ;;  %v4387_v18 = vpop.f32.mrf.mxu3  ;;  %3209 = vmatmul.msk.bf16.vlgmr.msrb.gmra.mxu3 %vm853_vm0, %v744_v59  ;;  %v4408_v32 = vpop.permute.xlu2 %831 }
 0x196   : > { %1574 = vmatpush.bf16.msrb.mxu2 %v809_v46  ;;  %v1181_v21 = vsel %vm1174_vm1, %v4387_v18, -inf  ;;  %v782_v22 = vpop.permute.xlu0 %781  ;;  %987 = vmatpush.bf16.xpose.msra.mxu0 %v978_v17 }
 0x197   : > { %1596 = vmatpush.bf16.msrb.mxu3 %v4344_v45  ;;  %1182 = vmax.xlane.f32.xlu2 %v1181_v21  ;;  %v1058_v25 = vsel %vm853_vm0, %v782_v22, 0 }
 0x19c   : > { %v752_v26 = vpop.permute.xlu1 %751 }
 0x19d   : > { %v4394_v27 = vpop.f32.mrf.mxu3  ;;  %3212 = vmatmul.msk.bf16.vlgmr.msra.gmra.mxu2 %vm853_vm0, %v750_v0  ;;  %3206 = vmatmul.msk.bf16.vlgmr.msra.gmra.mxu0 %vm853_vm0, %v738_v15  ;;  %v748_v40 = vpop.permute.xlu2 %747 }
 0x19e   : > { %1067 = vmatpush.bf16.xpose.msrb.mxu0 %v1058_v25  ;;  %v1184_v28 = vsel %vm1174_vm1, %v4394_v27, -inf  ;;  %v754_v29 = vpop.permute.xlu0 %753 }
 0x19f   : > { %1185 = vmax.xlane.f32.xlu2 %v1184_v28 }
 0x1a4   : > { %v740_v23 = vpop.permute.xlu1 %739 }
 0x1a5   : > { %v4402_v30 = vpop.f32.mrf.mxu3  ;;  %3213 = vmatmul.msk.bf16.vlgmr.msra.gmra.mxu3 %vm853_vm0, %v752_v26  ;;  %3207 = vmatmul.msk.bf16.vlgmr.msrb.gmra.mxu1 %vm853_vm0, %v740_v23  ;;  %v756_v48 = vpop.permute.xlu2 %755 }
 0x1a6   : > { %v1187_v24 = vsel %vm1174_vm1, %v4402_v30, -inf  ;;  %v820_v31 = vpop.permute.xlu0 %819 }
 0x1a7   : > { %1188 = vmax.xlane.f32.xlu0 %v1187_v24  ;;  %1684 = vmatpush.bf16.msra.mxu3 %v820_v31 }
 0x1ac   : > { %v790_v33 = vpop.permute.xlu1 %789 }
 0x1ad   : > { %v4410_v34 = vpop.f32.mrf.mxu3  ;;  %v1138_v35 = vsel %vm853_vm0, %v790_v33, 0  ;;  %3210 = vmatmul.msk.bf16.vlgmr.msrb.gmra.mxu0 %vm853_vm0, %v746_v1 }
 0x1ae   : > { %v1190_v36 = vsel %vm1174_vm1, %v4410_v34, -inf  ;;  %v784_v37 = vpop.permute.xlu0 %783  ;;  %1147 = vmatpush.bf16.xpose.msra.mxu0 %v1138_v35 }
 0x1af   : > { %1191 = vmax.xlane.f32.xlu1 %v1190_v36  ;;  %v1078_v38 = vsel %vm853_vm0, %v784_v37, 0 }
 0x1b0   : > { %1087 = vmatpush.bf16.xpose.msra.mxu1 %v1078_v38 }
 0x1b4   : > { %v818_v39 = vpop.permute.xlu1 %817 }
 0x1b5   : > { %v4418_v41 = vpop.f32.mrf.mxu3  ;;  %1662 = vmatpush.bf16.msra.mxu2 %v818_v39 }
 0x1b6   : > { %1618 = vmatpush.bf16.msrb.mxu0 %v4357_v54  ;;  %v1193_v42 = vsel %vm1174_vm1, %v4418_v41, -inf  ;;  %v822_v46 = vpop.permute.xlu0 %821 }
 0x1b7   : > { %1194 = vmax.xlane.f32.xlu2 %v1193_v42  ;;  %3211 = vmatmul.msk.bf16.vlgmr.msra.gmra.mxu1 %vm853_vm0, %v748_v40 }
 0x1bc   : > { %v792_v43 = vpop.permute.xlu1 %791 }
 0x1bd   : > { %v4423_v44 = vpop.f32.mrf.mxu3  ;;  %v1158_v45 = vsel %vm853_vm0, %v792_v43, 0  ;;  %3214 = vmatmul.msk.bf16.vlgmr.msra.gmra.mxu0 %vm853_vm0, %v754_v29 }
 0x1be   : > { %v1196_v47 = vsel %vm1174_vm1, %v4423_v44, -inf  ;;  %1167 = vmatpush.bf16.xpose.msrb.mxu1 %v1158_v45  ;;  %1706 = vmatpush.bf16.msra.mxu0 %v822_v46 }
 0x1bf   : > { %1197 = vmax.xlane.f32.xlu0 %v1196_v47 }
 0x1c4   : > { %v4440_v0 = vpop.permute.xlu1 %841 }
 0x1c6   : > { %1640 = vmatpush.bf16.msra.mxu1 %v4432_v58 }
 0x1c7   : > { %3215 = vmatmul.msk.bf16.vlgmr.msrb.gmra.mxu1 %vm853_vm0, %v756_v48 }
 0x1cc   : > { %v4448_v4 = vpop.permute.xlu1 %843 }
 0x1f4   : > { %v1177_v59 = vpop.xlane.xlu0 %1176 }
 0x1f5   : > { %v1271_v60 = vsub.f32 %v4371_v2, %v1177_v59 }
 0x1f7   : > { %v1303_v61 = vmul.f32 1.442695, %v1271_v60 }
 0x1f8   : > { %v4436_v62 = vpop.f32.mrf.mxu3 }
 0x1f9   : > { %3596 = vpow2.f32 %v1303_v61  ;;  %v1199_v63 = vsel %vm1174_vm1, %v4436_v62, -inf }
 0x1fa   : > { %1200 = vmax.xlane.f32.xlu0 %v1199_v63 }
 0x1fc   : > { %v1180_v6 = vpop.xlane.xlu1 %1179 }
 0x1fd   : > { %v1272_v7 = vsub.f32 %v4380_v11, %v1180_v6 }
 0x1ff   : > { %v4442_v19 = vpop.eup %3596  ;;  %v1305_v15 = vmul.f32 1.442695, %v1272_v7 }
 0x200   : > { %v4444_v1 = vpop.f32.mrf.mxu3  ;;  %v1367_v3 = vsel %vm1174_vm1, %v4442_v19, 0.0 }
 0x201   : > { %v1202_v22 = vsel %vm1174_vm1, %v4444_v1, -inf }
 0x202   : > { %1368 = vadd.xlane.f32.xlu0 %v1367_v3 }
 0x208   : > { %v4450_v2 = vpop.f32.mrf.mxu3 }
 0x209   : > { %v1205_v24 = vsel %vm1174_vm1, %v4450_v2, -inf }
 0x20a   : > { %v1183_v5 = vpop.xlane.xlu2 %1182 }
 0x20b   : > { %v1273_v28 = vsub.f32 %v4387_v18, %v1183_v5 }
 0x20d   : > { %v1307_v36 = vmul.f32 1.442695, %v1273_v28 }
 0x210   : > { %v4453_v8 = vpop.f32.mrf.mxu3  ;;  %v4455_v9 = vpop.f32.mrf.mxu2 }
 0x211   : > { %v1208_v10 = vsel %vm1174_vm1, %v4453_v8, -inf  ;;  %v1223_v12 = vsel %vm1174_vm1, %v4455_v9, -inf }
 0x212   : > { %v1186_v13 = vpop.xlane.xlu2 %1185  ;;  %1209 = vmax.xlane.f32.xlu0 %v1208_v10  ;;  %1224 = vmax.xlane.f32.xlu1 %v1223_v12 }
 0x213   : > { %v1274_v14 = vsub.f32 %v4394_v27, %v1186_v13 }
 0x215   : > { %v1309_v16 = vmul.f32 1.442695, %v1274_v14 }
 0x217   : > { %3598 = vpow2.f32 %v1309_v16 }
 0x218   : > { %3600 = vpow2.f32 %v1305_v15  ;;  %v4462_v11 = vpop.f32.mrf.mxu2  ;;  %v4464_v17 = vpop.f32.mrf.mxu3 }
 0x219   : > { %v1226_v21 = vsel %vm1174_vm1, %v4462_v11, -inf  ;;  %3602 = vpow2.f32 %v1307_v36  ;;  %v1229_v56 = vsel %vm1174_vm1, %v4464_v17, -inf }
 0x21a   : > { %1227 = vmax.xlane.f32.xlu2 %v1226_v21  ;;  %1203 = vmax.xlane.f32.xlu1 %v1202_v22  ;;  %v4479_v23 = vpop.f32.mrf.mxu0  ;;  %v1189_v33 = vpop.xlane.xlu0 %1188 }
 0x21b   : > { %v1275_v37 = vsub.f32 %v4402_v30, %v1189_v33  ;;  %v1211_v47 = vsel %vm1174_vm1, %v4479_v23, -inf }
 0x21d   : > { %v4470_v25 = vpop.eup %3598  ;;  %v1311_v39 = vmul.f32 1.442695, %v1275_v37 }
 0x21e   : > { %v4472_v26 = vpop.eup %3600  ;;  %v1376_v27 = vsel %vm1174_vm1, %v4470_v25, 0.0 }
 0x21f   : > { %1377 = vadd.xlane.f32.xlu0 %v1376_v27  ;;  %v1370_v31 = vsel %vm1174_vm1, %v4472_v26, 0.0  ;;  %3604 = vpow2.f32 %v1311_v39  ;;  %v4502_v46 = vpop.eup %3602 }
 0x220   : > { %v4477_v29 = vpop.f32.mrf.mxu2  ;;  %v4485_v35 = vpop.f32.mrf.mxu3  ;;  %v1373_v48 = vsel %vm1174_vm1, %v4502_v46, 0.0 }
 0x221   : > { %v1232_v18 = vsel %vm1174_vm1, %v4485_v35, -inf  ;;  %v1247_v42 = vsel %vm1174_vm1, %v4477_v29, -inf }
 0x222   : > { %1206 = vmax.xlane.f32.xlu2 %v1205_v24  ;;  %1371 = vadd.xlane.f32.xlu1 %v1370_v31  ;;  %v4496_v43 = vpop.f32.mrf.mxu0  ;;  %v4498_v45 = vpop.f32.mrf.mxu1 }
 0x223   : > { %v1217_v30 = vsel %vm1174_vm1, %v4498_v45, -inf  ;;  %v1192_v57 = vpop.xlane.xlu1 %1191  ;;  %v1214_v5 = vsel %vm1174_vm1, %v4496_v43, -inf }
 0x224   : > { %v1276_v3 = vsub.f32 %v4410_v34, %v1192_v57 }
 0x225   : > { %v4508_v49 = vpop.eup %3604 }
 0x226   : > { %v1379_v53 = vsel %vm1174_vm1, %v4508_v49, 0.0  ;;  %v1313_v13 = vmul.f32 1.442695, %v1276_v3 }
 0x227   : > { %1233 = vmax.xlane.f32.xlu0 %v1232_v18 }
 0x228   : > { %v4490_v38 = vpop.f32.mrf.mxu2  ;;  %v4510_v50 = vpop.f32.mrf.mxu3  ;;  %3606 = vpow2.f32 %v1313_v13 }
 0x229   : > { %v1250_v40 = vsel %vm1174_vm1, %v4490_v38, -inf  ;;  %v1253_v61 = vsel %vm1174_vm1, %v4510_v50, -inf }
 0x22a   : > { %1251 = vmax.xlane.f32.xlu2 %v1250_v40  ;;  %1248 = vmax.xlane.f32.xlu1 %v1247_v42  ;;  %v4512_v51 = vpop.f32.mrf.mxu0  ;;  %v4514_v52 = vpop.f32.mrf.mxu1 }
 0x22b   : > { %v1220_v55 = vsel %vm1174_vm1, %v4514_v52, -inf  ;;  %v1195_v59 = vpop.xlane.xlu2 %1194  ;;  %v1235_v22 = vsel %vm1174_vm1, %v4512_v51, -inf }
 0x22c   : > { %v1277_v6 = vsub.f32 %v4418_v41, %v1195_v59 }
 0x22e   : > { %v1315_v14 = vmul.f32 1.442695, %v1277_v6 }
 0x22f   : > { %1218 = vmax.xlane.f32.xlu0 %v1217_v30 }
 0x230   : > { %v4522_v60 = vpop.f32.mrf.mxu3  ;;  %3608 = vpow2.f32 %v1315_v14 }
 0x231   : > { %v1256_v10 = vsel %vm1174_vm1, %v4522_v60, -inf }
 0x232   : > { %1374 = vadd.xlane.f32.xlu2 %v1373_v48  ;;  %1212 = vmax.xlane.f32.xlu1 %v1211_v47  ;;  %v4526_v63 = vpop.f32.mrf.mxu0  ;;  %v1198_v12 = vpop.xlane.xlu0 %1197 }
 0x233   : > { %v1278_v15 = vsub.f32 %v4423_v44, %v1198_v12  ;;  %v1238_v34 = vsel %vm1174_vm1, %v4526_v63, -inf  ;;  %v4547_v44 = vpop.eup %3606 }
 0x234   : > { %v4532_v7 = vpop.f32.mrf.mxu1  ;;  %v1382_v31 = vsel %vm1174_vm1, %v4547_v44, 0.0 }
 0x235   : > { %v1317_v21 = vmul.f32 1.442695, %v1278_v15  ;;  %v1241_v39 = vsel %vm1174_vm1, %v4532_v7, -inf }
 0x236   : > { %v4549_v28 = vpop.eup %3608 }
 0x237   : > { %1380 = vadd.xlane.f32.xlu0 %v1379_v53  ;;  %3610 = vpow2.f32 %v1317_v21  ;;  %v1385_v33 = vsel %vm1174_vm1, %v4549_v28, 0.0 }
 0x23a   : > { %1230 = vmax.xlane.f32.xlu2 %v1229_v56  ;;  %1221 = vmax.xlane.f32.xlu1 %v1220_v55  ;;  %v4539_v16 = vpop.f32.mrf.mxu0 }
 0x23b   : > { %v1259_v41 = vsel %vm1174_vm1, %v4539_v16, -inf }
 0x23c   : > { %v4545_v27 = vpop.f32.mrf.mxu1 }
 0x23d   : > { %v1244_v24 = vsel %vm1174_vm1, %v4545_v27, -inf  ;;  %v4557_v36 = vpop.eup %3610 }
 0x23e   : > { %v1388_v18 = vsel %vm1174_vm1, %v4557_v36, 0.0 }
 0x23f   : > { %1254 = vmax.xlane.f32.xlu0 %v1253_v61 }
 0x242   : > { %1257 = vmax.xlane.f32.xlu1 %v1256_v10  ;;  %1215 = vmax.xlane.f32.xlu2 %v1214_v5  ;;  %v4569_v30 = vpop.f32.mrf.mxu0 }
 0x243   : > { %v1262_v48 = vsel %vm1174_vm1, %v4569_v30, -inf }
 0x244   : > { %v4559_v37 = vpop.f32.mrf.mxu1 }
 0x245   : > { %v1265_v40 = vsel %vm1174_vm1, %v4559_v37, -inf }
 0x247   : > { %1239 = vmax.xlane.f32.xlu0 %v1238_v34 }
 0x24a   : > { %1236 = vmax.xlane.f32.xlu2 %v1235_v22  ;;  %1260 = vmax.xlane.f32.xlu1 %v1259_v41 }
 0x24c   : > { %v4567_v42 = vpop.f32.mrf.mxu1 }
 0x24d   : > { %v1268_v47 = vsel %vm1174_vm1, %v4567_v42, -inf }
 0x24f   : > { %1245 = vmax.xlane.f32.xlu0 %v1244_v24 }
 0x252   : > { %1383 = vadd.xlane.f32.xlu2 %v1382_v31  ;;  %1386 = vadd.xlane.f32.xlu1 %v1385_v33 }
 0x257   : > { %1389 = vadd.xlane.f32.xlu0 %v1388_v18 }
 0x25a   : > { %1242 = vmax.xlane.f32.xlu2 %v1241_v39  ;;  %1266 = vmax.xlane.f32.xlu1 %v1265_v40 }
 0x262   : > { %1269 = vmax.xlane.f32.xlu1 %v1268_v47  ;;  %1263 = vmax.xlane.f32.xlu2 %v1262_v48 }
 0x26b   : > { %833 = vrot.lane.b32.xlu0 %v4357_v54, %s4069_s10 }
 0x26d   : > { %v1201_v53 = vpop.xlane.xlu0 %1200 }
 0x26e   : > { %v1279_v55 = vsub.f32 %v4436_v62, %v1201_v53 }
 0x270   : > { %v1319_v56 = vmul.f32 1.442695, %v1279_v55 }
 0x272   : > { %3612 = vpow2.f32 %v1319_v56 }
 0x275   : > { %v1369_v61 = vpop.xlane.xlu0 %1368 }
 0x278   : > { %v4578_v57 = vpop.eup %3612 }
 0x279   : > { %v1391_v59 = vsel %vm1174_vm1, %v4578_v57, 0.0 }
 0x27a   : > { %1392 = vadd.xlane.f32.xlu1 %v1391_v59 }
 0x285   : > { %v1225_v3 = vpop.xlane.xlu1 %1224  ;;  %v1210_v10 = vpop.xlane.xlu0 %1209 }
 0x286   : > { %v1287_v5 = vsub.f32 %v4455_v9, %v1225_v3  ;;  %v1282_v15 = vsub.f32 %v4453_v8, %v1210_v10 }
 0x288   : > { %v1335_v6 = vmul.f32 1.442695, %v1287_v5  ;;  %v1325_v24 = vmul.f32 1.442695, %v1282_v15 }
 0x28a   : > { %3614 = vpow2.f32 %v1335_v6 }
 0x28b   : > { %3616 = vrcp.f32 %v1369_v61 }
 0x28d   : > { %v1228_v12 = vpop.xlane.xlu2 %1227  ;;  %v1204_v13 = vpop.xlane.xlu1 %1203 }
 0x28e   : > { %v1288_v14 = vsub.f32 %v4462_v11, %v1228_v12  ;;  %v1280_v62 = vsub.f32 %v4444_v1, %v1204_v13 }
 0x290   : > { %v1337_v34 = vmul.f32 1.442695, %v1288_v14  ;;  %v1321_v41 = vmul.f32 1.442695, %v1280_v62  ;;  %v4586_v21 = vpop.eup %3614 }
 0x291   : > { %v1415_v9 = vsel %vm1174_vm1, %v4586_v21, 0.0  ;;  %v3617_v33 = vpop.eup %3616 }
 0x292   : > { %3618 = vpow2.f32 %v1337_v34  ;;  %v1378_v22 = vpop.xlane.xlu0 %1377  ;;  %1416 = vadd.xlane.f32.xlu2 %v1415_v9  ;;  %v1495_v18 = vmul.f32 %v3617_v33, %v4442_v19 }
 0x293   : > { %3620 = vpow2.f32 %v1321_v41 }
 0x294   : > { %v1527_v53 = vpack.c.bf16 %v1495_v18, %v1495_v18 }
 0x295   : > { %v4590_v31 = vpop.xlane.xlu2 %1206  ;;  %v1372_v11 = vpop.xlane.xlu1 %1371 }
 0x296   : > { %3622 = vrcp.f32 %v1372_v11  ;;  %v1561_v6 = vunpack.c.l.b16 %v1527_v53 }
 0x297   : > { %3624 = vpow2.f32 %v1325_v24 }
 0x298   : > { %v4592_v1 = vpop.eup %3618  ;;  %3626 = vrcp.f32 %v1378_v22 }
 0x299   : > { %v4594_v8 = vpop.eup %3620  ;;  %v1418_v39 = vsel %vm1174_vm1, %v4592_v1, 0.0 }
 0x29a   : > { %v1234_v40 = vpop.xlane.xlu0 %1233  ;;  %1419 = vadd.xlane.f32.xlu0 %v1418_v39  ;;  %v1394_v47 = vsel %vm1174_vm1, %v4594_v8, 0.0 }
 0x29b   : > { %1395 = vadd.xlane.f32.xlu2 %v1394_v47  ;;  %v1290_v41 = vsub.f32 %v4485_v35, %v1234_v40 }
 0x29c   : > { %v3623_v48 = vpop.eup %3622 }
 0x29d   : > { %v1496_v55 = vmul.f32 %v3623_v48, %v4472_v26  ;;  %v1252_v56 = vpop.xlane.xlu2 %1251  ;;  %v4602_v59 = vpop.xlane.xlu1 %1248  ;;  %v1341_v18 = vmul.f32 1.442695, %v1290_v41 }
 0x29e   : > { %v4604_v61 = vpop.eup %3624  ;;  %v1296_v19 = vsub.f32 %v4490_v38, %v1252_v56 }
 0x29f   : > { %v1528_v3 = vpack.c.bf16 %v1496_v55, %v1496_v55  ;;  %v1400_v12 = vsel %vm1174_vm1, %v4604_v61, 0.0  ;;  %v3627_v15 = vpop.eup %3626 }
 0x2a0   : > { %v1353_v5 = vmul.f32 1.442695, %v1296_v19  ;;  %v1498_v9 = vmul.f32 %v3627_v15, %v4470_v25 }
 0x2a1   : > { %v1562_v10 = vunpack.c.l.b16 %v1528_v3 }
 0x2a2   : > { %3628 = vpow2.f32 %v1353_v5  ;;  %v4609_v13 = vpop.xlane.xlu0 %1218  ;;  %1401 = vadd.xlane.f32.xlu0 %v1400_v12  ;;  %v1530_v39 = vpack.c.bf16 %v1498_v9, %v1498_v9 }
 0x2a3   : > { %v1563_v26 = vpack.c.b16 %v1562_v10, %v1561_v6 }
 0x2a4   : > { %v1584_v55 = vunpack.c.l.b16 %v1530_v39 }
 0x2a5   : > { %v1375_v14 = vpop.xlane.xlu2 %1374  ;;  %3216 = vmatmul.msk.bf16.vlgmr.msrb.gmra.mxu2 %vm1174_vm1, %v1563_v26  ;;  %v1213_v62 = vpop.xlane.xlu1 %1212 }
 0x2a6   : > { %3630 = vrcp.f32 %v1375_v14  ;;  %1750 = vmatpush.bf16.msrb.mxu2 %v4400_v20  ;;  %v1283_v38 = vsub.f32 %v4479_v23, %v1213_v62 }
 0x2a8   : > { %v4614_v34 = vpop.eup %3628  ;;  %v1327_v22 = vmul.f32 1.442695, %v1283_v38 }
 0x2a9   : > { %v1442_v24 = vsel %vm1174_vm1, %v4614_v34, 0.0 }
 0x2aa   : > { %3632 = vpow2.f32 %v1327_v22  ;;  %v1381_v11 = vpop.xlane.xlu0 %1380  ;;  %1443 = vadd.xlane.f32.xlu1 %v1442_v24 }
 0x2ab   : > { %3634 = vpow2.f32 %v1341_v18 }
 0x2ac   : > { %v3631_v33 = vpop.eup %3630 }
 0x2ad   : > { %v1497_v20 = vmul.f32 %v3631_v33, %v4502_v46  ;;  %v1231_v47 = vpop.xlane.xlu2 %1230  ;;  %v1222_v23 = vpop.xlane.xlu1 %1221 }
 0x2ae   : > { %v1289_v48 = vsub.f32 %v4464_v17, %v1231_v47  ;;  %v1286_v40 = vsub.f32 %v4514_v52, %v1222_v23 }
 0x2af   : > { %v1529_v53 = vpack.c.bf16 %v1497_v20, %v1497_v20 }
 0x2b0   : > { %v4622_v35 = vpop.eup %3632  ;;  %v1339_v25 = vmul.f32 1.442695, %v1289_v48  ;;  %v1333_v17 = vmul.f32 1.442695, %v1286_v40 }
 0x2b1   : > { %v1583_v56 = vunpack.c.l.b16 %v1529_v53  ;;  %v1403_v19 = vsel %vm1174_vm1, %v4622_v35, 0.0  ;;  %v4630_v10 = vpop.eup %3634 }
 0x2b2   : > { %3636 = vpow2.f32 %v1339_v25  ;;  %v1255_v3 = vpop.xlane.xlu0 %1254  ;;  %1404 = vadd.xlane.f32.xlu1 %v1403_v19  ;;  %v1424_v62 = vsel %vm1174_vm1, %v4630_v10, 0.0 }
 0x2b3   : > { %v1585_v46 = vpack.c.b16 %v1584_v55, %v1583_v56  ;;  %823 = vrot.lane.b32.xlu2 %v4432_v58, %s4068_s13  ;;  %3638 = vpow2.f32 %v1333_v17  ;;  %v1297_v24 = vsub.f32 %v4510_v50, %v1255_v3  ;;  %v1281_v50 = vsub.f32 %v4450_v2, %v4590_v31 }
 0x2b5   : > { %3217 = vmatmul.msk.bf16.vlgmr.msrb.gmra.mxu3 %vm1174_vm1, %v1585_v46  ;;  %v1258_v5 = vpop.xlane.xlu1 %1257  ;;  %v1216_v6 = vpop.xlane.xlu2 %1215  ;;  %v1355_v20 = vmul.f32 1.442695, %v1297_v24  ;;  %v1323_v56 = vmul.f32 1.442695, %v1281_v50 }
 0x2b6   : > { %1772 = vmatpush.bf16.msrb.mxu3 %v4408_v32  ;;  %v1284_v52 = vsub.f32 %v4496_v43, %v1216_v6  ;;  %v1298_v53 = vsub.f32 %v4522_v60, %v1258_v5  ;;  %v1295_v5 = vsub.f32 %v4477_v29, %v4602_v59 }
 0x2b8   : > { %v4634_v12 = vpop.eup %3636  ;;  %v1329_v26 = vmul.f32 1.442695, %v1284_v52  ;;  %v1357_v3 = vmul.f32 1.442695, %v1298_v53  ;;  %v1285_v53 = vsub.f32 %v4498_v45, %v4609_v13 }
 0x2b9   : > { %v1421_v14 = vsel %vm1174_vm1, %v4634_v12, 0.0  ;;  %v4642_v32 = vpop.eup %3638 }
 0x2ba   : > { %1422 = vadd.xlane.f32.xlu0 %v1421_v14  ;;  %v4640_v15 = vpop.xlane.xlu0 %1239  ;;  %1425 = vadd.xlane.f32.xlu1 %v1424_v62  ;;  %3640 = vpow2.f32 %v1329_v26  ;;  %v1412_v33 = vsel %vm1174_vm1, %v4642_v32, 0.0 }
 0x2bb   : > { %3642 = vrcp.f32 %v1381_v11 }
 0x2bd   : > { %v1237_v38 = vpop.xlane.xlu2 %1236  ;;  %v1261_v41 = vpop.xlane.xlu1 %1260 }
 0x2be   : > { %v1291_v43 = vsub.f32 %v4512_v51, %v1237_v38  ;;  %v1299_v62 = vsub.f32 %v4539_v16, %v1261_v41 }
 0x2c0   : > { %v1343_v22 = vmul.f32 1.442695, %v1291_v43  ;;  %v4645_v9 = vpop.eup %3640 }
 0x2c1   : > { %v1406_v18 = vsel %vm1174_vm1, %v4645_v9, 0.0  ;;  %v3643_v11 = vpop.eup %3642 }
 0x2c2   : > { %3644 = vpow2.f32 %v1343_v22  ;;  %v4652_v39 = vpop.xlane.xlu0 %1245  ;;  %1413 = vadd.xlane.f32.xlu1 %v1412_v33  ;;  %1407 = vadd.xlane.f32.xlu0 %v1406_v18  ;;  %v1499_v48 = vmul.f32 %v3643_v11, %v4508_v49  ;;  %v1359_v33 = vmul.f32 1.442695, %v1299_v62  ;;  %v1351_v18 = vmul.f32 1.442695, %v1295_v5 }
 0x2c4   : > { %v1531_v19 = vpack.c.bf16 %v1499_v48, %v1499_v48 }
 0x2c5   : > { %v1384_v47 = vpop.xlane.xlu2 %1383  ;;  %v1387_v51 = vpop.xlane.xlu1 %1386 }
 0x2c6   : > { %3646 = vrcp.f32 %v1384_v47  ;;  %v1605_v14 = vunpack.c.l.b16 %v1531_v19 }
 0x2c7   : > { %3648 = vrcp.f32 %v1387_v51 }
 0x2c8   : > { %v4654_v23 = vpop.eup %3644  ;;  %3650 = vpow2.f32 %v1355_v20 }
 0x2c9   : > { %v1427_v25 = vsel %vm1174_vm1, %v4654_v23, 0.0 }
 0x2ca   : > { %v1390_v40 = vpop.xlane.xlu0 %1389  ;;  %1428 = vadd.xlane.f32.xlu0 %v1427_v25 }
 0x2cb   : > { %3652 = vrcp.f32 %v1390_v40 }
 0x2cc   : > { %v3647_v55 = vpop.eup %3646  ;;  %3654 = vpow2.f32 %v1323_v56 }
 0x2cd   : > { %v1500_v46 = vmul.f32 %v3647_v55, %v4547_v44  ;;  %v1243_v17 = vpop.xlane.xlu2 %1242  ;;  %v3649_v2 = vpop.eup %3648  ;;  %3656 = vpow2.f32 %v1357_v3  ;;  %v1331_v55 = vmul.f32 1.442695, %v1285_v53 }
 0x2ce   : > { %v1293_v31 = vsub.f32 %v4532_v7, %v1243_v17  ;;  %v4664_v49 = vpop.eup %3650  ;;  %v1501_v60 = vmul.f32 %v3649_v2, %v4549_v28  ;;  %v1267_v24 = vpop.xlane.xlu1 %1266 }
 0x2cf   : > { %v1532_v6 = vpack.c.bf16 %v1500_v46, %v1500_v46  ;;  %v1445_v7 = vsel %vm1174_vm1, %v4664_v49, 0.0  ;;  %v1301_v50 = vsub.f32 %v4559_v37, %v1267_v24  ;;  %v1292_v46 = vsub.f32 %v4526_v63, %v4640_v15 }
 0x2d0   : > { %v1347_v52 = vmul.f32 1.442695, %v1293_v31  ;;  %v1533_v38 = vpack.c.bf16 %v1501_v60, %v1501_v60  ;;  %v1294_v63 = vsub.f32 %v4545_v27, %v4652_v39 }
 0x2d1   : > { %v3653_v26 = vpop.eup %3652  ;;  %v1606_v44 = vunpack.c.l.b16 %v1532_v6  ;;  %v1363_v37 = vmul.f32 1.442695, %v1301_v50  ;;  %v1345_v60 = vmul.f32 1.442695, %v1292_v46 }
 0x2d2   : > { %v1502_v43 = vmul.f32 %v3653_v26, %v4557_v36  ;;  %3658 = vpow2.f32 %v1347_v52  ;;  %1446 = vadd.xlane.f32.xlu0 %v1445_v7  ;;  %v4674_v59 = vpop.eup %3654  ;;  %v1627_v16 = vunpack.c.l.b16 %v1533_v38  ;;  %v1349_v26 = vmul.f32 1.442695, %v1294_v63 }
 0x2d3   : > { %v1607_v22 = vpack.c.b16 %v1606_v44, %v1605_v14  ;;  %v4677_v36 = vpop.eup %3656  ;;  %3660 = vpow2.f32 %v1359_v33 }
 0x2d4   : > { %v1534_v28 = vpack.c.bf16 %v1502_v43, %v1502_v43  ;;  %3662 = vpow2.f32 %v1351_v18  ;;  %v1448_v25 = vsel %vm1174_vm1, %v4677_v36, 0.0 }
 0x2d5   : > { %3218 = vmatmul.msk.bf16.vlgmr.msrb.gmra.mxu0 %vm1174_vm1, %v1607_v22  ;;  %v1264_v29 = vpop.xlane.xlu2 %1263 }
 0x2d6   : > { %v1628_v41 = vunpack.c.l.b16 %v1534_v28  ;;  %v1300_v20 = vsub.f32 %v4569_v30, %v1264_v29  ;;  %v1397_v30 = vsel %vm1174_vm1, %v4674_v59, 0.0  ;;  %v1270_v56 = vpop.xlane.xlu1 %1269 }
 0x2d7   : > { %v1302_v3 = vsub.f32 %v4567_v42, %v1270_v56 }
 0x2d8   : > { %v4679_v47 = vpop.eup %3658  ;;  %v1629_v51 = vpack.c.b16 %v1628_v41, %v1627_v16  ;;  %v1361_v11 = vmul.f32 1.442695, %v1300_v20 }
 0x2d9   : > { %v1433_v48 = vsel %vm1174_vm1, %v4679_v47, 0.0  ;;  %v4691_v19 = vpop.eup %3660  ;;  %v1365_v6 = vmul.f32 1.442695, %v1302_v3 }
 0x2da   : > { %1434 = vadd.xlane.f32.xlu1 %v1433_v48  ;;  %3219 = vmatmul.msk.bf16.vlgmr.msra.gmra.mxu1 %vm1174_vm1, %v1629_v51  ;;  %3664 = vpow2.f32 %v1361_v11  ;;  %v4693_v45 = vpop.eup %3662  ;;  %v1451_v17 = vsel %vm1174_vm1, %v4691_v19, 0.0 }
 0x2db   : > { %1449 = vadd.xlane.f32.xlu0 %v1448_v25  ;;  %3666 = vpow2.f32 %v1363_v37  ;;  %v1439_v31 = vsel %vm1174_vm1, %v4693_v45, 0.0 }
 0x2dc   : > { %1398 = vadd.xlane.f32.xlu2 %v1397_v30  ;;  %3668 = vpow2.f32 %v1331_v55 }
 0x2dd   : > { %v834_v40 = vpop.permute.xlu0 %833  ;;  %3670 = vpow2.f32 %v1365_v6 }
 0x2de   : > { %1794 = vmatpush.bf16.msrb.mxu0 %v834_v40  ;;  %3672 = vpow2.f32 %v1345_v60 }
 0x2df   : > { %3674 = vpow2.f32 %v1349_v26 }
 0x2e0   : > { %v4695_v13 = vpop.eup %3664 }
 0x2e1   : > { %v1454_v2 = vsel %vm1174_vm1, %v4695_v13, 0.0  ;;  %v4706_v5 = vpop.eup %3666 }
 0x2e2   : > { %1455 = vadd.xlane.f32.xlu1 %v1454_v2  ;;  %v4708_v42 = vpop.eup %3668  ;;  %v1457_v15 = vsel %vm1174_vm1, %v4706_v5, 0.0 }
 0x2e3   : > { %1452 = vadd.xlane.f32.xlu0 %v1451_v17  ;;  %v1409_v52 = vsel %vm1174_vm1, %v4708_v42, 0.0  ;;  %v4716_v14 = vpop.eup %3670 }
 0x2e4   : > { %1440 = vadd.xlane.f32.xlu2 %v1439_v31  ;;  %v4718_v62 = vpop.eup %3672  ;;  %v1460_v44 = vsel %vm1174_vm1, %v4716_v14, 0.0 }
 0x2e5   : > { %v1430_v27 = vsel %vm1174_vm1, %v4718_v62, 0.0  ;;  %v4724_v39 = vpop.eup %3674 }
 0x2e6   : > { %v1436_v38 = vsel %vm1174_vm1, %v4724_v39, 0.0 }
 0x2eb   : > { %1458 = vadd.xlane.f32.xlu0 %v1457_v15 }
 0x2ec   : > { %1410 = vadd.xlane.f32.xlu2 %v1409_v52 }
 0x2ed   : > { %v1393_v43 = vpop.xlane.xlu1 %1392 }
 0x2ee   : > { %3676 = vrcp.f32 %v1393_v43 }
 0x2f3   : > { %1461 = vadd.xlane.f32.xlu0 %v1460_v44 }
 0x2f4   : > { %1431 = vadd.xlane.f32.xlu2 %v1430_v27  ;;  %v3677_v28 = vpop.eup %3676 }
 0x2f5   : > { %v1503_v24 = vmul.f32 %v3677_v28, %v4578_v57 }
 0x2f7   : > { %v1535_v18 = vpack.c.bf16 %v1503_v24, %v1503_v24 }
 0x2f9   : > { %v1649_v20 = vunpack.c.l.b16 %v1535_v18 }
 0x2fb   : > { %845 = vrot.lane.b32.xlu1 %v4357_v54, %s4070_s14 }
 0x2fc   : > { %1437 = vadd.xlane.f32.xlu2 %v1436_v38 }
 0x305   : > { %v1417_v7 = vpop.xlane.xlu2 %1416 }
 0x307   : > { %847 = vrot.lane.b32.xlu0 %v4432_v58, %s4070_s14 }
 0x30d   : > { %v1420_v33 = vpop.xlane.xlu0 %1419 }
 0x30e   : > { %v1396_v22 = vpop.xlane.xlu2 %1395 }
 0x30f   : > { %3678 = vrcp.f32 %v1396_v22 }
 0x310   : > { %3680 = vrcp.f32 %v1420_v33 }
 0x311   : > { %3682 = vrcp.f32 %v1417_v7 }
 0x314   : > { %835 = vrot.lane.b32.xlu2 %v4432_v58, %s4069_s10 }
 0x315   : > { %v3679_v29 = vpop.eup %3678  ;;  %v1402_v25 = vpop.xlane.xlu0 %1401 }
 0x316   : > { %v1504_v16 = vmul.f32 %v3679_v29, %v4594_v8  ;;  %v824_v54 = vpop.permute.xlu2 %823  ;;  %v3681_v50 = vpop.eup %3680 }
 0x317   : > { %1728 = vmatpush.bf16.msrb.mxu1 %v824_v54  ;;  %v3683_v57 = vpop.eup %3682  ;;  %v1512_v58 = vmul.f32 %v3681_v50, %v4592_v1 }
 0x318   : > { %v1536_v41 = vpack.c.bf16 %v1504_v16, %v1504_v16  ;;  %v1511_v48 = vmul.f32 %v3683_v57, %v4586_v21 }
 0x319   : > { %v1544_v53 = vpack.c.bf16 %v1512_v58, %v1512_v58 }
 0x31a   : > { %v1650_v51 = vunpack.c.l.b16 %v1536_v41  ;;  %v1543_v30 = vpack.c.bf16 %v1511_v48, %v1511_v48 }
 0x31b   : > { %v1738_v37 = vunpack.c.l.b16 %v1544_v53 }
 0x31c   : > { %v1651_v11 = vpack.c.b16 %v1650_v51, %v1649_v20  ;;  %v1737_v40 = vunpack.c.l.b16 %v1543_v30 }
 0x31d   : > { %v1444_v8 = vpop.xlane.xlu1 %1443 }
 0x31e   : > { %3220 = vmatmul.msk.bf16.vlgmr.msra.gmra.mxu2 %vm1174_vm1, %v1651_v11  ;;  %v1739_v55 = vpack.c.b16 %v1738_v37, %v1737_v40 }
 0x31f   : > { %1838 = vmatpush.bf16.msra.mxu2 %v4440_v0 }
 0x325   : > { %v1405_v3 = vpop.xlane.xlu1 %1404 }
 0x326   : > { %3684 = vrcp.f32 %v1405_v3 }
 0x32c   : > { %v3685_v17 = vpop.eup %3684 }
 0x32d   : > { %v1423_v56 = vpop.xlane.xlu0 %1422  ;;  %v1507_v0 = vmul.f32 %v3685_v17, %v4622_v35  ;;  %v1426_v26 = vpop.xlane.xlu1 %1425 }
 0x32e   : > { %3224 = vmatmul.msk.bf16.vlgmr.msrb.gmra.mxu2 %vm1174_vm1, %v1739_v55 }
 0x32f   : > { %v1539_v2 = vpack.c.bf16 %v1507_v0, %v1507_v0 }
 0x331   : > { %v1693_v60 = vunpack.c.l.b16 %v1539_v2 }
 0x335   : > { %v1408_v46 = vpop.xlane.xlu0 %1407  ;;  %v1414_v43 = vpop.xlane.xlu1 %1413 }
 0x336   : > { %3686 = vrcp.f32 %v1408_v46 }
 0x337   : > { %3688 = vrcp.f32 %v1402_v25 }
 0x33c   : > { %v3687_v1 = vpop.eup %3686 }
 0x33d   : > { %v1508_v21 = vmul.f32 %v3687_v1, %v4645_v9  ;;  %v1429_v31 = vpop.xlane.xlu0 %1428  ;;  %v3689_v27 = vpop.eup %3688 }
 0x33e   : > { %v1506_v38 = vmul.f32 %v3689_v27, %v4604_v61 }
 0x33f   : > { %v1540_v6 = vpack.c.bf16 %v1508_v21, %v1508_v21 }
 0x340   : > { %v1538_v9 = vpack.c.bf16 %v1506_v38, %v1506_v38 }
 0x341   : > { %v1694_v63 = vunpack.c.l.b16 %v1540_v6 }
 0x342   : > { %v1672_v29 = vunpack.c.l.b16 %v1538_v9 }
 0x343   : > { %v1695_v15 = vpack.c.b16 %v1694_v63, %v1693_v60 }
 0x345   : > { %3222 = vmatmul.msk.bf16.vlgmr.msra.gmra.mxu0 %vm1174_vm1, %v1695_v15  ;;  %v1447_v52 = vpop.xlane.xlu0 %1446 }
 0x34d   : > { %v1435_v54 = vpop.xlane.xlu1 %1434 }
 0x34e   : > { %v1450_v35 = vpop.xlane.xlu0 %1449 }
 0x34f   : > { %v1399_v44 = vpop.xlane.xlu2 %1398 }
 0x350   : > { %3690 = vrcp.f32 %v1399_v44 }
 0x351   : > { %3692 = vrcp.f32 %v1444_v8 }
 0x352   : > { %3694 = vrcp.f32 %v1423_v56 }
 0x353   : > { %3696 = vrcp.f32 %v1426_v26 }
 0x355   : > { %v1456_v56 = vpop.xlane.xlu1 %1455 }
 0x356   : > { %v3691_v7 = vpop.eup %3690  ;;  %v1453_v20 = vpop.xlane.xlu0 %1452 }
 0x357   : > { %v1505_v22 = vmul.f32 %v3691_v7, %v4674_v59  ;;  %v1441_v28 = vpop.xlane.xlu2 %1440  ;;  %v3693_v24 = vpop.eup %3692 }
 0x358   : > { %3698 = vrcp.f32 %v1441_v28  ;;  %v1520_v16 = vmul.f32 %v3693_v24, %v4614_v34  ;;  %v3695_v61 = vpop.eup %3694 }
 0x359   : > { %v1537_v33 = vpack.c.bf16 %v1505_v22, %v1505_v22  ;;  %3700 = vrcp.f32 %v1414_v43  ;;  %v3697_v51 = vpop.eup %3696  ;;  %v1513_v48 = vmul.f32 %v3695_v61, %v4634_v12 }
 0x35a   : > { %v1552_v57 = vpack.c.bf16 %v1520_v16, %v1520_v16  ;;  %v1514_v34 = vmul.f32 %v3697_v51, %v4630_v10 }
 0x35b   : > { %v1671_v18 = vunpack.c.l.b16 %v1537_v33  ;;  %v1545_v37 = vpack.c.bf16 %v1513_v48, %v1513_v48 }
 0x35c   : > { %v1826_v25 = vunpack.c.l.b16 %v1552_v57  ;;  %v1546_v40 = vpack.c.bf16 %v1514_v34, %v1514_v34 }
 0x35d   : > { %v1673_v41 = vpack.c.b16 %v1672_v29, %v1671_v18  ;;  %v1759_v10 = vunpack.c.l.b16 %v1545_v37 }
 0x35e   : > { %v3699_v11 = vpop.eup %3698  ;;  %v1760_v0 = vunpack.c.l.b16 %v1546_v40 }
 0x35f   : > { %3221 = vmatmul.msk.bf16.vlgmr.msra.gmra.mxu3 %vm1174_vm1, %v1673_v41  ;;  %v1411_v50 = vpop.xlane.xlu2 %1410  ;;  %v3701_v59 = vpop.eup %3700  ;;  %v1519_v58 = vmul.f32 %v3699_v11, %v4693_v45 }
 0x360   : > { %1860 = vmatpush.bf16.msra.mxu3 %v4448_v4  ;;  %3702 = vrcp.f32 %v1411_v50  ;;  %v1510_v8 = vmul.f32 %v3701_v59, %v4642_v32  ;;  %v1459_v45 = vpop.xlane.xlu0 %1458  ;;  %v1761_v6 = vpack.c.b16 %v1760_v0, %v1759_v10 }
 0x361   : > { %3704 = vrcp.f32 %v1429_v31  ;;  %v1551_v53 = vpack.c.bf16 %v1519_v58, %v1519_v58 }
 0x362   : > { %v1542_v46 = vpack.c.bf16 %v1510_v8, %v1510_v8  ;;  %3706 = vrcp.f32 %v1450_v35 }
 0x363   : > { %v1825_v30 = vunpack.c.l.b16 %v1551_v53 }
 0x364   : > { %v1716_v1 = vunpack.c.l.b16 %v1542_v46 }
 0x365   : > { %v1827_v3 = vpack.c.b16 %v1826_v25, %v1825_v30 }
 0x366   : > { %v3703_v55 = vpop.eup %3702 }
 0x367   : > { %v1509_v4 = vmul.f32 %v3703_v55, %v4708_v42  ;;  %v1432_v17 = vpop.xlane.xlu2 %1431  ;;  %v3705_v12 = vpop.eup %3704  ;;  %3228 = vmatmul.msk.bf16.vlgmr.msra.gmra.mxu2 %vm1174_vm1, %v1827_v3 }
 0x368   : > { %3708 = vrcp.f32 %v1432_v17  ;;  %v1515_v2 = vmul.f32 %v3705_v12, %v4654_v23  ;;  %v3707_v31 = vpop.eup %3706  ;;  %v1462_v38 = vpop.xlane.xlu0 %1461 }
 0x369   : > { %3710 = vrcp.f32 %v1447_v52  ;;  %v1541_v32 = vpack.c.bf16 %v1509_v4, %v1509_v4  ;;  %v1522_v23 = vmul.f32 %v3707_v31, %v4677_v36  ;;  %v4771_v3 = vpop.f32.mrf.mxu2 }
 0x36a   : > { %3712 = vrcp.f32 %v1435_v54  ;;  %v1547_v26 = vpack.c.bf16 %v1515_v2, %v1515_v2 }
 0x36b   : > { %v1715_v21 = vunpack.c.l.b16 %v1541_v32  ;;  %3714 = vrcp.f32 %v1453_v20  ;;  %v1554_v24 = vpack.c.bf16 %v1522_v23, %v1522_v23 }
 0x36c   : > { %3716 = vrcp.f32 %v1456_v56  ;;  %v1781_v43 = vunpack.c.l.b16 %v1547_v26 }
 0x36d   : > { %v1717_v60 = vpack.c.b16 %v1716_v1, %v1715_v21  ;;  %v846_v42 = vpop.permute.xlu1 %845  ;;  %v1848_v61 = vunpack.c.l.b16 %v1554_v24 }
 0x36e   : > { %v3709_v63 = vpop.eup %3708  ;;  %1882 = vmatpush.bf16.msra.mxu0 %v846_v42 }
 0x36f   : > { %v3711_v15 = vpop.eup %3710  ;;  %v1516_v44 = vmul.f32 %v3709_v63, %v4718_v62  ;;  %3223 = vmatmul.msk.bf16.vlgmr.msrb.gmra.mxu1 %vm1174_vm1, %v1717_v60  ;;  %3225 = vmatmul.msk.bf16.vlgmr.msrb.gmra.mxu3 %vm1174_vm1, %v1761_v6  ;;  %v1438_v52 = vpop.xlane.xlu2 %1437 }
 0x370   : > { %v3713_v27 = vpop.eup %3712  ;;  %3718 = vrcp.f32 %v1438_v52  ;;  %v1521_v7 = vmul.f32 %v3711_v15, %v4664_v49  ;;  %v4778_v60 = vpop.f32.mrf.mxu3 }
 0x371   : > { %v1548_v35 = vpack.c.bf16 %v1516_v44, %v1516_v44  ;;  %v1517_v9 = vmul.f32 %v3713_v27, %v4679_v47  ;;  %v3715_v28 = vpop.eup %3714  ;;  %3720 = vrcp.f32 %v1462_v38  ;;  %v4774_v46 = vpop.f32.mrf.mxu2 }
 0x372   : > { %v3717_v62 = vpop.eup %3716  ;;  %v1553_v18 = vpack.c.bf16 %v1521_v7, %v1521_v7  ;;  %v1523_v49 = vmul.f32 %v3715_v28, %v4691_v19  ;;  %3722 = vrcp.f32 %v1459_v45  ;;  %v4780_v63 = vpop.f32.mrf.mxu0 }
 0x373   : > { %v1782_v22 = vunpack.c.l.b16 %v1548_v35  ;;  %v1549_v16 = vpack.c.bf16 %v1517_v9, %v1517_v9  ;;  %v1524_v47 = vmul.f32 %v3717_v62, %v4695_v13  ;;  %v4784_v15 = vpop.f32.mrf.mxu1 }
 0x374   : > { %v1847_v51 = vunpack.c.l.b16 %v1553_v18  ;;  %v1555_v57 = vpack.c.bf16 %v1523_v49, %v1523_v49 }
 0x375   : > { %v1783_v33 = vpack.c.b16 %v1782_v22, %v1781_v43  ;;  %v1803_v11 = vunpack.c.l.b16 %v1549_v16 }
 0x376   : > { %v3719_v29 = vpop.eup %3718  ;;  %v1849_v59 = vpack.c.b16 %v1848_v61, %v1847_v51  ;;  %v1869_v19 = vunpack.c.l.b16 %v1555_v57 }
 0x377   : > { %v1518_v54 = vmul.f32 %v3719_v29, %v4724_v39  ;;  %3226 = vmatmul.msk.bf16.vlgmr.msrb.gmra.mxu0 %vm1174_vm1, %v1783_v33  ;;  %v836_v36 = vpop.permute.xlu2 %835  ;;  %v1556_v39 = vpack.c.bf16 %v1524_v47, %v1524_v47  ;;  %v3721_v48 = vpop.eup %3720 }
 0x378   : > { %1816 = vmatpush.bf16.msra.mxu1 %v836_v36  ;;  %v3723_v34 = vpop.eup %3722  ;;  %v1526_v13 = vmul.f32 %v3721_v48, %v4716_v14  ;;  %v4782_v42 = vpop.f32.mrf.mxu3 }
 0x379   : > { %v1550_v41 = vpack.c.bf16 %v1518_v54, %v1518_v54  ;;  %v848_v20 = vpop.permute.xlu0 %847  ;;  %v1870_v53 = vunpack.c.l.b16 %v1556_v39  ;;  %v1525_v8 = vmul.f32 %v3723_v34, %v4706_v5 }
 0x37a   : > { %v1558_v30 = vpack.c.bf16 %v1526_v13, %v1526_v13  ;;  %v4786_v26 = vpop.f32.mrf.mxu0 }
 0x37b   : > { %v1804_v50 = vunpack.c.l.b16 %v1550_v41  ;;  %v1871_v25 = vpack.c.b16 %v1870_v53, %v1869_v19  ;;  %v1557_v37 = vpack.c.bf16 %v1525_v8, %v1525_v8  ;;  %v4788_v27 = vpop.f32.mrf.mxu1 }
 0x37c   : > { %1904 = vmatpush.bf16.msrb.mxu1 %v848_v20  ;;  %v1892_v40 = vunpack.c.l.b16 %v1558_v30 }
 0x37d   : > { %v1805_v58 = vpack.c.b16 %v1804_v50, %v1803_v11  ;;  %v1891_v55 = vunpack.c.l.b16 %v1557_v37 }
 0x37f   : > { %3227 = vmatmul.msk.bf16.vlgmr.msra.gmra.mxu1 %vm1174_vm1, %v1805_v58  ;;  %3229 = vmatmul.msk.bf16.vlgmr.msra.gmra.mxu3 %vm1174_vm1, %v1849_v59  ;;  %v1893_v56 = vpack.c.b16 %v1892_v40, %v1891_v55 }
 0x387   : > { %3230 = vmatmul.msk.bf16.vlgmr.msra.gmra.mxu0 %vm1174_vm1, %v1871_v25 }
 0x38f   : > { %3231 = vmatmul.msk.bf16.vlgmr.msrb.gmra.mxu1 %vm1174_vm1, %v1893_v56 }
 0x3a1   : > { %v1664_v45 = vpop.f32.mrf.mxu2 }
 0x3a2   : > { %v1919_v4 = vpack.c.bf16 %v1664_v45, %v1664_v45 }
 0x3a4   : > { %v1971_v12 = vunpack.c.l.b16 %v1919_v4 }
 0x3a9   : > { %v1666_v17 = vpop.f32.mrf.mxu2 }
 0x3aa   : > { %v1920_v14 = vpack.c.bf16 %v1666_v17, %v1666_v17 }
 0x3ac   : > { %v1972_v5 = vunpack.c.l.b16 %v1920_v14 }
 0x3ae   : > { %v1979_v10 = vpack.c.b16 %v1972_v5, %v1971_v12 }
 0x3b0   : > { %1983 = vrot.lane.b32.xlu2 %v1979_v10, %s4070_s14 }
 0x3b1   : > { %v1752_v0 = vpop.f32.mrf.mxu2 }
 0x3b2   : > { %v1927_v32 = vpack.c.bf16 %v1752_v0, %v1752_v0 }
 0x3b4   : > { %v1999_v21 = vunpack.c.l.b16 %v1927_v32 }
 0x3b9   : > { %v1754_v1 = vpop.f32.mrf.mxu2 }
 0x3ba   : > { %v1928_v2 = vpack.c.bf16 %v1754_v1, %v1754_v1 }
 0x3bc   : > { %v2000_v31 = vunpack.c.l.b16 %v1928_v2 }
 0x3be   : > { %v2007_v6 = vpack.c.b16 %v2000_v31, %v1999_v21 }
 0x3c0   : > { %2011 = vrot.lane.b32.xlu1 %v2007_v6, %s4069_s10 }
 0x3c2   : > { %v1708_v44 = vpop.f32.mrf.mxu0 }
 0x3c3   : > { %v1923_v33 = vpack.c.bf16 %v1708_v44, %v1708_v44 }
 0x3c5   : > { %v1975_v47 = vunpack.c.l.b16 %v1923_v33 }
 0x3ca   : > { %v1710_v7 = vpop.f32.mrf.mxu0 }
 0x3cb   : > { %v1924_v62 = vpack.c.bf16 %v1710_v7, %v1710_v7  ;;  %v3429_v7 = vld [vmem:[#allocation8 + $0x38] sm:$0xff] }
 0x3cc   : > { %2146 = vmatpush.bf16.msrb.mxu2 %v3429_v7  ;;  %3463 = vmatpush.bf16.msrb.mxu3 %v3429_v7 }
 0x3cd   : > { %v1976_v16 = vunpack.c.l.b16 %v1924_v62 }
 0x3cf   : > { %v1981_v51 = vpack.c.b16 %v1976_v16, %v1975_v47  ;;  %v3423_v47 = vld [vmem:[#allocation8 + $0x8] sm:$0xff] }
 0x3e2   : > { %v1686_v52 = vpop.f32.mrf.mxu3 }
 0x3e3   : > { %v1921_v23 = vpack.c.bf16 %v1686_v52, %v1686_v52 }
 0x3e5   : > { %v1973_v22 = vunpack.c.l.b16 %v1921_v23 }
 0x3ea   : > { %v1688_v38 = vpop.f32.mrf.mxu3  ;;  %v1840_v43 = vpop.f32.mrf.mxu2 }
 0x3eb   : > { %v1922_v35 = vpack.c.bf16 %v1688_v38, %v1688_v38  ;;  %v1935_v29 = vpack.c.bf16 %v1840_v43, %v1840_v43 }
 0x3ec   : > { %v1730_v9 = vpop.f32.mrf.mxu1 }
 0x3ed   : > { %v1974_v28 = vunpack.c.l.b16 %v1922_v35  ;;  %v2027_v41 = vunpack.c.l.b16 %v1935_v29  ;;  %v1925_v59 = vpack.c.bf16 %v1730_v9, %v1730_v9  ;;  %v3427_v29 = vld [vmem:[#allocation8 + $0x28] sm:$0xff] }
 0x3ef   : > { %v1980_v24 = vpack.c.b16 %v1974_v28, %v1973_v22  ;;  %v1977_v53 = vunpack.c.l.b16 %v1925_v59  ;;  %v3428_v28 = vld [vmem:[#allocation8 + $0x30] sm:$0xff] }
 0x3f0   : > { %2147 = vmatpush.bf16.msrb.mxu2 %v3428_v28  ;;  %3464 = vmatpush.bf16.msrb.mxu3 %v3428_v28  ;;  %v3759_v28 = vld [vmem:[%s4259_s24 + $0x8] sm:$0xff] }
 0x3f1   : > { %1985 = vrot.lane.b32.xlu1 %v1980_v24, %s4070_s14 }
 0x3f2   : > { %v1774_v18 = vpop.f32.mrf.mxu3  ;;  %v1842_v54 = vpop.f32.mrf.mxu2 }
 0x3f3   : > { %v1936_v36 = vpack.c.bf16 %v1842_v54, %v1842_v54  ;;  %v1929_v57 = vpack.c.bf16 %v1774_v18, %v1774_v18  ;;  %v3426_v54 = vld [vmem:[#allocation8 + $0x20] sm:$0xff] }
 0x3f4   : > { %v1732_v61 = vpop.f32.mrf.mxu1  ;;  %v1796_v49 = vpop.f32.mrf.mxu0  ;;  %2148 = vmatpush.bf16.msrb.mxu2 %v3427_v29  ;;  %3465 = vmatpush.bf16.msrb.mxu3 %v3427_v29  ;;  %v3760_v29 = vld [vmem:[%s4259_s24 + $0x10] sm:$0xff] }
 0x3f5   : > { %v2028_v20 = vunpack.c.l.b16 %v1936_v36  ;;  %v1926_v11 = vpack.c.bf16 %v1732_v61, %v1732_v61  ;;  %v2001_v13 = vunpack.c.l.b16 %v1929_v57  ;;  %v1931_v40 = vpack.c.bf16 %v1796_v49, %v1796_v49  ;;  %v3425_v61 = vld [vmem:[#allocation8 + $0x18] sm:$0xff]  ;;  %v3424_v49 = vld [vmem:[#allocation8 + $0x10] sm:$0xff] }
 0x3f7   : > { %v2035_v50 = vpack.c.b16 %v2028_v20, %v2027_v41  ;;  %v1978_v58 = vunpack.c.l.b16 %v1926_v11  ;;  %v2003_v17 = vunpack.c.l.b16 %v1931_v40  ;;  %v3422_v41 = vld [vmem:[#allocation8] sm:$0xff]  ;;  %v1912_v20 = vpack.c.bf16 %v4774_v46, %v4774_v46 }
 0x3f8   : > { %2149 = vmatpush.bf16.msrb.mxu2 %v3426_v54  ;;  %3466 = vmatpush.bf16.msrb.mxu3 %v3426_v54  ;;  %v1914_v46 = vpack.c.bf16 %v4782_v42, %v4782_v42  ;;  %v1915_v40 = vpack.c.bf16 %v4780_v63, %v4780_v63 }
 0x3f9   : > { %1987 = vrot.lane.b32.xlu1 %v1981_v51, %s4070_s14  ;;  %2039 = vrot.lane.b32.xlu2 %v2035_v50, %s4068_s13  ;;  %v1982_v25 = vpack.c.b16 %v1978_v58, %v1977_v53  ;;  %v1911_v51 = vpack.c.bf16 %v4771_v3, %v4771_v3  ;;  %v1952_v50 = vunpack.c.l.b16 %v1912_v20  ;;  %v1913_v3 = vpack.c.bf16 %v4778_v60, %v4778_v60 }
 0x3fa   : > { %v1776_v39 = vpop.f32.mrf.mxu3 }
 0x3fb   : > { %v1930_v48 = vpack.c.bf16 %v1776_v39, %v1776_v39  ;;  %v1951_v59 = vunpack.c.l.b16 %v1911_v51 }
 0x3fc   : > { %v1798_v34 = vpop.f32.mrf.mxu0  ;;  %v1818_v19 = vpop.f32.mrf.mxu1  ;;  %2150 = vmatpush.bf16.msrb.mxu2 %v3425_v61  ;;  %3467 = vmatpush.bf16.msrb.mxu3 %v3425_v61 }
 0x3fd   : > { %v2002_v8 = vunpack.c.l.b16 %v1930_v48  ;;  %v1932_v37 = vpack.c.bf16 %v1798_v34, %v1798_v34  ;;  %v1933_v10 = vpack.c.bf16 %v1818_v19, %v1818_v19  ;;  %v1959_v57 = vpack.c.b16 %v1952_v50, %v1951_v59  ;;  %v3763_v50 = vld [vmem:[%s4259_s24 + $0x28] sm:$0xff] }
 0x3ff   : > { %v2008_v30 = vpack.c.b16 %v2002_v8, %v2001_v13  ;;  %v2004_v56 = vunpack.c.l.b16 %v1932_v37  ;;  %v2005_v44 = vunpack.c.l.b16 %v1933_v10  ;;  %v1954_v13 = vunpack.c.l.b16 %v1914_v46 }
 0x400   : > { %2151 = vmatpush.bf16.msrb.mxu2 %v3424_v49  ;;  %3468 = vmatpush.bf16.msrb.mxu3 %v3424_v49  ;;  %v1953_v8 = vunpack.c.l.b16 %v1913_v3  ;;  %v3761_v49 = vld [vmem:[%s4259_s24 + $0x18] sm:$0xff] }
 0x401   : > { %1989 = vrot.lane.b32.xlu1 %v1982_v25, %s4070_s14  ;;  %2013 = vrot.lane.b32.xlu2 %v2008_v30, %s4069_s10  ;;  %v2009_v14 = vpack.c.b16 %v2004_v56, %v2003_v17  ;;  %v1916_v30 = vpack.c.bf16 %v4786_v26, %v4786_v26  ;;  %v1955_v17 = vunpack.c.l.b16 %v1915_v40  ;;  %v1917_v26 = vpack.c.bf16 %v4784_v15, %v4784_v15 }
 0x402   : > { %v1862_v55 = vpop.f32.mrf.mxu3  ;;  %v1960_v25 = vpack.c.b16 %v1954_v13, %v1953_v8 }
 0x403   : > { %v1937_v5 = vpack.c.bf16 %v1862_v55, %v1862_v55  ;;  %v1956_v56 = vunpack.c.l.b16 %v1916_v30 }
 0x404   : > { %v1820_v45 = vpop.f32.mrf.mxu1  ;;  %v1884_v4 = vpop.f32.mrf.mxu0  ;;  %2152 = vmatpush.bf16.msrb.mxu2 %v3423_v47  ;;  %3469 = vmatpush.bf16.msrb.mxu3 %v3423_v47 }
 0x405   : > { %v1934_v12 = vpack.c.bf16 %v1820_v45, %v1820_v45  ;;  %v2029_v31 = vunpack.c.l.b16 %v1937_v5  ;;  %v1939_v35 = vpack.c.bf16 %v1884_v4, %v1884_v4 }
 0x407   : > { %v2006_v1 = vunpack.c.l.b16 %v1934_v12  ;;  %v2031_v22 = vunpack.c.l.b16 %v1939_v35  ;;  %v1918_v12 = vpack.c.bf16 %v4788_v27, %v4788_v27 }
 0x408   : > { %2153 = vmatpush.bf16.msrb.mxu2 %v3422_v41  ;;  %3470 = vmatpush.bf16.msrb.mxu3 %v3422_v41  ;;  %v3762_v41 = vld [vmem:[%s4259_s24 + $0x20] sm:$0xff] }
 0x409   : > { %2015 = vrot.lane.b32.xlu2 %v2009_v14, %s4069_s10  ;;  %v2010_v38 = vpack.c.b16 %v2006_v1, %v2005_v44  ;;  %v1961_v14 = vpack.c.b16 %v1956_v56, %v1955_v17  ;;  %v1958_v10 = vunpack.c.l.b16 %v1918_v12  ;;  %v1957_v1 = vunpack.c.l.b16 %v1917_v26  ;;  %v3765_v17 = vld [vmem:[%s4259_s24 + $0x38] sm:$0xff] }
 0x40a   : > { %v1864_v0 = vpop.f32.mrf.mxu3  ;;  %v1984_v11 = vpop.permute.xlu2 %1983 }
 0x40b   : > { %v1938_v32 = vpack.c.bf16 %v1864_v0, %v1864_v0  ;;  %v2049_v58 = vsel %vm853_vm0, %v1959_v57, %v1984_v11 }
 0x40c   : > { %v1886_v2 = vpop.f32.mrf.mxu0  ;;  %v1906_v21 = vpop.f32.mrf.mxu1 }
 0x40d   : > { %v2030_v6 = vunpack.c.l.b16 %v1938_v32  ;;  %v1940_v23 = vpack.c.bf16 %v1886_v2, %v1886_v2  ;;  %v1941_v33 = vpack.c.bf16 %v1906_v21, %v1906_v21 }
 0x40f   : > { %v2036_v52 = vpack.c.b16 %v2030_v6, %v2029_v31  ;;  %v2032_v43 = vunpack.c.l.b16 %v1940_v23  ;;  %v2033_v16 = vunpack.c.l.b16 %v1941_v33  ;;  %v1962_v31 = vpack.c.b16 %v1958_v10, %v1957_v1  ;;  %v3590_v23 = vld [vmem:[#allocation13] ss:$0 sm:$0xff] }
 0x411   : > { %2041 = vrot.lane.b32.xlu0 %v2036_v52, %s4068_s13  ;;  %2017 = vrot.lane.b32.xlu2 %v2010_v38, %s4069_s10  ;;  %v2037_v62 = vpack.c.b16 %v2032_v43, %v2031_v22  ;;  %v3758_v43 = vld [vmem:[%s4259_s24] sm:$0xff]  ;;  %s3996_s10 = scalar_lea.hbm %s5083_s8, 128 }
 0x412   : > { %p3998_p7 = scmp.lt.s32.totalorder %s3996_s10, %s3992_s3 }
 0x414   : > { %v1908_v9 = vpop.f32.mrf.mxu1  ;;  %p3999_p8 = por %p3998_p7, %p3997_p12 }
 0x415   : > { %v1942_v24 = vpack.c.bf16 %v1908_v9, %v1908_v9 }
 0x416   : > { %p4000_p9 = pnand %p3999_p8, %p3995_p5 }
 0x417   : > { %v2034_v18 = vunpack.c.l.b16 %v1942_v24 }
 0x419   : > { %2043 = vrot.lane.b32.xlu0 %v2037_v62, %s4068_s13  ;;  %v2038_v36 = vpack.c.b16 %v2034_v18, %v2033_v16 }
 0x421   : > { %2045 = vrot.lane.b32.xlu0 %v2038_v36, %s4068_s13 }
 0x432   : > { %v2012_v39 = vpop.permute.xlu1 %2011 }
 0x433   : > { %v2061_v48 = vsel %vm2059_vm2, %v2049_v58, %v2012_v39  ;;  %v3764_v58 = vld [vmem:[%s4259_s24 + $0x30] sm:$0xff] }
 0x453   : > { %v2040_v34 = vpop.permute.xlu2 %2039 }
 0x454   : > { %v2070_v19 = vsel %vm2068_vm3, %v2061_v48, %v2040_v34  ;;  %v4071_v34 = vmov 128.0  }
 0x455   : > { %2154 = vmatmul.bf16.vlgmr.msrb.gmra.mxu2 %v2070_v19  ;;  %3724 = vrcp.f32 %v4071_v34  ;;  %v3437_v34 = vld [vmem:[#allocation10 + $0x34] sm:$0xf0] }
 0x45b   : > { %v2014_v37 = vpop.permute.xlu2 %2013  ;;  %v3725_v19 = vpop.eup %3724 }
 0x45c   : > { %v2200_v46 = vmul.f32 128.0, %v3725_v19  ;;  %vm2204_vm4 = vweird.f32 %v3725_v19 }
 0x45e   : > { %v2201_v3 = vsub.f32 1.0, %v2200_v46 }
 0x463   : > { %v1986_v53 = vpop.permute.xlu1 %1985  ;;  %v2016_v5 = vpop.permute.xlu2 %2015 }
 0x464   : > { %v2052_v55 = vsel %vm853_vm0, %v1960_v25, %v1986_v53  ;;  %v2202_v53 = vmul.f32 %v3725_v19, %v2201_v3  ;;  %v3292_v3 = vld [vmem:[#allocation10 + $0x38] sm:$0xf0] }
 0x465   : > { %v2063_v42 = vsel %vm2059_vm2, %v2052_v55, %v2014_v37 }
 0x466   : > { %v2203_v13 = vadd.f32 %v3725_v19, %v2202_v53 }
 0x468   : > { %v4835_v8 = vsel %vm2204_vm4, %v3725_v19, %v2203_v13  ;;  %v3436_v19 = vld [vmem:[#allocation10 + $0x34] sm:$0xf]  ;;  %v3282_v13 = vld [vmem:[#allocation10 + $0x20] sm:$0xf] }
 0x469   : > { %v3295_v53 = vor.u32 %v3436_v19, %v3292_v3 }
 0x46b   : > { %v1988_v45 = vpop.permute.xlu1 %1987  ;;  %v2018_v6 = vpop.permute.xlu2 %2017 }
 0x46c   : > { %v2055_v63 = vsel %vm853_vm0, %v1961_v14, %v1988_v45 }
 0x46d   : > { %v2065_v32 = vsel %vm2059_vm2, %v2055_v63, %v2016_v5 }
 0x473   : > { %v1990_v21 = vpop.permute.xlu1 %1989 }
 0x474   : > { %v2058_v27 = vsel %vm853_vm0, %v1962_v31, %v1990_v21 }
 0x475   : > { %v2067_v15 = vsel %vm2059_vm2, %v2058_v27, %v2018_v6 }
 0x483   : > { %v2042_v4 = vpop.permute.xlu0 %2041 }
 0x484   : > { %v2073_v60 = vsel %vm2068_vm3, %v2063_v42, %v2042_v4 }
 0x485   : > { %2159 = vmatmul.bf16.gmra.mxu2 %v2073_v60 }
 0x48b   : > { %v2044_v0 = vpop.permute.xlu0 %2043 }
 0x48c   : > { %v2076_v2 = vsel %vm2068_vm3, %v2065_v32, %v2044_v0 }
 0x48d   : > { %2164 = vmatmul.bf16.vlgmr.msrb.gmra.mxu3 %v2076_v2 }
 0x493   : > { %v2046_v44 = vpop.permute.xlu0 %2045 }
 0x494   : > { %v2079_v52 = vsel %vm2068_vm3, %v2067_v15, %v2046_v44 }
 0x49d   : > { %2169 = vmatmul.bf16.gmra.mxu3 %v2079_v52 }
 0x4d8   : > { %v2155_v38 = vpop.f32.mrf.mxu2 }
 0x4d9   : > { %v2156_v35 = vadd.f32 %v3590_v23, %v2155_v38 }
 0x4db   : > { %v2175_v7 = vadd.f32 %v3758_v43, %v2156_v35 }
 0x4dd   : > { %2183 = vadd.xlane.f32.xlu1 %v2175_v7 }
 0x4e0   : > { %v2157_v9 = vpop.f32.mrf.mxu2 }
 0x4e1   : > { %v2158_v22 = vadd.f32 %v3590_v23, %v2157_v9  ;;  %v3445_v9 = vld [vmem:[#allocation10 + $0x74] sm:$0xf0] }
 0x4e3   : > { %v2176_v62 = vadd.f32 %v3759_v28, %v2158_v22  ;;  %v3444_v22 = vld [vmem:[#allocation10 + $0x74] sm:$0xf] }
 0x4e5   : > { %2185 = vadd.xlane.f32.xlu2 %v2176_v62 }
 0x508   : > { %v2160_v24 = vpop.f32.mrf.mxu2 }
 0x509   : > { %v2161_v33 = vadd.f32 %v3590_v23, %v2160_v24 }
 0x50b   : > { %v2177_v18 = vadd.f32 %v3760_v29, %v2161_v33  ;;  %v3314_v33 = vld [vmem:[#allocation10 + $0x60] sm:$0xf]  ;;  %v3443_v29 = vld [vmem:[#allocation10 + $0x64] sm:$0xf0] }
 0x50d   : > { %2187 = vadd.xlane.f32.xlu0 %v2177_v18 }
 0x510   : > { %v2162_v16 = vpop.f32.mrf.mxu2  ;;  %v2165_v54 = vpop.f32.mrf.mxu3 }
 0x511   : > { %v2163_v36 = vadd.f32 %v3590_v23, %v2162_v16  ;;  %v2166_v61 = vadd.f32 %v3590_v23, %v2165_v54  ;;  %v3315_v16 = vor.u32 %v3443_v29, %v3314_v33  ;;  %v3316_v54 = vld [vmem:[#allocation10 + $0x68] sm:$0xf0] }
 0x513   : > { %v2178_v47 = vadd.f32 %v3761_v49, %v2163_v36  ;;  %v2179_v20 = vadd.f32 %v3762_v41, %v2166_v61  ;;  %v3306_v61 = vld [vmem:[#allocation10 + $0x50] sm:$0xf]  ;;  %v3441_v49 = vld [vmem:[#allocation10 + $0x54] sm:$0xf0] }
 0x514   : > { %v3307_v41 = vor.u32 %v3441_v49, %v3306_v61 }
 0x515   : > { %2189 = vadd.xlane.f32.xlu2 %v2178_v47  ;;  %2191 = vadd.xlane.f32.xlu1 %v2179_v20 }
 0x518   : > { %v2167_v51 = vpop.f32.mrf.mxu3 }
 0x519   : > { %v2168_v11 = vadd.f32 %v3590_v23, %v2167_v51 }
 0x51b   : > { %v2180_v59 = vadd.f32 %v3763_v50, %v2168_v11  ;;  %v3298_v11 = vld [vmem:[#allocation10 + $0x40] sm:$0xf]  ;;  %v3439_v50 = vld [vmem:[#allocation10 + $0x44] sm:$0xf0] }
 0x51d   : > { %2193 = vadd.xlane.f32.xlu0 %v2180_v59 }
 0x520   : > { %v2170_v57 = vpop.f32.mrf.mxu3 }
 0x521   : > { %v2171_v39 = vadd.f32 %v3590_v23, %v2170_v57  ;;  %v3299_v57 = vor.u32 %v3439_v50, %v3298_v11  ;;  %v4887_v11 = vld [vmem:[#allocation13 + $0x3] ss:$0 sm:$0xff] }
 0x523   : > { %v2181_v48 = vadd.f32 %v3764_v58, %v2171_v39  ;;  %v3300_v39 = vld [vmem:[#allocation10 + $0x48] sm:$0xf0] }
 0x525   : > { %2195 = vadd.xlane.f32.xlu0 %v2181_v48 }
 0x528   : > { %v2172_v55 = vpop.f32.mrf.mxu3 }
 0x529   : > { %v2173_v45 = vadd.f32 %v3590_v23, %v2172_v55  ;;  %v3284_v55 = vld [vmem:[#allocation10 + $0x28] sm:$0xf0] }
 0x52b   : > { %v4846_v60 = vadd.f32 %v3765_v17, %v2173_v45  ;;  %v3274_v45 = vld [vmem:[#allocation10 + $0x10] sm:$0xf]  ;;  %v3432_v17 = vld [vmem:[#allocation10 + $0x14] sm:$0xf] }
 0x550   : > { %v2184_v25 = vpop.xlane.xlu1 %2183 }
 0x551   : > { %v2206_v30 = vmul.f32 %v4835_v8, %v2184_v25  ;;  %v3435_v25 = vld [vmem:[#allocation10 + $0x24] sm:$0xf0] }
 0x553   : > { %v4838_v37 = vsub.f32 %v2175_v7, %v2206_v30  ;;  %v3322_v7 = vld [vmem:[#allocation10 + $0x70] sm:$0xf]  ;;  %v3434_v30 = vld [vmem:[#allocation10 + $0x24] sm:$0xf] }
 0x554   : > { %v3323_v28 = vor.u32 %v3445_v9, %v3322_v7 }
 0x555   : > { %v2222_v40 = vmul.f32 %v4838_v37, %v4838_v37 }
 0x556   : > { %2474 = vmatpush.bf16.msra.mxu3 %v3323_v28 }
 0x557   : > { %2230 = vadd.xlane.f32.xlu2 %v2222_v40  ;;  %v3283_v40 = vor.u32 %v3435_v25, %v3282_v13 }
 0x558   : > { %v2186_v56 = vpop.xlane.xlu2 %2185 }
 0x559   : > { %v2207_v4 = vmul.f32 %v4835_v8, %v2186_v56  ;;  %v3287_v56 = vor.u32 %v3434_v30, %v3284_v55 }
 0x55a   : > { %2475 = vmatpush.bf16.msra.mxu3 %v3315_v16 }
 0x55b   : > { %v4843_v42 = vsub.f32 %v2176_v62, %v2207_v4  ;;  %v3324_v62 = vld [vmem:[#allocation10 + $0x78] sm:$0xf0]  ;;  %v3433_v4 = vld [vmem:[#allocation10 + $0x14] sm:$0xf0] }
 0x55c   : > { %v3327_v24 = vor.u32 %v3444_v22, %v3324_v62 }
 0x55d   : > { %v2223_v14 = vmul.f32 %v4843_v42, %v4843_v42 }
 0x55e   : > { %2503 = vmatpush.bf16.msrb.mxu0 %v3327_v24  ;;  %2476 = vmatpush.bf16.msra.mxu3 %v3307_v41 }
 0x55f   : > { %2197 = vadd.xlane.f32.xlu2 %v4846_v60  ;;  %2232 = vadd.xlane.f32.xlu1 %v2223_v14  ;;  %v3275_v14 = vor.u32 %v3433_v4, %v3274_v45 }
 0x562   : > { %2477 = vmatpush.bf16.msra.mxu3 %v3299_v57 }
 0x580   : > { %v2188_v12 = vpop.xlane.xlu0 %2187 }
 0x581   : > { %v2208_v26 = vmul.f32 %v4835_v8, %v2188_v12  ;;  %v3276_v12 = vld [vmem:[#allocation10 + $0x18] sm:$0xf0] }
 0x583   : > { %v4852_v5 = vsub.f32 %v2177_v18, %v2208_v26  ;;  %v3442_v18 = vld [vmem:[#allocation10 + $0x64] sm:$0xf]  ;;  %v3279_v26 = vor.u32 %v3432_v17, %v3276_v12 }
 0x584   : > { %v3319_v36 = vor.u32 %v3442_v18, %v3316_v54 }
 0x585   : > { %v2224_v63 = vmul.f32 %v4852_v5, %v4852_v5 }
 0x586   : > { %2504 = vmatpush.bf16.msrb.mxu0 %v3319_v36 }
 0x587   : > { %2234 = vadd.xlane.f32.xlu1 %v2224_v63 }
 0x588   : > { %v2192_v10 = vpop.xlane.xlu1 %2191  ;;  %v2190_v0 = vpop.xlane.xlu2 %2189 }
 0x589   : > { %v2210_v32 = vmul.f32 %v4835_v8, %v2192_v10  ;;  %v2209_v1 = vmul.f32 %v4835_v8, %v2190_v0  ;;  %v3266_v0 = vld [vmem:[#allocation10] sm:$0xf] }
 0x58b   : > { %v4858_v2 = vsub.f32 %v2179_v20, %v2210_v32  ;;  %v4860_v21 = vsub.f32 %v2178_v47, %v2209_v1  ;;  %v3440_v47 = vld [vmem:[#allocation10 + $0x54] sm:$0xf]  ;;  %v3308_v20 = vld [vmem:[#allocation10 + $0x58] sm:$0xf0]  ;;  %v3431_v32 = vld [vmem:[#allocation10 + $0x4] sm:$0xf0] }
 0x58c   : > { %v3311_v51 = vor.u32 %v3440_v47, %v3308_v20  ;;  %v3430_v1 = vld [vmem:[#allocation10 + $0x4] sm:$0xf]  ;;  %v4884_v47 = vld [vmem:[#allocation13 + $0x2] ss:$0 sm:$0xff] }
 0x58d   : > { %v2226_v31 = vmul.f32 %v4858_v2, %v4858_v2  ;;  %v2225_v27 = vmul.f32 %v4860_v21, %v4860_v21 }
 0x58e   : > { %2505 = vmatpush.bf16.msrb.mxu0 %v3311_v51 }
 0x58f   : > { %2238 = vadd.xlane.f32.xlu2 %v2226_v31  ;;  %2236 = vadd.xlane.f32.xlu0 %v2225_v27  ;;  %v3267_v31 = vor.u32 %v3431_v32, %v3266_v0  ;;  %v3268_v27 = vld [vmem:[#allocation10 + $0x8] sm:$0xf0] }
 0x590   : > { %v2194_v6 = vpop.xlane.xlu0 %2193 }
 0x591   : > { %v2211_v44 = vmul.f32 %v4835_v8, %v2194_v6 }
 0x593   : > { %v4867_v15 = vsub.f32 %v2180_v59, %v2211_v44  ;;  %v3438_v59 = vld [vmem:[#allocation10 + $0x44] sm:$0xf]  ;;  %v3271_v44 = vor.u32 %v3430_v1, %v3268_v27 }
 0x594   : > { %v3303_v58 = vor.u32 %v3438_v59, %v3300_v39 }
 0x595   : > { %v2227_v52 = vmul.f32 %v4867_v15, %v4867_v15 }
 0x596   : > { %2506 = vmatpush.bf16.msrb.mxu0 %v3303_v58 }
 0x597   : > { %2240 = vadd.xlane.f32.xlu1 %v2227_v52 }
 0x598   : > { %v2196_v23 = vpop.xlane.xlu0 %2195 }
 0x599   : > { %v2212_v38 = vmul.f32 %v4835_v8, %v2196_v23 }
 0x59a   : > { %2507 = vmatpush.bf16.msrb.mxu0 %v3295_v53 }
 0x59b   : > { %v4872_v35 = vsub.f32 %v2181_v48, %v2212_v38  ;;  %v3290_v48 = vld [vmem:[#allocation10 + $0x30] sm:$0xf] }
 0x59c   : > { %v3291_v46 = vor.u32 %v3437_v34, %v3290_v48 }
 0x59d   : > { %v2228_v43 = vmul.f32 %v4872_v35, %v4872_v35 }
 0x59e   : > { %2478 = vmatpush.bf16.msra.mxu3 %v3291_v46  ;;  %2508 = vmatpush.bf16.msrb.mxu0 %v3287_v56 }
 0x59f   : > { %2242 = vadd.xlane.f32.xlu0 %v2228_v43 }
 0x5a2   : > { %2479 = vmatpush.bf16.msra.mxu3 %v3283_v40  ;;  %2509 = vmatpush.bf16.msrb.mxu0 %v3279_v26 }
 0x5a6   : > { %2480 = vmatpush.bf16.msra.mxu3 %v3275_v14  ;;  %2510 = vmatpush.bf16.msrb.mxu0 %v3271_v44 }
 0x5aa   : > { %2481 = vmatpush.bf16.msra.mxu3 %v3267_v31 }
 0x5ca   : > { %v2231_v63 = vpop.xlane.xlu2 %2230 }
 0x5cb   : > { %v2246_v10 = vmul.f32 %v2231_v63, %v4835_v8 }
 0x5cd   : > { %v2254_v6 = vadd.f32 1e-05, %v2246_v10 }
 0x5cf   : > { %3726 = vrsqrt.f32 %v2254_v6  ;;  %vm2268_vm6 = vweird.f32 %v2254_v6 }
 0x5d2   : > { %v2233_v52 = vpop.xlane.xlu1 %2232  ;;  %v2198_v23 = vpop.xlane.xlu2 %2197 }
 0x5d3   : > { %v2247_v38 = vmul.f32 %v2233_v52, %v4835_v8  ;;  %v2213_v43 = vmul.f32 %v4835_v8, %v2198_v23 }
 0x5d5   : > { %v3727_v7 = vpop.eup %3726  ;;  %v2255_v9 = vadd.f32 1e-05, %v2247_v38  ;;  %v4880_v22 = vsub.f32 %v4846_v60, %v2213_v43 }
 0x5d6   : > { %v2263_v28 = vmul.f32 %v3727_v7, %v2254_v6  ;;  %vm2269_vm5 = vweird.f32 %v3727_v7 }
 0x5d7   : > { %3728 = vrsqrt.f32 %v2255_v9  ;;  %v2229_v62 = vmul.f32 %v4880_v22, %v4880_v22  ;;  %vm2270_vm7 = vmor %vm2268_vm6, %vm2269_vm5  ;;  %vm2278_vm9 = vweird.f32 %v2255_v9 }
 0x5d8   : > { %v2264_v24 = vmul.f32 %v3727_v7, %v2263_v28 }
 0x5d9   : > { %2244 = vadd.xlane.f32.xlu2 %v2229_v62 }
 0x5da   : > { %v2265_v33 = vmul.f32 0.5, %v2264_v24 }
 0x5dc   : > { %v2266_v29 = vsub.f32 1.5, %v2265_v33 }
 0x5dd   : > { %v3729_v18 = vpop.eup %3728 }
 0x5de   : > { %v2267_v16 = vmul.f32 %v3727_v7, %v2266_v29  ;;  %v2273_v54 = vmul.f32 %v3729_v18, %v2255_v9  ;;  %vm2279_vm8 = vweird.f32 %v3729_v18 }
 0x5df   : > { %vm2280_vm10 = vmor %vm2278_vm9, %vm2279_vm8 }
 0x5e0   : > { %v2274_v36 = vmul.f32 %v3729_v18, %v2273_v54  ;;  %v2271_v61 = vsel %vm2270_vm7, %v3727_v7, %v2267_v16 }
 0x5e1   : > { %v2342_v41 = vmul.f32 %v2271_v61, %v4838_v37 }
 0x5e2   : > { %v2275_v49 = vmul.f32 0.5, %v2274_v36 }
 0x5e3   : > { %v2351_v50 = vmul.f32 %v4884_v47, %v2342_v41 }
 0x5e4   : > { %v2276_v60 = vsub.f32 1.5, %v2275_v49 }
 0x5e5   : > { %v4893_v39 = vadd.f32 %v4887_v11, %v2351_v50 }
 0x5e6   : > { %v2277_v20 = vmul.f32 %v3729_v18, %v2276_v60 }
 0x5e8   : > { %v2281_v51 = vsel %vm2280_vm10, %v3729_v18, %v2277_v20 }
 0x5e9   : > { %v2343_v59 = vmul.f32 %v2281_v51, %v4843_v42 }
 0x5eb   : > { %v2352_v57 = vmul.f32 %v4884_v47, %v2343_v59 }
 0x5ed   : > { %v4896_v58 = vadd.f32 %v4887_v11, %v2352_v57 }
 0x5ef   : > { %v2368_v37 = vpack.c.bf16 %v4896_v58, %v4893_v39 }
 0x5f1   : > { %2482 = vmatmul.bf16.vlgmr.msra.gmra.mxu3 %v2368_v37  ;;  %2511 = vmatmul.bf16.vlgmr.msrb.gmra.mxu0 %v2368_v37 }
 0x5fa   : > { %v2235_v48 = vpop.xlane.xlu1 %2234 }
 0x5fb   : > { %v2248_v34 = vmul.f32 %v2235_v48, %v4835_v8 }
 0x5fd   : > { %v2256_v19 = vadd.f32 1e-05, %v2248_v34  ;;  %v3460_v34 = vld [vmem:[#allocation11 + $0x70] sm:$0xff] }
 0x5ff   : > { %3730 = vrsqrt.f32 %v2256_v19  ;;  %vm2288_vm12 = vweird.f32 %v2256_v19 }
 0x602   : > { %v2237_v46 = vpop.xlane.xlu0 %2236  ;;  %v2239_v42 = vpop.xlane.xlu2 %2238 }
 0x603   : > { %v2249_v3 = vmul.f32 %v2237_v46, %v4835_v8  ;;  %v2250_v53 = vmul.f32 %v2239_v42, %v4835_v8  ;;  %v3459_v46 = vld [vmem:[#allocation11 + $0x68] sm:$0xff]  ;;  %v3452_v42 = vld [vmem:[#allocation11 + $0x30] sm:$0xff] }
 0x605   : > { %v3731_v13 = vpop.eup %3730  ;;  %v2257_v25 = vadd.f32 1e-05, %v2249_v3  ;;  %v2258_v30 = vadd.f32 1e-05, %v2250_v53  ;;  %v3458_v53 = vld [vmem:[#allocation11 + $0x60] sm:$0xff] }
 0x606   : > { %v2283_v40 = vmul.f32 %v3731_v13, %v2256_v19  ;;  %vm2289_vm11 = vweird.f32 %v3731_v13  ;;  %v3453_v19 = vld [vmem:[#allocation11 + $0x38] sm:$0xff] }
 0x607   : > { %3732 = vrsqrt.f32 %v2257_v25  ;;  %vm2290_vm13 = vmor %vm2288_vm12, %vm2289_vm11  ;;  %vm2298_vm15 = vweird.f32 %v2257_v25  ;;  %vm2308_vm5 = vweird.f32 %v2258_v30  ;;  %2685 = vmatpush.bf16.msra.mxu1 %v3453_v19 }
 0x608   : > { %v2284_v55 = vmul.f32 %v3731_v13, %v2283_v40  ;;  %3734 = vrsqrt.f32 %v2258_v30 }
 0x60a   : > { %v2285_v56 = vmul.f32 0.5, %v2284_v55  ;;  %v2241_v45 = vpop.xlane.xlu1 %2240  ;;  %v3457_v55 = vld [vmem:[#allocation11 + $0x58] sm:$0xff] }
 0x60b   : > { %v2251_v4 = vmul.f32 %v2241_v45, %v4835_v8  ;;  %2686 = vmatpush.bf16.msra.mxu1 %v3452_v42  ;;  %v3450_v45 = vld [vmem:[#allocation11 + $0x20] sm:$0xff] }
 0x60c   : > { %v2286_v17 = vsub.f32 1.5, %v2285_v56 }
 0x60d   : > { %v3733_v14 = vpop.eup %3732  ;;  %v2259_v12 = vadd.f32 1e-05, %v2251_v4 }
 0x60e   : > { %v3735_v26 = vpop.eup %3734  ;;  %v2287_v63 = vmul.f32 %v3731_v13, %v2286_v17  ;;  %v2293_v10 = vmul.f32 %v3733_v14, %v2257_v25  ;;  %vm2299_vm14 = vweird.f32 %v3733_v14  ;;  %v3451_v25 = vld [vmem:[#allocation11 + $0x28] sm:$0xff] }
 0x60f   : > { %v2303_v0 = vmul.f32 %v3735_v26, %v2258_v30  ;;  %3736 = vrsqrt.f32 %v2259_v12  ;;  %vm2300_vm0 = vmor %vm2298_vm15, %vm2299_vm14  ;;  %vm2309_vm2 = vweird.f32 %v3735_v26  ;;  %vm2318_vm3 = vweird.f32 %v2259_v12  ;;  %2687 = vmatpush.bf16.msra.mxu1 %v3451_v25 }
 0x610   : > { %v2294_v32 = vmul.f32 %v3733_v14, %v2293_v10  ;;  %v2291_v1 = vsel %vm2290_vm13, %v3731_v13, %v2287_v63  ;;  %vm2310_vm6 = vmor %vm2308_vm5, %vm2309_vm2  ;;  %v3455_v63 = vld [vmem:[#allocation11 + $0x48] sm:$0xff]  ;;  %v3448_v10 = vld [vmem:[#allocation11 + $0x10] sm:$0xff] }
 0x611   : > { %v2304_v27 = vmul.f32 %v3735_v26, %v2303_v0  ;;  %v2344_v52 = vmul.f32 %v2291_v1, %v4852_v5 }
 0x612   : > { %v2295_v31 = vmul.f32 0.5, %v2294_v32  ;;  %v2243_v37 = vpop.xlane.xlu0 %2242 }
 0x613   : > { %v2305_v38 = vmul.f32 0.5, %v2304_v27  ;;  %v2353_v62 = vmul.f32 %v4884_v47, %v2344_v52  ;;  %2688 = vmatpush.bf16.msra.mxu1 %v3450_v45 }
 0x614   : > { %v2296_v6 = vsub.f32 1.5, %v2295_v31  ;;  %v3454_v31 = vld [vmem:[#allocation11 + $0x40] sm:$0xff] }
 0x615   : > { %v3737_v44 = vpop.eup %3736  ;;  %v2306_v24 = vsub.f32 1.5, %v2305_v38  ;;  %v4909_v16 = vadd.f32 %v4887_v11, %v2353_v62  ;;  %v3446_v38 = vld [vmem:[#allocation11] sm:$0xff] }
 0x616   : > { %v2297_v23 = vmul.f32 %v3733_v14, %v2296_v6  ;;  %v2313_v43 = vmul.f32 %v3737_v44, %v2259_v12  ;;  %vm2319_vm1 = vweird.f32 %v3737_v44  ;;  %v3449_v12 = vld [vmem:[#allocation11 + $0x18] sm:$0xff]  ;;  %v3447_v6 = vld [vmem:[#allocation11 + $0x8] sm:$0xff] }
 0x617   : > { %v2307_v54 = vmul.f32 %v3735_v26, %v2306_v24  ;;  %vm2320_vm4 = vmor %vm2318_vm3, %vm2319_vm1  ;;  %2689 = vmatpush.bf16.msra.mxu1 %v3449_v12 }
 0x618   : > { %v2301_v7 = vsel %vm2300_vm0, %v3733_v14, %v2297_v23  ;;  %v2314_v9 = vmul.f32 %v3737_v44, %v2313_v43  ;;  %v3456_v14 = vld [vmem:[#allocation11 + $0x50] sm:$0xff] }
 0x619   : > { %v2345_v28 = vmul.f32 %v2301_v7, %v4860_v21  ;;  %v2311_v49 = vsel %vm2310_vm6, %v3735_v26, %v2307_v54 }
 0x61a   : > { %v2315_v33 = vmul.f32 0.5, %v2314_v9  ;;  %v2346_v41 = vmul.f32 %v2311_v49, %v4858_v2  ;;  %v3461_v2 = vld [vmem:[#allocation11 + $0x78] sm:$0xff] }
 0x61b   : > { %v2354_v29 = vmul.f32 %v4884_v47, %v2345_v28  ;;  %2714 = vmatpush.bf16.msra.mxu2 %v3461_v2  ;;  %2690 = vmatpush.bf16.msra.mxu1 %v3448_v10 }
 0x61c   : > { %v2316_v18 = vsub.f32 1.5, %v2315_v33  ;;  %v2355_v51 = vmul.f32 %v4884_v47, %v2346_v41 }
 0x61d   : > { %v4912_v5 = vadd.f32 %v4887_v11, %v2354_v29 }
 0x61e   : > { %v2317_v36 = vmul.f32 %v3737_v44, %v2316_v18  ;;  %v4924_v59 = vadd.f32 %v4887_v11, %v2355_v51  ;;  %v2388_v18 = vld [vmem:[%s5080_s5] sm:$0x3] }
 0x61f   : > { %v2369_v21 = vpack.c.bf16 %v4912_v5, %v4909_v16  ;;  %2715 = vmatpush.bf16.msra.mxu2 %v3460_v34  ;;  %2691 = vmatpush.bf16.msra.mxu1 %v3447_v6  ;;  %v2391_v54 = vperm.slane %v2388_v18, 1 }
 0x620   : > { %v2321_v61 = vsel %vm2320_vm4, %v3737_v44, %v2317_v36 }
 0x621   : > { %2487 = vmatmul.bf16.gmra.mxu3 %v2369_v21  ;;  %2516 = vmatmul.bf16.gmra.mxu0 %v2369_v21  ;;  %v2347_v60 = vmul.f32 %v2321_v61, %v4867_v15  ;;  %v2252_v15 = vmul.f32 %v2243_v37, %v4835_v8  ;;  %v2390_v61 = vperm.slane %v2388_v18, 0 }
 0x623   : > { %v2356_v20 = vmul.f32 %v4884_v47, %v2347_v60  ;;  %v2260_v48 = vadd.f32 1e-05, %v2252_v15  ;;  %2716 = vmatpush.bf16.msra.mxu2 %v3459_v46  ;;  %2692 = vmatpush.bf16.msra.mxu1 %v3446_v38 }
 0x625   : > { %v4921_v50 = vadd.f32 %v4887_v11, %v2356_v20  ;;  %3738 = vrsqrt.f32 %v2260_v48  ;;  %vm2328_vm8 = vweird.f32 %v2260_v48 }
 0x627   : > { %v2370_v57 = vpack.c.bf16 %v4921_v50, %v4924_v59  ;;  %2717 = vmatpush.bf16.msra.mxu2 %v3458_v53 }
 0x62b   : > { %v3739_v3 = vpop.eup %3738  ;;  %2718 = vmatpush.bf16.msra.mxu2 %v3457_v55 }
 0x62c   : > { %v2323_v13 = vmul.f32 %v3739_v3, %v2260_v48  ;;  %vm2329_vm7 = vweird.f32 %v3739_v3 }
 0x62d   : > { %vm2330_vm9 = vmor %vm2328_vm8, %vm2329_vm7 }
 0x62e   : > { %v2324_v30 = vmul.f32 %v3739_v3, %v2323_v13 }
 0x62f   : > { %2719 = vmatpush.bf16.msra.mxu2 %v3456_v14 }
 0x630   : > { %v2325_v17 = vmul.f32 0.5, %v2324_v30 }
 0x631   : > { %2492 = vmatmul.bf16.gmra.mxu3 %v2370_v57  ;;  %2521 = vmatmul.bf16.gmra.mxu0 %v2370_v57 }
 0x632   : > { %v2326_v26 = vsub.f32 1.5, %v2325_v17 }
 0x633   : > { %2720 = vmatpush.bf16.msra.mxu2 %v3455_v63 }
 0x634   : > { %v2327_v32 = vmul.f32 %v3739_v3, %v2326_v26 }
 0x636   : > { %v2331_v44 = vsel %vm2330_vm9, %v3739_v3, %v2327_v32 }
 0x637   : > { %2721 = vmatpush.bf16.msra.mxu2 %v3454_v31  ;;  %v2348_v43 = vmul.f32 %v2331_v44, %v4872_v35 }
 0x639   : > { %v2357_v62 = vmul.f32 %v4884_v47, %v2348_v43 }
 0x63b   : > { %v4935_v33 = vadd.f32 %v4887_v11, %v2357_v62 }
 0x64c   : > { %v2245_v40 = vpop.xlane.xlu2 %2244 }
 0x64d   : > { %v2253_v56 = vmul.f32 %v2245_v40, %v4835_v8 }
 0x64f   : > { %v2261_v4 = vadd.f32 1e-05, %v2253_v56 }
 0x651   : > { %3740 = vrsqrt.f32 %v2261_v4  ;;  %vm2338_vm11 = vweird.f32 %v2261_v4 }
 0x657   : > { %v3741_v0 = vpop.eup %3740 }
 0x658   : > { %v2333_v1 = vmul.f32 %v3741_v0, %v2261_v4  ;;  %vm2339_vm10 = vweird.f32 %v3741_v0 }
 0x659   : > { %vm2340_vm12 = vmor %vm2338_vm11, %vm2339_vm10 }
 0x65a   : > { %v2334_v27 = vmul.f32 %v3741_v0, %v2333_v1 }
 0x65c   : > { %v2335_v52 = vmul.f32 0.5, %v2334_v27 }
 0x65e   : > { %v2336_v23 = vsub.f32 1.5, %v2335_v52 }
 0x660   : > { %v2337_v7 = vmul.f32 %v3741_v0, %v2336_v23 }
 0x662   : > { %v2341_v9 = vsel %vm2340_vm12, %v3741_v0, %v2337_v7 }
 0x663   : > { %v2349_v28 = vmul.f32 %v2341_v9, %v4880_v22 }
 0x665   : > { %v2358_v24 = vmul.f32 %v4884_v47, %v2349_v28 }
 0x667   : > { %v4938_v29 = vadd.f32 %v4887_v11, %v2358_v24 }
 0x669   : > { %v2371_v35 = vpack.c.bf16 %v4938_v29, %v4935_v33 }
 0x66b   : > { %2497 = vmatmul.bf16.gmra.mxu3 %v2371_v35  ;;  %2526 = vmatmul.bf16.gmra.mxu0 %v2371_v35 }
 0x66e   : > { %v2512_v22 = vpop.f32.mrf.mxu0 }
 0x66f   : > { %v2513_v21 = vadd.f32 %v2512_v22, %v2391_v54 }
 0x671   : > { %v2533_v60 = vmax.f32 %v2513_v21, 0.0 }
 0x674   : > { %v2483_v36 = vpop.f32.mrf.mxu3 }
 0x675   : > { %v2484_v11 = vadd.f32 %v2483_v36, %v2390_v61 }
 0x676   : > { %v2514_v47 = vpop.f32.mrf.mxu0 }
 0x677   : > { %v2515_v49 = vadd.f32 %v2514_v47, %v2391_v54  ;;  %v2532_v37 = vmax.f32 %v2484_v11, 0.0  ;;  %v3593_v47 = vld [vmem:[#allocation13 + $0x1] ss:$0 sm:$0xff] }
 0x679   : > { %v2535_v41 = vmax.f32 %v2515_v49, 0.0 }
 0x67b   : > { %v2549_v20 = vpack.c.bf16 %v2535_v41, %v2533_v60 }
 0x67c   : > { %v2485_v51 = vpop.f32.mrf.mxu3 }
 0x67d   : > { %v2486_v57 = vadd.f32 %v2485_v51, %v2390_v61  ;;  %2722 = vmatmul.bf16.vlgmr.msra.gmra.mxu2 %v2549_v20 }
 0x67f   : > { %v2534_v15 = vmax.f32 %v2486_v57, 0.0 }
 0x681   : > { %v2548_v48 = vpack.c.bf16 %v2534_v15, %v2532_v37 }
 0x683   : > { %2693 = vmatmul.bf16.vlgmr.msra.gmra.mxu1 %v2548_v48 }
 0x69e   : > { %v2517_v2 = vpop.f32.mrf.mxu0 }
 0x69f   : > { %v2518_v19 = vadd.f32 %v2517_v2, %v2391_v54 }
 0x6a1   : > { %v2537_v3 = vmax.f32 %v2518_v19, 0.0 }
 0x6a4   : > { %v2488_v34 = vpop.f32.mrf.mxu3 }
 0x6a5   : > { %v2489_v13 = vadd.f32 %v2488_v34, %v2390_v61 }
 0x6a6   : > { %v2519_v46 = vpop.f32.mrf.mxu0 }
 0x6a7   : > { %v2520_v42 = vadd.f32 %v2519_v46, %v2391_v54  ;;  %v2536_v56 = vmax.f32 %v2489_v13, 0.0 }
 0x6a9   : > { %v2539_v53 = vmax.f32 %v2520_v42, 0.0 }
 0x6ab   : > { %v2551_v25 = vpack.c.bf16 %v2539_v53, %v2537_v3 }
 0x6ac   : > { %v2490_v30 = vpop.f32.mrf.mxu3 }
 0x6ad   : > { %v2491_v40 = vadd.f32 %v2490_v30, %v2390_v61  ;;  %2727 = vmatmul.bf16.gmra.mxu2 %v2551_v25 }
 0x6ae   : > { %v2522_v55 = vpop.f32.mrf.mxu0 }
 0x6af   : > { %v2538_v45 = vmax.f32 %v2491_v40, 0.0  ;;  %v2523_v14 = vadd.f32 %v2522_v55, %v2391_v54 }
 0x6b1   : > { %v2550_v4 = vpack.c.bf16 %v2538_v45, %v2536_v56  ;;  %v2541_v63 = vmax.f32 %v2523_v14, 0.0 }
 0x6b3   : > { %2698 = vmatmul.bf16.gmra.mxu1 %v2550_v4 }
 0x6b4   : > { %v2493_v17 = vpop.f32.mrf.mxu3 }
 0x6b5   : > { %v2494_v0 = vadd.f32 %v2493_v17, %v2390_v61 }
 0x6b6   : > { %v2524_v12 = vpop.f32.mrf.mxu0 }
 0x6b7   : > { %v2525_v26 = vadd.f32 %v2524_v12, %v2391_v54  ;;  %v2540_v27 = vmax.f32 %v2494_v0, 0.0 }
 0x6b9   : > { %v2543_v10 = vmax.f32 %v2525_v26, 0.0 }
 0x6bb   : > { %v2553_v32 = vpack.c.bf16 %v2543_v10, %v2541_v63 }
 0x6bc   : > { %v2495_v1 = vpop.f32.mrf.mxu3 }
 0x6bd   : > { %v2496_v31 = vadd.f32 %v2495_v1, %v2390_v61  ;;  %2732 = vmatmul.bf16.gmra.mxu2 %v2553_v32 }
 0x6bf   : > { %v2542_v6 = vmax.f32 %v2496_v31, 0.0 }
 0x6c1   : > { %v2552_v44 = vpack.c.bf16 %v2542_v6, %v2540_v27 }
 0x6c3   : > { %2703 = vmatmul.bf16.gmra.mxu1 %v2552_v44 }
 0x6e8   : > { %v2527_v52 = vpop.f32.mrf.mxu0 }
 0x6e9   : > { %v2528_v38 = vadd.f32 %v2527_v52, %v2391_v54 }
 0x6eb   : > { %v2545_v9 = vmax.f32 %v2528_v38, 0.0 }
 0x6ee   : > { %v2498_v23 = vpop.f32.mrf.mxu3 }
 0x6ef   : > { %v2499_v62 = vadd.f32 %v2498_v23, %v2390_v61 }
 0x6f0   : > { %v2529_v43 = vpop.f32.mrf.mxu0 }
 0x6f1   : > { %v2530_v7 = vadd.f32 %v2529_v43, %v2391_v54  ;;  %v2544_v22 = vmax.f32 %v2499_v62, 0.0 }
 0x6f3   : > { %v2547_v28 = vmax.f32 %v2530_v7, 0.0 }
 0x6f5   : > { %v2555_v24 = vpack.c.bf16 %v2547_v28, %v2545_v9 }
 0x6f6   : > { %v2500_v35 = vpop.f32.mrf.mxu3 }
 0x6f7   : > { %v2501_v18 = vadd.f32 %v2500_v35, %v2390_v61  ;;  %2737 = vmatmul.bf16.gmra.mxu2 %v2555_v24 }
 0x6f9   : > { %v2546_v36 = vmax.f32 %v2501_v18, 0.0 }
 0x6fb   : > { %v2554_v21 = vpack.c.bf16 %v2546_v36, %v2544_v22 }
 0x6fd   : > { %2708 = vmatmul.bf16.gmra.mxu1 %v2554_v21 }
 0x700   : > { %v2694_v49 = vpop.f32.mrf.mxu1  ;;  %v2723_v60 = vpop.f32.mrf.mxu2 }
 0x701   : > { %v2695_v41 = vadd.f32 %v3593_v47, %v2694_v49 }
 0x703   : > { %v2724_v11 = vadd.f32 %v2723_v60, %v2695_v41 }
 0x705   : > { %v2743_v20 = vadd.f32 %v2724_v11, %v4893_v39 }
 0x707   : > { %2751 = vadd.xlane.f32.xlu1 %v2743_v20 }
 0x708   : > { %v2696_v54 = vpop.f32.mrf.mxu1  ;;  %v2725_v57 = vpop.f32.mrf.mxu2 }
 0x709   : > { %v2697_v51 = vadd.f32 %v3593_v47, %v2696_v54 }
 0x70b   : > { %v2726_v37 = vadd.f32 %v2725_v57, %v2697_v51 }
 0x70d   : > { %v2744_v15 = vadd.f32 %v2726_v37, %v4896_v58 }
 0x70f   : > { %2753 = vadd.xlane.f32.xlu0 %v2744_v15 }
 0x730   : > { %v2699_v61 = vpop.f32.mrf.mxu1  ;;  %v2728_v48 = vpop.f32.mrf.mxu2 }
 0x731   : > { %v2700_v2 = vadd.f32 %v3593_v47, %v2699_v61 }
 0x733   : > { %v2729_v34 = vadd.f32 %v2728_v48, %v2700_v2 }
 0x735   : > { %v2745_v19 = vadd.f32 %v2729_v34, %v4909_v16 }
 0x737   : > { %2755 = vadd.xlane.f32.xlu2 %v2745_v19 }
 0x738   : > { %v2701_v46 = vpop.f32.mrf.mxu1  ;;  %v2730_v42 = vpop.f32.mrf.mxu2 }
 0x739   : > { %v2702_v3 = vadd.f32 %v3593_v47, %v2701_v46 }
 0x73b   : > { %v2731_v53 = vadd.f32 %v2730_v42, %v2702_v3 }
 0x73d   : > { %v2746_v39 = vadd.f32 %v2731_v53, %v4912_v5 }
 0x73f   : > { %2757 = vadd.xlane.f32.xlu1 %v2746_v39 }
 0x740   : > { %v2704_v13 = vpop.f32.mrf.mxu1  ;;  %v2733_v25 = vpop.f32.mrf.mxu2 }
 0x741   : > { %v2705_v30 = vadd.f32 %v3593_v47, %v2704_v13 }
 0x743   : > { %v2734_v40 = vadd.f32 %v2733_v25, %v2705_v30 }
 0x745   : > { %v2747_v58 = vadd.f32 %v2734_v40, %v4924_v59  ;;  %v4995_v40 = vld [vmem:[#allocation13 + $0x4] ss:$0 sm:$0xff] }
 0x747   : > { %2759 = vadd.xlane.f32.xlu0 %v2747_v58 }
 0x748   : > { %v2706_v55 = vpop.f32.mrf.mxu1  ;;  %v2735_v45 = vpop.f32.mrf.mxu2 }
 0x749   : > { %v2707_v56 = vadd.f32 %v3593_v47, %v2706_v55 }
 0x74b   : > { %v2736_v4 = vadd.f32 %v2735_v45, %v2707_v56  ;;  %v4997_v56 = vld [vmem:[#allocation13 + $0x5] ss:$0 sm:$0xff] }
 0x74d   : > { %v2748_v16 = vadd.f32 %v2736_v4, %v4921_v50 }
 0x74f   : > { %2761 = vadd.xlane.f32.xlu2 %v2748_v16 }
 0x77a   : > { %v2752_v17 = vpop.xlane.xlu1 %2751  ;;  %v2709_v14 = vpop.f32.mrf.mxu1 }
 0x77b   : > { %v2767_v12 = vmul.f32 %v2752_v17, %v4835_v8  ;;  %v2710_v5 = vadd.f32 %v3593_v47, %v2709_v14  ;;  %v2738_v26 = vpop.f32.mrf.mxu2 }
 0x77d   : > { %v4952_v63 = vsub.f32 %v2743_v20, %v2767_v12  ;;  %v2739_v10 = vadd.f32 %v2738_v26, %v2710_v5 }
 0x77f   : > { %v2783_v59 = vmul.f32 %v4952_v63, %v4952_v63  ;;  %v2749_v0 = vadd.f32 %v2739_v10, %v4935_v33 }
 0x781   : > { %2791 = vadd.xlane.f32.xlu2 %v2783_v59  ;;  %2763 = vadd.xlane.f32.xlu1 %v2749_v0 }
 0x782   : > { %v2754_v32 = vpop.xlane.xlu0 %2753  ;;  %v2711_v1 = vpop.f32.mrf.mxu1 }
 0x783   : > { %v2768_v50 = vmul.f32 %v2754_v32, %v4835_v8  ;;  %v2712_v31 = vadd.f32 %v3593_v47, %v2711_v1  ;;  %v2740_v27 = vpop.f32.mrf.mxu2 }
 0x785   : > { %v4958_v6 = vsub.f32 %v2744_v15, %v2768_v50  ;;  %v2741_v44 = vadd.f32 %v2740_v27, %v2712_v31 }
 0x787   : > { %v2750_v52 = vadd.f32 %v2741_v44, %v4938_v29  ;;  %v2784_v23 = vmul.f32 %v4958_v6, %v4958_v6 }
 0x789   : > { %2765 = vadd.xlane.f32.xlu0 %v2750_v52  ;;  %2793 = vadd.xlane.f32.xlu1 %v2784_v23 }
 0x7aa   : > { %v2756_v38 = vpop.xlane.xlu2 %2755 }
 0x7ab   : > { %v2769_v33 = vmul.f32 %v2756_v38, %v4835_v8 }
 0x7ad   : > { %v4964_v43 = vsub.f32 %v2745_v19, %v2769_v33 }
 0x7af   : > { %v2785_v7 = vmul.f32 %v4964_v43, %v4964_v43 }
 0x7b1   : > { %2795 = vadd.xlane.f32.xlu0 %v2785_v7 }
 0x7b2   : > { %v2758_v9 = vpop.xlane.xlu1 %2757 }
 0x7b3   : > { %v2770_v28 = vmul.f32 %v2758_v9, %v4835_v8 }
 0x7b5   : > { %v4969_v62 = vsub.f32 %v2746_v39, %v2770_v28 }
 0x7b7   : > { %v2786_v29 = vmul.f32 %v4969_v62, %v4969_v62 }
 0x7b9   : > { %2797 = vadd.xlane.f32.xlu2 %v2786_v29 }
 0x7ba   : > { %v2760_v24 = vpop.xlane.xlu0 %2759 }
 0x7bb   : > { %v2771_v35 = vmul.f32 %v2760_v24, %v4835_v8 }
 0x7bd   : > { %v4974_v18 = vsub.f32 %v2747_v58, %v2771_v35 }
 0x7bf   : > { %v2787_v22 = vmul.f32 %v4974_v18, %v4974_v18 }
 0x7c1   : > { %2799 = vadd.xlane.f32.xlu1 %v2787_v22 }
 0x7c2   : > { %v2762_v36 = vpop.xlane.xlu2 %2761 }
 0x7c3   : > { %v2772_v21 = vmul.f32 %v2762_v36, %v4835_v8 }
 0x7c5   : > { %v4979_v47 = vsub.f32 %v2748_v16, %v2772_v21 }
 0x7c7   : > { %v2788_v49 = vmul.f32 %v4979_v47, %v4979_v47 }
 0x7c9   : > { %2801 = vadd.xlane.f32.xlu0 %v2788_v49 }
 0x7f4   : > { %v2764_v60 = vpop.xlane.xlu1 %2763  ;;  %v2792_v41 = vpop.xlane.xlu2 %2791 }
 0x7f5   : > { %v2773_v11 = vmul.f32 %v2764_v60, %v4835_v8  ;;  %v2807_v20 = vmul.f32 %v2792_v41, %v4835_v8 }
 0x7f7   : > { %v4985_v54 = vsub.f32 %v2749_v0, %v2773_v11  ;;  %v2815_v51 = vadd.f32 1e-05, %v2807_v20 }
 0x7f9   : > { %3742 = vrsqrt.f32 %v2815_v51  ;;  %v2789_v57 = vmul.f32 %v4985_v54, %v4985_v54  ;;  %vm2829_vm14 = vweird.f32 %v2815_v51 }
 0x7fb   : > { %2803 = vadd.xlane.f32.xlu2 %v2789_v57 }
 0x7fc   : > { %v2766_v37 = vpop.xlane.xlu0 %2765  ;;  %v2794_v15 = vpop.xlane.xlu1 %2793 }
 0x7fd   : > { %v2774_v61 = vmul.f32 %v2766_v37, %v4835_v8  ;;  %v2808_v48 = vmul.f32 %v2794_v15, %v4835_v8 }
 0x7ff   : > { %v3743_v2 = vpop.eup %3742  ;;  %v4991_v34 = vsub.f32 %v2750_v52, %v2774_v61  ;;  %v2816_v19 = vadd.f32 1e-05, %v2808_v48 }
 0x800   : > { %v2824_v46 = vmul.f32 %v3743_v2, %v2815_v51  ;;  %vm2830_vm13 = vweird.f32 %v3743_v2 }
 0x801   : > { %3744 = vrsqrt.f32 %v2816_v19  ;;  %v2790_v42 = vmul.f32 %v4991_v34, %v4991_v34  ;;  %vm2831_vm15 = vmor %vm2829_vm14, %vm2830_vm13  ;;  %vm2839_vm1 = vweird.f32 %v2816_v19 }
 0x802   : > { %v2825_v3 = vmul.f32 %v3743_v2, %v2824_v46 }
 0x803   : > { %2805 = vadd.xlane.f32.xlu1 %v2790_v42 }
 0x804   : > { %v2826_v53 = vmul.f32 0.5, %v2825_v3 }
 0x806   : > { %v2827_v39 = vsub.f32 1.5, %v2826_v53 }
 0x807   : > { %v3745_v13 = vpop.eup %3744 }
 0x808   : > { %v2828_v25 = vmul.f32 %v3743_v2, %v2827_v39  ;;  %v2834_v30 = vmul.f32 %v3745_v13, %v2816_v19  ;;  %vm2840_vm0 = vweird.f32 %v3745_v13 }
 0x809   : > { %vm2841_vm2 = vmor %vm2839_vm1, %vm2840_vm0 }
 0x80a   : > { %v2832_v58 = vsel %vm2831_vm15, %v3743_v2, %v2828_v25  ;;  %v2835_v55 = vmul.f32 %v3745_v13, %v2834_v30 }
 0x80b   : > { %v2903_v45 = vmul.f32 %v2832_v58, %v4952_v63 }
 0x80c   : > { %v2836_v4 = vmul.f32 0.5, %v2835_v55 }
 0x80d   : > { %v2912_v16 = vmul.f32 %v4995_v40, %v2903_v45 }
 0x80e   : > { %v2837_v17 = vsub.f32 1.5, %v2836_v4 }
 0x80f   : > { %v2921_v14 = vadd.f32 %v4997_v56, %v2912_v16 }
 0x810   : > { %v2838_v12 = vmul.f32 %v3745_v13, %v2837_v17 }
 0x811   : > { %2929 = vst [vmem:[%s5004_s17] sm:$0xff] %v2921_v14 }
 0x812   : > { %v2842_v5 = vsel %vm2841_vm2, %v3745_v13, %v2838_v12 }
 0x813   : > { %v2904_v26 = vmul.f32 %v2842_v5, %v4958_v6 }
 0x815   : > { %v2913_v63 = vmul.f32 %v4995_v40, %v2904_v26 }
 0x817   : > { %v2922_v10 = vadd.f32 %v4997_v56, %v2913_v63 }
 0x819   : > { %2930 = vst [vmem:[%s5004_s17 + $0x8] sm:$0xff] %v2922_v10 }
 0x824   : > { %v2796_v59 = vpop.xlane.xlu0 %2795 }
 0x825   : > { %v2809_v0 = vmul.f32 %v2796_v59, %v4835_v8 }
 0x827   : > { %v2817_v32 = vadd.f32 1e-05, %v2809_v0 }
 0x829   : > { %3746 = vrsqrt.f32 %v2817_v32  ;;  %vm2849_vm4 = vweird.f32 %v2817_v32 }
 0x82c   : > { %v2798_v1 = vpop.xlane.xlu2 %2797 }
 0x82d   : > { %v2810_v50 = vmul.f32 %v2798_v1, %v4835_v8 }
 0x82f   : > { %v3747_v31 = vpop.eup %3746  ;;  %v2818_v27 = vadd.f32 1e-05, %v2810_v50 }
 0x830   : > { %v2844_v44 = vmul.f32 %v3747_v31, %v2817_v32  ;;  %vm2850_vm3 = vweird.f32 %v3747_v31 }
 0x831   : > { %3748 = vrsqrt.f32 %v2818_v27  ;;  %vm2851_vm5 = vmor %vm2849_vm4, %vm2850_vm3  ;;  %vm2859_vm7 = vweird.f32 %v2818_v27 }
 0x832   : > { %v2845_v52 = vmul.f32 %v3747_v31, %v2844_v44 }
 0x834   : > { %v2846_v23 = vmul.f32 0.5, %v2845_v52  ;;  %v2800_v6 = vpop.xlane.xlu1 %2799 }
 0x835   : > { %v2811_v38 = vmul.f32 %v2800_v6, %v4835_v8 }
 0x836   : > { %v2847_v33 = vsub.f32 1.5, %v2846_v23 }
 0x837   : > { %v3749_v7 = vpop.eup %3748  ;;  %v2819_v9 = vadd.f32 1e-05, %v2811_v38 }
 0x838   : > { %v2848_v28 = vmul.f32 %v3747_v31, %v2847_v33  ;;  %v2854_v29 = vmul.f32 %v3749_v7, %v2818_v27  ;;  %vm2860_vm6 = vweird.f32 %v3749_v7 }
 0x839   : > { %3750 = vrsqrt.f32 %v2819_v9  ;;  %vm2861_vm8 = vmor %vm2859_vm7, %vm2860_vm6  ;;  %vm2869_vm10 = vweird.f32 %v2819_v9 }
 0x83a   : > { %v2852_v24 = vsel %vm2851_vm5, %v3747_v31, %v2848_v28  ;;  %v2855_v35 = vmul.f32 %v3749_v7, %v2854_v29 }
 0x83b   : > { %v2905_v22 = vmul.f32 %v2852_v24, %v4964_v43 }
 0x83c   : > { %v2856_v36 = vmul.f32 0.5, %v2855_v35  ;;  %v2802_v21 = vpop.xlane.xlu0 %2801 }
 0x83d   : > { %v2914_v49 = vmul.f32 %v4995_v40, %v2905_v22  ;;  %v2812_v60 = vmul.f32 %v2802_v21, %v4835_v8 }
 0x83e   : > { %v2857_v41 = vsub.f32 1.5, %v2856_v36 }
 0x83f   : > { %v3751_v11 = vpop.eup %3750  ;;  %v2923_v20 = vadd.f32 %v4997_v56, %v2914_v49  ;;  %v2820_v51 = vadd.f32 1e-05, %v2812_v60 }
 0x840   : > { %v2858_v57 = vmul.f32 %v3749_v7, %v2857_v41  ;;  %v2864_v37 = vmul.f32 %v3751_v11, %v2819_v9  ;;  %vm2870_vm9 = vweird.f32 %v3751_v11 }
 0x841   : > { %2931 = vst [vmem:[%s5004_s17 + $0x10] sm:$0xff] %v2923_v20  ;;  %3752 = vrsqrt.f32 %v2820_v51  ;;  %vm2871_vm11 = vmor %vm2869_vm10, %vm2870_vm9  ;;  %vm2879_vm13 = vweird.f32 %v2820_v51 }
 0x842   : > { %v2862_v43 = vsel %vm2861_vm8, %v3749_v7, %v2858_v57  ;;  %v2865_v15 = vmul.f32 %v3751_v11, %v2864_v37 }
 0x843   : > { %v2906_v61 = vmul.f32 %v2862_v43, %v4969_v62 }
 0x844   : > { %v2866_v48 = vmul.f32 0.5, %v2865_v15 }
 0x845   : > { %v2915_v2 = vmul.f32 %v4995_v40, %v2906_v61 }
 0x846   : > { %v2867_v19 = vsub.f32 1.5, %v2866_v48 }
 0x847   : > { %v3753_v46 = vpop.eup %3752  ;;  %v2924_v42 = vadd.f32 %v4997_v56, %v2915_v2 }
 0x848   : > { %v2868_v3 = vmul.f32 %v3751_v11, %v2867_v19  ;;  %v2874_v53 = vmul.f32 %v3753_v46, %v2820_v51  ;;  %vm2880_vm12 = vweird.f32 %v3753_v46 }
 0x849   : > { %2932 = vst [vmem:[%s5004_s17 + $0x18] sm:$0xff] %v2924_v42  ;;  %vm2881_vm14 = vmor %vm2879_vm13, %vm2880_vm12 }
 0x84a   : > { %v2872_v39 = vsel %vm2871_vm11, %v3751_v11, %v2868_v3  ;;  %v2875_v13 = vmul.f32 %v3753_v46, %v2874_v53 }
 0x84b   : > { %v2907_v25 = vmul.f32 %v2872_v39, %v4974_v18 }
 0x84c   : > { %v2876_v62 = vmul.f32 0.5, %v2875_v13 }
 0x84d   : > { %v2916_v30 = vmul.f32 %v4995_v40, %v2907_v25 }
 0x84e   : > { %v2877_v58 = vsub.f32 1.5, %v2876_v62 }
 0x84f   : > { %v2925_v55 = vadd.f32 %v4997_v56, %v2916_v30 }
 0x850   : > { %v2878_v45 = vmul.f32 %v3753_v46, %v2877_v58 }
 0x851   : > { %2933 = vst [vmem:[%s5004_s17 + $0x20] sm:$0xff] %v2925_v55 }
 0x852   : > { %v2882_v4 = vsel %vm2881_vm14, %v3753_v46, %v2878_v45 }
 0x853   : > { %v2908_v16 = vmul.f32 %v2882_v4, %v4979_v47 }
 0x855   : > { %v2917_v17 = vmul.f32 %v4995_v40, %v2908_v16 }
 0x857   : > { %v2926_v14 = vadd.f32 %v4997_v56, %v2917_v17 }
 0x859   : > { %2934 = vst [vmem:[%s5004_s17 + $0x28] sm:$0xff] %v2926_v14 }
 0x86e   : > { %v2804_v18 = vpop.xlane.xlu2 %2803 }
 0x86f   : > { %v2813_v12 = vmul.f32 %v2804_v18, %v4835_v8 }
 0x871   : > { %v2821_v5 = vadd.f32 1e-05, %v2813_v12 }
 0x873   : > { %3754 = vrsqrt.f32 %v2821_v5  ;;  %vm2889_vm0 = vweird.f32 %v2821_v5 }
 0x876   : > { %v2806_v26 = vpop.xlane.xlu1 %2805 }
 0x877   : > { %v2814_v63 = vmul.f32 %v2806_v26, %v4835_v8 }
 0x879   : > { %v3755_v10 = vpop.eup %3754  ;;  %v2822_v59 = vadd.f32 1e-05, %v2814_v63 }
 0x87a   : > { %v2884_v0 = vmul.f32 %v3755_v10, %v2821_v5  ;;  %vm2890_vm15 = vweird.f32 %v3755_v10 }
 0x87b   : > { %3756 = vrsqrt.f32 %v2822_v59  ;;  %vm2891_vm1 = vmor %vm2889_vm0, %vm2890_vm15  ;;  %vm2899_vm3 = vweird.f32 %v2822_v59 }
 0x87c   : > { %v2885_v32 = vmul.f32 %v3755_v10, %v2884_v0 }
 0x87e   : > { %v2886_v47 = vmul.f32 0.5, %v2885_v32 }
 0x880   : > { %v2887_v1 = vsub.f32 1.5, %v2886_v47 }
 0x881   : > { %v3757_v50 = vpop.eup %3756 }
 0x882   : > { %v2888_v31 = vmul.f32 %v3755_v10, %v2887_v1  ;;  %v2894_v27 = vmul.f32 %v3757_v50, %v2822_v59  ;;  %vm2900_vm2 = vweird.f32 %v3757_v50 }
 0x883   : > { %vm2901_vm4 = vmor %vm2899_vm3, %vm2900_vm2 }
 0x884   : > { %v2892_v44 = vsel %vm2891_vm1, %v3755_v10, %v2888_v31  ;;  %v2895_v52 = vmul.f32 %v3757_v50, %v2894_v27 }
 0x885   : > { %v2909_v8 = vmul.f32 %v2892_v44, %v4985_v54 }
 0x886   : > { %v2896_v23 = vmul.f32 0.5, %v2895_v52 }
 0x887   : > { %v2918_v6 = vmul.f32 %v4995_v40, %v2909_v8 }
 0x888   : > { %v2897_v38 = vsub.f32 1.5, %v2896_v23 }
 0x889   : > { %v2927_v33 = vadd.f32 %v4997_v56, %v2918_v6 }
 0x88a   : > { %v2898_v7 = vmul.f32 %v3757_v50, %v2897_v38 }
 0x88b   : > { %2935 = vst [vmem:[%s5004_s17 + $0x30] sm:$0xff] %v2927_v33 }
 0x88c   : > { %v2902_v54 = vsel %vm2901_vm4, %v3757_v50, %v2898_v7 }
 0x88d   : > { %v2910_v9 = vmul.f32 %v2902_v54, %v4991_v34 }
 0x88f   : > { %v2919_v28 = vmul.f32 %v4995_v40, %v2910_v9 }
 0x891   : > { %v2928_v29 = vadd.f32 %v4997_v56, %v2919_v28 }
 0x893   : > { %2936 = vst [vmem:[%s5004_s17 + $0x38] sm:$0xff] %v2928_v29 }
 0x894   : > { %4003 = shalt.err (!%p4000_p9)
}
 0x895   : > { %s4072_s11 = smov 128   ;;  %s4073_s15 = smov 8  }
 0x896   : > { %3497 = dma.vmem_to_hbm [thread:$0]  (%p4219_p4), %s2951_s21, 1024, %s2953_s12, %s2938_s16, %s4072_s11, %s4072_s11, %s4073_s15  }
 0x897 PF: > { %s2967_s17 = sand.u32 1, %s4042_s27   ;;  %p5101_p10 = scmp.ge.s32.totalorder %s4054_s30, 2 }
 0x898   : > { %s2968_s25 = scalar_lea.sflag [#allocation4], %s2967_s17 }
 0x899   : > { %p3523_p13 = pnand %p5101_p10, %p4223_p6 }
 0x89b   : > { %p3524_p11 = pneg %p3523_p13 }
 0x89d   : > { %4037 = dma.done.wait (%p3524_p11), %s2968_s25, 1024  }
 0x89e   : > { %4039 = vsyncadd (%p3524_p11), %s2968_s25, 4294966272  ;;  %p24_p0 = scmp.ge.s32.totalorder %s4193_s20, 4   ;;  %s5102_s27 = smov %s4046_s28 }
 0x89f   : > { %s5103_s28 = smov %s4050_s29  ;;  %s5104_s29 = smov %s4204_s22 }
 0x8a0   : > { %s5105_s30 = smov %s4193_s20  ;;  %26 = sbr.rel (!%p24_p0) target bundleno = 12 (0xc), region = 121 }
 0x8a5   :  { %2974 = vsyncpa [#allocation3], 1 }
 0x8a6   :  { %2976 = vsyncpa [#allocation3 + $0x1], 1 }
 0x8a7   :  { %2977 = vsyncpa [#allocation6], 1 }
 0x8a8   :  { %2978 = vsyncpa [#allocation9], 1 }
 0x8a9   :  { %2979 = vsyncpa [#allocation12], 1 }
 0x8aa   :  { %2980 = vsyncpa [#allocation4], 1 }
 0x8ab   :  { %2982 = vsyncpa [#allocation4 + $0x1], 1 }

// kernel: tpu_custom_call.1
= control target key start
LH: loop header
LB: loop body
LE: loop exit
PB: predicated region body
PF: predicated region fallthrough
CT: control target
= control target key end

     0   :  { %s5075_s0 = inlined_call_operand.hbm [shape: f32[128,128], index: 0, kind: input, shape index: {}]   ;;  %s5076_s1 = inlined_call_operand.hbm [shape: bf16[128,384], index: 1, kind: input, shape index: {}]   ;;  %s5077_s2 = inlined_call_operand.hbm [shape: f32[1,384], index: 2, kind: input, shape index: {}]   ;;  %s5078_s3 = inlined_call_operand.hbm [shape: bf16[128,128], index: 3, kind: input, shape index: {}]   ;;  %s5079_s4 = inlined_call_operand.hbm [shape: bf16[128,256], index: 4, kind: input, shape index: {}]   ;;  %s5080_s5 = inlined_call_operand.vmem [shape: f32[1,256], index: 5, kind: input, shape index: {}]   ;;  %s5081_s6 = inlined_call_operand.hbm [shape: bf16[256,128], index: 6, kind: input, shape index: {}]   ;;  %s5082_s7 = inlined_call_operand.hbm [shape: f32[8,128], index: 7, kind: input, shape index: {}]   ;;  %s5083_s8 = inlined_call_operand.hbm [shape: f32[128,128], index: 8, kind: output, shape index: {}]  }
   0x1   :  { %5086 = sst [smem:[#allocation20_spill]] %s5076_s1 }
   0x2   :  { %5087 = sst [smem:[#allocation21_spill]] %s5077_s2 }
   0x3   :  { %5088 = sst [smem:[#allocation22_spill]] %s5078_s3 }
   0x4   :  { %13 = vsyncpa [#allocation3], 0 }
   0x5   :  { %15 = vsyncpa [#allocation3 + $0x1], 0 }
   0x6   :  { %16 = vsyncpa [#allocation6], 0 }
   0x7   :  { %17 = vsyncpa [#allocation9], 0 }
   0x8   :  { %18 = vsyncpa [#allocation12], 0 }
   0x9   :  { %19 = vsyncpa [#allocation4], 0 }
   0xa   :  { %21 = vsyncpa [#allocation4 + $0x1], 0  ;;  %s4119_s27 = smov 0   ;;  %s4121_s28 = smov 0  }
   0xb   :  { %s4123_s29 = smov 0   ;;  %s4125_s30 = smov 0  }
   0xc LB: > { %s5089_s1 = sld [smem:[#allocation20_spill]]  ;;  %s4143_s12 = sadd.s32 4294967295, %s4054_s30   ;;  %s4054_s30 = sphi %s4125_s30, %s5105_s30   ;;  %s4050_s29 = sphi %s4123_s29, %s5104_s29   ;;  %s4046_s28 = sphi %s4121_s28, %s5103_s28   ;;  %s4042_s27 = sphi %s4119_s27, %s5102_s27  }
   0xd   : > { %p3084_p0 = scmp.ge.s32.totalorder %s4054_s30, 1  ;;  %p48_p1 = scmp.eq.s32.totalorder %s4143_s12, 0 }
   0xe   : > { %p231_p2 = scmp.lt.s32.totalorder %s4054_s30, 3  ;;  %s4056_s14 = smov [#allocation5]  }
   0xf   : > { %s244_s15 = sshll.u32 %s4056_s14, 4  ;;  %s5091_s3 = sld [smem:[#allocation22_spill]]  ;;  %s245_s15 = int_to_ptr.vmem [resolvable:$true] %s244_s15 }
  0x10   : > { %p4148_p3 = pnand %p3084_p0, %p231_p2  ;;  %s4057_s20 = smov [#allocation8]  }
  0x11   : > { %s270_s21 = sshll.u32 %s4057_s20, 4  ;;  %s4058_s22 = smov 192   ;;  %s271_s21 = int_to_ptr.vmem [resolvable:$true] %s270_s21 }
  0x12   : > { %s242_s11 = sshll.u32 %s5089_s1, 4  ;;  %p3499_p4 = pneg %p4148_p3  ;;  %s243_s11 = int_to_ptr.hbm [resolvable:$true] %s242_s11 }
  0x13   : > { %s4059_s23 = smov 12   ;;  %s4060_s24 = smov 64  }
  0x14   : > { %p4160_p6 = pnand %p3499_p4, %p48_p1  ;;  %s4061_s25 = smov 4  }
  0x15   : > { %s268_s18 = sshll.u32 %s5091_s3, 4  ;;  %s299_s10 = sshll.u32 %s5081_s6, 4  ;;  %s269_s18 = int_to_ptr.hbm [resolvable:$true] %s268_s18  ;;  %s300_s10 = int_to_ptr.hbm [resolvable:$true] %s299_s10 }
  0x16   : > { %3502 = dma.hbm_to_vmem [thread:$0]  (!%p4160_p6), %s243_s11, 3072, %s245_s15, [#allocation6], %s4058_s22, %s4058_s22, %s4059_s23  }
  0x17   : > { %3508 = dma.hbm_to_vmem [thread:$0]  (!%p4160_p6), %s269_s18, 1024, %s271_s21, [#allocation9], %s4060_s24, %s4060_s24, %s4061_s25  }
  0x18   : > { %s4062_s14 = smov [#allocation11]   ;;  %s5093_s2 = sld [smem:[#allocation21_spill]] }
  0x19   : > { %s301_s16 = sshll.u32 %s4062_s14, 4  ;;  %s4063_s11 = smov [#allocation7]   ;;  %s302_s16 = int_to_ptr.vmem [resolvable:$true] %s301_s16 }
  0x1a   : > { %3514 = dma.hbm_to_vmem [thread:$0]  (!%p4160_p6), %s300_s10, 2048, %s302_s16, [#allocation12], %s4060_s24, %s4060_s24, %s4061_s25  }
  0x1b   : > { %s259_s15 = sshll.u32 %s4063_s11, 4  ;;  %s282_s21 = sshll.u32 %s5079_s4, 4  ;;  %s260_s15 = int_to_ptr.vmem [resolvable:$true] %s259_s15  ;;  %s283_s21 = int_to_ptr.hbm [resolvable:$true] %s282_s21 }
  0x1c   : > { %s4064_s23 = smov [#allocation10]   ;;  %s314_s9 = sshll.u32 %s5082_s7, 4  ;;  %s315_s9 = int_to_ptr.hbm [resolvable:$true] %s314_s9 }
  0x1d   : > { %s284_s26 = sshll.u32 %s4064_s23, 4  ;;  %s5084_s10 = smov 128   ;;  %s285_s26 = int_to_ptr.vmem [resolvable:$true] %s284_s26 }
  0x1e   : > { %s257_s1 = sshll.u32 %s5093_s2, 4  ;;  %s5085_s14 = smov 8   ;;  %s258_s1 = int_to_ptr.hbm [resolvable:$true] %s257_s1 }
  0x1f   : > { %3505 = dma.hbm_to_vmem [thread:$0]  (!%p4160_p6), %s258_s1, 48, %s260_s15, [#allocation6]  }
  0x20   : > { %3511 = dma.hbm_to_vmem [thread:$0]  (!%p4160_p6), %s283_s21, 2048, %s285_s26, [#allocation9], %s5084_s10, %s5084_s10, %s5085_s14  }
  0x21   : > { %s4067_s1 = smov [#allocation13]   ;;  %s3083_s17 = sadd.s32 4294967294, %s4054_s30  }
  0x22   : > { %s316_s16 = sshll.u32 %s4067_s1, 4  ;;  %s4193_s20 = sadd.s32 1, %s4054_s30   ;;  %s317_s16 = int_to_ptr.vmem [resolvable:$true] %s316_s16 }
  0x23   : > { %3517 = dma.hbm_to_vmem [thread:$0]  (!%p4160_p6), %s315_s9, 128, %s317_s16, [#allocation12]  }
  0x24   : > { %s31_s11 = ssub.s32 %s4054_s30, %s4193_s20  ;;  %s34_s15 = sadd.s32 1, %s4050_s29 }
  0x25   : > { %p32_p7 = scmp.eq.s32.totalorder %s31_s11, 0  ;;  %p41_p8 = scmp.ne.s32.totalorder %s4050_s29, %s4046_s28 }
  0x26   : > { %p42_p9 = scmp.eq.s32.totalorder %s4054_s30, 0  ;;  %p47_p10 = scmp.ne.s32.totalorder %s4046_s28, %s4042_s27 }
  0x27   : > { %s4204_s22 = scalar_select %p32_p7, %s4050_s29, %s34_s15  }
  0x28   : > { %p4206_p11 = por %p42_p9, %p41_p8  ;;  %p4212_p12 = por %p48_p1, %p47_p10 }
  0x29   : > { %p218_p13 = scmp.eq.s32.totalorder %s4143_s12, 1  ;;  %p224_p0 = scmp.eq.s32.totalorder %s3083_s17, 1 }
  0x2a   : > { %p3532_p2 = scmp.lt.s32.totalorder %s4054_s30, 2  ;;  %s327_s21 = sand.u32 1, %s4050_s29  }
  0x2b   : > { %p4219_p4 = por %p218_p13, %p41_p8  ;;  %p4223_p6 = por %p224_p0, %p47_p10 }
  0x2c   : > { %s3092_s24 = sshll.u32 %s327_s21, 6  ;;  %s3397_s25 = sshll.u32 %s4054_s30, 6 }
  0x2d   : > { %s336_s16 = scalar_lea.hbm %s5075_s0, %s3397_s25  ;;  %s331_s11 = scalar_lea.vmem [#allocation2], %s3092_s24 }
  0x2e   : > { %s339_s15 = sshll.u32 %s331_s11, 4  ;;  %s337_s10 = sshll.u32 %s336_s16, 4  ;;  %s340_s15 = int_to_ptr.vmem [resolvable:$true] %s339_s15  ;;  %s338_s10 = int_to_ptr.hbm [resolvable:$true] %s337_s10 }
  0x2f   : > { %p4233_p7 = pnand %p3532_p2, %p4206_p11  ;;  %s328_s14 = scalar_lea.sflag [#allocation3], %s327_s21 }
  0x30   : > { %s3946_s2 = sshra.s32 %s338_s10, 4  ;;  %s3953_s9 = scalar_lea.hbm %s5075_s0, 128  ;;  %s3947_s2 = int_to_ptr.hbm [resolvable:$true] %s3946_s2 }
  0x31   : > { %s3948_s3 = scalar_lea.hbm %s3947_s2, 64  ;;  %p3950_p9 = pneg %p4233_p7 }
  0x32   : > { %p3949_p8 = scmp.ne.s32.totalorder %s3947_s2, %s3948_s3  ;;  %p3954_p11 = scmp.lt.s32.totalorder %s3947_s2, %s5075_s0 }
  0x33   : > { %p3955_p0 = scmp.lt.s32.totalorder %s3953_s9, %s3948_s3 }
  0x34   : > { %p3951_p10 = pnand %p3950_p9, %p3949_p8 }
  0x35   : > { %p3956_p2 = por %p3955_p0, %p3954_p11 }
  0x36   : > { %p3952_p13 = pneg %p3951_p10 }
  0x38   : > { %p3957_p5 = pnand %p3956_p2, %p3952_p13 }
  0x3a   : > { %3960 = shalt.err (!%p3957_p5)
}
  0x3b   : > { %s5099_s21 = smov 8   ;;  %s5100_s16 = smov 128  }
  0x3c   : > { %3521 = dma.hbm_to_vmem [thread:$0]  (!%p4233_p7), %s338_s10, 1024, %s340_s15, %s328_s14, %s5100_s16, %s5100_s16, %s5099_s21  }
  0x3d   : > { %351 = sbr.rel (%p4148_p3) target bundleno = 2199 (0x897), region = 52  ;;  %s4253_s11 = sand.u32 (!%p4148_p3), 1, %s4046_s28  }
  0x3e   : > { %s3096_s2 = sshll.u32 (!%p4148_p3), %s4253_s11, 6  ;;  %s354_s3 = scalar_lea.sflag (!%p4148_p3), [#allocation3], %s4253_s11 }
  0x3f   : > { %s4259_s24 = scalar_lea.vmem (!%p4148_p3), [#allocation2], %s3096_s2 }
  0x42   : > { %4021 = dma.done.wait (%p4212_p12), %s354_s3, 1024  }
  0x43   : > { %4023 = vsyncadd (%p4212_p12), %s354_s3, 4294966272 }
  0x44   : > { %4025 = dma.done.wait (%p48_p1), [#allocation6], 3120  }
  0x45   : > { %4027 = vsyncadd (%p48_p1), [#allocation6], 4294964176 }
  0x46   : > { %4029 = dma.done.wait (%p48_p1), [#allocation9], 3072  }
  0x47   : > { %4031 = vsyncadd (%p48_p1), [#allocation9], 4294964224 }
  0x48   : > { %4033 = dma.done.wait (%p48_p1), [#allocation12], 2176  }
  0x49   : > { %4035 = vsyncadd (%p48_p1), [#allocation12], 4294965120  ;;  %v3190_v0 = vld [vmem:[#allocation5 + $0xa8] sm:$0xf]  ;;  %v3420_v1 = vld [vmem:[#allocation5 + $0xb0] sm:$0xf0] }
  0x4a   : > { %v3419_v2 = vld [vmem:[#allocation5 + $0xac] sm:$0xf]  ;;  %v3191_v3 = vor.u32 %v3420_v1, %v3190_v0  ;;  %v3192_v4 = vld [vmem:[#allocation5 + $0xb4] sm:$0xf0]  ;;  %v3178_v5 = vld [vmem:[#allocation5 + $0x90] sm:$0xf] }
  0x4b   : > { %v3417_v6 = vld [vmem:[#allocation5 + $0x98] sm:$0xf0]  ;;  %v3195_v7 = vor.u32 %v3419_v2, %v3192_v4  ;;  %v3416_v8 = vld [vmem:[#allocation5 + $0x94] sm:$0xf]  ;;  %v3180_v9 = vld [vmem:[#allocation5 + $0x9c] sm:$0xf0] }
  0x4c   : > { %610 = vmatpush.bf16.msra.mxu0 %v3191_v3  ;;  %v3179_v10 = vor.u32 %v3417_v6, %v3178_v5  ;;  %v3183_v11 = vor.u32 %v3416_v8, %v3180_v9  ;;  %v3166_v12 = vld [vmem:[#allocation5 + $0x78] sm:$0xf]  ;;  %v3414_v13 = vld [vmem:[#allocation5 + $0x80] sm:$0xf0]  ;;  %v3413_v14 = vld [vmem:[#allocation5 + $0x7c] sm:$0xf] }
  0x4d   : > { %639 = vmatpush.bf16.msra.mxu1 %v3195_v7  ;;  %v3168_v15 = vld [vmem:[#allocation5 + $0x84] sm:$0xf0]  ;;  %v3167_v16 = vor.u32 %v3414_v13, %v3166_v12  ;;  %v3154_v18 = vld [vmem:[#allocation5 + $0x60] sm:$0xf]  ;;  %v3411_v19 = vld [vmem:[#allocation5 + $0x68] sm:$0xf0] }
  0x4e   : > { %v3171_v17 = vor.u32 %v3413_v14, %v3168_v15  ;;  %v3410_v20 = vld [vmem:[#allocation5 + $0x64] sm:$0xf]  ;;  %v3156_v21 = vld [vmem:[#allocation5 + $0x6c] sm:$0xf0]  ;;  %v3155_v22 = vor.u32 %v3411_v19, %v3154_v18  ;;  %v3142_v23 = vld [vmem:[#allocation5 + $0x48] sm:$0xf] }
  0x4f   : > { %v3198_v24 = vld [vmem:[#allocation5 + $0xb0] sm:$0xf]  ;;  %v3421_v25 = vld [vmem:[#allocation5 + $0xb8] sm:$0xf0]  ;;  %v3159_v26 = vor.u32 %v3410_v20, %v3156_v21  ;;  %v3408_v27 = vld [vmem:[#allocation5 + $0x50] sm:$0xf0] }
  0x50   : > { %611 = vmatpush.bf16.msra.mxu0 %v3179_v10  ;;  %v3199_v28 = vor.u32 %v3421_v25, %v3198_v24  ;;  %v3186_v29 = vld [vmem:[#allocation5 + $0x98] sm:$0xf]  ;;  %v3418_v30 = vld [vmem:[#allocation5 + $0xa0] sm:$0xf0]  ;;  %v3407_v31 = vld [vmem:[#allocation5 + $0x4c] sm:$0xf]  ;;  %v3143_v35 = vor.u32 %v3408_v27, %v3142_v23 }
  0x51   : > { %640 = vmatpush.bf16.msra.mxu1 %v3183_v11  ;;  %v3144_v32 = vld [vmem:[#allocation5 + $0x54] sm:$0xf0]  ;;  %v3130_v33 = vld [vmem:[#allocation5 + $0x30] sm:$0xf]  ;;  %v3187_v34 = vor.u32 %v3418_v30, %v3186_v29  ;;  %v3174_v36 = vld [vmem:[#allocation5 + $0x80] sm:$0xf] }
  0x52   : > { %668 = vmatpush.bf16.msra.mxu2 %v3199_v28  ;;  %v3415_v37 = vld [vmem:[#allocation5 + $0x88] sm:$0xf0]  ;;  %v3147_v38 = vor.u32 %v3407_v31, %v3144_v32  ;;  %v3405_v39 = vld [vmem:[#allocation5 + $0x38] sm:$0xf0]  ;;  %v3404_v40 = vld [vmem:[#allocation5 + $0x34] sm:$0xf] }
  0x53   : > { %v3132_v41 = vld [vmem:[#allocation5 + $0x3c] sm:$0xf0]  ;;  %v3175_v42 = vor.u32 %v3415_v37, %v3174_v36  ;;  %v3131_v43 = vor.u32 %v3405_v39, %v3130_v33  ;;  %v3162_v44 = vld [vmem:[#allocation5 + $0x68] sm:$0xf]  ;;  %v3412_v45 = vld [vmem:[#allocation5 + $0x70] sm:$0xf0] }
  0x54   : > { %612 = vmatpush.bf16.msra.mxu0 %v3167_v16  ;;  %v3135_v46 = vor.u32 %v3404_v40, %v3132_v41  ;;  %v3118_v47 = vld [vmem:[#allocation5 + $0x18] sm:$0xf]  ;;  %v3402_v48 = vld [vmem:[#allocation5 + $0x20] sm:$0xf0]  ;;  %v3401_v49 = vld [vmem:[#allocation5 + $0x1c] sm:$0xf]  ;;  %v3163_v51 = vor.u32 %v3412_v45, %v3162_v44 }
  0x55   : > { %641 = vmatpush.bf16.msra.mxu1 %v3171_v17  ;;  %v3120_v50 = vld [vmem:[#allocation5 + $0x24] sm:$0xf0]  ;;  %v3119_v52 = vor.u32 %v3402_v48, %v3118_v47  ;;  %v3150_v53 = vld [vmem:[#allocation5 + $0x50] sm:$0xf]  ;;  %v3409_v54 = vld [vmem:[#allocation5 + $0x58] sm:$0xf0] }
  0x56   : > { %669 = vmatpush.bf16.msra.mxu2 %v3187_v34  ;;  %v3123_v55 = vor.u32 %v3401_v49, %v3120_v50  ;;  %v3106_v56 = vld [vmem:[#allocation5] sm:$0xf]  ;;  %v3399_v57 = vld [vmem:[#allocation5 + $0x8] sm:$0xf0]  ;;  %v3398_v58 = vld [vmem:[#allocation5 + $0x4] sm:$0xf]  ;;  %v3151_v61 = vor.u32 %v3409_v54, %v3150_v53 }
  0x57   : > { %v3108_v59 = vld [vmem:[#allocation5 + $0xc] sm:$0xf0]  ;;  %v424_v60 = vld [vmem:[%s4259_s24] sm:$0xff]  ;;  %v3107_v62 = vor.u32 %v3399_v57, %v3106_v56  ;;  %v425_v63 = vld [vmem:[%s4259_s24 + $0x8] sm:$0xff]  ;;  %vm853_vm0 = vcmask 261120   ;;  %s4068_s13 = smov 96  }
  0x58   : > { %613 = vmatpush.bf16.msra.mxu0 %v3155_v22  ;;  %v3138_v0 = vld [vmem:[#allocation5 + $0x38] sm:$0xf]  ;;  %v3406_v1 = vld [vmem:[#allocation5 + $0x40] sm:$0xf0]  ;;  %v3111_v2 = vor.u32 %v3398_v58, %v3108_v59  ;;  %v438_v3 = vpack.c.bf16 %v425_v63, %v424_v60  ;;  %v3126_v5 = vld [vmem:[#allocation5 + $0x20] sm:$0xf] }
  0x59   : > { %642 = vmatpush.bf16.msra.mxu1 %v3159_v26  ;;  %v3139_v4 = vor.u32 %v3406_v1, %v3138_v0  ;;  %v3403_v6 = vld [vmem:[#allocation5 + $0x28] sm:$0xf0]  ;;  %v3114_v8 = vld [vmem:[#allocation5 + $0x8] sm:$0xf]  ;;  %v3400_v9 = vld [vmem:[#allocation5 + $0x10] sm:$0xf0] }
  0x5a   : > { %670 = vmatpush.bf16.msra.mxu2 %v3175_v42  ;;  %v3127_v7 = vor.u32 %v3403_v6, %v3126_v5  ;;  %v3115_v10 = vor.u32 %v3400_v9, %v3114_v8  ;;  %v426_v11 = vld [vmem:[%s4259_s24 + $0x10] sm:$0xff]  ;;  %v427_v12 = vld [vmem:[%s4259_s24 + $0x18] sm:$0xff]  ;;  %v428_v14 = vld [vmem:[%s4259_s24 + $0x20] sm:$0xff]  ;;  %s4069_s10 = smov 64   ;;  %s4070_s14 = smov 32   ;;  %vm1174_vm1 = vcmask 130048  }
  0x5b   : > { %v439_v13 = vpack.c.bf16 %v427_v12, %v426_v11  ;;  %v429_v15 = vld [vmem:[%s4259_s24 + $0x28] sm:$0xff]  ;;  %v430_v17 = vld [vmem:[%s4259_s24 + $0x30] sm:$0xff]  ;;  %v431_v18 = vld [vmem:[%s4259_s24 + $0x38] sm:$0xff]  ;;  %vm2059_vm2 = vcmask 523264   ;;  %vm2068_vm3 = vcmask 785408   ;;  %s5004_s17 = scalar_lea.vmem [#allocation14], %s3096_s2 }
  0x5c   : > { %614 = vmatpush.bf16.msra.mxu0 %v3143_v35  ;;  %v440_v16 = vpack.c.bf16 %v429_v15, %v428_v14  ;;  %v441_v19 = vpack.c.bf16 %v431_v18, %v430_v17  ;;  %v4285_v20 = vld [vmem:[#allocation7] sm:$0x7]  ;;  %s3462_s25 = sshll.u32 %s4143_s12, 6  ;;  %s2950_s21 = sshll.u32 %s5004_s17, 4  ;;  %s2951_s21 = int_to_ptr.vmem [resolvable:$true] %s2950_s21 }
  0x5d   : > { %643 = vmatpush.bf16.msra.mxu1 %v3147_v38  ;;  %v4288_v23 = vperm.slane %v4285_v20, 0  ;;  %v4291_v24 = vperm.slane %v4285_v20, 1  ;;  %s2949_s18 = scalar_lea.hbm %s5083_s8, %s3462_s25  ;;  %s2938_s16 = scalar_lea.sflag [#allocation4], %s4253_s11 }
  0x5e   : > { %671 = vmatpush.bf16.msra.mxu2 %v3163_v51  ;;  %s2952_s12 = sshll.u32 %s2949_s18, 4  ;;  %s2953_s12 = int_to_ptr.hbm [resolvable:$true] %s2952_s12 }
  0x5f   : > { %s3990_s2 = sshra.s32 %s2953_s12, 4  ;;  %s3991_s2 = int_to_ptr.hbm [resolvable:$true] %s3990_s2 }
  0x60   : > { %615 = vmatpush.bf16.msra.mxu0 %v3131_v43  ;;  %s3992_s3 = scalar_lea.hbm %s3991_s2, 64  ;;  %p3997_p12 = scmp.lt.s32.totalorder %s3991_s2, %s5083_s8 }
  0x61   : > { %644 = vmatpush.bf16.msra.mxu1 %v3135_v46  ;;  %p3993_p1 = scmp.ne.s32.totalorder %s3991_s2, %s3992_s3 }
  0x62   : > { %672 = vmatpush.bf16.msra.mxu2 %v3151_v61 }
  0x63   : > { %p3994_p3 = pnand %p3993_p1, %p4219_p4 }
  0x64   : > { %616 = vmatpush.bf16.msra.mxu0 %v3119_v52 }
  0x65   : > { %645 = vmatpush.bf16.msra.mxu1 %v3123_v55  ;;  %p3995_p5 = pneg %p3994_p3 }
  0x66   : > { %673 = vmatpush.bf16.msra.mxu2 %v3139_v4 }
  0x68   : > { %617 = vmatpush.bf16.msra.mxu0 %v3107_v62 }
  0x69   : > { %646 = vmatpush.bf16.msra.mxu1 %v3111_v2 }
  0x6a   : > { %674 = vmatpush.bf16.msra.mxu2 %v3127_v7 }
  0x6b   : > { %618 = vmatmul.bf16.vlgmr.msra.gmra.mxu0 %v438_v3 }
  0x6c   : > { %647 = vmatmul.bf16.vlgmr.msra.gmra.mxu1 %v438_v3 }
  0x6e   : > { %675 = vmatpush.bf16.msra.mxu2 %v3115_v10 }
  0x71   : > { %676 = vmatmul.bf16.vlgmr.msra.gmra.mxu2 %v438_v3 }
  0x7b   : > { %623 = vmatmul.bf16.gmra.mxu0 %v439_v13 }
  0x7c   : > { %652 = vmatmul.bf16.gmra.mxu1 %v439_v13 }
  0x81   : > { %681 = vmatmul.bf16.gmra.mxu2 %v439_v13 }
  0x8b   : > { %628 = vmatmul.bf16.gmra.mxu0 %v440_v16 }
  0x8c   : > { %657 = vmatmul.bf16.gmra.mxu1 %v440_v16 }
  0x91   : > { %686 = vmatmul.bf16.gmra.mxu2 %v440_v16 }
  0x9b   : > { %633 = vmatmul.bf16.gmra.mxu0 %v441_v19 }
  0x9c   : > { %662 = vmatmul.bf16.gmra.mxu1 %v441_v19 }
  0xa1   : > { %691 = vmatmul.bf16.gmra.mxu2 %v441_v19  ;;  %v4327_v19 = vperm.slane %v4285_v20, 2 }
  0xe8   : > { %v619_v21 = vpop.f32.mrf.mxu0 }
  0xe9   : > { %v648_v22 = vpop.f32.mrf.mxu1  ;;  %v620_v25 = vadd.f32 %v619_v21, %v4288_v23 }
  0xea   : > { %v649_v26 = vadd.f32 %v648_v22, %v4291_v24 }
  0xec   : > { %v697_v30 = vpack.c.bf16 %v649_v26, %v620_v25 }
  0xee   : > { %v721_v33 = vunpack.c.l.b16 %v697_v30  ;;  %v757_v34 = vunpack.c.h.b16 %v697_v30 }
  0xf0   : > { %v621_v27 = vpop.f32.mrf.mxu0 }
  0xf1   : > { %v622_v28 = vadd.f32 %v621_v27, %v4288_v23  ;;  %v650_v29 = vpop.f32.mrf.mxu1 }
  0xf2   : > { %v651_v31 = vadd.f32 %v650_v29, %v4291_v24 }
  0xf4   : > { %v699_v32 = vpack.c.bf16 %v651_v31, %v622_v28  ;;  %v4303_v47 = vpop.f32.mrf.mxu2 }
  0xf6   : > { %v722_v35 = vunpack.c.l.b16 %v699_v32  ;;  %v758_v36 = vunpack.c.h.b16 %v699_v32 }
  0xf8   : > { %v624_v37 = vpop.f32.mrf.mxu0  ;;  %v765_v38 = vpack.c.b16 %v758_v36, %v757_v34  ;;  %v729_v39 = vpack.c.b16 %v722_v35, %v721_v33 }
  0xf9   : > { %v653_v40 = vpop.f32.mrf.mxu1  ;;  %v625_v42 = vadd.f32 %v624_v37, %v4288_v23 }
  0xfa   : > { %769 = vrot.lane.b32.xlu0 %v765_v38, %s4068_s13  ;;  %741 = vrot.lane.b32.xlu2 %v729_v39, %s4069_s10  ;;  %v858_v41 = vsel %vm853_vm0, %v765_v38, 0  ;;  %v654_v43 = vadd.f32 %v653_v40, %v4291_v24 }
  0xfb   : > { %867 = vmatpush.bf16.xpose.msrb.mxu0 %v858_v41 }
  0xfc   : > { %v701_v48 = vpack.c.bf16 %v654_v43, %v625_v42  ;;  %v679_v60 = vpop.f32.mrf.mxu2 }
  0xfd   : > { %v680_v30 = vadd.f32 %v679_v60, %v4327_v19 }
  0xfe   : > { %v723_v51 = vunpack.c.l.b16 %v701_v48  ;;  %v759_v52 = vunpack.c.h.b16 %v701_v48 }
  0xff   : > { %v700_v36 = vpack.c.bf16 %v680_v30, %v680_v30 }
 0x100   : > { %v626_v44 = vpop.f32.mrf.mxu0 }
 0x101   : > { %v627_v45 = vadd.f32 %v626_v44, %v4288_v23  ;;  %v655_v46 = vpop.f32.mrf.mxu1  ;;  %v802_v43 = vunpack.c.l.b16 %v700_v36 }
 0x102   : > { %v656_v49 = vadd.f32 %v655_v46, %v4291_v24  ;;  %733 = vrot.lane.b32.xlu0 %v729_v39, %s4068_s13  ;;  %3200 = vmatmul.msk.bf16.vlgmr.msrb.gmra.mxu0 %vm853_vm0, %v729_v39 }
 0x104   : > { %v703_v50 = vpack.c.bf16 %v656_v49, %v627_v45  ;;  %v682_v7 = vpop.f32.mrf.mxu2 }
 0x105   : > { %v683_v29 = vadd.f32 %v682_v7, %v4327_v19 }
 0x106   : > { %v724_v53 = vunpack.c.l.b16 %v703_v50  ;;  %v760_v54 = vunpack.c.h.b16 %v703_v50 }
 0x107   : > { %v702_v33 = vpack.c.bf16 %v683_v29, %v683_v29 }
 0x108   : > { %v629_v55 = vpop.f32.mrf.mxu0  ;;  %v766_v56 = vpack.c.b16 %v760_v54, %v759_v52  ;;  %v730_v57 = vpack.c.b16 %v724_v53, %v723_v51 }
 0x109   : > { %v658_v58 = vpop.f32.mrf.mxu1  ;;  %v630_v61 = vadd.f32 %v629_v55, %v4288_v23  ;;  %v803_v40 = vunpack.c.l.b16 %v702_v33 }
 0x10a   : > { %771 = vrot.lane.b32.xlu1 %v766_v56, %s4068_s13  ;;  %735 = vrot.lane.b32.xlu2 %v730_v57, %s4068_s13  ;;  %v878_v59 = vsel %vm853_vm0, %v766_v56, 0  ;;  %v659_v62 = vadd.f32 %v658_v58, %v4291_v24 }
 0x10b   : > { %749 = vrot.lane.b32.xlu0 %v729_v39, %s4070_s14  ;;  %887 = vmatpush.bf16.xpose.msra.mxu3 %v878_v59 }
 0x10c   : > { %v705_v63 = vpack.c.bf16 %v659_v62, %v630_v61  ;;  %v684_v17 = vpop.f32.mrf.mxu2 }
 0x10d   : > { %v685_v20 = vadd.f32 %v684_v17, %v4327_v19 }
 0x10e   : > { %v725_v4 = vunpack.c.l.b16 %v705_v63  ;;  %v761_v5 = vunpack.c.h.b16 %v705_v63 }
 0x10f   : > { %v704_v34 = vpack.c.bf16 %v685_v20, %v685_v20 }
 0x110   : > { %v631_v0 = vpop.f32.mrf.mxu0 }
 0x111   : > { %v632_v1 = vadd.f32 %v631_v0, %v4288_v23  ;;  %v660_v2 = vpop.f32.mrf.mxu1  ;;  %v804_v41 = vunpack.c.l.b16 %v704_v34 }
 0x112   : > { %v661_v3 = vadd.f32 %v660_v2, %v4291_v24  ;;  %3201 = vmatmul.msk.bf16.vlgmr.msra.gmra.mxu3 %vm853_vm0, %v730_v57  ;;  %777 = vrot.lane.b32.xlu1 %v765_v38, %s4069_s10 }
 0x113   : > { %743 = vrot.lane.b32.xlu2 %v730_v57, %s4069_s10  ;;  %779 = vrot.lane.b32.xlu0 %v766_v56, %s4069_s10  ;;  %v4344_v45 = vpack.c.b16 %v804_v41, %v803_v40 }
 0x114   : > { %v707_v6 = vpack.c.bf16 %v661_v3, %v632_v1  ;;  %v687_v31 = vpop.f32.mrf.mxu2 }
 0x115   : > { %v688_v48 = vadd.f32 %v687_v31, %v4327_v19 }
 0x116   : > { %v726_v8 = vunpack.c.l.b16 %v707_v6  ;;  %v762_v9 = vunpack.c.h.b16 %v707_v6 }
 0x117   : > { %v706_v50 = vpack.c.bf16 %v688_v48, %v688_v48 }
 0x118   : > { %v767_v10 = vpack.c.b16 %v762_v9, %v761_v5  ;;  %v634_v11 = vpop.f32.mrf.mxu0  ;;  %v731_v12 = vpack.c.b16 %v726_v8, %v725_v4 }
 0x119   : > { %v663_v13 = vpop.f32.mrf.mxu1  ;;  %v635_v15 = vadd.f32 %v634_v11, %v4288_v23  ;;  %v805_v52 = vunpack.c.l.b16 %v706_v50 }
 0x11a   : > { %785 = vrot.lane.b32.xlu1 %v765_v38, %s4070_s14  ;;  %v898_v14 = vsel %vm853_vm0, %v767_v10, 0  ;;  %v664_v16 = vadd.f32 %v663_v13, %v4291_v24 }
 0x11b   : > { %787 = vrot.lane.b32.xlu2 %v766_v56, %s4070_s14  ;;  %907 = vmatpush.bf16.xpose.msrb.mxu3 %v898_v14 }
 0x11c   : > { %737 = vrot.lane.b32.xlu0 %v731_v12, %s4068_s13  ;;  %v709_v18 = vpack.c.bf16 %v664_v16, %v635_v15 }
 0x11e   : > { %v763_v27 = vunpack.c.h.b16 %v709_v18  ;;  %v727_v37 = vunpack.c.l.b16 %v709_v18 }
 0x120   : > { %v636_v21 = vpop.f32.mrf.mxu0 }
 0x121   : > { %v637_v22 = vadd.f32 %v636_v21, %v4288_v23  ;;  %v665_v25 = vpop.f32.mrf.mxu1  ;;  %v678_v23 = vadd.f32 %v4303_v47, %v4327_v19  ;;  %v689_v47 = vpop.f32.mrf.mxu2 }
 0x122   : > { %v666_v26 = vadd.f32 %v665_v25, %v4291_v24  ;;  %3202 = vmatmul.msk.bf16.vlgmr.msrb.gmra.mxu3 %vm853_vm0, %v731_v12  ;;  %773 = vrot.lane.b32.xlu1 %v767_v10, %s4068_s13  ;;  %v690_v49 = vadd.f32 %v689_v47, %v4327_v19 }
 0x123   : > { %745 = vrot.lane.b32.xlu2 %v731_v12, %s4069_s10  ;;  %v698_v35 = vpack.c.bf16 %v678_v23, %v678_v23 }
 0x124   : > { %v711_v28 = vpack.c.bf16 %v666_v26, %v637_v22  ;;  %781 = vrot.lane.b32.xlu0 %v767_v10, %s4069_s10  ;;  %v708_v51 = vpack.c.bf16 %v690_v49, %v690_v49 }
 0x125   : > { %v801_v42 = vunpack.c.l.b16 %v698_v35 }
 0x126   : > { %v764_v24 = vunpack.c.h.b16 %v711_v28  ;;  %v728_v38 = vunpack.c.l.b16 %v711_v28  ;;  %v806_v53 = vunpack.c.l.b16 %v708_v51 }
 0x127   : > { %v809_v46 = vpack.c.b16 %v802_v43, %v801_v42 }
 0x128   : > { %v768_v32 = vpack.c.b16 %v764_v24, %v763_v27  ;;  %v732_v44 = vpack.c.b16 %v728_v38, %v727_v37  ;;  %v4357_v54 = vpack.c.b16 %v806_v53, %v805_v52 }
 0x129   : > { %v692_v49 = vpop.f32.mrf.mxu2 }
 0x12a   : > { %751 = vrot.lane.b32.xlu1 %v730_v57, %s4070_s14  ;;  %v918_v39 = vsel %vm853_vm0, %v768_v32, 0  ;;  %v693_v50 = vadd.f32 %v692_v49, %v4327_v19 }
 0x12b   : > { %927 = vmatpush.bf16.xpose.msra.mxu3 %v918_v39  ;;  %775 = vrot.lane.b32.xlu2 %v768_v32, %s4068_s13 }
 0x12c   : > { %753 = vrot.lane.b32.xlu0 %v731_v12, %s4070_s14  ;;  %v710_v52 = vpack.c.bf16 %v693_v50, %v693_v50 }
 0x131   : > { %v694_v51 = vpop.f32.mrf.mxu2 }
 0x132   : > { %3203 = vmatmul.msk.bf16.vlgmr.msra.gmra.mxu3 %vm853_vm0, %v732_v44  ;;  %739 = vrot.lane.b32.xlu1 %v732_v44, %s4068_s13  ;;  %v695_v53 = vadd.f32 %v694_v51, %v4327_v19 }
 0x133   : > { %829 = vrot.lane.b32.xlu2 %v809_v46, %s4069_s10 }
 0x134   : > { %819 = vrot.lane.b32.xlu0 %v4344_v45, %s4068_s13 }
 0x13a   : > { %789 = vrot.lane.b32.xlu1 %v767_v10, %s4070_s14 }
 0x13b   : > { %831 = vrot.lane.b32.xlu2 %v4344_v45, %s4069_s10 }
 0x13c   : > { %783 = vrot.lane.b32.xlu0 %v768_v32, %s4069_s10 }
 0x142   : > { %817 = vrot.lane.b32.xlu1 %v809_v46, %s4068_s13 }
 0x143   : > { %747 = vrot.lane.b32.xlu2 %v732_v44, %s4069_s10 }
 0x144   : > { %821 = vrot.lane.b32.xlu0 %v4357_v54, %s4068_s13 }
 0x14a   : > { %791 = vrot.lane.b32.xlu1 %v768_v32, %s4070_s14 }
 0x14b   : > { %755 = vrot.lane.b32.xlu2 %v732_v44, %s4070_s14 }
 0x152   : > { %841 = vrot.lane.b32.xlu1 %v809_v46, %s4070_s14 }
 0x154   : > { %v742_v55 = vpop.permute.xlu2 %741 }
 0x15a   : > { %843 = vrot.lane.b32.xlu1 %v4344_v45, %s4070_s14 }
 0x164   : > { %v736_v56 = vpop.permute.xlu2 %735 }
 0x16c   : > { %v770_v57 = vpop.permute.xlu0 %769 }
 0x16d   : > { %v938_v58 = vsel %vm853_vm0, %v770_v57, 0  ;;  %v744_v59 = vpop.permute.xlu2 %743 }
 0x16e   : > { %947 = vmatpush.bf16.xpose.msrb.mxu3 %v938_v58 }
 0x174   : > { %v734_v60 = vpop.permute.xlu0 %733 }
 0x175   : > { %v788_v61 = vpop.permute.xlu2 %787  ;;  %3204 = vmatmul.msk.bf16.vlgmr.msrb.gmra.mxu3 %vm853_vm0, %v734_v60 }
 0x176   : > { %v1118_v10 = vsel %vm853_vm0, %v788_v61, 0 }
 0x17c   : > { %v772_v62 = vpop.permute.xlu1 %771 }
 0x17d   : > { %v958_v63 = vsel %vm853_vm0, %v772_v62, 0  ;;  %v750_v0 = vpop.permute.xlu0 %749  ;;  %v746_v1 = vpop.permute.xlu2 %745 }
 0x17e   : > { %967 = vmatpush.bf16.xpose.msra.mxu3 %v958_v63 }
 0x17f   : > { %v4371_v2 = vpop.f32.mrf.mxu0 }
 0x180   : > { %v1175_v3 = vsel %vm1174_vm1, %v4371_v2, -inf }
 0x181   : > { %1176 = vmax.xlane.f32.xlu0 %v1175_v3 }
 0x184   : > { %v778_v4 = vpop.permute.xlu1 %777 }
 0x185   : > { %v780_v5 = vpop.permute.xlu0 %779  ;;  %3205 = vmatmul.msk.bf16.vlgmr.msra.gmra.mxu3 %vm853_vm0, %v736_v56  ;;  %v1018_v6 = vsel %vm853_vm0, %v778_v4, 0  ;;  %v776_v7 = vpop.permute.xlu2 %775  ;;  %v712_v56 = vpack.c.bf16 %v695_v53, %v695_v53 }
 0x186   : > { %v1038_v8 = vsel %vm853_vm0, %v780_v5, 0  ;;  %1027 = vmatpush.bf16.xpose.msrb.mxu2 %v1018_v6  ;;  %v998_v9 = vsel %vm853_vm0, %v776_v7, 0 }
 0x187   : > { %1047 = vmatpush.bf16.xpose.msrb.mxu3 %v1038_v8  ;;  %v4380_v11 = vpop.f32.mrf.mxu0  ;;  %1007 = vmatpush.bf16.xpose.msrb.mxu1 %v998_v9  ;;  %v808_v57 = vunpack.c.l.b16 %v712_v56 }
 0x188   : > { %v1178_v12 = vsel %vm1174_vm1, %v4380_v11, -inf }
 0x189   : > { %1179 = vmax.xlane.f32.xlu1 %v1178_v12 }
 0x18c   : > { %v786_v13 = vpop.permute.xlu1 %785 }
 0x18d   : > { %v1098_v14 = vsel %vm853_vm0, %v786_v13, 0  ;;  %3208 = vmatmul.msk.bf16.vlgmr.msrb.gmra.mxu2 %vm853_vm0, %v742_v55  ;;  %v4400_v20 = vpop.permute.xlu2 %829  ;;  %v807_v55 = vunpack.c.l.b16 %v710_v52 }
 0x18e   : > { %1107 = vmatpush.bf16.xpose.msra.mxu2 %v1098_v14  ;;  %v738_v15 = vpop.permute.xlu0 %737 }
 0x18f   : > { %1127 = vmatpush.bf16.xpose.msra.mxu3 %v1118_v10  ;;  %v4432_v58 = vpack.c.b16 %v808_v57, %v807_v55 }
 0x194   : > { %v774_v16 = vpop.permute.xlu1 %773 }
 0x195   : > { %v978_v17 = vsel %vm853_vm0, %v774_v16, 0  ;;  %v4387_v18 = vpop.f32.mrf.mxu3  ;;  %3209 = vmatmul.msk.bf16.vlgmr.msrb.gmra.mxu3 %vm853_vm0, %v744_v59  ;;  %v4408_v32 = vpop.permute.xlu2 %831 }
 0x196   : > { %1574 = vmatpush.bf16.msrb.mxu2 %v809_v46  ;;  %v1181_v21 = vsel %vm1174_vm1, %v4387_v18, -inf  ;;  %v782_v22 = vpop.permute.xlu0 %781  ;;  %987 = vmatpush.bf16.xpose.msra.mxu0 %v978_v17 }
 0x197   : > { %1596 = vmatpush.bf16.msrb.mxu3 %v4344_v45  ;;  %1182 = vmax.xlane.f32.xlu2 %v1181_v21  ;;  %v1058_v25 = vsel %vm853_vm0, %v782_v22, 0 }
 0x19c   : > { %v752_v26 = vpop.permute.xlu1 %751 }
 0x19d   : > { %v4394_v27 = vpop.f32.mrf.mxu3  ;;  %3212 = vmatmul.msk.bf16.vlgmr.msra.gmra.mxu2 %vm853_vm0, %v750_v0  ;;  %3206 = vmatmul.msk.bf16.vlgmr.msra.gmra.mxu0 %vm853_vm0, %v738_v15  ;;  %v748_v40 = vpop.permute.xlu2 %747 }
 0x19e   : > { %1067 = vmatpush.bf16.xpose.msrb.mxu0 %v1058_v25  ;;  %v1184_v28 = vsel %vm1174_vm1, %v4394_v27, -inf  ;;  %v754_v29 = vpop.permute.xlu0 %753 }
 0x19f   : > { %1185 = vmax.xlane.f32.xlu2 %v1184_v28 }
 0x1a4   : > { %v740_v23 = vpop.permute.xlu1 %739 }
 0x1a5   : > { %v4402_v30 = vpop.f32.mrf.mxu3  ;;  %3213 = vmatmul.msk.bf16.vlgmr.msra.gmra.mxu3 %vm853_vm0, %v752_v26  ;;  %3207 = vmatmul.msk.bf16.vlgmr.msrb.gmra.mxu1 %vm853_vm0, %v740_v23  ;;  %v756_v48 = vpop.permute.xlu2 %755 }
 0x1a6   : > { %v1187_v24 = vsel %vm1174_vm1, %v4402_v30, -inf  ;;  %v820_v31 = vpop.permute.xlu0 %819 }
 0x1a7   : > { %1188 = vmax.xlane.f32.xlu0 %v1187_v24  ;;  %1684 = vmatpush.bf16.msra.mxu3 %v820_v31 }
 0x1ac   : > { %v790_v33 = vpop.permute.xlu1 %789 }
 0x1ad   : > { %v4410_v34 = vpop.f32.mrf.mxu3  ;;  %v1138_v35 = vsel %vm853_vm0, %v790_v33, 0  ;;  %3210 = vmatmul.msk.bf16.vlgmr.msrb.gmra.mxu0 %vm853_vm0, %v746_v1 }
 0x1ae   : > { %v1190_v36 = vsel %vm1174_vm1, %v4410_v34, -inf  ;;  %v784_v37 = vpop.permute.xlu0 %783  ;;  %1147 = vmatpush.bf16.xpose.msra.mxu0 %v1138_v35 }
 0x1af   : > { %1191 = vmax.xlane.f32.xlu1 %v1190_v36  ;;  %v1078_v38 = vsel %vm853_vm0, %v784_v37, 0 }
 0x1b0   : > { %1087 = vmatpush.bf16.xpose.msra.mxu1 %v1078_v38 }
 0x1b4   : > { %v818_v39 = vpop.permute.xlu1 %817 }
 0x1b5   : > { %v4418_v41 = vpop.f32.mrf.mxu3  ;;  %1662 = vmatpush.bf16.msra.mxu2 %v818_v39 }
 0x1b6   : > { %1618 = vmatpush.bf16.msrb.mxu0 %v4357_v54  ;;  %v1193_v42 = vsel %vm1174_vm1, %v4418_v41, -inf  ;;  %v822_v46 = vpop.permute.xlu0 %821 }
 0x1b7   : > { %1194 = vmax.xlane.f32.xlu2 %v1193_v42  ;;  %3211 = vmatmul.msk.bf16.vlgmr.msra.gmra.mxu1 %vm853_vm0, %v748_v40 }
 0x1bc   : > { %v792_v43 = vpop.permute.xlu1 %791 }
 0x1bd   : > { %v4423_v44 = vpop.f32.mrf.mxu3  ;;  %v1158_v45 = vsel %vm853_vm0, %v792_v43, 0  ;;  %3214 = vmatmul.msk.bf16.vlgmr.msra.gmra.mxu0 %vm853_vm0, %v754_v29 }
 0x1be   : > { %v1196_v47 = vsel %vm1174_vm1, %v4423_v44, -inf  ;;  %1167 = vmatpush.bf16.xpose.msrb.mxu1 %v1158_v45  ;;  %1706 = vmatpush.bf16.msra.mxu0 %v822_v46 }
 0x1bf   : > { %1197 = vmax.xlane.f32.xlu0 %v1196_v47 }
 0x1c4   : > { %v4440_v0 = vpop.permute.xlu1 %841 }
 0x1c6   : > { %1640 = vmatpush.bf16.msra.mxu1 %v4432_v58 }
 0x1c7   : > { %3215 = vmatmul.msk.bf16.vlgmr.msrb.gmra.mxu1 %vm853_vm0, %v756_v48 }
 0x1cc   : > { %v4448_v4 = vpop.permute.xlu1 %843 }
 0x1f4   : > { %v1177_v59 = vpop.xlane.xlu0 %1176 }
 0x1f5   : > { %v1271_v60 = vsub.f32 %v4371_v2, %v1177_v59 }
 0x1f7   : > { %v1303_v61 = vmul.f32 1.442695, %v1271_v60 }
 0x1f8   : > { %v4436_v62 = vpop.f32.mrf.mxu3 }
 0x1f9   : > { %3596 = vpow2.f32 %v1303_v61  ;;  %v1199_v63 = vsel %vm1174_vm1, %v4436_v62, -inf }
 0x1fa   : > { %1200 = vmax.xlane.f32.xlu0 %v1199_v63 }
 0x1fc   : > { %v1180_v6 = vpop.xlane.xlu1 %1179 }
 0x1fd   : > { %v1272_v7 = vsub.f32 %v4380_v11, %v1180_v6 }
 0x1ff   : > { %v4442_v19 = vpop.eup %3596  ;;  %v1305_v15 = vmul.f32 1.442695, %v1272_v7 }
 0x200   : > { %v4444_v1 = vpop.f32.mrf.mxu3  ;;  %v1367_v3 = vsel %vm1174_vm1, %v4442_v19, 0.0 }
 0x201   : > { %v1202_v22 = vsel %vm1174_vm1, %v4444_v1, -inf }
 0x202   : > { %1368 = vadd.xlane.f32.xlu0 %v1367_v3 }
 0x208   : > { %v4450_v2 = vpop.f32.mrf.mxu3 }
 0x209   : > { %v1205_v24 = vsel %vm1174_vm1, %v4450_v2, -inf }
 0x20a   : > { %v1183_v5 = vpop.xlane.xlu2 %1182 }
 0x20b   : > { %v1273_v28 = vsub.f32 %v4387_v18, %v1183_v5 }
 0x20d   : > { %v1307_v36 = vmul.f32 1.442695, %v1273_v28 }
 0x210   : > { %v4453_v8 = vpop.f32.mrf.mxu3  ;;  %v4455_v9 = vpop.f32.mrf.mxu2 }
 0x211   : > { %v1208_v10 = vsel %vm1174_vm1, %v4453_v8, -inf  ;;  %v1223_v12 = vsel %vm1174_vm1, %v4455_v9, -inf }
 0x212   : > { %v1186_v13 = vpop.xlane.xlu2 %1185  ;;  %1209 = vmax.xlane.f32.xlu0 %v1208_v10  ;;  %1224 = vmax.xlane.f32.xlu1 %v1223_v12 }
 0x213   : > { %v1274_v14 = vsub.f32 %v4394_v27, %v1186_v13 }
 0x215   : > { %v1309_v16 = vmul.f32 1.442695, %v1274_v14 }
 0x217   : > { %3598 = vpow2.f32 %v1309_v16 }
 0x218   : > { %3600 = vpow2.f32 %v1305_v15  ;;  %v4462_v11 = vpop.f32.mrf.mxu2  ;;  %v4464_v17 = vpop.f32.mrf.mxu3 }
 0x219   : > { %v1226_v21 = vsel %vm1174_vm1, %v4462_v11, -inf  ;;  %3602 = vpow2.f32 %v1307_v36  ;;  %v1229_v56 = vsel %vm1174_vm1, %v4464_v17, -inf }
 0x21a   : > { %1227 = vmax.xlane.f32.xlu2 %v1226_v21  ;;  %1203 = vmax.xlane.f32.xlu1 %v1202_v22  ;;  %v4479_v23 = vpop.f32.mrf.mxu0  ;;  %v1189_v33 = vpop.xlane.xlu0 %1188 }
 0x21b   : > { %v1275_v37 = vsub.f32 %v4402_v30, %v1189_v33  ;;  %v1211_v47 = vsel %vm1174_vm1, %v4479_v23, -inf }
 0x21d   : > { %v4470_v25 = vpop.eup %3598  ;;  %v1311_v39 = vmul.f32 1.442695, %v1275_v37 }
 0x21e   : > { %v4472_v26 = vpop.eup %3600  ;;  %v1376_v27 = vsel %vm1174_vm1, %v4470_v25, 0.0 }
 0x21f   : > { %1377 = vadd.xlane.f32.xlu0 %v1376_v27  ;;  %v1370_v31 = vsel %vm1174_vm1, %v4472_v26, 0.0  ;;  %3604 = vpow2.f32 %v1311_v39  ;;  %v4502_v46 = vpop.eup %3602 }
 0x220   : > { %v4477_v29 = vpop.f32.mrf.mxu2  ;;  %v4485_v35 = vpop.f32.mrf.mxu3  ;;  %v1373_v48 = vsel %vm1174_vm1, %v4502_v46, 0.0 }
 0x221   : > { %v1232_v18 = vsel %vm1174_vm1, %v4485_v35, -inf  ;;  %v1247_v42 = vsel %vm1174_vm1, %v4477_v29, -inf }
 0x222   : > { %1206 = vmax.xlane.f32.xlu2 %v1205_v24  ;;  %1371 = vadd.xlane.f32.xlu1 %v1370_v31  ;;  %v4496_v43 = vpop.f32.mrf.mxu0  ;;  %v4498_v45 = vpop.f32.mrf.mxu1 }
 0x223   : > { %v1217_v30 = vsel %vm1174_vm1, %v4498_v45, -inf  ;;  %v1192_v57 = vpop.xlane.xlu1 %1191  ;;  %v1214_v5 = vsel %vm1174_vm1, %v4496_v43, -inf }
 0x224   : > { %v1276_v3 = vsub.f32 %v4410_v34, %v1192_v57 }
 0x225   : > { %v4508_v49 = vpop.eup %3604 }
 0x226   : > { %v1379_v53 = vsel %vm1174_vm1, %v4508_v49, 0.0  ;;  %v1313_v13 = vmul.f32 1.442695, %v1276_v3 }
 0x227   : > { %1233 = vmax.xlane.f32.xlu0 %v1232_v18 }
 0x228   : > { %v4490_v38 = vpop.f32.mrf.mxu2  ;;  %v4510_v50 = vpop.f32.mrf.mxu3  ;;  %3606 = vpow2.f32 %v1313_v13 }
 0x229   : > { %v1250_v40 = vsel %vm1174_vm1, %v4490_v38, -inf  ;;  %v1253_v61 = vsel %vm1174_vm1, %v4510_v50, -inf }
 0x22a   : > { %1251 = vmax.xlane.f32.xlu2 %v1250_v40  ;;  %1248 = vmax.xlane.f32.xlu1 %v1247_v42  ;;  %v4512_v51 = vpop.f32.mrf.mxu0  ;;  %v4514_v52 = vpop.f32.mrf.mxu1 }
 0x22b   : > { %v1220_v55 = vsel %vm1174_vm1, %v4514_v52, -inf  ;;  %v1195_v59 = vpop.xlane.xlu2 %1194  ;;  %v1235_v22 = vsel %vm1174_vm1, %v4512_v51, -inf }
 0x22c   : > { %v1277_v6 = vsub.f32 %v4418_v41, %v1195_v59 }
 0x22e   : > { %v1315_v14 = vmul.f32 1.442695, %v1277_v6 }
 0x22f   : > { %1218 = vmax.xlane.f32.xlu0 %v1217_v30 }
 0x230   : > { %v4522_v60 = vpop.f32.mrf.mxu3  ;;  %3608 = vpow2.f32 %v1315_v14 }
 0x231   : > { %v1256_v10 = vsel %vm1174_vm1, %v4522_v60, -inf }
 0x232   : > { %1374 = vadd.xlane.f32.xlu2 %v1373_v48  ;;  %1212 = vmax.xlane.f32.xlu1 %v1211_v47  ;;  %v4526_v63 = vpop.f32.mrf.mxu0  ;;  %v1198_v12 = vpop.xlane.xlu0 %1197 }
 0x233   : > { %v1278_v15 = vsub.f32 %v4423_v44, %v1198_v12  ;;  %v1238_v34 = vsel %vm1174_vm1, %v4526_v63, -inf  ;;  %v4547_v44 = vpop.eup %3606 }
 0x234   : > { %v4532_v7 = vpop.f32.mrf.mxu1  ;;  %v1382_v31 = vsel %vm1174_vm1, %v4547_v44, 0.0 }
 0x235   : > { %v1317_v21 = vmul.f32 1.442695, %v1278_v15  ;;  %v1241_v39 = vsel %vm1174_vm1, %v4532_v7, -inf }
 0x236   : > { %v4549_v28 = vpop.eup %3608 }
 0x237   : > { %1380 = vadd.xlane.f32.xlu0 %v1379_v53  ;;  %3610 = vpow2.f32 %v1317_v21  ;;  %v1385_v33 = vsel %vm1174_vm1, %v4549_v28, 0.0 }
 0x23a   : > { %1230 = vmax.xlane.f32.xlu2 %v1229_v56  ;;  %1221 = vmax.xlane.f32.xlu1 %v1220_v55  ;;  %v4539_v16 = vpop.f32.mrf.mxu0 }
 0x23b   : > { %v1259_v41 = vsel %vm1174_vm1, %v4539_v16, -inf }
 0x23c   : > { %v4545_v27 = vpop.f32.mrf.mxu1 }
 0x23d   : > { %v1244_v24 = vsel %vm1174_vm1, %v4545_v27, -inf  ;;  %v4557_v36 = vpop.eup %3610 }
 0x23e   : > { %v1388_v18 = vsel %vm1174_vm1, %v4557_v36, 0.0 }
 0x23f   : > { %1254 = vmax.xlane.f32.xlu0 %v1253_v61 }
 0x242   : > { %1257 = vmax.xlane.f32.xlu1 %v1256_v10  ;;  %1215 = vmax.xlane.f32.xlu2 %v1214_v5  ;;  %v4569_v30 = vpop.f32.mrf.mxu0 }
 0x243   : > { %v1262_v48 = vsel %vm1174_vm1, %v4569_v30, -inf }
 0x244   : > { %v4559_v37 = vpop.f32.mrf.mxu1 }
 0x245   : > { %v1265_v40 = vsel %vm1174_vm1, %v4559_v37, -inf }
 0x247   : > { %1239 = vmax.xlane.f32.xlu0 %v1238_v34 }
 0x24a   : > { %1236 = vmax.xlane.f32.xlu2 %v1235_v22  ;;  %1260 = vmax.xlane.f32.xlu1 %v1259_v41 }
 0x24c   : > { %v4567_v42 = vpop.f32.mrf.mxu1 }
 0x24d   : > { %v1268_v47 = vsel %vm1174_vm1, %v4567_v42, -inf }
 0x24f   : > { %1245 = vmax.xlane.f32.xlu0 %v1244_v24 }
 0x252   : > { %1383 = vadd.xlane.f32.xlu2 %v1382_v31  ;;  %1386 = vadd.xlane.f32.xlu1 %v1385_v33 }
 0x257   : > { %1389 = vadd.xlane.f32.xlu0 %v1388_v18 }
 0x25a   : > { %1242 = vmax.xlane.f32.xlu2 %v1241_v39  ;;  %1266 = vmax.xlane.f32.xlu1 %v1265_v40 }
 0x262   : > { %1269 = vmax.xlane.f32.xlu1 %v1268_v47  ;;  %1263 = vmax.xlane.f32.xlu2 %v1262_v48 }
 0x26b   : > { %833 = vrot.lane.b32.xlu0 %v4357_v54, %s4069_s10 }
 0x26d   : > { %v1201_v53 = vpop.xlane.xlu0 %1200 }
 0x26e   : > { %v1279_v55 = vsub.f32 %v4436_v62, %v1201_v53 }
 0x270   : > { %v1319_v56 = vmul.f32 1.442695, %v1279_v55 }
 0x272   : > { %3612 = vpow2.f32 %v1319_v56 }
 0x275   : > { %v1369_v61 = vpop.xlane.xlu0 %1368 }
 0x278   : > { %v4578_v57 = vpop.eup %3612 }
 0x279   : > { %v1391_v59 = vsel %vm1174_vm1, %v4578_v57, 0.0 }
 0x27a   : > { %1392 = vadd.xlane.f32.xlu1 %v1391_v59 }
 0x285   : > { %v1225_v3 = vpop.xlane.xlu1 %1224  ;;  %v1210_v10 = vpop.xlane.xlu0 %1209 }
 0x286   : > { %v1287_v5 = vsub.f32 %v4455_v9, %v1225_v3  ;;  %v1282_v15 = vsub.f32 %v4453_v8, %v1210_v10 }
 0x288   : > { %v1335_v6 = vmul.f32 1.442695, %v1287_v5  ;;  %v1325_v24 = vmul.f32 1.442695, %v1282_v15 }
 0x28a   : > { %3614 = vpow2.f32 %v1335_v6 }
 0x28b   : > { %3616 = vrcp.f32 %v1369_v61 }
 0x28d   : > { %v1228_v12 = vpop.xlane.xlu2 %1227  ;;  %v1204_v13 = vpop.xlane.xlu1 %1203 }
 0x28e   : > { %v1288_v14 = vsub.f32 %v4462_v11, %v1228_v12  ;;  %v1280_v62 = vsub.f32 %v4444_v1, %v1204_v13 }
 0x290   : > { %v1337_v34 = vmul.f32 1.442695, %v1288_v14  ;;  %v1321_v41 = vmul.f32 1.442695, %v1280_v62  ;;  %v4586_v21 = vpop.eup %3614 }
 0x291   : > { %v1415_v9 = vsel %vm1174_vm1, %v4586_v21, 0.0  ;;  %v3617_v33 = vpop.eup %3616 }
 0x292   : > { %3618 = vpow2.f32 %v1337_v34  ;;  %v1378_v22 = vpop.xlane.xlu0 %1377  ;;  %1416 = vadd.xlane.f32.xlu2 %v1415_v9  ;;  %v1495_v18 = vmul.f32 %v3617_v33, %v4442_v19 }
 0x293   : > { %3620 = vpow2.f32 %v1321_v41 }
 0x294   : > { %v1527_v53 = vpack.c.bf16 %v1495_v18, %v1495_v18 }
 0x295   : > { %v4590_v31 = vpop.xlane.xlu2 %1206  ;;  %v1372_v11 = vpop.xlane.xlu1 %1371 }
 0x296   : > { %3622 = vrcp.f32 %v1372_v11  ;;  %v1561_v6 = vunpack.c.l.b16 %v1527_v53 }
 0x297   : > { %3624 = vpow2.f32 %v1325_v24 }
 0x298   : > { %v4592_v1 = vpop.eup %3618  ;;  %3626 = vrcp.f32 %v1378_v22 }
 0x299   : > { %v4594_v8 = vpop.eup %3620  ;;  %v1418_v39 = vsel %vm1174_vm1, %v4592_v1, 0.0 }
 0x29a   : > { %v1234_v40 = vpop.xlane.xlu0 %1233  ;;  %1419 = vadd.xlane.f32.xlu0 %v1418_v39  ;;  %v1394_v47 = vsel %vm1174_vm1, %v4594_v8, 0.0 }
 0x29b   : > { %1395 = vadd.xlane.f32.xlu2 %v1394_v47  ;;  %v1290_v41 = vsub.f32 %v4485_v35, %v1234_v40 }
 0x29c   : > { %v3623_v48 = vpop.eup %3622 }
 0x29d   : > { %v1496_v55 = vmul.f32 %v3623_v48, %v4472_v26  ;;  %v1252_v56 = vpop.xlane.xlu2 %1251  ;;  %v4602_v59 = vpop.xlane.xlu1 %1248  ;;  %v1341_v18 = vmul.f32 1.442695, %v1290_v41 }
 0x29e   : > { %v4604_v61 = vpop.eup %3624  ;;  %v1296_v19 = vsub.f32 %v4490_v38, %v1252_v56 }
 0x29f   : > { %v1528_v3 = vpack.c.bf16 %v1496_v55, %v1496_v55  ;;  %v1400_v12 = vsel %vm1174_vm1, %v4604_v61, 0.0  ;;  %v3627_v15 = vpop.eup %3626 }
 0x2a0   : > { %v1353_v5 = vmul.f32 1.442695, %v1296_v19  ;;  %v1498_v9 = vmul.f32 %v3627_v15, %v4470_v25 }
 0x2a1   : > { %v1562_v10 = vunpack.c.l.b16 %v1528_v3 }
 0x2a2   : > { %3628 = vpow2.f32 %v1353_v5  ;;  %v4609_v13 = vpop.xlane.xlu0 %1218  ;;  %1401 = vadd.xlane.f32.xlu0 %v1400_v12  ;;  %v1530_v39 = vpack.c.bf16 %v1498_v9, %v1498_v9 }
 0x2a3   : > { %v1563_v26 = vpack.c.b16 %v1562_v10, %v1561_v6 }
 0x2a4   : > { %v1584_v55 = vunpack.c.l.b16 %v1530_v39 }
 0x2a5   : > { %v1375_v14 = vpop.xlane.xlu2 %1374  ;;  %3216 = vmatmul.msk.bf16.vlgmr.msrb.gmra.mxu2 %vm1174_vm1, %v1563_v26  ;;  %v1213_v62 = vpop.xlane.xlu1 %1212 }
 0x2a6   : > { %3630 = vrcp.f32 %v1375_v14  ;;  %1750 = vmatpush.bf16.msrb.mxu2 %v4400_v20  ;;  %v1283_v38 = vsub.f32 %v4479_v23, %v1213_v62 }
 0x2a8   : > { %v4614_v34 = vpop.eup %3628  ;;  %v1327_v22 = vmul.f32 1.442695, %v1283_v38 }
 0x2a9   : > { %v1442_v24 = vsel %vm1174_vm1, %v4614_v34, 0.0 }
 0x2aa   : > { %3632 = vpow2.f32 %v1327_v22  ;;  %v1381_v11 = vpop.xlane.xlu0 %1380  ;;  %1443 = vadd.xlane.f32.xlu1 %v1442_v24 }
 0x2ab   : > { %3634 = vpow2.f32 %v1341_v18 }
 0x2ac   : > { %v3631_v33 = vpop.eup %3630 }
 0x2ad   : > { %v1497_v20 = vmul.f32 %v3631_v33, %v4502_v46  ;;  %v1231_v47 = vpop.xlane.xlu2 %1230  ;;  %v1222_v23 = vpop.xlane.xlu1 %1221 }
 0x2ae   : > { %v1289_v48 = vsub.f32 %v4464_v17, %v1231_v47  ;;  %v1286_v40 = vsub.f32 %v4514_v52, %v1222_v23 }
 0x2af   : > { %v1529_v53 = vpack.c.bf16 %v1497_v20, %v1497_v20 }
 0x2b0   : > { %v4622_v35 = vpop.eup %3632  ;;  %v1339_v25 = vmul.f32 1.442695, %v1289_v48  ;;  %v1333_v17 = vmul.f32 1.442695, %v1286_v40 }
 0x2b1   : > { %v1583_v56 = vunpack.c.l.b16 %v1529_v53  ;;  %v1403_v19 = vsel %vm1174_vm1, %v4622_v35, 0.0  ;;  %v4630_v10 = vpop.eup %3634 }
 0x2b2   : > { %3636 = vpow2.f32 %v1339_v25  ;;  %v1255_v3 = vpop.xlane.xlu0 %1254  ;;  %1404 = vadd.xlane.f32.xlu1 %v1403_v19  ;;  %v1424_v62 = vsel %vm1174_vm1, %v4630_v10, 0.0 }
 0x2b3   : > { %v1585_v46 = vpack.c.b16 %v1584_v55, %v1583_v56  ;;  %823 = vrot.lane.b32.xlu2 %v4432_v58, %s4068_s13  ;;  %3638 = vpow2.f32 %v1333_v17  ;;  %v1297_v24 = vsub.f32 %v4510_v50, %v1255_v3  ;;  %v1281_v50 = vsub.f32 %v4450_v2, %v4590_v31 }
 0x2b5   : > { %3217 = vmatmul.msk.bf16.vlgmr.msrb.gmra.mxu3 %vm1174_vm1, %v1585_v46  ;;  %v1258_v5 = vpop.xlane.xlu1 %1257  ;;  %v1216_v6 = vpop.xlane.xlu2 %1215  ;;  %v1355_v20 = vmul.f32 1.442695, %v1297_v24  ;;  %v1323_v56 = vmul.f32 1.442695, %v1281_v50 }
 0x2b6   : > { %1772 = vmatpush.bf16.msrb.mxu3 %v4408_v32  ;;  %v1284_v52 = vsub.f32 %v4496_v43, %v1216_v6  ;;  %v1298_v53 = vsub.f32 %v4522_v60, %v1258_v5  ;;  %v1295_v5 = vsub.f32 %v4477_v29, %v4602_v59 }
 0x2b8   : > { %v4634_v12 = vpop.eup %3636  ;;  %v1329_v26 = vmul.f32 1.442695, %v1284_v52  ;;  %v1357_v3 = vmul.f32 1.442695, %v1298_v53  ;;  %v1285_v53 = vsub.f32 %v4498_v45, %v4609_v13 }
 0x2b9   : > { %v1421_v14 = vsel %vm1174_vm1, %v4634_v12, 0.0  ;;  %v4642_v32 = vpop.eup %3638 }
 0x2ba   : > { %1422 = vadd.xlane.f32.xlu0 %v1421_v14  ;;  %v4640_v15 = vpop.xlane.xlu0 %1239  ;;  %1425 = vadd.xlane.f32.xlu1 %v1424_v62  ;;  %3640 = vpow2.f32 %v1329_v26  ;;  %v1412_v33 = vsel %vm1174_vm1, %v4642_v32, 0.0 }
 0x2bb   : > { %3642 = vrcp.f32 %v1381_v11 }
 0x2bd   : > { %v1237_v38 = vpop.xlane.xlu2 %1236  ;;  %v1261_v41 = vpop.xlane.xlu1 %1260 }
 0x2be   : > { %v1291_v43 = vsub.f32 %v4512_v51, %v1237_v38  ;;  %v1299_v62 = vsub.f32 %v4539_v16, %v1261_v41 }
 0x2c0   : > { %v1343_v22 = vmul.f32 1.442695, %v1291_v43  ;;  %v4645_v9 = vpop.eup %3640 }
 0x2c1   : > { %v1406_v18 = vsel %vm1174_vm1, %v4645_v9, 0.0  ;;  %v3643_v11 = vpop.eup %3642 }
 0x2c2   : > { %3644 = vpow2.f32 %v1343_v22  ;;  %v4652_v39 = vpop.xlane.xlu0 %1245  ;;  %1413 = vadd.xlane.f32.xlu1 %v1412_v33  ;;  %1407 = vadd.xlane.f32.xlu0 %v1406_v18  ;;  %v1499_v48 = vmul.f32 %v3643_v11, %v4508_v49  ;;  %v1359_v33 = vmul.f32 1.442695, %v1299_v62  ;;  %v1351_v18 = vmul.f32 1.442695, %v1295_v5 }
 0x2c4   : > { %v1531_v19 = vpack.c.bf16 %v1499_v48, %v1499_v48 }
 0x2c5   : > { %v1384_v47 = vpop.xlane.xlu2 %1383  ;;  %v1387_v51 = vpop.xlane.xlu1 %1386 }
 0x2c6   : > { %3646 = vrcp.f32 %v1384_v47  ;;  %v1605_v14 = vunpack.c.l.b16 %v1531_v19 }
 0x2c7   : > { %3648 = vrcp.f32 %v1387_v51 }
 0x2c8   : > { %v4654_v23 = vpop.eup %3644  ;;  %3650 = vpow2.f32 %v1355_v20 }
 0x2c9   : > { %v1427_v25 = vsel %vm1174_vm1, %v4654_v23, 0.0 }
 0x2ca   : > { %v1390_v40 = vpop.xlane.xlu0 %1389  ;;  %1428 = vadd.xlane.f32.xlu0 %v1427_v25 }
 0x2cb   : > { %3652 = vrcp.f32 %v1390_v40 }
 0x2cc   : > { %v3647_v55 = vpop.eup %3646  ;;  %3654 = vpow2.f32 %v1323_v56 }
 0x2cd   : > { %v1500_v46 = vmul.f32 %v3647_v55, %v4547_v44  ;;  %v1243_v17 = vpop.xlane.xlu2 %1242  ;;  %v3649_v2 = vpop.eup %3648  ;;  %3656 = vpow2.f32 %v1357_v3  ;;  %v1331_v55 = vmul.f32 1.442695, %v1285_v53 }
 0x2ce   : > { %v1293_v31 = vsub.f32 %v4532_v7, %v1243_v17  ;;  %v4664_v49 = vpop.eup %3650  ;;  %v1501_v60 = vmul.f32 %v3649_v2, %v4549_v28  ;;  %v1267_v24 = vpop.xlane.xlu1 %1266 }
 0x2cf   : > { %v1532_v6 = vpack.c.bf16 %v1500_v46, %v1500_v46  ;;  %v1445_v7 = vsel %vm1174_vm1, %v4664_v49, 0.0  ;;  %v1301_v50 = vsub.f32 %v4559_v37, %v1267_v24  ;;  %v1292_v46 = vsub.f32 %v4526_v63, %v4640_v15 }
 0x2d0   : > { %v1347_v52 = vmul.f32 1.442695, %v1293_v31  ;;  %v1533_v38 = vpack.c.bf16 %v1501_v60, %v1501_v60  ;;  %v1294_v63 = vsub.f32 %v4545_v27, %v4652_v39 }
 0x2d1   : > { %v3653_v26 = vpop.eup %3652  ;;  %v1606_v44 = vunpack.c.l.b16 %v1532_v6  ;;  %v1363_v37 = vmul.f32 1.442695, %v1301_v50  ;;  %v1345_v60 = vmul.f32 1.442695, %v1292_v46 }
 0x2d2   : > { %v1502_v43 = vmul.f32 %v3653_v26, %v4557_v36  ;;  %3658 = vpow2.f32 %v1347_v52  ;;  %1446 = vadd.xlane.f32.xlu0 %v1445_v7  ;;  %v4674_v59 = vpop.eup %3654  ;;  %v1627_v16 = vunpack.c.l.b16 %v1533_v38  ;;  %v1349_v26 = vmul.f32 1.442695, %v1294_v63 }
 0x2d3   : > { %v1607_v22 = vpack.c.b16 %v1606_v44, %v1605_v14  ;;  %v4677_v36 = vpop.eup %3656  ;;  %3660 = vpow2.f32 %v1359_v33 }
 0x2d4   : > { %v1534_v28 = vpack.c.bf16 %v1502_v43, %v1502_v43  ;;  %3662 = vpow2.f32 %v1351_v18  ;;  %v1448_v25 = vsel %vm1174_vm1, %v4677_v36, 0.0 }
 0x2d5   : > { %3218 = vmatmul.msk.bf16.vlgmr.msrb.gmra.mxu0 %vm1174_vm1, %v1607_v22  ;;  %v1264_v29 = vpop.xlane.xlu2 %1263 }
 0x2d6   : > { %v1628_v41 = vunpack.c.l.b16 %v1534_v28  ;;  %v1300_v20 = vsub.f32 %v4569_v30, %v1264_v29  ;;  %v1397_v30 = vsel %vm1174_vm1, %v4674_v59, 0.0  ;;  %v1270_v56 = vpop.xlane.xlu1 %1269 }
 0x2d7   : > { %v1302_v3 = vsub.f32 %v4567_v42, %v1270_v56 }
 0x2d8   : > { %v4679_v47 = vpop.eup %3658  ;;  %v1629_v51 = vpack.c.b16 %v1628_v41, %v1627_v16  ;;  %v1361_v11 = vmul.f32 1.442695, %v1300_v20 }
 0x2d9   : > { %v1433_v48 = vsel %vm1174_vm1, %v4679_v47, 0.0  ;;  %v4691_v19 = vpop.eup %3660  ;;  %v1365_v6 = vmul.f32 1.442695, %v1302_v3 }
 0x2da   : > { %1434 = vadd.xlane.f32.xlu1 %v1433_v48  ;;  %3219 = vmatmul.msk.bf16.vlgmr.msra.gmra.mxu1 %vm1174_vm1, %v1629_v51  ;;  %3664 = vpow2.f32 %v1361_v11  ;;  %v4693_v45 = vpop.eup %3662  ;;  %v1451_v17 = vsel %vm1174_vm1, %v4691_v19, 0.0 }
 0x2db   : > { %1449 = vadd.xlane.f32.xlu0 %v1448_v25  ;;  %3666 = vpow2.f32 %v1363_v37  ;;  %v1439_v31 = vsel %vm1174_vm1, %v4693_v45, 0.0 }
 0x2dc   : > { %1398 = vadd.xlane.f32.xlu2 %v1397_v30  ;;  %3668 = vpow2.f32 %v1331_v55 }
 0x2dd   : > { %v834_v40 = vpop.permute.xlu0 %833  ;;  %3670 = vpow2.f32 %v1365_v6 }
 0x2de   : > { %1794 = vmatpush.bf16.msrb.mxu0 %v834_v40  ;;  %3672 = vpow2.f32 %v1345_v60 }
 0x2df   : > { %3674 = vpow2.f32 %v1349_v26 }
 0x2e0   : > { %v4695_v13 = vpop.eup %3664 }
 0x2e1   : > { %v1454_v2 = vsel %vm1174_vm1, %v4695_v13, 0.0  ;;  %v4706_v5 = vpop.eup %3666 }
 0x2e2   : > { %1455 = vadd.xlane.f32.xlu1 %v1454_v2  ;;  %v4708_v42 = vpop.eup %3668  ;;  %v1457_v15 = vsel %vm1174_vm1, %v4706_v5, 0.0 }
 0x2e3   : > { %1452 = vadd.xlane.f32.xlu0 %v1451_v17  ;;  %v1409_v52 = vsel %vm1174_vm1, %v4708_v42, 0.0  ;;  %v4716_v14 = vpop.eup %3670 }
 0x2e4   : > { %1440 = vadd.xlane.f32.xlu2 %v1439_v31  ;;  %v4718_v62 = vpop.eup %3672  ;;  %v1460_v44 = vsel %vm1174_vm1, %v4716_v14, 0.0 }
 0x2e5   : > { %v1430_v27 = vsel %vm1174_vm1, %v4718_v62, 0.0  ;;  %v4724_v39 = vpop.eup %3674 }
 0x2e6   : > { %v1436_v38 = vsel %vm1174_vm1, %v4724_v39, 0.0 }
 0x2eb   : > { %1458 = vadd.xlane.f32.xlu0 %v1457_v15 }
 0x2ec   : > { %1410 = vadd.xlane.f32.xlu2 %v1409_v52 }
 0x2ed   : > { %v1393_v43 = vpop.xlane.xlu1 %1392 }
 0x2ee   : > { %3676 = vrcp.f32 %v1393_v43 }
 0x2f3   : > { %1461 = vadd.xlane.f32.xlu0 %v1460_v44 }
 0x2f4   : > { %1431 = vadd.xlane.f32.xlu2 %v1430_v27  ;;  %v3677_v28 = vpop.eup %3676 }
 0x2f5   : > { %v1503_v24 = vmul.f32 %v3677_v28, %v4578_v57 }
 0x2f7   : > { %v1535_v18 = vpack.c.bf16 %v1503_v24, %v1503_v24 }
 0x2f9   : > { %v1649_v20 = vunpack.c.l.b16 %v1535_v18 }
 0x2fb   : > { %845 = vrot.lane.b32.xlu1 %v4357_v54, %s4070_s14 }
 0x2fc   : > { %1437 = vadd.xlane.f32.xlu2 %v1436_v38 }
 0x305   : > { %v1417_v7 = vpop.xlane.xlu2 %1416 }
 0x307   : > { %847 = vrot.lane.b32.xlu0 %v4432_v58, %s4070_s14 }
 0x30d   : > { %v1420_v33 = vpop.xlane.xlu0 %1419 }
 0x30e   : > { %v1396_v22 = vpop.xlane.xlu2 %1395 }
 0x30f   : > { %3678 = vrcp.f32 %v1396_v22 }
 0x310   : > { %3680 = vrcp.f32 %v1420_v33 }
 0x311   : > { %3682 = vrcp.f32 %v1417_v7 }
 0x314   : > { %835 = vrot.lane.b32.xlu2 %v4432_v58, %s4069_s10 }
 0x315   : > { %v3679_v29 = vpop.eup %3678  ;;  %v1402_v25 = vpop.xlane.xlu0 %1401 }
 0x316   : > { %v1504_v16 = vmul.f32 %v3679_v29, %v4594_v8  ;;  %v824_v54 = vpop.permute.xlu2 %823  ;;  %v3681_v50 = vpop.eup %3680 }
 0x317   : > { %1728 = vmatpush.bf16.msrb.mxu1 %v824_v54  ;;  %v3683_v57 = vpop.eup %3682  ;;  %v1512_v58 = vmul.f32 %v3681_v50, %v4592_v1 }
 0x318   : > { %v1536_v41 = vpack.c.bf16 %v1504_v16, %v1504_v16  ;;  %v1511_v48 = vmul.f32 %v3683_v57, %v4586_v21 }
 0x319   : > { %v1544_v53 = vpack.c.bf16 %v1512_v58, %v1512_v58 }
 0x31a   : > { %v1650_v51 = vunpack.c.l.b16 %v1536_v41  ;;  %v1543_v30 = vpack.c.bf16 %v1511_v48, %v1511_v48 }
 0x31b   : > { %v1738_v37 = vunpack.c.l.b16 %v1544_v53 }
 0x31c   : > { %v1651_v11 = vpack.c.b16 %v1650_v51, %v1649_v20  ;;  %v1737_v40 = vunpack.c.l.b16 %v1543_v30 }
 0x31d   : > { %v1444_v8 = vpop.xlane.xlu1 %1443 }
 0x31e   : > { %3220 = vmatmul.msk.bf16.vlgmr.msra.gmra.mxu2 %vm1174_vm1, %v1651_v11  ;;  %v1739_v55 = vpack.c.b16 %v1738_v37, %v1737_v40 }
 0x31f   : > { %1838 = vmatpush.bf16.msra.mxu2 %v4440_v0 }
 0x325   : > { %v1405_v3 = vpop.xlane.xlu1 %1404 }
 0x326   : > { %3684 = vrcp.f32 %v1405_v3 }
 0x32c   : > { %v3685_v17 = vpop.eup %3684 }
 0x32d   : > { %v1423_v56 = vpop.xlane.xlu0 %1422  ;;  %v1507_v0 = vmul.f32 %v3685_v17, %v4622_v35  ;;  %v1426_v26 = vpop.xlane.xlu1 %1425 }
 0x32e   : > { %3224 = vmatmul.msk.bf16.vlgmr.msrb.gmra.mxu2 %vm1174_vm1, %v1739_v55 }
 0x32f   : > { %v1539_v2 = vpack.c.bf16 %v1507_v0, %v1507_v0 }
 0x331   : > { %v1693_v60 = vunpack.c.l.b16 %v1539_v2 }
 0x335   : > { %v1408_v46 = vpop.xlane.xlu0 %1407  ;;  %v1414_v43 = vpop.xlane.xlu1 %1413 }
 0x336   : > { %3686 = vrcp.f32 %v1408_v46 }
 0x337   : > { %3688 = vrcp.f32 %v1402_v25 }
 0x33c   : > { %v3687_v1 = vpop.eup %3686 }
 0x33d   : > { %v1508_v21 = vmul.f32 %v3687_v1, %v4645_v9  ;;  %v1429_v31 = vpop.xlane.xlu0 %1428  ;;  %v3689_v27 = vpop.eup %3688 }
 0x33e   : > { %v1506_v38 = vmul.f32 %v3689_v27, %v4604_v61 }
 0x33f   : > { %v1540_v6 = vpack.c.bf16 %v1508_v21, %v1508_v21 }
 0x340   : > { %v1538_v9 = vpack.c.bf16 %v1506_v38, %v1506_v38 }
 0x341   : > { %v1694_v63 = vunpack.c.l.b16 %v1540_v6 }
 0x342   : > { %v1672_v29 = vunpack.c.l.b16 %v1538_v9 }
 0x343   : > { %v1695_v15 = vpack.c.b16 %v1694_v63, %v1693_v60 }
 0x345   : > { %3222 = vmatmul.msk.bf16.vlgmr.msra.gmra.mxu0 %vm1174_vm1, %v1695_v15  ;;  %v1447_v52 = vpop.xlane.xlu0 %1446 }
 0x34d   : > { %v1435_v54 = vpop.xlane.xlu1 %1434 }
 0x34e   : > { %v1450_v35 = vpop.xlane.xlu0 %1449 }
 0x34f   : > { %v1399_v44 = vpop.xlane.xlu2 %1398 }
 0x350   : > { %3690 = vrcp.f32 %v1399_v44 }
 0x351   : > { %3692 = vrcp.f32 %v1444_v8 }
 0x352   : > { %3694 = vrcp.f32 %v1423_v56 }
 0x353   : > { %3696 = vrcp.f32 %v1426_v26 }
 0x355   : > { %v1456_v56 = vpop.xlane.xlu1 %1455 }
 0x356   : > { %v3691_v7 = vpop.eup %3690  ;;  %v1453_v20 = vpop.xlane.xlu0 %1452 }
 0x357   : > { %v1505_v22 = vmul.f32 %v3691_v7, %v4674_v59  ;;  %v1441_v28 = vpop.xlane.xlu2 %1440  ;;  %v3693_v24 = vpop.eup %3692 }
 0x358   : > { %3698 = vrcp.f32 %v1441_v28  ;;  %v1520_v16 = vmul.f32 %v3693_v24, %v4614_v34  ;;  %v3695_v61 = vpop.eup %3694 }
 0x359   : > { %v1537_v33 = vpack.c.bf16 %v1505_v22, %v1505_v22  ;;  %3700 = vrcp.f32 %v1414_v43  ;;  %v3697_v51 = vpop.eup %3696  ;;  %v1513_v48 = vmul.f32 %v3695_v61, %v4634_v12 }
 0x35a   : > { %v1552_v57 = vpack.c.bf16 %v1520_v16, %v1520_v16  ;;  %v1514_v34 = vmul.f32 %v3697_v51, %v4630_v10 }
 0x35b   : > { %v1671_v18 = vunpack.c.l.b16 %v1537_v33  ;;  %v1545_v37 = vpack.c.bf16 %v1513_v48, %v1513_v48 }
 0x35c   : > { %v1826_v25 = vunpack.c.l.b16 %v1552_v57  ;;  %v1546_v40 = vpack.c.bf16 %v1514_v34, %v1514_v34 }
 0x35d   : > { %v1673_v41 = vpack.c.b16 %v1672_v29, %v1671_v18  ;;  %v1759_v10 = vunpack.c.l.b16 %v1545_v37 }
 0x35e   : > { %v3699_v11 = vpop.eup %3698  ;;  %v1760_v0 = vunpack.c.l.b16 %v1546_v40 }
 0x35f   : > { %3221 = vmatmul.msk.bf16.vlgmr.msra.gmra.mxu3 %vm1174_vm1, %v1673_v41  ;;  %v1411_v50 = vpop.xlane.xlu2 %1410  ;;  %v3701_v59 = vpop.eup %3700  ;;  %v1519_v58 = vmul.f32 %v3699_v11, %v4693_v45 }
 0x360   : > { %1860 = vmatpush.bf16.msra.mxu3 %v4448_v4  ;;  %3702 = vrcp.f32 %v1411_v50  ;;  %v1510_v8 = vmul.f32 %v3701_v59, %v4642_v32  ;;  %v1459_v45 = vpop.xlane.xlu0 %1458  ;;  %v1761_v6 = vpack.c.b16 %v1760_v0, %v1759_v10 }
 0x361   : > { %3704 = vrcp.f32 %v1429_v31  ;;  %v1551_v53 = vpack.c.bf16 %v1519_v58, %v1519_v58 }
 0x362   : > { %v1542_v46 = vpack.c.bf16 %v1510_v8, %v1510_v8  ;;  %3706 = vrcp.f32 %v1450_v35 }
 0x363   : > { %v1825_v30 = vunpack.c.l.b16 %v1551_v53 }
 0x364   : > { %v1716_v1 = vunpack.c.l.b16 %v1542_v46 }
 0x365   : > { %v1827_v3 = vpack.c.b16 %v1826_v25, %v1825_v30 }
 0x366   : > { %v3703_v55 = vpop.eup %3702 }
 0x367   : > { %v1509_v4 = vmul.f32 %v3703_v55, %v4708_v42  ;;  %v1432_v17 = vpop.xlane.xlu2 %1431  ;;  %v3705_v12 = vpop.eup %3704  ;;  %3228 = vmatmul.msk.bf16.vlgmr.msra.gmra.mxu2 %vm1174_vm1, %v1827_v3 }
 0x368   : > { %3708 = vrcp.f32 %v1432_v17  ;;  %v1515_v2 = vmul.f32 %v3705_v12, %v4654_v23  ;;  %v3707_v31 = vpop.eup %3706  ;;  %v1462_v38 = vpop.xlane.xlu0 %1461 }
 0x369   : > { %3710 = vrcp.f32 %v1447_v52  ;;  %v1541_v32 = vpack.c.bf16 %v1509_v4, %v1509_v4  ;;  %v1522_v23 = vmul.f32 %v3707_v31, %v4677_v36  ;;  %v4771_v3 = vpop.f32.mrf.mxu2 }
 0x36a   : > { %3712 = vrcp.f32 %v1435_v54  ;;  %v1547_v26 = vpack.c.bf16 %v1515_v2, %v1515_v2 }
 0x36b   : > { %v1715_v21 = vunpack.c.l.b16 %v1541_v32  ;;  %3714 = vrcp.f32 %v1453_v20  ;;  %v1554_v24 = vpack.c.bf16 %v1522_v23, %v1522_v23 }
 0x36c   : > { %3716 = vrcp.f32 %v1456_v56  ;;  %v1781_v43 = vunpack.c.l.b16 %v1547_v26 }
 0x36d   : > { %v1717_v60 = vpack.c.b16 %v1716_v1, %v1715_v21  ;;  %v846_v42 = vpop.permute.xlu1 %845  ;;  %v1848_v61 = vunpack.c.l.b16 %v1554_v24 }
 0x36e   : > { %v3709_v63 = vpop.eup %3708  ;;  %1882 = vmatpush.bf16.msra.mxu0 %v846_v42 }
 0x36f   : > { %v3711_v15 = vpop.eup %3710  ;;  %v1516_v44 = vmul.f32 %v3709_v63, %v4718_v62  ;;  %3223 = vmatmul.msk.bf16.vlgmr.msrb.gmra.mxu1 %vm1174_vm1, %v1717_v60  ;;  %3225 = vmatmul.msk.bf16.vlgmr.msrb.gmra.mxu3 %vm1174_vm1, %v1761_v6  ;;  %v1438_v52 = vpop.xlane.xlu2 %1437 }
 0x370   : > { %v3713_v27 = vpop.eup %3712  ;;  %3718 = vrcp.f32 %v1438_v52  ;;  %v1521_v7 = vmul.f32 %v3711_v15, %v4664_v49  ;;  %v4778_v60 = vpop.f32.mrf.mxu3 }
 0x371   : > { %v1548_v35 = vpack.c.bf16 %v1516_v44, %v1516_v44  ;;  %v1517_v9 = vmul.f32 %v3713_v27, %v4679_v47  ;;  %v3715_v28 = vpop.eup %3714  ;;  %3720 = vrcp.f32 %v1462_v38  ;;  %v4774_v46 = vpop.f32.mrf.mxu2 }
 0x372   : > { %v3717_v62 = vpop.eup %3716  ;;  %v1553_v18 = vpack.c.bf16 %v1521_v7, %v1521_v7  ;;  %v1523_v49 = vmul.f32 %v3715_v28, %v4691_v19  ;;  %3722 = vrcp.f32 %v1459_v45  ;;  %v4780_v63 = vpop.f32.mrf.mxu0 }
 0x373   : > { %v1782_v22 = vunpack.c.l.b16 %v1548_v35  ;;  %v1549_v16 = vpack.c.bf16 %v1517_v9, %v1517_v9  ;;  %v1524_v47 = vmul.f32 %v3717_v62, %v4695_v13  ;;  %v4784_v15 = vpop.f32.mrf.mxu1 }
 0x374   : > { %v1847_v51 = vunpack.c.l.b16 %v1553_v18  ;;  %v1555_v57 = vpack.c.bf16 %v1523_v49, %v1523_v49 }
 0x375   : > { %v1783_v33 = vpack.c.b16 %v1782_v22, %v1781_v43  ;;  %v1803_v11 = vunpack.c.l.b16 %v1549_v16 }
 0x376   : > { %v3719_v29 = vpop.eup %3718  ;;  %v1849_v59 = vpack.c.b16 %v1848_v61, %v1847_v51  ;;  %v1869_v19 = vunpack.c.l.b16 %v1555_v57 }
 0x377   : > { %v1518_v54 = vmul.f32 %v3719_v29, %v4724_v39  ;;  %3226 = vmatmul.msk.bf16.vlgmr.msrb.gmra.mxu0 %vm1174_vm1, %v1783_v33  ;;  %v836_v36 = vpop.permute.xlu2 %835  ;;  %v1556_v39 = vpack.c.bf16 %v1524_v47, %v1524_v47  ;;  %v3721_v48 = vpop.eup %3720 }
 0x378   : > { %1816 = vmatpush.bf16.msra.mxu1 %v836_v36  ;;  %v3723_v34 = vpop.eup %3722  ;;  %v1526_v13 = vmul.f32 %v3721_v48, %v4716_v14  ;;  %v4782_v42 = vpop.f32.mrf.mxu3 }
 0x379   : > { %v1550_v41 = vpack.c.bf16 %v1518_v54, %v1518_v54  ;;  %v848_v20 = vpop.permute.xlu0 %847  ;;  %v1870_v53 = vunpack.c.l.b16 %v1556_v39  ;;  %v1525_v8 = vmul.f32 %v3723_v34, %v4706_v5 }
 0x37a   : > { %v1558_v30 = vpack.c.bf16 %v1526_v13, %v1526_v13  ;;  %v4786_v26 = vpop.f32.mrf.mxu0 }
 0x37b   : > { %v1804_v50 = vunpack.c.l.b16 %v1550_v41  ;;  %v1871_v25 = vpack.c.b16 %v1870_v53, %v1869_v19  ;;  %v1557_v37 = vpack.c.bf16 %v1525_v8, %v1525_v8  ;;  %v4788_v27 = vpop.f32.mrf.mxu1 }
 0x37c   : > { %1904 = vmatpush.bf16.msrb.mxu1 %v848_v20  ;;  %v1892_v40 = vunpack.c.l.b16 %v1558_v30 }
 0x37d   : > { %v1805_v58 = vpack.c.b16 %v1804_v50, %v1803_v11  ;;  %v1891_v55 = vunpack.c.l.b16 %v1557_v37 }
 0x37f   : > { %3227 = vmatmul.msk.bf16.vlgmr.msra.gmra.mxu1 %vm1174_vm1, %v1805_v58  ;;  %3229 = vmatmul.msk.bf16.vlgmr.msra.gmra.mxu3 %vm1174_vm1, %v1849_v59  ;;  %v1893_v56 = vpack.c.b16 %v1892_v40, %v1891_v55 }
 0x387   : > { %3230 = vmatmul.msk.bf16.vlgmr.msra.gmra.mxu0 %vm1174_vm1, %v1871_v25 }
 0x38f   : > { %3231 = vmatmul.msk.bf16.vlgmr.msrb.gmra.mxu1 %vm1174_vm1, %v1893_v56 }
 0x3a1   : > { %v1664_v45 = vpop.f32.mrf.mxu2 }
 0x3a2   : > { %v1919_v4 = vpack.c.bf16 %v1664_v45, %v1664_v45 }
 0x3a4   : > { %v1971_v12 = vunpack.c.l.b16 %v1919_v4 }
 0x3a9   : > { %v1666_v17 = vpop.f32.mrf.mxu2 }
 0x3aa   : > { %v1920_v14 = vpack.c.bf16 %v1666_v17, %v1666_v17 }
 0x3ac   : > { %v1972_v5 = vunpack.c.l.b16 %v1920_v14 }
 0x3ae   : > { %v1979_v10 = vpack.c.b16 %v1972_v5, %v1971_v12 }
 0x3b0   : > { %1983 = vrot.lane.b32.xlu2 %v1979_v10, %s4070_s14 }
 0x3b1   : > { %v1752_v0 = vpop.f32.mrf.mxu2 }
 0x3b2   : > { %v1927_v32 = vpack.c.bf16 %v1752_v0, %v1752_v0 }
 0x3b4   : > { %v1999_v21 = vunpack.c.l.b16 %v1927_v32 }
 0x3b9   : > { %v1754_v1 = vpop.f32.mrf.mxu2 }
 0x3ba   : > { %v1928_v2 = vpack.c.bf16 %v1754_v1, %v1754_v1 }
 0x3bc   : > { %v2000_v31 = vunpack.c.l.b16 %v1928_v2 }
 0x3be   : > { %v2007_v6 = vpack.c.b16 %v2000_v31, %v1999_v21 }
 0x3c0   : > { %2011 = vrot.lane.b32.xlu1 %v2007_v6, %s4069_s10 }
 0x3c2   : > { %v1708_v44 = vpop.f32.mrf.mxu0 }
 0x3c3   : > { %v1923_v33 = vpack.c.bf16 %v1708_v44, %v1708_v44 }
 0x3c5   : > { %v1975_v47 = vunpack.c.l.b16 %v1923_v33 }
 0x3ca   : > { %v1710_v7 = vpop.f32.mrf.mxu0 }
 0x3cb   : > { %v1924_v62 = vpack.c.bf16 %v1710_v7, %v1710_v7  ;;  %v3429_v7 = vld [vmem:[#allocation8 + $0x38] sm:$0xff] }
 0x3cc   : > { %2146 = vmatpush.bf16.msrb.mxu2 %v3429_v7  ;;  %3463 = vmatpush.bf16.msrb.mxu3 %v3429_v7 }
 0x3cd   : > { %v1976_v16 = vunpack.c.l.b16 %v1924_v62 }
 0x3cf   : > { %v1981_v51 = vpack.c.b16 %v1976_v16, %v1975_v47  ;;  %v3423_v47 = vld [vmem:[#allocation8 + $0x8] sm:$0xff] }
 0x3e2   : > { %v1686_v52 = vpop.f32.mrf.mxu3 }
 0x3e3   : > { %v1921_v23 = vpack.c.bf16 %v1686_v52, %v1686_v52 }
 0x3e5   : > { %v1973_v22 = vunpack.c.l.b16 %v1921_v23 }
 0x3ea   : > { %v1688_v38 = vpop.f32.mrf.mxu3  ;;  %v1840_v43 = vpop.f32.mrf.mxu2 }
 0x3eb   : > { %v1922_v35 = vpack.c.bf16 %v1688_v38, %v1688_v38  ;;  %v1935_v29 = vpack.c.bf16 %v1840_v43, %v1840_v43 }
 0x3ec   : > { %v1730_v9 = vpop.f32.mrf.mxu1 }
 0x3ed   : > { %v1974_v28 = vunpack.c.l.b16 %v1922_v35  ;;  %v2027_v41 = vunpack.c.l.b16 %v1935_v29  ;;  %v1925_v59 = vpack.c.bf16 %v1730_v9, %v1730_v9  ;;  %v3427_v29 = vld [vmem:[#allocation8 + $0x28] sm:$0xff] }
 0x3ef   : > { %v1980_v24 = vpack.c.b16 %v1974_v28, %v1973_v22  ;;  %v1977_v53 = vunpack.c.l.b16 %v1925_v59  ;;  %v3428_v28 = vld [vmem:[#allocation8 + $0x30] sm:$0xff] }
 0x3f0   : > { %2147 = vmatpush.bf16.msrb.mxu2 %v3428_v28  ;;  %3464 = vmatpush.bf16.msrb.mxu3 %v3428_v28  ;;  %v3759_v28 = vld [vmem:[%s4259_s24 + $0x8] sm:$0xff] }
 0x3f1   : > { %1985 = vrot.lane.b32.xlu1 %v1980_v24, %s4070_s14 }
 0x3f2   : > { %v1774_v18 = vpop.f32.mrf.mxu3  ;;  %v1842_v54 = vpop.f32.mrf.mxu2 }
 0x3f3   : > { %v1936_v36 = vpack.c.bf16 %v1842_v54, %v1842_v54  ;;  %v1929_v57 = vpack.c.bf16 %v1774_v18, %v1774_v18  ;;  %v3426_v54 = vld [vmem:[#allocation8 + $0x20] sm:$0xff] }
 0x3f4   : > { %v1732_v61 = vpop.f32.mrf.mxu1  ;;  %v1796_v49 = vpop.f32.mrf.mxu0  ;;  %2148 = vmatpush.bf16.msrb.mxu2 %v3427_v29  ;;  %3465 = vmatpush.bf16.msrb.mxu3 %v3427_v29  ;;  %v3760_v29 = vld [vmem:[%s4259_s24 + $0x10] sm:$0xff] }
 0x3f5   : > { %v2028_v20 = vunpack.c.l.b16 %v1936_v36  ;;  %v1926_v11 = vpack.c.bf16 %v1732_v61, %v1732_v61  ;;  %v2001_v13 = vunpack.c.l.b16 %v1929_v57  ;;  %v1931_v40 = vpack.c.bf16 %v1796_v49, %v1796_v49  ;;  %v3425_v61 = vld [vmem:[#allocation8 + $0x18] sm:$0xff]  ;;  %v3424_v49 = vld [vmem:[#allocation8 + $0x10] sm:$0xff] }
 0x3f7   : > { %v2035_v50 = vpack.c.b16 %v2028_v20, %v2027_v41  ;;  %v1978_v58 = vunpack.c.l.b16 %v1926_v11  ;;  %v2003_v17 = vunpack.c.l.b16 %v1931_v40  ;;  %v3422_v41 = vld [vmem:[#allocation8] sm:$0xff]  ;;  %v1912_v20 = vpack.c.bf16 %v4774_v46, %v4774_v46 }
 0x3f8   : > { %2149 = vmatpush.bf16.msrb.mxu2 %v3426_v54  ;;  %3466 = vmatpush.bf16.msrb.mxu3 %v3426_v54  ;;  %v1914_v46 = vpack.c.bf16 %v4782_v42, %v4782_v42  ;;  %v1915_v40 = vpack.c.bf16 %v4780_v63, %v4780_v63 }
 0x3f9   : > { %1987 = vrot.lane.b32.xlu1 %v1981_v51, %s4070_s14  ;;  %2039 = vrot.lane.b32.xlu2 %v2035_v50, %s4068_s13  ;;  %v1982_v25 = vpack.c.b16 %v1978_v58, %v1977_v53  ;;  %v1911_v51 = vpack.c.bf16 %v4771_v3, %v4771_v3  ;;  %v1952_v50 = vunpack.c.l.b16 %v1912_v20  ;;  %v1913_v3 = vpack.c.bf16 %v4778_v60, %v4778_v60 }
 0x3fa   : > { %v1776_v39 = vpop.f32.mrf.mxu3 }
 0x3fb   : > { %v1930_v48 = vpack.c.bf16 %v1776_v39, %v1776_v39  ;;  %v1951_v59 = vunpack.c.l.b16 %v1911_v51 }
 0x3fc   : > { %v1798_v34 = vpop.f32.mrf.mxu0  ;;  %v1818_v19 = vpop.f32.mrf.mxu1  ;;  %2150 = vmatpush.bf16.msrb.mxu2 %v3425_v61  ;;  %3467 = vmatpush.bf16.msrb.mxu3 %v3425_v61 }
 0x3fd   : > { %v2002_v8 = vunpack.c.l.b16 %v1930_v48  ;;  %v1932_v37 = vpack.c.bf16 %v1798_v34, %v1798_v34  ;;  %v1933_v10 = vpack.c.bf16 %v1818_v19, %v1818_v19  ;;  %v1959_v57 = vpack.c.b16 %v1952_v50, %v1951_v59  ;;  %v3763_v50 = vld [vmem:[%s4259_s24 + $0x28] sm:$0xff] }
 0x3ff   : > { %v2008_v30 = vpack.c.b16 %v2002_v8, %v2001_v13  ;;  %v2004_v56 = vunpack.c.l.b16 %v1932_v37  ;;  %v2005_v44 = vunpack.c.l.b16 %v1933_v10  ;;  %v1954_v13 = vunpack.c.l.b16 %v1914_v46 }
 0x400   : > { %2151 = vmatpush.bf16.msrb.mxu2 %v3424_v49  ;;  %3468 = vmatpush.bf16.msrb.mxu3 %v3424_v49  ;;  %v1953_v8 = vunpack.c.l.b16 %v1913_v3  ;;  %v3761_v49 = vld [vmem:[%s4259_s24 + $0x18] sm:$0xff] }
 0x401   : > { %1989 = vrot.lane.b32.xlu1 %v1982_v25, %s4070_s14  ;;  %2013 = vrot.lane.b32.xlu2 %v2008_v30, %s4069_s10  ;;  %v2009_v14 = vpack.c.b16 %v2004_v56, %v2003_v17  ;;  %v1916_v30 = vpack.c.bf16 %v4786_v26, %v4786_v26  ;;  %v1955_v17 = vunpack.c.l.b16 %v1915_v40  ;;  %v1917_v26 = vpack.c.bf16 %v4784_v15, %v4784_v15 }
 0x402   : > { %v1862_v55 = vpop.f32.mrf.mxu3  ;;  %v1960_v25 = vpack.c.b16 %v1954_v13, %v1953_v8 }
 0x403   : > { %v1937_v5 = vpack.c.bf16 %v1862_v55, %v1862_v55  ;;  %v1956_v56 = vunpack.c.l.b16 %v1916_v30 }
 0x404   : > { %v1820_v45 = vpop.f32.mrf.mxu1  ;;  %v1884_v4 = vpop.f32.mrf.mxu0  ;;  %2152 = vmatpush.bf16.msrb.mxu2 %v3423_v47  ;;  %3469 = vmatpush.bf16.msrb.mxu3 %v3423_v47 }
 0x405   : > { %v1934_v12 = vpack.c.bf16 %v1820_v45, %v1820_v45  ;;  %v2029_v31 = vunpack.c.l.b16 %v1937_v5  ;;  %v1939_v35 = vpack.c.bf16 %v1884_v4, %v1884_v4 }
 0x407   : > { %v2006_v1 = vunpack.c.l.b16 %v1934_v12  ;;  %v2031_v22 = vunpack.c.l.b16 %v1939_v35  ;;  %v1918_v12 = vpack.c.bf16 %v4788_v27, %v4788_v27 }
 0x408   : > { %2153 = vmatpush.bf16.msrb.mxu2 %v3422_v41  ;;  %3470 = vmatpush.bf16.msrb.mxu3 %v3422_v41  ;;  %v3762_v41 = vld [vmem:[%s4259_s24 + $0x20] sm:$0xff] }
 0x409   : > { %2015 = vrot.lane.b32.xlu2 %v2009_v14, %s4069_s10  ;;  %v2010_v38 = vpack.c.b16 %v2006_v1, %v2005_v44  ;;  %v1961_v14 = vpack.c.b16 %v1956_v56, %v1955_v17  ;;  %v1958_v10 = vunpack.c.l.b16 %v1918_v12  ;;  %v1957_v1 = vunpack.c.l.b16 %v1917_v26  ;;  %v3765_v17 = vld [vmem:[%s4259_s24 + $0x38] sm:$0xff] }
 0x40a   : > { %v1864_v0 = vpop.f32.mrf.mxu3  ;;  %v1984_v11 = vpop.permute.xlu2 %1983 }
 0x40b   : > { %v1938_v32 = vpack.c.bf16 %v1864_v0, %v1864_v0  ;;  %v2049_v58 = vsel %vm853_vm0, %v1959_v57, %v1984_v11 }
 0x40c   : > { %v1886_v2 = vpop.f32.mrf.mxu0  ;;  %v1906_v21 = vpop.f32.mrf.mxu1 }
 0x40d   : > { %v2030_v6 = vunpack.c.l.b16 %v1938_v32  ;;  %v1940_v23 = vpack.c.bf16 %v1886_v2, %v1886_v2  ;;  %v1941_v33 = vpack.c.bf16 %v1906_v21, %v1906_v21 }
 0x40f   : > { %v2036_v52 = vpack.c.b16 %v2030_v6, %v2029_v31  ;;  %v2032_v43 = vunpack.c.l.b16 %v1940_v23  ;;  %v2033_v16 = vunpack.c.l.b16 %v1941_v33  ;;  %v1962_v31 = vpack.c.b16 %v1958_v10, %v1957_v1  ;;  %v3590_v23 = vld [vmem:[#allocation13] ss:$0 sm:$0xff] }
 0x411   : > { %2041 = vrot.lane.b32.xlu0 %v2036_v52, %s4068_s13  ;;  %2017 = vrot.lane.b32.xlu2 %v2010_v38, %s4069_s10  ;;  %v2037_v62 = vpack.c.b16 %v2032_v43, %v2031_v22  ;;  %v3758_v43 = vld [vmem:[%s4259_s24] sm:$0xff]  ;;  %s3996_s10 = scalar_lea.hbm %s5083_s8, 128 }
 0x412   : > { %p3998_p7 = scmp.lt.s32.totalorder %s3996_s10, %s3992_s3 }
 0x414   : > { %v1908_v9 = vpop.f32.mrf.mxu1  ;;  %p3999_p8 = por %p3998_p7, %p3997_p12 }
 0x415   : > { %v1942_v24 = vpack.c.bf16 %v1908_v9, %v1908_v9 }
 0x416   : > { %p4000_p9 = pnand %p3999_p8, %p3995_p5 }
 0x417   : > { %v2034_v18 = vunpack.c.l.b16 %v1942_v24 }
 0x419   : > { %2043 = vrot.lane.b32.xlu0 %v2037_v62, %s4068_s13  ;;  %v2038_v36 = vpack.c.b16 %v2034_v18, %v2033_v16 }
 0x421   : > { %2045 = vrot.lane.b32.xlu0 %v2038_v36, %s4068_s13 }
 0x432   : > { %v2012_v39 = vpop.permute.xlu1 %2011 }
 0x433   : > { %v2061_v48 = vsel %vm2059_vm2, %v2049_v58, %v2012_v39  ;;  %v3764_v58 = vld [vmem:[%s4259_s24 + $0x30] sm:$0xff] }
 0x453   : > { %v2040_v34 = vpop.permute.xlu2 %2039 }
 0x454   : > { %v2070_v19 = vsel %vm2068_vm3, %v2061_v48, %v2040_v34  ;;  %v4071_v34 = vmov 128.0  }
 0x455   : > { %2154 = vmatmul.bf16.vlgmr.msrb.gmra.mxu2 %v2070_v19  ;;  %3724 = vrcp.f32 %v4071_v34  ;;  %v3437_v34 = vld [vmem:[#allocation10 + $0x34] sm:$0xf0] }
 0x45b   : > { %v2014_v37 = vpop.permute.xlu2 %2013  ;;  %v3725_v19 = vpop.eup %3724 }
 0x45c   : > { %v2200_v46 = vmul.f32 128.0, %v3725_v19  ;;  %vm2204_vm4 = vweird.f32 %v3725_v19 }
 0x45e   : > { %v2201_v3 = vsub.f32 1.0, %v2200_v46 }
 0x463   : > { %v1986_v53 = vpop.permute.xlu1 %1985  ;;  %v2016_v5 = vpop.permute.xlu2 %2015 }
 0x464   : > { %v2052_v55 = vsel %vm853_vm0, %v1960_v25, %v1986_v53  ;;  %v2202_v53 = vmul.f32 %v3725_v19, %v2201_v3  ;;  %v3292_v3 = vld [vmem:[#allocation10 + $0x38] sm:$0xf0] }
 0x465   : > { %v2063_v42 = vsel %vm2059_vm2, %v2052_v55, %v2014_v37 }
 0x466   : > { %v2203_v13 = vadd.f32 %v3725_v19, %v2202_v53 }
 0x468   : > { %v4835_v8 = vsel %vm2204_vm4, %v3725_v19, %v2203_v13  ;;  %v3436_v19 = vld [vmem:[#allocation10 + $0x34] sm:$0xf]  ;;  %v3282_v13 = vld [vmem:[#allocation10 + $0x20] sm:$0xf] }
 0x469   : > { %v3295_v53 = vor.u32 %v3436_v19, %v3292_v3 }
 0x46b   : > { %v1988_v45 = vpop.permute.xlu1 %1987  ;;  %v2018_v6 = vpop.permute.xlu2 %2017 }
 0x46c   : > { %v2055_v63 = vsel %vm853_vm0, %v1961_v14, %v1988_v45 }
 0x46d   : > { %v2065_v32 = vsel %vm2059_vm2, %v2055_v63, %v2016_v5 }
 0x473   : > { %v1990_v21 = vpop.permute.xlu1 %1989 }
 0x474   : > { %v2058_v27 = vsel %vm853_vm0, %v1962_v31, %v1990_v21 }
 0x475   : > { %v2067_v15 = vsel %vm2059_vm2, %v2058_v27, %v2018_v6 }
 0x483   : > { %v2042_v4 = vpop.permute.xlu0 %2041 }
 0x484   : > { %v2073_v60 = vsel %vm2068_vm3, %v2063_v42, %v2042_v4 }
 0x485   : > { %2159 = vmatmul.bf16.gmra.mxu2 %v2073_v60 }
 0x48b   : > { %v2044_v0 = vpop.permute.xlu0 %2043 }
 0x48c   : > { %v2076_v2 = vsel %vm2068_vm3, %v2065_v32, %v2044_v0 }
 0x48d   : > { %2164 = vmatmul.bf16.vlgmr.msrb.gmra.mxu3 %v2076_v2 }
 0x493   : > { %v2046_v44 = vpop.permute.xlu0 %2045 }
 0x494   : > { %v2079_v52 = vsel %vm2068_vm3, %v2067_v15, %v2046_v44 }
 0x49d   : > { %2169 = vmatmul.bf16.gmra.mxu3 %v2079_v52 }
 0x4d8   : > { %v2155_v38 = vpop.f32.mrf.mxu2 }
 0x4d9   : > { %v2156_v35 = vadd.f32 %v3590_v23, %v2155_v38 }
 0x4db   : > { %v2175_v7 = vadd.f32 %v3758_v43, %v2156_v35 }
 0x4dd   : > { %2183 = vadd.xlane.f32.xlu1 %v2175_v7 }
 0x4e0   : > { %v2157_v9 = vpop.f32.mrf.mxu2 }
 0x4e1   : > { %v2158_v22 = vadd.f32 %v3590_v23, %v2157_v9  ;;  %v3445_v9 = vld [vmem:[#allocation10 + $0x74] sm:$0xf0] }
 0x4e3   : > { %v2176_v62 = vadd.f32 %v3759_v28, %v2158_v22  ;;  %v3444_v22 = vld [vmem:[#allocation10 + $0x74] sm:$0xf] }
 0x4e5   : > { %2185 = vadd.xlane.f32.xlu2 %v2176_v62 }
 0x508   : > { %v2160_v24 = vpop.f32.mrf.mxu2 }
 0x509   : > { %v2161_v33 = vadd.f32 %v3590_v23, %v2160_v24 }
 0x50b   : > { %v2177_v18 = vadd.f32 %v3760_v29, %v2161_v33  ;;  %v3314_v33 = vld [vmem:[#allocation10 + $0x60] sm:$0xf]  ;;  %v3443_v29 = vld [vmem:[#allocation10 + $0x64] sm:$0xf0] }
 0x50d   : > { %2187 = vadd.xlane.f32.xlu0 %v2177_v18 }
 0x510   : > { %v2162_v16 = vpop.f32.mrf.mxu2  ;;  %v2165_v54 = vpop.f32.mrf.mxu3 }
 0x511   : > { %v2163_v36 = vadd.f32 %v3590_v23, %v2162_v16  ;;  %v2166_v61 = vadd.f32 %v3590_v23, %v2165_v54  ;;  %v3315_v16 = vor.u32 %v3443_v29, %v3314_v33  ;;  %v3316_v54 = vld [vmem:[#allocation10 + $0x68] sm:$0xf0] }
 0x513   : > { %v2178_v47 = vadd.f32 %v3761_v49, %v2163_v36  ;;  %v2179_v20 = vadd.f32 %v3762_v41, %v2166_v61  ;;  %v3306_v61 = vld [vmem:[#allocation10 + $0x50] sm:$0xf]  ;;  %v3441_v49 = vld [vmem:[#allocation10 + $0x54] sm:$0xf0] }
 0x514   : > { %v3307_v41 = vor.u32 %v3441_v49, %v3306_v61 }
 0x515   : > { %2189 = vadd.xlane.f32.xlu2 %v2178_v47  ;;  %2191 = vadd.xlane.f32.xlu1 %v2179_v20 }
 0x518   : > { %v2167_v51 = vpop.f32.mrf.mxu3 }
 0x519   : > { %v2168_v11 = vadd.f32 %v3590_v23, %v2167_v51 }
 0x51b   : > { %v2180_v59 = vadd.f32 %v3763_v50, %v2168_v11  ;;  %v3298_v11 = vld [vmem:[#allocation10 + $0x40] sm:$0xf]  ;;  %v3439_v50 = vld [vmem:[#allocation10 + $0x44] sm:$0xf0] }
 0x51d   : > { %2193 = vadd.xlane.f32.xlu0 %v2180_v59 }
 0x520   : > { %v2170_v57 = vpop.f32.mrf.mxu3 }
 0x521   : > { %v2171_v39 = vadd.f32 %v3590_v23, %v2170_v57  ;;  %v3299_v57 = vor.u32 %v3439_v50, %v3298_v11  ;;  %v4887_v11 = vld [vmem:[#allocation13 + $0x3] ss:$0 sm:$0xff] }
 0x523   : > { %v2181_v48 = vadd.f32 %v3764_v58, %v2171_v39  ;;  %v3300_v39 = vld [vmem:[#allocation10 + $0x48] sm:$0xf0] }
 0x525   : > { %2195 = vadd.xlane.f32.xlu0 %v2181_v48 }
 0x528   : > { %v2172_v55 = vpop.f32.mrf.mxu3 }
 0x529   : > { %v2173_v45 = vadd.f32 %v3590_v23, %v2172_v55  ;;  %v3284_v55 = vld [vmem:[#allocation10 + $0x28] sm:$0xf0] }
 0x52b   : > { %v4846_v60 = vadd.f32 %v3765_v17, %v2173_v45  ;;  %v3274_v45 = vld [vmem:[#allocation10 + $0x10] sm:$0xf]  ;;  %v3432_v17 = vld [vmem:[#allocation10 + $0x14] sm:$0xf] }
 0x550   : > { %v2184_v25 = vpop.xlane.xlu1 %2183 }
 0x551   : > { %v2206_v30 = vmul.f32 %v4835_v8, %v2184_v25  ;;  %v3435_v25 = vld [vmem:[#allocation10 + $0x24] sm:$0xf0] }
 0x553   : > { %v4838_v37 = vsub.f32 %v2175_v7, %v2206_v30  ;;  %v3322_v7 = vld [vmem:[#allocation10 + $0x70] sm:$0xf]  ;;  %v3434_v30 = vld [vmem:[#allocation10 + $0x24] sm:$0xf] }
 0x554   : > { %v3323_v28 = vor.u32 %v3445_v9, %v3322_v7 }
 0x555   : > { %v2222_v40 = vmul.f32 %v4838_v37, %v4838_v37 }
 0x556   : > { %2474 = vmatpush.bf16.msra.mxu3 %v3323_v28 }
 0x557   : > { %2230 = vadd.xlane.f32.xlu2 %v2222_v40  ;;  %v3283_v40 = vor.u32 %v3435_v25, %v3282_v13 }
 0x558   : > { %v2186_v56 = vpop.xlane.xlu2 %2185 }
 0x559   : > { %v2207_v4 = vmul.f32 %v4835_v8, %v2186_v56  ;;  %v3287_v56 = vor.u32 %v3434_v30, %v3284_v55 }
 0x55a   : > { %2475 = vmatpush.bf16.msra.mxu3 %v3315_v16 }
 0x55b   : > { %v4843_v42 = vsub.f32 %v2176_v62, %v2207_v4  ;;  %v3324_v62 = vld [vmem:[#allocation10 + $0x78] sm:$0xf0]  ;;  %v3433_v4 = vld [vmem:[#allocation10 + $0x14] sm:$0xf0] }
 0x55c   : > { %v3327_v24 = vor.u32 %v3444_v22, %v3324_v62 }
 0x55d   : > { %v2223_v14 = vmul.f32 %v4843_v42, %v4843_v42 }
 0x55e   : > { %2503 = vmatpush.bf16.msrb.mxu0 %v3327_v24  ;;  %2476 = vmatpush.bf16.msra.mxu3 %v3307_v41 }
 0x55f   : > { %2197 = vadd.xlane.f32.xlu2 %v4846_v60  ;;  %2232 = vadd.xlane.f32.xlu1 %v2223_v14  ;;  %v3275_v14 = vor.u32 %v3433_v4, %v3274_v45 }
 0x562   : > { %2477 = vmatpush.bf16.msra.mxu3 %v3299_v57 }
 0x580   : > { %v2188_v12 = vpop.xlane.xlu0 %2187 }
 0x581   : > { %v2208_v26 = vmul.f32 %v4835_v8, %v2188_v12  ;;  %v3276_v12 = vld [vmem:[#allocation10 + $0x18] sm:$0xf0] }
 0x583   : > { %v4852_v5 = vsub.f32 %v2177_v18, %v2208_v26  ;;  %v3442_v18 = vld [vmem:[#allocation10 + $0x64] sm:$0xf]  ;;  %v3279_v26 = vor.u32 %v3432_v17, %v3276_v12 }
 0x584   : > { %v3319_v36 = vor.u32 %v3442_v18, %v3316_v54 }
 0x585   : > { %v2224_v63 = vmul.f32 %v4852_v5, %v4852_v5 }
 0x586   : > { %2504 = vmatpush.bf16.msrb.mxu0 %v3319_v36 }
 0x587   : > { %2234 = vadd.xlane.f32.xlu1 %v2224_v63 }
 0x588   : > { %v2192_v10 = vpop.xlane.xlu1 %2191  ;;  %v2190_v0 = vpop.xlane.xlu2 %2189 }
 0x589   : > { %v2210_v32 = vmul.f32 %v4835_v8, %v2192_v10  ;;  %v2209_v1 = vmul.f32 %v4835_v8, %v2190_v0  ;;  %v3266_v0 = vld [vmem:[#allocation10] sm:$0xf] }
 0x58b   : > { %v4858_v2 = vsub.f32 %v2179_v20, %v2210_v32  ;;  %v4860_v21 = vsub.f32 %v2178_v47, %v2209_v1  ;;  %v3440_v47 = vld [vmem:[#allocation10 + $0x54] sm:$0xf]  ;;  %v3308_v20 = vld [vmem:[#allocation10 + $0x58] sm:$0xf0]  ;;  %v3431_v32 = vld [vmem:[#allocation10 + $0x4] sm:$0xf0] }
 0x58c   : > { %v3311_v51 = vor.u32 %v3440_v47, %v3308_v20  ;;  %v3430_v1 = vld [vmem:[#allocation10 + $0x4] sm:$0xf]  ;;  %v4884_v47 = vld [vmem:[#allocation13 + $0x2] ss:$0 sm:$0xff] }
 0x58d   : > { %v2226_v31 = vmul.f32 %v4858_v2, %v4858_v2  ;;  %v2225_v27 = vmul.f32 %v4860_v21, %v4860_v21 }
 0x58e   : > { %2505 = vmatpush.bf16.msrb.mxu0 %v3311_v51 }
 0x58f   : > { %2238 = vadd.xlane.f32.xlu2 %v2226_v31  ;;  %2236 = vadd.xlane.f32.xlu0 %v2225_v27  ;;  %v3267_v31 = vor.u32 %v3431_v32, %v3266_v0  ;;  %v3268_v27 = vld [vmem:[#allocation10 + $0x8] sm:$0xf0] }
 0x590   : > { %v2194_v6 = vpop.xlane.xlu0 %2193 }
 0x591   : > { %v2211_v44 = vmul.f32 %v4835_v8, %v2194_v6 }
 0x593   : > { %v4867_v15 = vsub.f32 %v2180_v59, %v2211_v44  ;;  %v3438_v59 = vld [vmem:[#allocation10 + $0x44] sm:$0xf]  ;;  %v3271_v44 = vor.u32 %v3430_v1, %v3268_v27 }
 0x594   : > { %v3303_v58 = vor.u32 %v3438_v59, %v3300_v39 }
 0x595   : > { %v2227_v52 = vmul.f32 %v4867_v15, %v4867_v15 }
 0x596   : > { %2506 = vmatpush.bf16.msrb.mxu0 %v3303_v58 }
 0x597   : > { %2240 = vadd.xlane.f32.xlu1 %v2227_v52 }
 0x598   : > { %v2196_v23 = vpop.xlane.xlu0 %2195 }
 0x599   : > { %v2212_v38 = vmul.f32 %v4835_v8, %v2196_v23 }
 0x59a   : > { %2507 = vmatpush.bf16.msrb.mxu0 %v3295_v53 }
 0x59b   : > { %v4872_v35 = vsub.f32 %v2181_v48, %v2212_v38  ;;  %v3290_v48 = vld [vmem:[#allocation10 + $0x30] sm:$0xf] }
 0x59c   : > { %v3291_v46 = vor.u32 %v3437_v34, %v3290_v48 }
 0x59d   : > { %v2228_v43 = vmul.f32 %v4872_v35, %v4872_v35 }
 0x59e   : > { %2478 = vmatpush.bf16.msra.mxu3 %v3291_v46  ;;  %2508 = vmatpush.bf16.msrb.mxu0 %v3287_v56 }
 0x59f   : > { %2242 = vadd.xlane.f32.xlu0 %v2228_v43 }
 0x5a2   : > { %2479 = vmatpush.bf16.msra.mxu3 %v3283_v40  ;;  %2509 = vmatpush.bf16.msrb.mxu0 %v3279_v26 }
 0x5a6   : > { %2480 = vmatpush.bf16.msra.mxu3 %v3275_v14  ;;  %2510 = vmatpush.bf16.msrb.mxu0 %v3271_v44 }
 0x5aa   : > { %2481 = vmatpush.bf16.msra.mxu3 %v3267_v31 }
 0x5ca   : > { %v2231_v63 = vpop.xlane.xlu2 %2230 }
 0x5cb   : > { %v2246_v10 = vmul.f32 %v2231_v63, %v4835_v8 }
 0x5cd   : > { %v2254_v6 = vadd.f32 1e-05, %v2246_v10 }
 0x5cf   : > { %3726 = vrsqrt.f32 %v2254_v6  ;;  %vm2268_vm6 = vweird.f32 %v2254_v6 }
 0x5d2   : > { %v2233_v52 = vpop.xlane.xlu1 %2232  ;;  %v2198_v23 = vpop.xlane.xlu2 %2197 }
 0x5d3   : > { %v2247_v38 = vmul.f32 %v2233_v52, %v4835_v8  ;;  %v2213_v43 = vmul.f32 %v4835_v8, %v2198_v23 }
 0x5d5   : > { %v3727_v7 = vpop.eup %3726  ;;  %v2255_v9 = vadd.f32 1e-05, %v2247_v38  ;;  %v4880_v22 = vsub.f32 %v4846_v60, %v2213_v43 }
 0x5d6   : > { %v2263_v28 = vmul.f32 %v3727_v7, %v2254_v6  ;;  %vm2269_vm5 = vweird.f32 %v3727_v7 }
 0x5d7   : > { %3728 = vrsqrt.f32 %v2255_v9  ;;  %v2229_v62 = vmul.f32 %v4880_v22, %v4880_v22  ;;  %vm2270_vm7 = vmor %vm2268_vm6, %vm2269_vm5  ;;  %vm2278_vm9 = vweird.f32 %v2255_v9 }
 0x5d8   : > { %v2264_v24 = vmul.f32 %v3727_v7, %v2263_v28 }
 0x5d9   : > { %2244 = vadd.xlane.f32.xlu2 %v2229_v62 }
 0x5da   : > { %v2265_v33 = vmul.f32 0.5, %v2264_v24 }
 0x5dc   : > { %v2266_v29 = vsub.f32 1.5, %v2265_v33 }
 0x5dd   : > { %v3729_v18 = vpop.eup %3728 }
 0x5de   : > { %v2267_v16 = vmul.f32 %v3727_v7, %v2266_v29  ;;  %v2273_v54 = vmul.f32 %v3729_v18, %v2255_v9  ;;  %vm2279_vm8 = vweird.f32 %v3729_v18 }
 0x5df   : > { %vm2280_vm10 = vmor %vm2278_vm9, %vm2279_vm8 }
 0x5e0   : > { %v2274_v36 = vmul.f32 %v3729_v18, %v2273_v54  ;;  %v2271_v61 = vsel %vm2270_vm7, %v3727_v7, %v2267_v16 }
 0x5e1   : > { %v2342_v41 = vmul.f32 %v2271_v61, %v4838_v37 }
 0x5e2   : > { %v2275_v49 = vmul.f32 0.5, %v2274_v36 }
 0x5e3   : > { %v2351_v50 = vmul.f32 %v4884_v47, %v2342_v41 }
 0x5e4   : > { %v2276_v60 = vsub.f32 1.5, %v2275_v49 }
 0x5e5   : > { %v4893_v39 = vadd.f32 %v4887_v11, %v2351_v50 }
 0x5e6   : > { %v2277_v20 = vmul.f32 %v3729_v18, %v2276_v60 }
 0x5e8   : > { %v2281_v51 = vsel %vm2280_vm10, %v3729_v18, %v2277_v20 }
 0x5e9   : > { %v2343_v59 = vmul.f32 %v2281_v51, %v4843_v42 }
 0x5eb   : > { %v2352_v57 = vmul.f32 %v4884_v47, %v2343_v59 }
 0x5ed   : > { %v4896_v58 = vadd.f32 %v4887_v11, %v2352_v57 }
 0x5ef   : > { %v2368_v37 = vpack.c.bf16 %v4896_v58, %v4893_v39 }
 0x5f1   : > { %2482 = vmatmul.bf16.vlgmr.msra.gmra.mxu3 %v2368_v37  ;;  %2511 = vmatmul.bf16.vlgmr.msrb.gmra.mxu0 %v2368_v37 }
 0x5fa   : > { %v2235_v48 = vpop.xlane.xlu1 %2234 }
 0x5fb   : > { %v2248_v34 = vmul.f32 %v2235_v48, %v4835_v8 }
 0x5fd   : > { %v2256_v19 = vadd.f32 1e-05, %v2248_v34  ;;  %v3460_v34 = vld [vmem:[#allocation11 + $0x70] sm:$0xff] }
 0x5ff   : > { %3730 = vrsqrt.f32 %v2256_v19  ;;  %vm2288_vm12 = vweird.f32 %v2256_v19 }
 0x602   : > { %v2237_v46 = vpop.xlane.xlu0 %2236  ;;  %v2239_v42 = vpop.xlane.xlu2 %2238 }
 0x603   : > { %v2249_v3 = vmul.f32 %v2237_v46, %v4835_v8  ;;  %v2250_v53 = vmul.f32 %v2239_v42, %v4835_v8  ;;  %v3459_v46 = vld [vmem:[#allocation11 + $0x68] sm:$0xff]  ;;  %v3452_v42 = vld [vmem:[#allocation11 + $0x30] sm:$0xff] }
 0x605   : > { %v3731_v13 = vpop.eup %3730  ;;  %v2257_v25 = vadd.f32 1e-05, %v2249_v3  ;;  %v2258_v30 = vadd.f32 1e-05, %v2250_v53  ;;  %v3458_v53 = vld [vmem:[#allocation11 + $0x60] sm:$0xff] }
 0x606   : > { %v2283_v40 = vmul.f32 %v3731_v13, %v2256_v19  ;;  %vm2289_vm11 = vweird.f32 %v3731_v13  ;;  %v3453_v19 = vld [vmem:[#allocation11 + $0x38] sm:$0xff] }
 0x607   : > { %3732 = vrsqrt.f32 %v2257_v25  ;;  %vm2290_vm13 = vmor %vm2288_vm12, %vm2289_vm11  ;;  %vm2298_vm15 = vweird.f32 %v2257_v25  ;;  %vm2308_vm5 = vweird.f32 %v2258_v30  ;;  %2685 = vmatpush.bf16.msra.mxu1 %v3453_v19 }
 0x608   : > { %v2284_v55 = vmul.f32 %v3731_v13, %v2283_v40  ;;  %3734 = vrsqrt.f32 %v2258_v30 }
 0x60a   : > { %v2285_v56 = vmul.f32 0.5, %v2284_v55  ;;  %v2241_v45 = vpop.xlane.xlu1 %2240  ;;  %v3457_v55 = vld [vmem:[#allocation11 + $0x58] sm:$0xff] }
 0x60b   : > { %v2251_v4 = vmul.f32 %v2241_v45, %v4835_v8  ;;  %2686 = vmatpush.bf16.msra.mxu1 %v3452_v42  ;;  %v3450_v45 = vld [vmem:[#allocation11 + $0x20] sm:$0xff] }
 0x60c   : > { %v2286_v17 = vsub.f32 1.5, %v2285_v56 }
 0x60d   : > { %v3733_v14 = vpop.eup %3732  ;;  %v2259_v12 = vadd.f32 1e-05, %v2251_v4 }
 0x60e   : > { %v3735_v26 = vpop.eup %3734  ;;  %v2287_v63 = vmul.f32 %v3731_v13, %v2286_v17  ;;  %v2293_v10 = vmul.f32 %v3733_v14, %v2257_v25  ;;  %vm2299_vm14 = vweird.f32 %v3733_v14  ;;  %v3451_v25 = vld [vmem:[#allocation11 + $0x28] sm:$0xff] }
 0x60f   : > { %v2303_v0 = vmul.f32 %v3735_v26, %v2258_v30  ;;  %3736 = vrsqrt.f32 %v2259_v12  ;;  %vm2300_vm0 = vmor %vm2298_vm15, %vm2299_vm14  ;;  %vm2309_vm2 = vweird.f32 %v3735_v26  ;;  %vm2318_vm3 = vweird.f32 %v2259_v12  ;;  %2687 = vmatpush.bf16.msra.mxu1 %v3451_v25 }
 0x610   : > { %v2294_v32 = vmul.f32 %v3733_v14, %v2293_v10  ;;  %v2291_v1 = vsel %vm2290_vm13, %v3731_v13, %v2287_v63  ;;  %vm2310_vm6 = vmor %vm2308_vm5, %vm2309_vm2  ;;  %v3455_v63 = vld [vmem:[#allocation11 + $0x48] sm:$0xff]  ;;  %v3448_v10 = vld [vmem:[#allocation11 + $0x10] sm:$0xff] }
 0x611   : > { %v2304_v27 = vmul.f32 %v3735_v26, %v2303_v0  ;;  %v2344_v52 = vmul.f32 %v2291_v1, %v4852_v5 }
 0x612   : > { %v2295_v31 = vmul.f32 0.5, %v2294_v32  ;;  %v2243_v37 = vpop.xlane.xlu0 %2242 }
 0x613   : > { %v2305_v38 = vmul.f32 0.5, %v2304_v27  ;;  %v2353_v62 = vmul.f32 %v4884_v47, %v2344_v52  ;;  %2688 = vmatpush.bf16.msra.mxu1 %v3450_v45 }
 0x614   : > { %v2296_v6 = vsub.f32 1.5, %v2295_v31  ;;  %v3454_v31 = vld [vmem:[#allocation11 + $0x40] sm:$0xff] }
 0x615   : > { %v3737_v44 = vpop.eup %3736  ;;  %v2306_v24 = vsub.f32 1.5, %v2305_v38  ;;  %v4909_v16 = vadd.f32 %v4887_v11, %v2353_v62  ;;  %v3446_v38 = vld [vmem:[#allocation11] sm:$0xff] }
 0x616   : > { %v2297_v23 = vmul.f32 %v3733_v14, %v2296_v6  ;;  %v2313_v43 = vmul.f32 %v3737_v44, %v2259_v12  ;;  %vm2319_vm1 = vweird.f32 %v3737_v44  ;;  %v3449_v12 = vld [vmem:[#allocation11 + $0x18] sm:$0xff]  ;;  %v3447_v6 = vld [vmem:[#allocation11 + $0x8] sm:$0xff] }
 0x617   : > { %v2307_v54 = vmul.f32 %v3735_v26, %v2306_v24  ;;  %vm2320_vm4 = vmor %vm2318_vm3, %vm2319_vm1  ;;  %2689 = vmatpush.bf16.msra.mxu1 %v3449_v12 }
 0x618   : > { %v2301_v7 = vsel %vm2300_vm0, %v3733_v14, %v2297_v23  ;;  %v2314_v9 = vmul.f32 %v3737_v44, %v2313_v43  ;;  %v3456_v14 = vld [vmem:[#allocation11 + $0x50] sm:$0xff] }
 0x619   : > { %v2345_v28 = vmul.f32 %v2301_v7, %v4860_v21  ;;  %v2311_v49 = vsel %vm2310_vm6, %v3735_v26, %v2307_v54 }
 0x61a   : > { %v2315_v33 = vmul.f32 0.5, %v2314_v9  ;;  %v2346_v41 = vmul.f32 %v2311_v49, %v4858_v2  ;;  %v3461_v2 = vld [vmem:[#allocation11 + $0x78] sm:$0xff] }
 0x61b   : > { %v2354_v29 = vmul.f32 %v4884_v47, %v2345_v28  ;;  %2714 = vmatpush.bf16.msra.mxu2 %v3461_v2  ;;  %2690 = vmatpush.bf16.msra.mxu1 %v3448_v10 }
 0x61c   : > { %v2316_v18 = vsub.f32 1.5, %v2315_v33  ;;  %v2355_v51 = vmul.f32 %v4884_v47, %v2346_v41 }
 0x61d   : > { %v4912_v5 = vadd.f32 %v4887_v11, %v2354_v29 }
 0x61e   : > { %v2317_v36 = vmul.f32 %v3737_v44, %v2316_v18  ;;  %v4924_v59 = vadd.f32 %v4887_v11, %v2355_v51  ;;  %v2388_v18 = vld [vmem:[%s5080_s5] sm:$0x3] }
 0x61f   : > { %v2369_v21 = vpack.c.bf16 %v4912_v5, %v4909_v16  ;;  %2715 = vmatpush.bf16.msra.mxu2 %v3460_v34  ;;  %2691 = vmatpush.bf16.msra.mxu1 %v3447_v6  ;;  %v2391_v54 = vperm.slane %v2388_v18, 1 }
 0x620   : > { %v2321_v61 = vsel %vm2320_vm4, %v3737_v44, %v2317_v36 }
 0x621   : > { %2487 = vmatmul.bf16.gmra.mxu3 %v2369_v21  ;;  %2516 = vmatmul.bf16.gmra.mxu0 %v2369_v21  ;;  %v2347_v60 = vmul.f32 %v2321_v61, %v4867_v15  ;;  %v2252_v15 = vmul.f32 %v2243_v37, %v4835_v8  ;;  %v2390_v61 = vperm.slane %v2388_v18, 0 }
 0x623   : > { %v2356_v20 = vmul.f32 %v4884_v47, %v2347_v60  ;;  %v2260_v48 = vadd.f32 1e-05, %v2252_v15  ;;  %2716 = vmatpush.bf16.msra.mxu2 %v3459_v46  ;;  %2692 = vmatpush.bf16.msra.mxu1 %v3446_v38 }
 0x625   : > { %v4921_v50 = vadd.f32 %v4887_v11, %v2356_v20  ;;  %3738 = vrsqrt.f32 %v2260_v48  ;;  %vm2328_vm8 = vweird.f32 %v2260_v48 }
 0x627   : > { %v2370_v57 = vpack.c.bf16 %v4921_v50, %v4924_v59  ;;  %2717 = vmatpush.bf16.msra.mxu2 %v3458_v53 }
 0x62b   : > { %v3739_v3 = vpop.eup %3738  ;;  %2718 = vmatpush.bf16.msra.mxu2 %v3457_v55 }
 0x62c   : > { %v2323_v13 = vmul.f32 %v3739_v3, %v2260_v48  ;;  %vm2329_vm7 = vweird.f32 %v3739_v3 }
 0x62d   : > { %vm2330_vm9 = vmor %vm2328_vm8, %vm2329_vm7 }
 0x62e   : > { %v2324_v30 = vmul.f32 %v3739_v3, %v2323_v13 }
 0x62f   : > { %2719 = vmatpush.bf16.msra.mxu2 %v3456_v14 }
 0x630   : > { %v2325_v17 = vmul.f32 0.5, %v2324_v30 }
 0x631   : > { %2492 = vmatmul.bf16.gmra.mxu3 %v2370_v57  ;;  %2521 = vmatmul.bf16.gmra.mxu0 %v2370_v57 }
 0x632   : > { %v2326_v26 = vsub.f32 1.5, %v2325_v17 }
 0x633   : > { %2720 = vmatpush.bf16.msra.mxu2 %v3455_v63 }
 0x634   : > { %v2327_v32 = vmul.f32 %v3739_v3, %v2326_v26 }
 0x636   : > { %v2331_v44 = vsel %vm2330_vm9, %v3739_v3, %v2327_v32 }
 0x637   : > { %2721 = vmatpush.bf16.msra.mxu2 %v3454_v31  ;;  %v2348_v43 = vmul.f32 %v2331_v44, %v4872_v35 }
 0x639   : > { %v2357_v62 = vmul.f32 %v4884_v47, %v2348_v43 }
 0x63b   : > { %v4935_v33 = vadd.f32 %v4887_v11, %v2357_v62 }
 0x64c   : > { %v2245_v40 = vpop.xlane.xlu2 %2244 }
 0x64d   : > { %v2253_v56 = vmul.f32 %v2245_v40, %v4835_v8 }
 0x64f   : > { %v2261_v4 = vadd.f32 1e-05, %v2253_v56 }
 0x651   : > { %3740 = vrsqrt.f32 %v2261_v4  ;;  %vm2338_vm11 = vweird.f32 %v2261_v4 }
 0x657   : > { %v3741_v0 = vpop.eup %3740 }
 0x658   : > { %v2333_v1 = vmul.f32 %v3741_v0, %v2261_v4  ;;  %vm2339_vm10 = vweird.f32 %v3741_v0 }
 0x659   : > { %vm2340_vm12 = vmor %vm2338_vm11, %vm2339_vm10 }
 0x65a   : > { %v2334_v27 = vmul.f32 %v3741_v0, %v2333_v1 }
 0x65c   : > { %v2335_v52 = vmul.f32 0.5, %v2334_v27 }
 0x65e   : > { %v2336_v23 = vsub.f32 1.5, %v2335_v52 }
 0x660   : > { %v2337_v7 = vmul.f32 %v3741_v0, %v2336_v23 }
 0x662   : > { %v2341_v9 = vsel %vm2340_vm12, %v3741_v0, %v2337_v7 }
 0x663   : > { %v2349_v28 = vmul.f32 %v2341_v9, %v4880_v22 }
 0x665   : > { %v2358_v24 = vmul.f32 %v4884_v47, %v2349_v28 }
 0x667   : > { %v4938_v29 = vadd.f32 %v4887_v11, %v2358_v24 }
 0x669   : > { %v2371_v35 = vpack.c.bf16 %v4938_v29, %v4935_v33 }
 0x66b   : > { %2497 = vmatmul.bf16.gmra.mxu3 %v2371_v35  ;;  %2526 = vmatmul.bf16.gmra.mxu0 %v2371_v35 }
 0x66e   : > { %v2512_v22 = vpop.f32.mrf.mxu0 }
 0x66f   : > { %v2513_v21 = vadd.f32 %v2512_v22, %v2391_v54 }
 0x671   : > { %v2533_v60 = vmax.f32 %v2513_v21, 0.0 }
 0x674   : > { %v2483_v36 = vpop.f32.mrf.mxu3 }
 0x675   : > { %v2484_v11 = vadd.f32 %v2483_v36, %v2390_v61 }
 0x676   : > { %v2514_v47 = vpop.f32.mrf.mxu0 }
 0x677   : > { %v2515_v49 = vadd.f32 %v2514_v47, %v2391_v54  ;;  %v2532_v37 = vmax.f32 %v2484_v11, 0.0  ;;  %v3593_v47 = vld [vmem:[#allocation13 + $0x1] ss:$0 sm:$0xff] }
 0x679   : > { %v2535_v41 = vmax.f32 %v2515_v49, 0.0 }
 0x67b   : > { %v2549_v20 = vpack.c.bf16 %v2535_v41, %v2533_v60 }
 0x67c   : > { %v2485_v51 = vpop.f32.mrf.mxu3 }
 0x67d   : > { %v2486_v57 = vadd.f32 %v2485_v51, %v2390_v61  ;;  %2722 = vmatmul.bf16.vlgmr.msra.gmra.mxu2 %v2549_v20 }
 0x67f   : > { %v2534_v15 = vmax.f32 %v2486_v57, 0.0 }
 0x681   : > { %v2548_v48 = vpack.c.bf16 %v2534_v15, %v2532_v37 }
 0x683   : > { %2693 = vmatmul.bf16.vlgmr.msra.gmra.mxu1 %v2548_v48 }
 0x69e   : > { %v2517_v2 = vpop.f32.mrf.mxu0 }
 0x69f   : > { %v2518_v19 = vadd.f32 %v2517_v2, %v2391_v54 }
 0x6a1   : > { %v2537_v3 = vmax.f32 %v2518_v19, 0.0 }
 0x6a4   : > { %v2488_v34 = vpop.f32.mrf.mxu3 }
 0x6a5   : > { %v2489_v13 = vadd.f32 %v2488_v34, %v2390_v61 }
 0x6a6   : > { %v2519_v46 = vpop.f32.mrf.mxu0 }
 0x6a7   : > { %v2520_v42 = vadd.f32 %v2519_v46, %v2391_v54  ;;  %v2536_v56 = vmax.f32 %v2489_v13, 0.0 }
 0x6a9   : > { %v2539_v53 = vmax.f32 %v2520_v42, 0.0 }
 0x6ab   : > { %v2551_v25 = vpack.c.bf16 %v2539_v53, %v2537_v3 }
 0x6ac   : > { %v2490_v30 = vpop.f32.mrf.mxu3 }
 0x6ad   : > { %v2491_v40 = vadd.f32 %v2490_v30, %v2390_v61  ;;  %2727 = vmatmul.bf16.gmra.mxu2 %v2551_v25 }
 0x6ae   : > { %v2522_v55 = vpop.f32.mrf.mxu0 }
 0x6af   : > { %v2538_v45 = vmax.f32 %v2491_v40, 0.0  ;;  %v2523_v14 = vadd.f32 %v2522_v55, %v2391_v54 }
 0x6b1   : > { %v2550_v4 = vpack.c.bf16 %v2538_v45, %v2536_v56  ;;  %v2541_v63 = vmax.f32 %v2523_v14, 0.0 }
 0x6b3   : > { %2698 = vmatmul.bf16.gmra.mxu1 %v2550_v4 }
 0x6b4   : > { %v2493_v17 = vpop.f32.mrf.mxu3 }
 0x6b5   : > { %v2494_v0 = vadd.f32 %v2493_v17, %v2390_v61 }
 0x6b6   : > { %v2524_v12 = vpop.f32.mrf.mxu0 }
 0x6b7   : > { %v2525_v26 = vadd.f32 %v2524_v12, %v2391_v54  ;;  %v2540_v27 = vmax.f32 %v2494_v0, 0.0 }
 0x6b9   : > { %v2543_v10 = vmax.f32 %v2525_v26, 0.0 }
 0x6bb   : > { %v2553_v32 = vpack.c.bf16 %v2543_v10, %v2541_v63 }
 0x6bc   : > { %v2495_v1 = vpop.f32.mrf.mxu3 }
 0x6bd   : > { %v2496_v31 = vadd.f32 %v2495_v1, %v2390_v61  ;;  %2732 = vmatmul.bf16.gmra.mxu2 %v2553_v32 }
 0x6bf   : > { %v2542_v6 = vmax.f32 %v2496_v31, 0.0 }
 0x6c1   : > { %v2552_v44 = vpack.c.bf16 %v2542_v6, %v2540_v27 }
 0x6c3   : > { %2703 = vmatmul.bf16.gmra.mxu1 %v2552_v44 }
 0x6e8   : > { %v2527_v52 = vpop.f32.mrf.mxu0 }
 0x6e9   : > { %v2528_v38 = vadd.f32 %v2527_v52, %v2391_v54 }
 0x6eb   : > { %v2545_v9 = vmax.f32 %v2528_v38, 0.0 }
 0x6ee   : > { %v2498_v23 = vpop.f32.mrf.mxu3 }
 0x6ef   : > { %v2499_v62 = vadd.f32 %v2498_v23, %v2390_v61 }
 0x6f0   : > { %v2529_v43 = vpop.f32.mrf.mxu0 }
 0x6f1   : > { %v2530_v7 = vadd.f32 %v2529_v43, %v2391_v54  ;;  %v2544_v22 = vmax.f32 %v2499_v62, 0.0 }
 0x6f3   : > { %v2547_v28 = vmax.f32 %v2530_v7, 0.0 }
 0x6f5   : > { %v2555_v24 = vpack.c.bf16 %v2547_v28, %v2545_v9 }
 0x6f6   : > { %v2500_v35 = vpop.f32.mrf.mxu3 }
 0x6f7   : > { %v2501_v18 = vadd.f32 %v2500_v35, %v2390_v61  ;;  %2737 = vmatmul.bf16.gmra.mxu2 %v2555_v24 }
 0x6f9   : > { %v2546_v36 = vmax.f32 %v2501_v18, 0.0 }
 0x6fb   : > { %v2554_v21 = vpack.c.bf16 %v2546_v36, %v2544_v22 }
 0x6fd   : > { %2708 = vmatmul.bf16.gmra.mxu1 %v2554_v21 }
 0x700   : > { %v2694_v49 = vpop.f32.mrf.mxu1  ;;  %v2723_v60 = vpop.f32.mrf.mxu2 }
 0x701   : > { %v2695_v41 = vadd.f32 %v3593_v47, %v2694_v49 }
 0x703   : > { %v2724_v11 = vadd.f32 %v2723_v60, %v2695_v41 }
 0x705   : > { %v2743_v20 = vadd.f32 %v2724_v11, %v4893_v39 }
 0x707   : > { %2751 = vadd.xlane.f32.xlu1 %v2743_v20 }
 0x708   : > { %v2696_v54 = vpop.f32.mrf.mxu1  ;;  %v2725_v57 = vpop.f32.mrf.mxu2 }
 0x709   : > { %v2697_v51 = vadd.f32 %v3593_v47, %v2696_v54 }
 0x70b   : > { %v2726_v37 = vadd.f32 %v2725_v57, %v2697_v51 }
 0x70d   : > { %v2744_v15 = vadd.f32 %v2726_v37, %v4896_v58 }
 0x70f   : > { %2753 = vadd.xlane.f32.xlu0 %v2744_v15 }
 0x730   : > { %v2699_v61 = vpop.f32.mrf.mxu1  ;;  %v2728_v48 = vpop.f32.mrf.mxu2 }
 0x731   : > { %v2700_v2 = vadd.f32 %v3593_v47, %v2699_v61 }
 0x733   : > { %v2729_v34 = vadd.f32 %v2728_v48, %v2700_v2 }
 0x735   : > { %v2745_v19 = vadd.f32 %v2729_v34, %v4909_v16 }
 0x737   : > { %2755 = vadd.xlane.f32.xlu2 %v2745_v19 }
 0x738   : > { %v2701_v46 = vpop.f32.mrf.mxu1  ;;  %v2730_v42 = vpop.f32.mrf.mxu2 }
 0x739   : > { %v2702_v3 = vadd.f32 %v3593_v47, %v2701_v46 }
 0x73b   : > { %v2731_v53 = vadd.f32 %v2730_v42, %v2702_v3 }
 0x73d   : > { %v2746_v39 = vadd.f32 %v2731_v53, %v4912_v5 }
 0x73f   : > { %2757 = vadd.xlane.f32.xlu1 %v2746_v39 }
 0x740   : > { %v2704_v13 = vpop.f32.mrf.mxu1  ;;  %v2733_v25 = vpop.f32.mrf.mxu2 }
 0x741   : > { %v2705_v30 = vadd.f32 %v3593_v47, %v2704_v13 }
 0x743   : > { %v2734_v40 = vadd.f32 %v2733_v25, %v2705_v30 }
 0x745   : > { %v2747_v58 = vadd.f32 %v2734_v40, %v4924_v59  ;;  %v4995_v40 = vld [vmem:[#allocation13 + $0x4] ss:$0 sm:$0xff] }
 0x747   : > { %2759 = vadd.xlane.f32.xlu0 %v2747_v58 }
 0x748   : > { %v2706_v55 = vpop.f32.mrf.mxu1  ;;  %v2735_v45 = vpop.f32.mrf.mxu2 }
 0x749   : > { %v2707_v56 = vadd.f32 %v3593_v47, %v2706_v55 }
 0x74b   : > { %v2736_v4 = vadd.f32 %v2735_v45, %v2707_v56  ;;  %v4997_v56 = vld [vmem:[#allocation13 + $0x5] ss:$0 sm:$0xff] }
 0x74d   : > { %v2748_v16 = vadd.f32 %v2736_v4, %v4921_v50 }
 0x74f   : > { %2761 = vadd.xlane.f32.xlu2 %v2748_v16 }
 0x77a   : > { %v2752_v17 = vpop.xlane.xlu1 %2751  ;;  %v2709_v14 = vpop.f32.mrf.mxu1 }
 0x77b   : > { %v2767_v12 = vmul.f32 %v2752_v17, %v4835_v8  ;;  %v2710_v5 = vadd.f32 %v3593_v47, %v2709_v14  ;;  %v2738_v26 = vpop.f32.mrf.mxu2 }
 0x77d   : > { %v4952_v63 = vsub.f32 %v2743_v20, %v2767_v12  ;;  %v2739_v10 = vadd.f32 %v2738_v26, %v2710_v5 }
 0x77f   : > { %v2783_v59 = vmul.f32 %v4952_v63, %v4952_v63  ;;  %v2749_v0 = vadd.f32 %v2739_v10, %v4935_v33 }
 0x781   : > { %2791 = vadd.xlane.f32.xlu2 %v2783_v59  ;;  %2763 = vadd.xlane.f32.xlu1 %v2749_v0 }
 0x782   : > { %v2754_v32 = vpop.xlane.xlu0 %2753  ;;  %v2711_v1 = vpop.f32.mrf.mxu1 }
 0x783   : > { %v2768_v50 = vmul.f32 %v2754_v32, %v4835_v8  ;;  %v2712_v31 = vadd.f32 %v3593_v47, %v2711_v1  ;;  %v2740_v27 = vpop.f32.mrf.mxu2 }
 0x785   : > { %v4958_v6 = vsub.f32 %v2744_v15, %v2768_v50  ;;  %v2741_v44 = vadd.f32 %v2740_v27, %v2712_v31 }
 0x787   : > { %v2750_v52 = vadd.f32 %v2741_v44, %v4938_v29  ;;  %v2784_v23 = vmul.f32 %v4958_v6, %v4958_v6 }
 0x789   : > { %2765 = vadd.xlane.f32.xlu0 %v2750_v52  ;;  %2793 = vadd.xlane.f32.xlu1 %v2784_v23 }
 0x7aa   : > { %v2756_v38 = vpop.xlane.xlu2 %2755 }
 0x7ab   : > { %v2769_v33 = vmul.f32 %v2756_v38, %v4835_v8 }
 0x7ad   : > { %v4964_v43 = vsub.f32 %v2745_v19, %v2769_v33 }
 0x7af   : > { %v2785_v7 = vmul.f32 %v4964_v43, %v4964_v43 }
 0x7b1   : > { %2795 = vadd.xlane.f32.xlu0 %v2785_v7 }
 0x7b2   : > { %v2758_v9 = vpop.xlane.xlu1 %2757 }
 0x7b3   : > { %v2770_v28 = vmul.f32 %v2758_v9, %v4835_v8 }
 0x7b5   : > { %v4969_v62 = vsub.f32 %v2746_v39, %v2770_v28 }
 0x7b7   : > { %v2786_v29 = vmul.f32 %v4969_v62, %v4969_v62 }
 0x7b9   : > { %2797 = vadd.xlane.f32.xlu2 %v2786_v29 }
 0x7ba   : > { %v2760_v24 = vpop.xlane.xlu0 %2759 }
 0x7bb   : > { %v2771_v35 = vmul.f32 %v2760_v24, %v4835_v8 }
 0x7bd   : > { %v4974_v18 = vsub.f32 %v2747_v58, %v2771_v35 }
 0x7bf   : > { %v2787_v22 = vmul.f32 %v4974_v18, %v4974_v18 }
 0x7c1   : > { %2799 = vadd.xlane.f32.xlu1 %v2787_v22 }
 0x7c2   : > { %v2762_v36 = vpop.xlane.xlu2 %2761 }
 0x7c3   : > { %v2772_v21 = vmul.f32 %v2762_v36, %v4835_v8 }
 0x7c5   : > { %v4979_v47 = vsub.f32 %v2748_v16, %v2772_v21 }
 0x7c7   : > { %v2788_v49 = vmul.f32 %v4979_v47, %v4979_v47 }
 0x7c9   : > { %2801 = vadd.xlane.f32.xlu0 %v2788_v49 }
 0x7f4   : > { %v2764_v60 = vpop.xlane.xlu1 %2763  ;;  %v2792_v41 = vpop.xlane.xlu2 %2791 }
 0x7f5   : > { %v2773_v11 = vmul.f32 %v2764_v60, %v4835_v8  ;;  %v2807_v20 = vmul.f32 %v2792_v41, %v4835_v8 }
 0x7f7   : > { %v4985_v54 = vsub.f32 %v2749_v0, %v2773_v11  ;;  %v2815_v51 = vadd.f32 1e-05, %v2807_v20 }
 0x7f9   : > { %3742 = vrsqrt.f32 %v2815_v51  ;;  %v2789_v57 = vmul.f32 %v4985_v54, %v4985_v54  ;;  %vm2829_vm14 = vweird.f32 %v2815_v51 }
 0x7fb   : > { %2803 = vadd.xlane.f32.xlu2 %v2789_v57 }
 0x7fc   : > { %v2766_v37 = vpop.xlane.xlu0 %2765  ;;  %v2794_v15 = vpop.xlane.xlu1 %2793 }
 0x7fd   : > { %v2774_v61 = vmul.f32 %v2766_v37, %v4835_v8  ;;  %v2808_v48 = vmul.f32 %v2794_v15, %v4835_v8 }
 0x7ff   : > { %v3743_v2 = vpop.eup %3742  ;;  %v4991_v34 = vsub.f32 %v2750_v52, %v2774_v61  ;;  %v2816_v19 = vadd.f32 1e-05, %v2808_v48 }
 0x800   : > { %v2824_v46 = vmul.f32 %v3743_v2, %v2815_v51  ;;  %vm2830_vm13 = vweird.f32 %v3743_v2 }
 0x801   : > { %3744 = vrsqrt.f32 %v2816_v19  ;;  %v2790_v42 = vmul.f32 %v4991_v34, %v4991_v34  ;;  %vm2831_vm15 = vmor %vm2829_vm14, %vm2830_vm13  ;;  %vm2839_vm1 = vweird.f32 %v2816_v19 }
 0x802   : > { %v2825_v3 = vmul.f32 %v3743_v2, %v2824_v46 }
 0x803   : > { %2805 = vadd.xlane.f32.xlu1 %v2790_v42 }
 0x804   : > { %v2826_v53 = vmul.f32 0.5, %v2825_v3 }
 0x806   : > { %v2827_v39 = vsub.f32 1.5, %v2826_v53 }
 0x807   : > { %v3745_v13 = vpop.eup %3744 }
 0x808   : > { %v2828_v25 = vmul.f32 %v3743_v2, %v2827_v39  ;;  %v2834_v30 = vmul.f32 %v3745_v13, %v2816_v19  ;;  %vm2840_vm0 = vweird.f32 %v3745_v13 }
 0x809   : > { %vm2841_vm2 = vmor %vm2839_vm1, %vm2840_vm0 }
 0x80a   : > { %v2832_v58 = vsel %vm2831_vm15, %v3743_v2, %v2828_v25  ;;  %v2835_v55 = vmul.f32 %v3745_v13, %v2834_v30 }
 0x80b   : > { %v2903_v45 = vmul.f32 %v2832_v58, %v4952_v63 }
 0x80c   : > { %v2836_v4 = vmul.f32 0.5, %v2835_v55 }
 0x80d   : > { %v2912_v16 = vmul.f32 %v4995_v40, %v2903_v45 }
 0x80e   : > { %v2837_v17 = vsub.f32 1.5, %v2836_v4 }
 0x80f   : > { %v2921_v14 = vadd.f32 %v4997_v56, %v2912_v16 }
 0x810   : > { %v2838_v12 = vmul.f32 %v3745_v13, %v2837_v17 }
 0x811   : > { %2929 = vst [vmem:[%s5004_s17] sm:$0xff] %v2921_v14 }
 0x812   : > { %v2842_v5 = vsel %vm2841_vm2, %v3745_v13, %v2838_v12 }
 0x813   : > { %v2904_v26 = vmul.f32 %v2842_v5, %v4958_v6 }
 0x815   : > { %v2913_v63 = vmul.f32 %v4995_v40, %v2904_v26 }
 0x817   : > { %v2922_v10 = vadd.f32 %v4997_v56, %v2913_v63 }
 0x819   : > { %2930 = vst [vmem:[%s5004_s17 + $0x8] sm:$0xff] %v2922_v10 }
 0x824   : > { %v2796_v59 = vpop.xlane.xlu0 %2795 }
 0x825   : > { %v2809_v0 = vmul.f32 %v2796_v59, %v4835_v8 }
 0x827   : > { %v2817_v32 = vadd.f32 1e-05, %v2809_v0 }
 0x829   : > { %3746 = vrsqrt.f32 %v2817_v32  ;;  %vm2849_vm4 = vweird.f32 %v2817_v32 }
 0x82c   : > { %v2798_v1 = vpop.xlane.xlu2 %2797 }
 0x82d   : > { %v2810_v50 = vmul.f32 %v2798_v1, %v4835_v8 }
 0x82f   : > { %v3747_v31 = vpop.eup %3746  ;;  %v2818_v27 = vadd.f32 1e-05, %v2810_v50 }
 0x830   : > { %v2844_v44 = vmul.f32 %v3747_v31, %v2817_v32  ;;  %vm2850_vm3 = vweird.f32 %v3747_v31 }
 0x831   : > { %3748 = vrsqrt.f32 %v2818_v27  ;;  %vm2851_vm5 = vmor %vm2849_vm4, %vm2850_vm3  ;;  %vm2859_vm7 = vweird.f32 %v2818_v27 }
 0x832   : > { %v2845_v52 = vmul.f32 %v3747_v31, %v2844_v44 }
 0x834   : > { %v2846_v23 = vmul.f32 0.5, %v2845_v52  ;;  %v2800_v6 = vpop.xlane.xlu1 %2799 }
 0x835   : > { %v2811_v38 = vmul.f32 %v2800_v6, %v4835_v8 }
 0x836   : > { %v2847_v33 = vsub.f32 1.5, %v2846_v23 }
 0x837   : > { %v3749_v7 = vpop.eup %3748  ;;  %v2819_v9 = vadd.f32 1e-05, %v2811_v38 }
 0x838   : > { %v2848_v28 = vmul.f32 %v3747_v31, %v2847_v33  ;;  %v2854_v29 = vmul.f32 %v3749_v7, %v2818_v27  ;;  %vm2860_vm6 = vweird.f32 %v3749_v7 }
 0x839   : > { %3750 = vrsqrt.f32 %v2819_v9  ;;  %vm2861_vm8 = vmor %vm2859_vm7, %vm2860_vm6  ;;  %vm2869_vm10 = vweird.f32 %v2819_v9 }
 0x83a   : > { %v2852_v24 = vsel %vm2851_vm5, %v3747_v31, %v2848_v28  ;;  %v2855_v35 = vmul.f32 %v3749_v7, %v2854_v29 }
 0x83b   : > { %v2905_v22 = vmul.f32 %v2852_v24, %v4964_v43 }
 0x83c   : > { %v2856_v36 = vmul.f32 0.5, %v2855_v35  ;;  %v2802_v21 = vpop.xlane.xlu0 %2801 }
 0x83d   : > { %v2914_v49 = vmul.f32 %v4995_v40, %v2905_v22  ;;  %v2812_v60 = vmul.f32 %v2802_v21, %v4835_v8 }
 0x83e   : > { %v2857_v41 = vsub.f32 1.5, %v2856_v36 }
 0x83f   : > { %v3751_v11 = vpop.eup %3750  ;;  %v2923_v20 = vadd.f32 %v4997_v56, %v2914_v49  ;;  %v2820_v51 = vadd.f32 1e-05, %v2812_v60 }
 0x840   : > { %v2858_v57 = vmul.f32 %v3749_v7, %v2857_v41  ;;  %v2864_v37 = vmul.f32 %v3751_v11, %v2819_v9  ;;  %vm2870_vm9 = vweird.f32 %v3751_v11 }
 0x841   : > { %2931 = vst [vmem:[%s5004_s17 + $0x10] sm:$0xff] %v2923_v20  ;;  %3752 = vrsqrt.f32 %v2820_v51  ;;  %vm2871_vm11 = vmor %vm2869_vm10, %vm2870_vm9  ;;  %vm2879_vm13 = vweird.f32 %v2820_v51 }
 0x842   : > { %v2862_v43 = vsel %vm2861_vm8, %v3749_v7, %v2858_v57  ;;  %v2865_v15 = vmul.f32 %v3751_v11, %v2864_v37 }
 0x843   : > { %v2906_v61 = vmul.f32 %v2862_v43, %v4969_v62 }
 0x844   : > { %v2866_v48 = vmul.f32 0.5, %v2865_v15 }
 0x845   : > { %v2915_v2 = vmul.f32 %v4995_v40, %v2906_v61 }
 0x846   : > { %v2867_v19 = vsub.f32 1.5, %v2866_v48 }
 0x847   : > { %v3753_v46 = vpop.eup %3752  ;;  %v2924_v42 = vadd.f32 %v4997_v56, %v2915_v2 }
 0x848   : > { %v2868_v3 = vmul.f32 %v3751_v11, %v2867_v19  ;;  %v2874_v53 = vmul.f32 %v3753_v46, %v2820_v51  ;;  %vm2880_vm12 = vweird.f32 %v3753_v46 }
 0x849   : > { %2932 = vst [vmem:[%s5004_s17 + $0x18] sm:$0xff] %v2924_v42  ;;  %vm2881_vm14 = vmor %vm2879_vm13, %vm2880_vm12 }
 0x84a   : > { %v2872_v39 = vsel %vm2871_vm11, %v3751_v11, %v2868_v3  ;;  %v2875_v13 = vmul.f32 %v3753_v46, %v2874_v53 }
 0x84b   : > { %v2907_v25 = vmul.f32 %v2872_v39, %v4974_v18 }
 0x84c   : > { %v2876_v62 = vmul.f32 0.5, %v2875_v13 }
 0x84d   : > { %v2916_v30 = vmul.f32 %v4995_v40, %v2907_v25 }
 0x84e   : > { %v2877_v58 = vsub.f32 1.5, %v2876_v62 }
 0x84f   : > { %v2925_v55 = vadd.f32 %v4997_v56, %v2916_v30 }
 0x850   : > { %v2878_v45 = vmul.f32 %v3753_v46, %v2877_v58 }
 0x851   : > { %2933 = vst [vmem:[%s5004_s17 + $0x20] sm:$0xff] %v2925_v55 }
 0x852   : > { %v2882_v4 = vsel %vm2881_vm14, %v3753_v46, %v2878_v45 }
 0x853   : > { %v2908_v16 = vmul.f32 %v2882_v4, %v4979_v47 }
 0x855   : > { %v2917_v17 = vmul.f32 %v4995_v40, %v2908_v16 }
 0x857   : > { %v2926_v14 = vadd.f32 %v4997_v56, %v2917_v17 }
 0x859   : > { %2934 = vst [vmem:[%s5004_s17 + $0x28] sm:$0xff] %v2926_v14 }
 0x86e   : > { %v2804_v18 = vpop.xlane.xlu2 %2803 }
 0x86f   : > { %v2813_v12 = vmul.f32 %v2804_v18, %v4835_v8 }
 0x871   : > { %v2821_v5 = vadd.f32 1e-05, %v2813_v12 }
 0x873   : > { %3754 = vrsqrt.f32 %v2821_v5  ;;  %vm2889_vm0 = vweird.f32 %v2821_v5 }
 0x876   : > { %v2806_v26 = vpop.xlane.xlu1 %2805 }
 0x877   : > { %v2814_v63 = vmul.f32 %v2806_v26, %v4835_v8 }
 0x879   : > { %v3755_v10 = vpop.eup %3754  ;;  %v2822_v59 = vadd.f32 1e-05, %v2814_v63 }
 0x87a   : > { %v2884_v0 = vmul.f32 %v3755_v10, %v2821_v5  ;;  %vm2890_vm15 = vweird.f32 %v3755_v10 }
 0x87b   : > { %3756 = vrsqrt.f32 %v2822_v59  ;;  %vm2891_vm1 = vmor %vm2889_vm0, %vm2890_vm15  ;;  %vm2899_vm3 = vweird.f32 %v2822_v59 }
 0x87c   : > { %v2885_v32 = vmul.f32 %v3755_v10, %v2884_v0 }
 0x87e   : > { %v2886_v47 = vmul.f32 0.5, %v2885_v32 }
 0x880   : > { %v2887_v1 = vsub.f32 1.5, %v2886_v47 }
 0x881   : > { %v3757_v50 = vpop.eup %3756 }
 0x882   : > { %v2888_v31 = vmul.f32 %v3755_v10, %v2887_v1  ;;  %v2894_v27 = vmul.f32 %v3757_v50, %v2822_v59  ;;  %vm2900_vm2 = vweird.f32 %v3757_v50 }
 0x883   : > { %vm2901_vm4 = vmor %vm2899_vm3, %vm2900_vm2 }
 0x884   : > { %v2892_v44 = vsel %vm2891_vm1, %v3755_v10, %v2888_v31  ;;  %v2895_v52 = vmul.f32 %v3757_v50, %v2894_v27 }
 0x885   : > { %v2909_v8 = vmul.f32 %v2892_v44, %v4985_v54 }
 0x886   : > { %v2896_v23 = vmul.f32 0.5, %v2895_v52 }
 0x887   : > { %v2918_v6 = vmul.f32 %v4995_v40, %v2909_v8 }
 0x888   : > { %v2897_v38 = vsub.f32 1.5, %v2896_v23 }
 0x889   : > { %v2927_v33 = vadd.f32 %v4997_v56, %v2918_v6 }
 0x88a   : > { %v2898_v7 = vmul.f32 %v3757_v50, %v2897_v38 }
 0x88b   : > { %2935 = vst [vmem:[%s5004_s17 + $0x30] sm:$0xff] %v2927_v33 }
 0x88c   : > { %v2902_v54 = vsel %vm2901_vm4, %v3757_v50, %v2898_v7 }
 0x88d   : > { %v2910_v9 = vmul.f32 %v2902_v54, %v4991_v34 }
 0x88f   : > { %v2919_v28 = vmul.f32 %v4995_v40, %v2910_v9 }
 0x891   : > { %v2928_v29 = vadd.f32 %v4997_v56, %v2919_v28 }
 0x893   : > { %2936 = vst [vmem:[%s5004_s17 + $0x38] sm:$0xff] %v2928_v29 }
 0x894   : > { %4003 = shalt.err (!%p4000_p9)
}
 0x895   : > { %s4072_s11 = smov 128   ;;  %s4073_s15 = smov 8  }
 0x896   : > { %3497 = dma.vmem_to_hbm [thread:$0]  (%p4219_p4), %s2951_s21, 1024, %s2953_s12, %s2938_s16, %s4072_s11, %s4072_s11, %s4073_s15  }
 0x897 PF: > { %s2967_s17 = sand.u32 1, %s4042_s27   ;;  %p5101_p10 = scmp.ge.s32.totalorder %s4054_s30, 2 }
 0x898   : > { %s2968_s25 = scalar_lea.sflag [#allocation4], %s2967_s17 }
 0x899   : > { %p3523_p13 = pnand %p5101_p10, %p4223_p6 }
 0x89b   : > { %p3524_p11 = pneg %p3523_p13 }
 0x89d   : > { %4037 = dma.done.wait (%p3524_p11), %s2968_s25, 1024  }
 0x89e   : > { %4039 = vsyncadd (%p3524_p11), %s2968_s25, 4294966272  ;;  %p24_p0 = scmp.ge.s32.totalorder %s4193_s20, 4   ;;  %s5102_s27 = smov %s4046_s28 }
 0x89f   : > { %s5103_s28 = smov %s4050_s29  ;;  %s5104_s29 = smov %s4204_s22 }
 0x8a0   : > { %s5105_s30 = smov %s4193_s20  ;;  %26 = sbr.rel (!%p24_p0) target bundleno = 12 (0xc), region = 121 }
 0x8a5   :  { %2974 = vsyncpa [#allocation3], 1 }
 0x8a6   :  { %2976 = vsyncpa [#allocation3 + $0x1], 1 }
 0x8a7   :  { %2977 = vsyncpa [#allocation6], 1 }
 0x8a8   :  { %2978 = vsyncpa [#allocation9], 1 }
 0x8a9   :  { %2979 = vsyncpa [#allocation12], 1 }
 0x8aa   :  { %2980 = vsyncpa [#allocation4], 1 }
 0x8ab   :  { %2982 = vsyncpa [#allocation4 + $0x1], 1 }

</bundles_post_ra>
